<compile_context>
chip_gen: v5e
topology: v5e:2x2
jax: 0.10.0
libtpu: 0.0.40
codegen_flags: <defaults>
</compile_context>

<pallas_src>
import jax
import jax.numpy as jnp
from jax.experimental import pallas as pl
from jax.experimental.pallas import tpu as pltpu


# ---------------------------------------------------------------------------
# Kernel
# ---------------------------------------------------------------------------
def mv_lstm_kernel(x_ref, wih1_ref, whh1_ref, b1_ref, w2_ref, b2_ref,
                   wlin_ref, blin_ref, out_ref):
    T = wlin_ref.shape[0]          # seq_len
    HP = wlin_ref.shape[2]         # padded per-gate width (128 lanes)
    BP = out_ref.shape[0]          # padded batch (multiple of 8 sublanes)
    G = 4 * HP

    # --- hoisted layer-1 input projection: one big matmul, bias folded in ----
    xproj = (jnp.dot(x_ref[...], wih1_ref[...],
                     preferred_element_type=jnp.float32)
             + b1_ref[...])                                # (T*BP, 4*HP)

    # --- loop-invariant operands, loaded / broadcast exactly once ------------
    whh1 = whh1_ref[...]                                   # (HP,   4*HP)
    w2 = w2_ref[...]                                       # (2*HP, 4*HP)
    b2 = jnp.broadcast_to(b2_ref[...], (BP, G))            # (BP,   4*HP)
    wlin = wlin_ref[...]                                   # (T, 1, HP)

    def act(gates):
        # Lane-aligned gate blocks: [i | f | o | g] at offsets 0/HP/2HP/3HP.
        sig = jax.nn.sigmoid(gates[:, 0:3 * HP])           # one EUP region (i,f,o)
        i = sig[:, 0:HP]
        f = sig[:, HP:2 * HP]
        o = sig[:, 2 * HP:3 * HP]
        g = jnp.tanh(gates[:, 3 * HP:4 * HP])
        return i, f, o, g

    zero = jnp.zeros((BP, HP), jnp.float32)
    h1, c1, h2, c2, acc = zero, zero, zero, zero, zero     # init_hidden()

    # Fully unrolled time loop: T is small and static, so all indexing below is
    # static and MXU/EUP/VPU work of adjacent steps can overlap.
    for t in range(T):
        # ---- layer 1: recurrent matmul only (input part precomputed) -------
        g1 = xproj[t * BP:(t + 1) * BP, :] + jnp.dot(
            h1, whh1, preferred_element_type=jnp.float32)
        i1, f1, o1, gg1 = act(g1)
        c1 = f1 * c1 + i1 * gg1
        h1 = o1 * jnp.tanh(c1)

        # ---- layer 2: fused [h1 | h2] @ [W_ih2 ; W_hh2] ---------------------
        h12 = jnp.concatenate([h1, h2], axis=1)            # (BP, 2*HP), aligned
        g2 = jnp.dot(h12, w2, preferred_element_type=jnp.float32) + b2
        i2, f2, o2, gg2 = act(g2)
        c2 = f2 * c2 + i2 * gg2
        h2 = o2 * jnp.tanh(c2)

        # ---- deferred Linear head: elementwise accumulate only --------------
        acc = acc + h2 * wlin[t]                           # (BP, HP), VPU only

    # One cross-lane reduction + one store at the very end.
    out_ref[...] = jnp.sum(acc, axis=1, keepdims=True) + blin_ref[...]


# ---------------------------------------------------------------------------
# Host-side packing helpers (PyTorch layout -> lane-aligned kernel layout)
# ---------------------------------------------------------------------------
def _pack_gate_w(w, hp):
    """(4H, K) PyTorch gate order [i,f,g,o] -> (K, 4*hp) kernel order [i,f,o,g]."""
    four_h, _ = w.shape
    h = four_h // 4
    blocks = [w[0:h], w[h:2 * h], w[3 * h:4 * h], w[2 * h:3 * h]]   # i, f, o, g
    out = jnp.zeros((w.shape[1], 4 * hp), jnp.float32)
    for n, blk in enumerate(blocks):
        out = out.at[:, n * hp:n * hp + h].set(blk.T)
    return out


def _pack_gate_b(b_ih, b_hh, hp):
    """Combined bias, reordered to [i,f,o,g], lane padded -> (1, 4*hp)."""
    b = b_ih + b_hh
    h = b.shape[0] // 4
    blocks = [b[0:h], b[h:2 * h], b[3 * h:4 * h], b[2 * h:3 * h]]
    out = jnp.zeros((1, 4 * hp), jnp.float32)
    for n, blk in enumerate(blocks):
        out = out.at[0, n * hp:n * hp + h].set(blk)
    return out


def _pad_rows(w, hp):
    out = jnp.zeros((hp, w.shape[1]), jnp.float32)
    return out.at[:w.shape[0]].set(w)


# ---------------------------------------------------------------------------
# Wrapper (same forward semantics as the PyTorch module, hidden zero-inited)
# ---------------------------------------------------------------------------
def mv_lstm_forward(x, w_ih0, w_hh0, b_ih0, b_hh0,
                    w_ih1, w_hh1, b_ih1, b_hh1, w_lin, b_lin, hp=128):
    """x: (B, T, F) batch-first, like the PyTorch module. Returns (B, 1)."""
    B, T, F = x.shape
    H = w_hh0.shape[1]
    assert H <= hp

    # ---- pack weights into lane-aligned padded layout -----------------------
    wih1_p = _pack_gate_w(w_ih0, hp)                       # (F,   4*hp)
    whh1_p = _pad_rows(_pack_gate_w(w_hh0, hp), hp)        # (hp,  4*hp)
    b1_p = _pack_gate_b(b_ih0, b_hh0, hp)                  # (1,   4*hp)
    wih2_p = _pad_rows(_pack_gate_w(w_ih1, hp), hp)        # (hp,  4*hp)
    whh2_p = _pad_rows(_pack_gate_w(w_hh1, hp), hp)        # (hp,  4*hp)
    w2_p = jnp.concatenate([wih2_p, whh2_p], axis=0)       # (2hp, 4*hp)
    b2_p = _pack_gate_b(b_ih1, b_hh1, hp)                  # (1,   4*hp)
    wlin_p = jnp.zeros((T, 1, hp), jnp.float32).at[:, 0, :H].set(
        w_lin.reshape(T, H))                               # PyTorch flatten order
    blin_p = b_lin.reshape(1, 1).astype(jnp.float32)

    # ---- time-major input, batch padded to a multiple of 8 sublanes ---------
    BP = ((B + 7) // 8) * 8
    x_tm = jnp.transpose(x, (1, 0, 2)).astype(jnp.float32)            # (T, B, F)
    x_pad = jnp.zeros((T, BP, F), jnp.float32).at[:, :B, :].set(x_tm)
    x2d = x_pad.reshape(T * BP, F)                                    # (T*BP, F)

    vmem = pl.BlockSpec(memory_space=pltpu.MemorySpace.VMEM)
    out = pl.pallas_call(
        mv_lstm_kernel,
        out_shape=jax.ShapeDtypeStruct((BP, 1), jnp.float32),
        in_specs=[vmem] * 8,
        out_specs=vmem,
    )(x2d, wih1_p, whh1_p, b1_p, w2_p, b2_p, wlin_p, blin_p)
    return out[:B]


# ---------------------------------------------------------------------------
# Pure-JAX reference (mirrors torch.nn.LSTM(num_layers=2) + Linear)
# ---------------------------------------------------------------------------
def mv_lstm_reference(x, w_ih0, w_hh0, b_ih0, b_hh0,
                      w_ih1, w_hh1, b_ih1, b_hh1, w_lin, b_lin):
    B, T, _ = x.shape
    H = w_hh0.shape[1]

    def cell(x_t, h, c, w_ih, w_hh, b_ih, b_hh):
        g = x_t @ w_ih.T + h @ w_hh.T + b_ih + b_hh
        i = jax.nn.sigmoid(g[:, 0:H])
        f = jax.nn.sigmoid(g[:, H:2 * H])
        gg = jnp.tanh(g[:, 2 * H:3 * H])
        o = jax.nn.sigmoid(g[:, 3 * H:4 * H])
        c = f * c + i * gg
        h = o * jnp.tanh(c)
        return h, c

    h1 = c1 = h2 = c2 = jnp.zeros((B, H), jnp.float32)
    outs = []
    for t in range(T):
        h1, c1 = cell(x[:, t, :], h1, c1, w_ih0, w_hh0, b_ih0, b_hh0)
        h2, c2 = cell(h1, h2, c2, w_ih1, w_hh1, b_ih1, b_hh1)
        outs.append(h2)
    flat = jnp.stack(outs, axis=1).reshape(B, T * H)       # PyTorch .view order
    return flat @ w_lin.T + b_lin                          # (B, 1)


if __name__ == "__main__":
    # Small shapes consistent with the module: n_hidden is fixed at 30.
    B, T, F, H = 4, 8, 16, 30

    key = jax.random.PRNGKey(0)
    ks = jax.random.split(key, 12)

    def u(kk, shape, bound):
        return jax.random.uniform(kk, shape, jnp.float32, -bound, bound)

    k_lstm = 1.0 / (H ** 0.5)          # PyTorch LSTM uniform init bound
    k_lin = 1.0 / ((T * H) ** 0.5)     # PyTorch Linear uniform init bound

    # Layer 1 (input_size=F), layer 2 (input_size=H) -- PyTorch parameter layout.
    w_ih0 = u(ks[0], (4 * H, F), k_lstm)
    w_hh0 = u(ks[1], (4 * H, H), k_lstm)
    b_ih0 = u(ks[2], (4 * H,), k_lstm)
    b_hh0 = u(ks[3], (4 * H,), k_lstm)
    w_ih1 = u(ks[4], (4 * H, H), k_lstm)
    w_hh1 = u(ks[5], (4 * H, H), k_lstm)
    b_ih1 = u(ks[6], (4 * H,), k_lstm)
    b_hh1 = u(ks[7], (4 * H,), k_lstm)
    # Linear(H*T, 1)
    w_lin = u(ks[8], (1, T * H), k_lin)
    b_lin = u(ks[9], (1,), k_lin)
    # Input batch (batch_first, like the PyTorch module).
    x = jax.random.normal(ks[10], (B, T, F), jnp.float32)

    out = mv_lstm_forward(x, w_ih0, w_hh0, b_ih0, b_hh0,
                          w_ih1, w_hh1, b_ih1, b_hh1, w_lin, b_lin)
    out = jax.block_until_ready(out)

    ref = mv_lstm_reference(x, w_ih0, w_hh0, b_ih0, b_hh0,
                            w_ih1, w_hh1, b_ih1, b_hh1, w_lin, b_lin)
    assert out.shape == (B, 1)
    assert jnp.allclose(out, ref, atol=1e-3, rtol=1e-3), (out, ref)

    # TODO(synk): the PyTorch module carries (h_n, c_n) in self.hidden across calls;
    # here the hidden state is zero-initialized each call (== init_hidden) and not returned.
    print("KERNEL_OK")
</pallas_src>

<mosaic_0001>
module attributes {stable_mosaic.version = 11 : i64} {
  func.func @mv_lstm_kernel(%arg0: memref<64x16xf32, #tpu.memory_space<vmem>>, %arg1: memref<16x512xf32, #tpu.memory_space<vmem>>, %arg2: memref<128x512xf32, #tpu.memory_space<vmem>>, %arg3: memref<1x512xf32, #tpu.memory_space<vmem>>, %arg4: memref<256x512xf32, #tpu.memory_space<vmem>>, %arg5: memref<1x512xf32, #tpu.memory_space<vmem>>, %arg6: memref<8x1x128xf32, #tpu.memory_space<vmem>>, %arg7: memref<1x1xf32, #tpu.memory_space<vmem>>, %arg8: memref<8x1xf32, #tpu.memory_space<vmem>>) attributes {dimension_semantics = [], scalar_prefetch = 0 : i64, scratch_operands = 0 : i64, tpu.core_type = #tpu.core_type<tc>} {
    %c0 = arith.constant 0 : index
    %c0_0 = arith.constant 0 : index
    %0 = vector.load %arg0[%c0, %c0_0] : memref<64x16xf32, #tpu.memory_space<vmem>>, vector<64x16xf32>
    %c0_1 = arith.constant 0 : index
    %c0_2 = arith.constant 0 : index
    %1 = vector.load %arg1[%c0_1, %c0_2] : memref<16x512xf32, #tpu.memory_space<vmem>>, vector<16x512xf32>
    %cst = arith.constant dense<0.000000e+00> : vector<64x512xf32>
    %2 = tpu.matmul %0, %1, %cst {dimension_numbers = #tpu.dot_dimension_numbers<[1], [0], [0], [1], [0, 0, 1, 1], [], []>} : vector<64x16xf32>, vector<16x512xf32>, vector<64x512xf32> -> vector<64x512xf32>
    %c0_3 = arith.constant 0 : index
    %c0_4 = arith.constant 0 : index
    %3 = vector.load %arg3[%c0_3, %c0_4] : memref<1x512xf32, #tpu.memory_space<vmem>>, vector<1x512xf32>
    %4 = vector.broadcast %3 : vector<1x512xf32> to vector<64x512xf32>
    %5 = arith.addf %2, %4 : vector<64x512xf32>
    %c0_5 = arith.constant 0 : index
    %c0_6 = arith.constant 0 : index
    %6 = vector.load %arg2[%c0_5, %c0_6] : memref<128x512xf32, #tpu.memory_space<vmem>>, vector<128x512xf32>
    %c0_7 = arith.constant 0 : index
    %c0_8 = arith.constant 0 : index
    %7 = vector.load %arg4[%c0_7, %c0_8] : memref<256x512xf32, #tpu.memory_space<vmem>>, vector<256x512xf32>
    %c0_9 = arith.constant 0 : index
    %c0_10 = arith.constant 0 : index
    %8 = vector.load %arg5[%c0_9, %c0_10] : memref<1x512xf32, #tpu.memory_space<vmem>>, vector<1x512xf32>
    %9 = vector.shape_cast %8 : vector<1x512xf32> to vector<1x512xf32>
    %10 = vector.broadcast %9 : vector<1x512xf32> to vector<8x512xf32>
    %c0_11 = arith.constant 0 : index
    %c0_12 = arith.constant 0 : index
    %c0_13 = arith.constant 0 : index
    %11 = vector.load %arg6[%c0_11, %c0_12, %c0_13] : memref<8x1x128xf32, #tpu.memory_space<vmem>>, vector<8x1x128xf32>
    %cst_14 = arith.constant 0.000000e+00 : f32
    %12 = vector.broadcast %cst_14 : f32 to vector<8x128xf32>
    %13 = vector.extract_strided_slice %5 {offsets = [0, 0], sizes = [8, 512], strides = [1, 1]} : vector<64x512xf32> to vector<8x512xf32>
    %cst_15 = arith.constant dense<0.000000e+00> : vector<8x512xf32>
    %14 = tpu.matmul %12, %6, %cst_15 {dimension_numbers = #tpu.dot_dimension_numbers<[1], [0], [0], [1], [0, 0, 1, 1], [], []>} : vector<8x128xf32>, vector<128x512xf32>, vector<8x512xf32> -> vector<8x512xf32>
    %15 = arith.addf %13, %14 : vector<8x512xf32>
    %16 = vector.extract_strided_slice %15 {offsets = [0, 0], sizes = [8, 384], strides = [1, 1]} : vector<8x512xf32> to vector<8x384xf32>
    %17 = arith.negf %16 : vector<8x384xf32>
    %18 = math.exp %17 : vector<8x384xf32>
    %cst_16 = arith.constant 1.000000e+00 : f32
    %19 = vector.broadcast %cst_16 : f32 to vector<8x384xf32>
    %20 = arith.addf %19, %18 : vector<8x384xf32>
    %21 = arith.divf %19, %20 : vector<8x384xf32>
    %22 = vector.extract_strided_slice %21 {offsets = [0, 0], sizes = [8, 128], strides = [1, 1]} : vector<8x384xf32> to vector<8x128xf32>
    %23 = vector.extract_strided_slice %21 {offsets = [0, 128], sizes = [8, 128], strides = [1, 1]} : vector<8x384xf32> to vector<8x128xf32>
    %24 = vector.extract_strided_slice %21 {offsets = [0, 256], sizes = [8, 128], strides = [1, 1]} : vector<8x384xf32> to vector<8x128xf32>
    %25 = vector.extract_strided_slice %15 {offsets = [0, 384], sizes = [8, 128], strides = [1, 1]} : vector<8x512xf32> to vector<8x128xf32>
    %26 = math.tanh %25 : vector<8x128xf32>
    %27 = arith.mulf %23, %12 : vector<8x128xf32>
    %28 = arith.mulf %22, %26 : vector<8x128xf32>
    %29 = arith.addf %27, %28 : vector<8x128xf32>
    %30 = math.tanh %29 : vector<8x128xf32>
    %31 = arith.mulf %24, %30 : vector<8x128xf32>
    %32 = tpu.concatenate %31, %12 in 1 : vector<8x128xf32>, vector<8x128xf32> -> vector<8x256xf32>
    %cst_17 = arith.constant dense<0.000000e+00> : vector<8x512xf32>
    %33 = tpu.matmul %32, %7, %cst_17 {dimension_numbers = #tpu.dot_dimension_numbers<[1], [0], [0], [1], [0, 0, 1, 1], [], []>} : vector<8x256xf32>, vector<256x512xf32>, vector<8x512xf32> -> vector<8x512xf32>
    %34 = arith.addf %33, %10 : vector<8x512xf32>
    %35 = vector.extract_strided_slice %34 {offsets = [0, 0], sizes = [8, 384], strides = [1, 1]} : vector<8x512xf32> to vector<8x384xf32>
    %36 = arith.negf %35 : vector<8x384xf32>
    %37 = math.exp %36 : vector<8x384xf32>
    %cst_18 = arith.constant 1.000000e+00 : f32
    %38 = vector.broadcast %cst_18 : f32 to vector<8x384xf32>
    %39 = arith.addf %38, %37 : vector<8x384xf32>
    %40 = arith.divf %38, %39 : vector<8x384xf32>
    %41 = vector.extract_strided_slice %40 {offsets = [0, 0], sizes = [8, 128], strides = [1, 1]} : vector<8x384xf32> to vector<8x128xf32>
    %42 = vector.extract_strided_slice %40 {offsets = [0, 128], sizes = [8, 128], strides = [1, 1]} : vector<8x384xf32> to vector<8x128xf32>
    %43 = vector.extract_strided_slice %40 {offsets = [0, 256], sizes = [8, 128], strides = [1, 1]} : vector<8x384xf32> to vector<8x128xf32>
    %44 = vector.extract_strided_slice %34 {offsets = [0, 384], sizes = [8, 128], strides = [1, 1]} : vector<8x512xf32> to vector<8x128xf32>
    %45 = math.tanh %44 : vector<8x128xf32>
    %46 = arith.mulf %42, %12 : vector<8x128xf32>
    %47 = arith.mulf %41, %45 : vector<8x128xf32>
    %48 = arith.addf %46, %47 : vector<8x128xf32>
    %49 = math.tanh %48 : vector<8x128xf32>
    %50 = arith.mulf %43, %49 : vector<8x128xf32>
    %51 = vector.extract_strided_slice %11 {offsets = [0, 0, 0], sizes = [1, 1, 128], strides = [1, 1, 1]} : vector<8x1x128xf32> to vector<1x1x128xf32>
    %52 = vector.shape_cast %51 : vector<1x1x128xf32> to vector<1x128xf32>
    %53 = vector.broadcast %52 : vector<1x128xf32> to vector<8x128xf32>
    %54 = arith.mulf %50, %53 : vector<8x128xf32>
    %55 = arith.addf %12, %54 : vector<8x128xf32>
    %56 = vector.extract_strided_slice %5 {offsets = [8, 0], sizes = [8, 512], strides = [1, 1]} : vector<64x512xf32> to vector<8x512xf32>
    %cst_19 = arith.constant dense<0.000000e+00> : vector<8x512xf32>
    %57 = tpu.matmul %31, %6, %cst_19 {dimension_numbers = #tpu.dot_dimension_numbers<[1], [0], [0], [1], [0, 0, 1, 1], [], []>} : vector<8x128xf32>, vector<128x512xf32>, vector<8x512xf32> -> vector<8x512xf32>
    %58 = arith.addf %56, %57 : vector<8x512xf32>
    %59 = vector.extract_strided_slice %58 {offsets = [0, 0], sizes = [8, 384], strides = [1, 1]} : vector<8x512xf32> to vector<8x384xf32>
    %60 = arith.negf %59 : vector<8x384xf32>
    %61 = math.exp %60 : vector<8x384xf32>
    %cst_20 = arith.constant 1.000000e+00 : f32
    %62 = vector.broadcast %cst_20 : f32 to vector<8x384xf32>
    %63 = arith.addf %62, %61 : vector<8x384xf32>
    %64 = arith.divf %62, %63 : vector<8x384xf32>
    %65 = vector.extract_strided_slice %64 {offsets = [0, 0], sizes = [8, 128], strides = [1, 1]} : vector<8x384xf32> to vector<8x128xf32>
    %66 = vector.extract_strided_slice %64 {offsets = [0, 128], sizes = [8, 128], strides = [1, 1]} : vector<8x384xf32> to vector<8x128xf32>
    %67 = vector.extract_strided_slice %64 {offsets = [0, 256], sizes = [8, 128], strides = [1, 1]} : vector<8x384xf32> to vector<8x128xf32>
    %68 = vector.extract_strided_slice %58 {offsets = [0, 384], sizes = [8, 128], strides = [1, 1]} : vector<8x512xf32> to vector<8x128xf32>
    %69 = math.tanh %68 : vector<8x128xf32>
    %70 = arith.mulf %66, %29 : vector<8x128xf32>
    %71 = arith.mulf %65, %69 : vector<8x128xf32>
    %72 = arith.addf %70, %71 : vector<8x128xf32>
    %73 = math.tanh %72 : vector<8x128xf32>
    %74 = arith.mulf %67, %73 : vector<8x128xf32>
    %75 = tpu.concatenate %74, %50 in 1 : vector<8x128xf32>, vector<8x128xf32> -> vector<8x256xf32>
    %cst_21 = arith.constant dense<0.000000e+00> : vector<8x512xf32>
    %76 = tpu.matmul %75, %7, %cst_21 {dimension_numbers = #tpu.dot_dimension_numbers<[1], [0], [0], [1], [0, 0, 1, 1], [], []>} : vector<8x256xf32>, vector<256x512xf32>, vector<8x512xf32> -> vector<8x512xf32>
    %77 = arith.addf %76, %10 : vector<8x512xf32>
    %78 = vector.extract_strided_slice %77 {offsets = [0, 0], sizes = [8, 384], strides = [1, 1]} : vector<8x512xf32> to vector<8x384xf32>
    %79 = arith.negf %78 : vector<8x384xf32>
    %80 = math.exp %79 : vector<8x384xf32>
    %cst_22 = arith.constant 1.000000e+00 : f32
    %81 = vector.broadcast %cst_22 : f32 to vector<8x384xf32>
    %82 = arith.addf %81, %80 : vector<8x384xf32>
    %83 = arith.divf %81, %82 : vector<8x384xf32>
    %84 = vector.extract_strided_slice %83 {offsets = [0, 0], sizes = [8, 128], strides = [1, 1]} : vector<8x384xf32> to vector<8x128xf32>
    %85 = vector.extract_strided_slice %83 {offsets = [0, 128], sizes = [8, 128], strides = [1, 1]} : vector<8x384xf32> to vector<8x128xf32>
    %86 = vector.extract_strided_slice %83 {offsets = [0, 256], sizes = [8, 128], strides = [1, 1]} : vector<8x384xf32> to vector<8x128xf32>
    %87 = vector.extract_strided_slice %77 {offsets = [0, 384], sizes = [8, 128], strides = [1, 1]} : vector<8x512xf32> to vector<8x128xf32>
    %88 = math.tanh %87 : vector<8x128xf32>
    %89 = arith.mulf %85, %48 : vector<8x128xf32>
    %90 = arith.mulf %84, %88 : vector<8x128xf32>
    %91 = arith.addf %89, %90 : vector<8x128xf32>
    %92 = math.tanh %91 : vector<8x128xf32>
    %93 = arith.mulf %86, %92 : vector<8x128xf32>
    %94 = vector.extract_strided_slice %11 {offsets = [1, 0, 0], sizes = [1, 1, 128], strides = [1, 1, 1]} : vector<8x1x128xf32> to vector<1x1x128xf32>
    %95 = vector.shape_cast %94 : vector<1x1x128xf32> to vector<1x128xf32>
    %96 = vector.broadcast %95 : vector<1x128xf32> to vector<8x128xf32>
    %97 = arith.mulf %93, %96 : vector<8x128xf32>
    %98 = arith.addf %55, %97 : vector<8x128xf32>
    %99 = vector.extract_strided_slice %5 {offsets = [16, 0], sizes = [8, 512], strides = [1, 1]} : vector<64x512xf32> to vector<8x512xf32>
    %cst_23 = arith.constant dense<0.000000e+00> : vector<8x512xf32>
    %100 = tpu.matmul %74, %6, %cst_23 {dimension_numbers = #tpu.dot_dimension_numbers<[1], [0], [0], [1], [0, 0, 1, 1], [], []>} : vector<8x128xf32>, vector<128x512xf32>, vector<8x512xf32> -> vector<8x512xf32>
    %101 = arith.addf %99, %100 : vector<8x512xf32>
    %102 = vector.extract_strided_slice %101 {offsets = [0, 0], sizes = [8, 384], strides = [1, 1]} : vector<8x512xf32> to vector<8x384xf32>
    %103 = arith.negf %102 : vector<8x384xf32>
    %104 = math.exp %103 : vector<8x384xf32>
    %cst_24 = arith.constant 1.000000e+00 : f32
    %105 = vector.broadcast %cst_24 : f32 to vector<8x384xf32>
    %106 = arith.addf %105, %104 : vector<8x384xf32>
    %107 = arith.divf %105, %106 : vector<8x384xf32>
    %108 = vector.extract_strided_slice %107 {offsets = [0, 0], sizes = [8, 128], strides = [1, 1]} : vector<8x384xf32> to vector<8x128xf32>
    %109 = vector.extract_strided_slice %107 {offsets = [0, 128], sizes = [8, 128], strides = [1, 1]} : vector<8x384xf32> to vector<8x128xf32>
    %110 = vector.extract_strided_slice %107 {offsets = [0, 256], sizes = [8, 128], strides = [1, 1]} : vector<8x384xf32> to vector<8x128xf32>
    %111 = vector.extract_strided_slice %101 {offsets = [0, 384], sizes = [8, 128], strides = [1, 1]} : vector<8x512xf32> to vector<8x128xf32>
    %112 = math.tanh %111 : vector<8x128xf32>
    %113 = arith.mulf %109, %72 : vector<8x128xf32>
    %114 = arith.mulf %108, %112 : vector<8x128xf32>
    %115 = arith.addf %113, %114 : vector<8x128xf32>
    %116 = math.tanh %115 : vector<8x128xf32>
    %117 = arith.mulf %110, %116 : vector<8x128xf32>
    %118 = tpu.concatenate %117, %93 in 1 : vector<8x128xf32>, vector<8x128xf32> -> vector<8x256xf32>
    %cst_25 = arith.constant dense<0.000000e+00> : vector<8x512xf32>
    %119 = tpu.matmul %118, %7, %cst_25 {dimension_numbers = #tpu.dot_dimension_numbers<[1], [0], [0], [1], [0, 0, 1, 1], [], []>} : vector<8x256xf32>, vector<256x512xf32>, vector<8x512xf32> -> vector<8x512xf32>
    %120 = arith.addf %119, %10 : vector<8x512xf32>
    %121 = vector.extract_strided_slice %120 {offsets = [0, 0], sizes = [8, 384], strides = [1, 1]} : vector<8x512xf32> to vector<8x384xf32>
    %122 = arith.negf %121 : vector<8x384xf32>
    %123 = math.exp %122 : vector<8x384xf32>
    %cst_26 = arith.constant 1.000000e+00 : f32
    %124 = vector.broadcast %cst_26 : f32 to vector<8x384xf32>
    %125 = arith.addf %124, %123 : vector<8x384xf32>
    %126 = arith.divf %124, %125 : vector<8x384xf32>
    %127 = vector.extract_strided_slice %126 {offsets = [0, 0], sizes = [8, 128], strides = [1, 1]} : vector<8x384xf32> to vector<8x128xf32>
    %128 = vector.extract_strided_slice %126 {offsets = [0, 128], sizes = [8, 128], strides = [1, 1]} : vector<8x384xf32> to vector<8x128xf32>
    %129 = vector.extract_strided_slice %126 {offsets = [0, 256], sizes = [8, 128], strides = [1, 1]} : vector<8x384xf32> to vector<8x128xf32>
    %130 = vector.extract_strided_slice %120 {offsets = [0, 384], sizes = [8, 128], strides = [1, 1]} : vector<8x512xf32> to vector<8x128xf32>
    %131 = math.tanh %130 : vector<8x128xf32>
    %132 = arith.mulf %128, %91 : vector<8x128xf32>
    %133 = arith.mulf %127, %131 : vector<8x128xf32>
    %134 = arith.addf %132, %133 : vector<8x128xf32>
    %135 = math.tanh %134 : vector<8x128xf32>
    %136 = arith.mulf %129, %135 : vector<8x128xf32>
    %137 = vector.extract_strided_slice %11 {offsets = [2, 0, 0], sizes = [1, 1, 128], strides = [1, 1, 1]} : vector<8x1x128xf32> to vector<1x1x128xf32>
    %138 = vector.shape_cast %137 : vector<1x1x128xf32> to vector<1x128xf32>
    %139 = vector.broadcast %138 : vector<1x128xf32> to vector<8x128xf32>
    %140 = arith.mulf %136, %139 : vector<8x128xf32>
    %141 = arith.addf %98, %140 : vector<8x128xf32>
    %142 = vector.extract_strided_slice %5 {offsets = [24, 0], sizes = [8, 512], strides = [1, 1]} : vector<64x512xf32> to vector<8x512xf32>
    %cst_27 = arith.constant dense<0.000000e+00> : vector<8x512xf32>
    %143 = tpu.matmul %117, %6, %cst_27 {dimension_numbers = #tpu.dot_dimension_numbers<[1], [0], [0], [1], [0, 0, 1, 1], [], []>} : vector<8x128xf32>, vector<128x512xf32>, vector<8x512xf32> -> vector<8x512xf32>
    %144 = arith.addf %142, %143 : vector<8x512xf32>
    %145 = vector.extract_strided_slice %144 {offsets = [0, 0], sizes = [8, 384], strides = [1, 1]} : vector<8x512xf32> to vector<8x384xf32>
    %146 = arith.negf %145 : vector<8x384xf32>
    %147 = math.exp %146 : vector<8x384xf32>
    %cst_28 = arith.constant 1.000000e+00 : f32
    %148 = vector.broadcast %cst_28 : f32 to vector<8x384xf32>
    %149 = arith.addf %148, %147 : vector<8x384xf32>
    %150 = arith.divf %148, %149 : vector<8x384xf32>
    %151 = vector.extract_strided_slice %150 {offsets = [0, 0], sizes = [8, 128], strides = [1, 1]} : vector<8x384xf32> to vector<8x128xf32>
    %152 = vector.extract_strided_slice %150 {offsets = [0, 128], sizes = [8, 128], strides = [1, 1]} : vector<8x384xf32> to vector<8x128xf32>
    %153 = vector.extract_strided_slice %150 {offsets = [0, 256], sizes = [8, 128], strides = [1, 1]} : vector<8x384xf32> to vector<8x128xf32>
    %154 = vector.extract_strided_slice %144 {offsets = [0, 384], sizes = [8, 128], strides = [1, 1]} : vector<8x512xf32> to vector<8x128xf32>
    %155 = math.tanh %154 : vector<8x128xf32>
    %156 = arith.mulf %152, %115 : vector<8x128xf32>
    %157 = arith.mulf %151, %155 : vector<8x128xf32>
    %158 = arith.addf %156, %157 : vector<8x128xf32>
    %159 = math.tanh %158 : vector<8x128xf32>
    %160 = arith.mulf %153, %159 : vector<8x128xf32>
    %161 = tpu.concatenate %160, %136 in 1 : vector<8x128xf32>, vector<8x128xf32> -> vector<8x256xf32>
    %cst_29 = arith.constant dense<0.000000e+00> : vector<8x512xf32>
    %162 = tpu.matmul %161, %7, %cst_29 {dimension_numbers = #tpu.dot_dimension_numbers<[1], [0], [0], [1], [0, 0, 1, 1], [], []>} : vector<8x256xf32>, vector<256x512xf32>, vector<8x512xf32> -> vector<8x512xf32>
    %163 = arith.addf %162, %10 : vector<8x512xf32>
    %164 = vector.extract_strided_slice %163 {offsets = [0, 0], sizes = [8, 384], strides = [1, 1]} : vector<8x512xf32> to vector<8x384xf32>
    %165 = arith.negf %164 : vector<8x384xf32>
    %166 = math.exp %165 : vector<8x384xf32>
    %cst_30 = arith.constant 1.000000e+00 : f32
    %167 = vector.broadcast %cst_30 : f32 to vector<8x384xf32>
    %168 = arith.addf %167, %166 : vector<8x384xf32>
    %169 = arith.divf %167, %168 : vector<8x384xf32>
    %170 = vector.extract_strided_slice %169 {offsets = [0, 0], sizes = [8, 128], strides = [1, 1]} : vector<8x384xf32> to vector<8x128xf32>
    %171 = vector.extract_strided_slice %169 {offsets = [0, 128], sizes = [8, 128], strides = [1, 1]} : vector<8x384xf32> to vector<8x128xf32>
    %172 = vector.extract_strided_slice %169 {offsets = [0, 256], sizes = [8, 128], strides = [1, 1]} : vector<8x384xf32> to vector<8x128xf32>
    %173 = vector.extract_strided_slice %163 {offsets = [0, 384], sizes = [8, 128], strides = [1, 1]} : vector<8x512xf32> to vector<8x128xf32>
    %174 = math.tanh %173 : vector<8x128xf32>
    %175 = arith.mulf %171, %134 : vector<8x128xf32>
    %176 = arith.mulf %170, %174 : vector<8x128xf32>
    %177 = arith.addf %175, %176 : vector<8x128xf32>
    %178 = math.tanh %177 : vector<8x128xf32>
    %179 = arith.mulf %172, %178 : vector<8x128xf32>
    %180 = vector.extract_strided_slice %11 {offsets = [3, 0, 0], sizes = [1, 1, 128], strides = [1, 1, 1]} : vector<8x1x128xf32> to vector<1x1x128xf32>
    %181 = vector.shape_cast %180 : vector<1x1x128xf32> to vector<1x128xf32>
    %182 = vector.broadcast %181 : vector<1x128xf32> to vector<8x128xf32>
    %183 = arith.mulf %179, %182 : vector<8x128xf32>
    %184 = arith.addf %141, %183 : vector<8x128xf32>
    %185 = vector.extract_strided_slice %5 {offsets = [32, 0], sizes = [8, 512], strides = [1, 1]} : vector<64x512xf32> to vector<8x512xf32>
    %cst_31 = arith.constant dense<0.000000e+00> : vector<8x512xf32>
    %186 = tpu.matmul %160, %6, %cst_31 {dimension_numbers = #tpu.dot_dimension_numbers<[1], [0], [0], [1], [0, 0, 1, 1], [], []>} : vector<8x128xf32>, vector<128x512xf32>, vector<8x512xf32> -> vector<8x512xf32>
    %187 = arith.addf %185, %186 : vector<8x512xf32>
    %188 = vector.extract_strided_slice %187 {offsets = [0, 0], sizes = [8, 384], strides = [1, 1]} : vector<8x512xf32> to vector<8x384xf32>
    %189 = arith.negf %188 : vector<8x384xf32>
    %190 = math.exp %189 : vector<8x384xf32>
    %cst_32 = arith.constant 1.000000e+00 : f32
    %191 = vector.broadcast %cst_32 : f32 to vector<8x384xf32>
    %192 = arith.addf %191, %190 : vector<8x384xf32>
    %193 = arith.divf %191, %192 : vector<8x384xf32>
    %194 = vector.extract_strided_slice %193 {offsets = [0, 0], sizes = [8, 128], strides = [1, 1]} : vector<8x384xf32> to vector<8x128xf32>
    %195 = vector.extract_strided_slice %193 {offsets = [0, 128], sizes = [8, 128], strides = [1, 1]} : vector<8x384xf32> to vector<8x128xf32>
    %196 = vector.extract_strided_slice %193 {offsets = [0, 256], sizes = [8, 128], strides = [1, 1]} : vector<8x384xf32> to vector<8x128xf32>
    %197 = vector.extract_strided_slice %187 {offsets = [0, 384], sizes = [8, 128], strides = [1, 1]} : vector<8x512xf32> to vector<8x128xf32>
    %198 = math.tanh %197 : vector<8x128xf32>
    %199 = arith.mulf %195, %158 : vector<8x128xf32>
    %200 = arith.mulf %194, %198 : vector<8x128xf32>
    %201 = arith.addf %199, %200 : vector<8x128xf32>
    %202 = math.tanh %201 : vector<8x128xf32>
    %203 = arith.mulf %196, %202 : vector<8x128xf32>
    %204 = tpu.concatenate %203, %179 in 1 : vector<8x128xf32>, vector<8x128xf32> -> vector<8x256xf32>
    %cst_33 = arith.constant dense<0.000000e+00> : vector<8x512xf32>
    %205 = tpu.matmul %204, %7, %cst_33 {dimension_numbers = #tpu.dot_dimension_numbers<[1], [0], [0], [1], [0, 0, 1, 1], [], []>} : vector<8x256xf32>, vector<256x512xf32>, vector<8x512xf32> -> vector<8x512xf32>
    %206 = arith.addf %205, %10 : vector<8x512xf32>
    %207 = vector.extract_strided_slice %206 {offsets = [0, 0], sizes = [8, 384], strides = [1, 1]} : vector<8x512xf32> to vector<8x384xf32>
    %208 = arith.negf %207 : vector<8x384xf32>
    %209 = math.exp %208 : vector<8x384xf32>
    %cst_34 = arith.constant 1.000000e+00 : f32
    %210 = vector.broadcast %cst_34 : f32 to vector<8x384xf32>
    %211 = arith.addf %210, %209 : vector<8x384xf32>
    %212 = arith.divf %210, %211 : vector<8x384xf32>
    %213 = vector.extract_strided_slice %212 {offsets = [0, 0], sizes = [8, 128], strides = [1, 1]} : vector<8x384xf32> to vector<8x128xf32>
    %214 = vector.extract_strided_slice %212 {offsets = [0, 128], sizes = [8, 128], strides = [1, 1]} : vector<8x384xf32> to vector<8x128xf32>
    %215 = vector.extract_strided_slice %212 {offsets = [0, 256], sizes = [8, 128], strides = [1, 1]} : vector<8x384xf32> to vector<8x128xf32>
    %216 = vector.extract_strided_slice %206 {offsets = [0, 384], sizes = [8, 128], strides = [1, 1]} : vector<8x512xf32> to vector<8x128xf32>
    %217 = math.tanh %216 : vector<8x128xf32>
    %218 = arith.mulf %214, %177 : vector<8x128xf32>
    %219 = arith.mulf %213, %217 : vector<8x128xf32>
    %220 = arith.addf %218, %219 : vector<8x128xf32>
    %221 = math.tanh %220 : vector<8x128xf32>
    %222 = arith.mulf %215, %221 : vector<8x128xf32>
    %223 = vector.extract_strided_slice %11 {offsets = [4, 0, 0], sizes = [1, 1, 128], strides = [1, 1, 1]} : vector<8x1x128xf32> to vector<1x1x128xf32>
    %224 = vector.shape_cast %223 : vector<1x1x128xf32> to vector<1x128xf32>
    %225 = vector.broadcast %224 : vector<1x128xf32> to vector<8x128xf32>
    %226 = arith.mulf %222, %225 : vector<8x128xf32>
    %227 = arith.addf %184, %226 : vector<8x128xf32>
    %228 = vector.extract_strided_slice %5 {offsets = [40, 0], sizes = [8, 512], strides = [1, 1]} : vector<64x512xf32> to vector<8x512xf32>
    %cst_35 = arith.constant dense<0.000000e+00> : vector<8x512xf32>
    %229 = tpu.matmul %203, %6, %cst_35 {dimension_numbers = #tpu.dot_dimension_numbers<[1], [0], [0], [1], [0, 0, 1, 1], [], []>} : vector<8x128xf32>, vector<128x512xf32>, vector<8x512xf32> -> vector<8x512xf32>
    %230 = arith.addf %228, %229 : vector<8x512xf32>
    %231 = vector.extract_strided_slice %230 {offsets = [0, 0], sizes = [8, 384], strides = [1, 1]} : vector<8x512xf32> to vector<8x384xf32>
    %232 = arith.negf %231 : vector<8x384xf32>
    %233 = math.exp %232 : vector<8x384xf32>
    %cst_36 = arith.constant 1.000000e+00 : f32
    %234 = vector.broadcast %cst_36 : f32 to vector<8x384xf32>
    %235 = arith.addf %234, %233 : vector<8x384xf32>
    %236 = arith.divf %234, %235 : vector<8x384xf32>
    %237 = vector.extract_strided_slice %236 {offsets = [0, 0], sizes = [8, 128], strides = [1, 1]} : vector<8x384xf32> to vector<8x128xf32>
    %238 = vector.extract_strided_slice %236 {offsets = [0, 128], sizes = [8, 128], strides = [1, 1]} : vector<8x384xf32> to vector<8x128xf32>
    %239 = vector.extract_strided_slice %236 {offsets = [0, 256], sizes = [8, 128], strides = [1, 1]} : vector<8x384xf32> to vector<8x128xf32>
    %240 = vector.extract_strided_slice %230 {offsets = [0, 384], sizes = [8, 128], strides = [1, 1]} : vector<8x512xf32> to vector<8x128xf32>
    %241 = math.tanh %240 : vector<8x128xf32>
    %242 = arith.mulf %238, %201 : vector<8x128xf32>
    %243 = arith.mulf %237, %241 : vector<8x128xf32>
    %244 = arith.addf %242, %243 : vector<8x128xf32>
    %245 = math.tanh %244 : vector<8x128xf32>
    %246 = arith.mulf %239, %245 : vector<8x128xf32>
    %247 = tpu.concatenate %246, %222 in 1 : vector<8x128xf32>, vector<8x128xf32> -> vector<8x256xf32>
    %cst_37 = arith.constant dense<0.000000e+00> : vector<8x512xf32>
    %248 = tpu.matmul %247, %7, %cst_37 {dimension_numbers = #tpu.dot_dimension_numbers<[1], [0], [0], [1], [0, 0, 1, 1], [], []>} : vector<8x256xf32>, vector<256x512xf32>, vector<8x512xf32> -> vector<8x512xf32>
    %249 = arith.addf %248, %10 : vector<8x512xf32>
    %250 = vector.extract_strided_slice %249 {offsets = [0, 0], sizes = [8, 384], strides = [1, 1]} : vector<8x512xf32> to vector<8x384xf32>
    %251 = arith.negf %250 : vector<8x384xf32>
    %252 = math.exp %251 : vector<8x384xf32>
    %cst_38 = arith.constant 1.000000e+00 : f32
    %253 = vector.broadcast %cst_38 : f32 to vector<8x384xf32>
    %254 = arith.addf %253, %252 : vector<8x384xf32>
    %255 = arith.divf %253, %254 : vector<8x384xf32>
    %256 = vector.extract_strided_slice %255 {offsets = [0, 0], sizes = [8, 128], strides = [1, 1]} : vector<8x384xf32> to vector<8x128xf32>
    %257 = vector.extract_strided_slice %255 {offsets = [0, 128], sizes = [8, 128], strides = [1, 1]} : vector<8x384xf32> to vector<8x128xf32>
    %258 = vector.extract_strided_slice %255 {offsets = [0, 256], sizes = [8, 128], strides = [1, 1]} : vector<8x384xf32> to vector<8x128xf32>
    %259 = vector.extract_strided_slice %249 {offsets = [0, 384], sizes = [8, 128], strides = [1, 1]} : vector<8x512xf32> to vector<8x128xf32>
    %260 = math.tanh %259 : vector<8x128xf32>
    %261 = arith.mulf %257, %220 : vector<8x128xf32>
    %262 = arith.mulf %256, %260 : vector<8x128xf32>
    %263 = arith.addf %261, %262 : vector<8x128xf32>
    %264 = math.tanh %263 : vector<8x128xf32>
    %265 = arith.mulf %258, %264 : vector<8x128xf32>
    %266 = vector.extract_strided_slice %11 {offsets = [5, 0, 0], sizes = [1, 1, 128], strides = [1, 1, 1]} : vector<8x1x128xf32> to vector<1x1x128xf32>
    %267 = vector.shape_cast %266 : vector<1x1x128xf32> to vector<1x128xf32>
    %268 = vector.broadcast %267 : vector<1x128xf32> to vector<8x128xf32>
    %269 = arith.mulf %265, %268 : vector<8x128xf32>
    %270 = arith.addf %227, %269 : vector<8x128xf32>
    %271 = vector.extract_strided_slice %5 {offsets = [48, 0], sizes = [8, 512], strides = [1, 1]} : vector<64x512xf32> to vector<8x512xf32>
    %cst_39 = arith.constant dense<0.000000e+00> : vector<8x512xf32>
    %272 = tpu.matmul %246, %6, %cst_39 {dimension_numbers = #tpu.dot_dimension_numbers<[1], [0], [0], [1], [0, 0, 1, 1], [], []>} : vector<8x128xf32>, vector<128x512xf32>, vector<8x512xf32> -> vector<8x512xf32>
    %273 = arith.addf %271, %272 : vector<8x512xf32>
    %274 = vector.extract_strided_slice %273 {offsets = [0, 0], sizes = [8, 384], strides = [1, 1]} : vector<8x512xf32> to vector<8x384xf32>
    %275 = arith.negf %274 : vector<8x384xf32>
    %276 = math.exp %275 : vector<8x384xf32>
    %cst_40 = arith.constant 1.000000e+00 : f32
    %277 = vector.broadcast %cst_40 : f32 to vector<8x384xf32>
    %278 = arith.addf %277, %276 : vector<8x384xf32>
    %279 = arith.divf %277, %278 : vector<8x384xf32>
    %280 = vector.extract_strided_slice %279 {offsets = [0, 0], sizes = [8, 128], strides = [1, 1]} : vector<8x384xf32> to vector<8x128xf32>
    %281 = vector.extract_strided_slice %279 {offsets = [0, 128], sizes = [8, 128], strides = [1, 1]} : vector<8x384xf32> to vector<8x128xf32>
    %282 = vector.extract_strided_slice %279 {offsets = [0, 256], sizes = [8, 128], strides = [1, 1]} : vector<8x384xf32> to vector<8x128xf32>
    %283 = vector.extract_strided_slice %273 {offsets = [0, 384], sizes = [8, 128], strides = [1, 1]} : vector<8x512xf32> to vector<8x128xf32>
    %284 = math.tanh %283 : vector<8x128xf32>
    %285 = arith.mulf %281, %244 : vector<8x128xf32>
    %286 = arith.mulf %280, %284 : vector<8x128xf32>
    %287 = arith.addf %285, %286 : vector<8x128xf32>
    %288 = math.tanh %287 : vector<8x128xf32>
    %289 = arith.mulf %282, %288 : vector<8x128xf32>
    %290 = tpu.concatenate %289, %265 in 1 : vector<8x128xf32>, vector<8x128xf32> -> vector<8x256xf32>
    %cst_41 = arith.constant dense<0.000000e+00> : vector<8x512xf32>
    %291 = tpu.matmul %290, %7, %cst_41 {dimension_numbers = #tpu.dot_dimension_numbers<[1], [0], [0], [1], [0, 0, 1, 1], [], []>} : vector<8x256xf32>, vector<256x512xf32>, vector<8x512xf32> -> vector<8x512xf32>
    %292 = arith.addf %291, %10 : vector<8x512xf32>
    %293 = vector.extract_strided_slice %292 {offsets = [0, 0], sizes = [8, 384], strides = [1, 1]} : vector<8x512xf32> to vector<8x384xf32>
    %294 = arith.negf %293 : vector<8x384xf32>
    %295 = math.exp %294 : vector<8x384xf32>
    %cst_42 = arith.constant 1.000000e+00 : f32
    %296 = vector.broadcast %cst_42 : f32 to vector<8x384xf32>
    %297 = arith.addf %296, %295 : vector<8x384xf32>
    %298 = arith.divf %296, %297 : vector<8x384xf32>
    %299 = vector.extract_strided_slice %298 {offsets = [0, 0], sizes = [8, 128], strides = [1, 1]} : vector<8x384xf32> to vector<8x128xf32>
    %300 = vector.extract_strided_slice %298 {offsets = [0, 128], sizes = [8, 128], strides = [1, 1]} : vector<8x384xf32> to vector<8x128xf32>
    %301 = vector.extract_strided_slice %298 {offsets = [0, 256], sizes = [8, 128], strides = [1, 1]} : vector<8x384xf32> to vector<8x128xf32>
    %302 = vector.extract_strided_slice %292 {offsets = [0, 384], sizes = [8, 128], strides = [1, 1]} : vector<8x512xf32> to vector<8x128xf32>
    %303 = math.tanh %302 : vector<8x128xf32>
    %304 = arith.mulf %300, %263 : vector<8x128xf32>
    %305 = arith.mulf %299, %303 : vector<8x128xf32>
    %306 = arith.addf %304, %305 : vector<8x128xf32>
    %307 = math.tanh %306 : vector<8x128xf32>
    %308 = arith.mulf %301, %307 : vector<8x128xf32>
    %309 = vector.extract_strided_slice %11 {offsets = [6, 0, 0], sizes = [1, 1, 128], strides = [1, 1, 1]} : vector<8x1x128xf32> to vector<1x1x128xf32>
    %310 = vector.shape_cast %309 : vector<1x1x128xf32> to vector<1x128xf32>
    %311 = vector.broadcast %310 : vector<1x128xf32> to vector<8x128xf32>
    %312 = arith.mulf %308, %311 : vector<8x128xf32>
    %313 = arith.addf %270, %312 : vector<8x128xf32>
    %314 = vector.extract_strided_slice %5 {offsets = [56, 0], sizes = [8, 512], strides = [1, 1]} : vector<64x512xf32> to vector<8x512xf32>
    %cst_43 = arith.constant dense<0.000000e+00> : vector<8x512xf32>
    %315 = tpu.matmul %289, %6, %cst_43 {dimension_numbers = #tpu.dot_dimension_numbers<[1], [0], [0], [1], [0, 0, 1, 1], [], []>} : vector<8x128xf32>, vector<128x512xf32>, vector<8x512xf32> -> vector<8x512xf32>
    %316 = arith.addf %314, %315 : vector<8x512xf32>
    %317 = vector.extract_strided_slice %316 {offsets = [0, 0], sizes = [8, 384], strides = [1, 1]} : vector<8x512xf32> to vector<8x384xf32>
    %318 = arith.negf %317 : vector<8x384xf32>
    %319 = math.exp %318 : vector<8x384xf32>
    %cst_44 = arith.constant 1.000000e+00 : f32
    %320 = vector.broadcast %cst_44 : f32 to vector<8x384xf32>
    %321 = arith.addf %320, %319 : vector<8x384xf32>
    %322 = arith.divf %320, %321 : vector<8x384xf32>
    %323 = vector.extract_strided_slice %322 {offsets = [0, 0], sizes = [8, 128], strides = [1, 1]} : vector<8x384xf32> to vector<8x128xf32>
    %324 = vector.extract_strided_slice %322 {offsets = [0, 128], sizes = [8, 128], strides = [1, 1]} : vector<8x384xf32> to vector<8x128xf32>
    %325 = vector.extract_strided_slice %322 {offsets = [0, 256], sizes = [8, 128], strides = [1, 1]} : vector<8x384xf32> to vector<8x128xf32>
    %326 = vector.extract_strided_slice %316 {offsets = [0, 384], sizes = [8, 128], strides = [1, 1]} : vector<8x512xf32> to vector<8x128xf32>
    %327 = math.tanh %326 : vector<8x128xf32>
    %328 = arith.mulf %324, %287 : vector<8x128xf32>
    %329 = arith.mulf %323, %327 : vector<8x128xf32>
    %330 = arith.addf %328, %329 : vector<8x128xf32>
    %331 = math.tanh %330 : vector<8x128xf32>
    %332 = arith.mulf %325, %331 : vector<8x128xf32>
    %333 = tpu.concatenate %332, %308 in 1 : vector<8x128xf32>, vector<8x128xf32> -> vector<8x256xf32>
    %cst_45 = arith.constant dense<0.000000e+00> : vector<8x512xf32>
    %334 = tpu.matmul %333, %7, %cst_45 {dimension_numbers = #tpu.dot_dimension_numbers<[1], [0], [0], [1], [0, 0, 1, 1], [], []>} : vector<8x256xf32>, vector<256x512xf32>, vector<8x512xf32> -> vector<8x512xf32>
    %335 = arith.addf %334, %10 : vector<8x512xf32>
    %336 = vector.extract_strided_slice %335 {offsets = [0, 0], sizes = [8, 384], strides = [1, 1]} : vector<8x512xf32> to vector<8x384xf32>
    %337 = arith.negf %336 : vector<8x384xf32>
    %338 = math.exp %337 : vector<8x384xf32>
    %cst_46 = arith.constant 1.000000e+00 : f32
    %339 = vector.broadcast %cst_46 : f32 to vector<8x384xf32>
    %340 = arith.addf %339, %338 : vector<8x384xf32>
    %341 = arith.divf %339, %340 : vector<8x384xf32>
    %342 = vector.extract_strided_slice %341 {offsets = [0, 0], sizes = [8, 128], strides = [1, 1]} : vector<8x384xf32> to vector<8x128xf32>
    %343 = vector.extract_strided_slice %341 {offsets = [0, 128], sizes = [8, 128], strides = [1, 1]} : vector<8x384xf32> to vector<8x128xf32>
    %344 = vector.extract_strided_slice %341 {offsets = [0, 256], sizes = [8, 128], strides = [1, 1]} : vector<8x384xf32> to vector<8x128xf32>
    %345 = vector.extract_strided_slice %335 {offsets = [0, 384], sizes = [8, 128], strides = [1, 1]} : vector<8x512xf32> to vector<8x128xf32>
    %346 = math.tanh %345 : vector<8x128xf32>
    %347 = arith.mulf %343, %306 : vector<8x128xf32>
    %348 = arith.mulf %342, %346 : vector<8x128xf32>
    %349 = arith.addf %347, %348 : vector<8x128xf32>
    %350 = math.tanh %349 : vector<8x128xf32>
    %351 = arith.mulf %344, %350 : vector<8x128xf32>
    %352 = vector.extract_strided_slice %11 {offsets = [7, 0, 0], sizes = [1, 1, 128], strides = [1, 1, 1]} : vector<8x1x128xf32> to vector<1x1x128xf32>
    %353 = vector.shape_cast %352 : vector<1x1x128xf32> to vector<1x128xf32>
    %354 = vector.broadcast %353 : vector<1x128xf32> to vector<8x128xf32>
    %355 = arith.mulf %351, %354 : vector<8x128xf32>
    %356 = arith.addf %313, %355 : vector<8x128xf32>
    %cst_47 = arith.constant dense<0.000000e+00> : vector<8xf32>
    %357 = vector.multi_reduction <add>, %356, %cst_47 [1] : vector<8x128xf32> to vector<8xf32>
    %358 = vector.shape_cast %357 : vector<8xf32> to vector<8x1xf32>
    %c0_48 = arith.constant 0 : index
    %c0_49 = arith.constant 0 : index
    %359 = vector.load %arg7[%c0_48, %c0_49] : memref<1x1xf32, #tpu.memory_space<vmem>>, vector<1x1xf32>
    %360 = vector.broadcast %359 : vector<1x1xf32> to vector<8x1xf32>
    %361 = arith.addf %358, %360 : vector<8x1xf32>
    %c0_50 = arith.constant 0 : index
    %c0_51 = arith.constant 0 : index
    %362 = vector.load %arg8[%c0_50, %c0_51] : memref<8x1xf32, #tpu.memory_space<vmem>>, vector<8x1xf32>
    tpu.vector_store %arg8[%c0_50, %c0_51], %361 {strides = array<i32>} : memref<8x1xf32, #tpu.memory_space<vmem>>, vector<8x1xf32>,
    return
  }
}

</mosaic_0001>

<bundles_post_ra>
// kernel: tpu_custom_call.1
= control target key start
LH: loop header
LB: loop body
LE: loop exit
PB: predicated region body
PF: predicated region fallthrough
CT: control target
= control target key end

     0   :  { %s8284_s0 = inlined_call_operand.vmem [shape: f32[64,16], index: 0, kind: input, shape index: {}]   ;;  %s8285_s1 = inlined_call_operand.vmem [shape: f32[16,512], index: 1, kind: input, shape index: {}]   ;;  %s8286_s2 = inlined_call_operand.hbm [shape: f32[128,512], index: 2, kind: input, shape index: {}]   ;;  %s8287_s3 = inlined_call_operand.vmem [shape: f32[1,512], index: 3, kind: input, shape index: {}]   ;;  %s8288_s4 = inlined_call_operand.hbm [shape: f32[256,512], index: 4, kind: input, shape index: {}]   ;;  %s8289_s5 = inlined_call_operand.vmem [shape: f32[1,512], index: 5, kind: input, shape index: {}]   ;;  %s8290_s6 = inlined_call_operand.vmem [shape: f32[8,1,128], index: 6, kind: input, shape index: {}]   ;;  %s8291_s7 = inlined_call_operand.<no memory space> [shape: f32[1,1], index: 7, kind: input, shape index: {}]   ;;  %s8292_s8 = inlined_call_operand.vmem [shape: f32[8,1], index: 8, kind: output, shape index: {}]  }
   0x1   :  { %v13_v0 = vstv %s8291_s7 }
   0x2   :  { %14 = vst [vmem:[#allocation2] sm:$0x1] %v13_v0 }
   0x3   :  { %15 = vsyncpa [#allocation4], 0  ;;  %s25_s9 = sshll.u32 %s8286_s2, 4  ;;  %s26_s9 = int_to_ptr.hbm [resolvable:$true] %s25_s9 }
   0x4   :  { %16 = vsyncpa [#allocation6], 0  ;;  %s4513_s10 = smov [#allocation3]   ;;  %s40_s14 = sshll.u32 %s8288_s4, 4  ;;  %s41_s14 = int_to_ptr.hbm [resolvable:$true] %s40_s14 }
   0x5   :  { %s27_s11 = sshll.u32 %s4513_s10, 4  ;;  %s4514_s15 = smov 512   ;;  %s28_s11 = int_to_ptr.vmem [resolvable:$true] %s27_s11 }
   0x6   :  { %s4515_s16 = smov 32   ;;  %s4516_s7 = smov [#allocation5]  }
   0x7   :  { %33 = dma.hbm_to_vmem [thread:$0]  %s26_s9, 8192, %s28_s11, [#allocation4], %s4514_s15, %s4514_s15, %s4515_s16  }
   0x8   :  { %s42_s17 = sshll.u32 %s4516_s7, 4  ;;  %s43_s17 = int_to_ptr.vmem [resolvable:$true] %s42_s17 }
   0x9   :  { %48 = dma.hbm_to_vmem [thread:$0]  %s41_s14, 16384, %s43_s17, [#allocation6], %s4514_s15, %s4514_s15, %s4515_s16  }
   0xa   :  { %4509 = dma.done.wait [#allocation4], 8192  }
   0xb   :  { %4510 = vsyncadd [#allocation4], 4294959104 }
   0xc   :  { %4511 = dma.done.wait [#allocation6], 16384  }
   0xd   :  { %4512 = vsyncadd [#allocation6], 4294950912  ;;  %v75_v1 = vld [vmem:[%s8285_s1 + $0x20] sm:$0xff]  ;;  %v76_v2 = vld [vmem:[%s8285_s1 + $0x28] sm:$0xff]  ;;  %vm89_vm0 = vcmask 130048  }
   0xe   :  { %v77_v3 = vld [vmem:[%s8285_s1 + $0x30] sm:$0xff]  ;;  %128 = vmatpush.msra.mxu0 %v75_v1  ;;  %169 = vmatpush.msra.mxu1 %v76_v2  ;;  %v78_v4 = vld [vmem:[%s8285_s1 + $0x38] sm:$0xff]  ;;  %v71_v5 = vld [vmem:[%s8285_s1] sm:$0xff] }
   0xf   :  { %v72_v6 = vld [vmem:[%s8285_s1 + $0x8] sm:$0xff]  ;;  %210 = vmatpush.msra.mxu2 %v77_v3  ;;  %251 = vmatpush.msra.mxu3 %v78_v4  ;;  %v73_v7 = vld [vmem:[%s8285_s1 + $0x10] sm:$0xff]  ;;  %v74_v8 = vld [vmem:[%s8285_s1 + $0x18] sm:$0xff] }
  0x10   :  { %v63_v9 = vld [vmem:[%s8284_s0] sm:$0xff]  ;;  %129 = vmatpush.msra.mxu0 %v71_v5  ;;  %170 = vmatpush.msra.mxu1 %v72_v6  ;;  %v4599_v11 = vld [vmem:[#allocation3 + $0x1e8] sm:$0xff]  ;;  %v340_v12 = vld [vmem:[#allocation3 + $0x1f0] sm:$0xff] }
  0x11   :  { %211 = vmatpush.msra.mxu2 %v73_v7  ;;  %252 = vmatpush.msra.mxu3 %v74_v8  ;;  %v338_v10 = vld [vmem:[#allocation3 + $0x1e0] sm:$0xff]  ;;  %v4605_v14 = vld [vmem:[#allocation3 + $0x1c8] sm:$0xff]  ;;  %v336_v15 = vld [vmem:[#allocation3 + $0x1d0] sm:$0xff] }
  0x12   :  { %3503 = vmatmul.msk.f32.vlgmr.msra.gmra.mxu0 %vm89_vm0, %v63_v9  ;;  %3511 = vmatmul.msk.f32.vlgmr.msra.gmra.mxu1 %vm89_vm0, %v63_v9  ;;  %v334_v13 = vld [vmem:[#allocation3 + $0x1c0] sm:$0xff]  ;;  %v4608_v16 = vld [vmem:[#allocation3 + $0x1f8] sm:$0xff]  ;;  %v4610_v18 = vld [vmem:[#allocation3 + $0x1a8] sm:$0xff] }
  0x13   :  { %3519 = vmatmul.msk.f32.vlgmr.msra.gmra.mxu2 %vm89_vm0, %v63_v9  ;;  %3527 = vmatmul.msk.f32.vlgmr.msra.gmra.mxu3 %vm89_vm0, %v63_v9  ;;  %v330_v17 = vld [vmem:[#allocation3 + $0x1a0] sm:$0xff]  ;;  %v4613_v19 = vld [vmem:[#allocation3 + $0x1d8] sm:$0xff]  ;;  %v332_v20 = vld [vmem:[#allocation3 + $0x1b0] sm:$0xff] }
  0x14   :  { %488 = vmatpush.msrb.mxu0 %v338_v10  ;;  %508 = vmatpush.msrb.mxu1 %v4599_v11  ;;  %v64_v21 = vld [vmem:[%s8284_s0 + $0x8] sm:$0xff]  ;;  %v4620_v22 = vld [vmem:[#allocation3 + $0x1b8] sm:$0xff]  ;;  %v328_v25 = vld [vmem:[#allocation3 + $0x190] sm:$0xff] }
  0x15   :  { %528 = vmatpush.msrb.mxu2 %v340_v12  ;;  %548 = vmatpush.msrb.mxu3 %v4608_v16  ;;  %v326_v23 = vld [vmem:[#allocation3 + $0x180] sm:$0xff]  ;;  %v4623_v24 = vld [vmem:[#allocation3 + $0x188] sm:$0xff]  ;;  %v4628_v26 = vld [vmem:[#allocation3 + $0x198] sm:$0xff] }
  0x16   :  { %489 = vmatpush.msrb.mxu0 %v334_v13  ;;  %509 = vmatpush.msrb.mxu1 %v4605_v14  ;;  %v322_v27 = vld [vmem:[#allocation3 + $0x160] sm:$0xff]  ;;  %v4632_v28 = vld [vmem:[#allocation3 + $0x168] sm:$0xff]  ;;  %v324_v29 = vld [vmem:[#allocation3 + $0x170] sm:$0xff] }
  0x17   :  { %529 = vmatpush.msrb.mxu2 %v336_v15  ;;  %549 = vmatpush.msrb.mxu3 %v4613_v19  ;;  %v4635_v30 = vld [vmem:[#allocation3 + $0x178] sm:$0xff]  ;;  %v318_v31 = vld [vmem:[#allocation3 + $0x140] sm:$0xff]  ;;  %v4637_v32 = vld [vmem:[#allocation3 + $0x148] sm:$0xff] }
  0x18   :  { %490 = vmatpush.msrb.mxu0 %v330_v17  ;;  %510 = vmatpush.msrb.mxu1 %v4610_v18  ;;  %v320_v33 = vld [vmem:[#allocation3 + $0x150] sm:$0xff]  ;;  %v4641_v34 = vld [vmem:[#allocation3 + $0x158] sm:$0xff]  ;;  %v314_v36 = vld [vmem:[#allocation3 + $0x120] sm:$0xff] }
  0x19   :  { %530 = vmatpush.msrb.mxu2 %v332_v20  ;;  %550 = vmatpush.msrb.mxu3 %v4620_v22  ;;  %v65_v35 = vld [vmem:[%s8284_s0 + $0x10] sm:$0xff]  ;;  %v4650_v39 = vld [vmem:[#allocation3 + $0x138] sm:$0xff]  ;;  %v310_v40 = vld [vmem:[#allocation3 + $0x100] sm:$0xff] }
  0x1a   :  { %3504 = vmatmul.msk.f32.gmra.mxu0 %vm89_vm0, %v64_v21  ;;  %3512 = vmatmul.msk.f32.gmra.mxu1 %vm89_vm0, %v64_v21  ;;  %v4646_v37 = vld [vmem:[#allocation3 + $0x128] sm:$0xff]  ;;  %v316_v38 = vld [vmem:[#allocation3 + $0x130] sm:$0xff]  ;;  %v4660_v43 = vld [vmem:[#allocation3 + $0x118] sm:$0xff] }
  0x1b   :  { %3520 = vmatmul.msk.f32.gmra.mxu2 %vm89_vm0, %v64_v21  ;;  %3528 = vmatmul.msk.f32.gmra.mxu3 %vm89_vm0, %v64_v21  ;;  %v4657_v41 = vld [vmem:[#allocation3 + $0x108] sm:$0xff]  ;;  %v312_v42 = vld [vmem:[#allocation3 + $0x110] sm:$0xff]  ;;  %v306_v44 = vld [vmem:[#allocation3 + $0xe0] sm:$0xff] }
  0x1c   :  { %491 = vmatpush.msrb.mxu0 %v326_v23  ;;  %511 = vmatpush.msrb.mxu1 %v4623_v24  ;;  %v4662_v45 = vld [vmem:[#allocation3 + $0xe8] sm:$0xff]  ;;  %v308_v46 = vld [vmem:[#allocation3 + $0xf0] sm:$0xff]  ;;  %v4666_v47 = vld [vmem:[#allocation3 + $0xf8] sm:$0xff]  ;;  %v8293_v23 = vmov 0.0  }
  0x1d   :  { %531 = vmatpush.msrb.mxu2 %v328_v25  ;;  %551 = vmatpush.msrb.mxu3 %v4628_v26  ;;  %v66_v48 = vld [vmem:[%s8284_s0 + $0x18] sm:$0xff]  ;;  %v302_v49 = vld [vmem:[#allocation3 + $0xc0] sm:$0xff]  ;;  %v4673_v50 = vld [vmem:[#allocation3 + $0xc8] sm:$0xff] }
  0x1e   :  { %492 = vmatpush.msrb.mxu0 %v322_v27  ;;  %512 = vmatpush.msrb.mxu1 %v4632_v28  ;;  %v304_v51 = vld [vmem:[#allocation3 + $0xd0] sm:$0xff]  ;;  %v4678_v52 = vld [vmem:[#allocation3 + $0xd8] sm:$0xff]  ;;  %v298_v53 = vld [vmem:[#allocation3 + $0xa0] sm:$0xff] }
  0x1f   :  { %532 = vmatpush.msrb.mxu2 %v324_v29  ;;  %552 = vmatpush.msrb.mxu3 %v4635_v30  ;;  %v4682_v54 = vld [vmem:[#allocation3 + $0xa8] sm:$0xff]  ;;  %v300_v55 = vld [vmem:[#allocation3 + $0xb0] sm:$0xff]  ;;  %v4685_v56 = vld [vmem:[#allocation3 + $0xb8] sm:$0xff] }
  0x20   :  { %493 = vmatpush.msrb.mxu0 %v318_v31  ;;  %513 = vmatpush.msrb.mxu1 %v4637_v32  ;;  %v294_v57 = vld [vmem:[#allocation3 + $0x80] sm:$0xff]  ;;  %v4687_v58 = vld [vmem:[#allocation3 + $0x88] sm:$0xff]  ;;  %v296_v59 = vld [vmem:[#allocation3 + $0x90] sm:$0xff] }
  0x21   :  { %533 = vmatpush.msrb.mxu2 %v320_v33  ;;  %553 = vmatpush.msrb.mxu3 %v4641_v34  ;;  %v4691_v60 = vld [vmem:[#allocation3 + $0x98] sm:$0xff]  ;;  %v290_v62 = vld [vmem:[#allocation3 + $0x60] sm:$0xff]  ;;  %v4698_v63 = vld [vmem:[#allocation3 + $0x68] sm:$0xff] }
  0x22   :  { %3505 = vmatmul.msk.f32.gmra.mxu0 %vm89_vm0, %v65_v35  ;;  %3513 = vmatmul.msk.f32.gmra.mxu1 %vm89_vm0, %v65_v35  ;;  %v67_v61 = vld [vmem:[%s8284_s0 + $0x20] sm:$0xff]  ;;  %v292_v0 = vld [vmem:[#allocation3 + $0x70] sm:$0xff]  ;;  %v4707_v3 = vld [vmem:[#allocation3 + $0x48] sm:$0xff] }
  0x23   :  { %3521 = vmatmul.msk.f32.gmra.mxu2 %vm89_vm0, %v65_v35  ;;  %3529 = vmatmul.msk.f32.gmra.mxu3 %vm89_vm0, %v65_v35  ;;  %v4703_v1 = vld [vmem:[#allocation3 + $0x78] sm:$0xff]  ;;  %v286_v2 = vld [vmem:[#allocation3 + $0x40] sm:$0xff]  ;;  %v288_v4 = vld [vmem:[#allocation3 + $0x50] sm:$0xff] }
  0x24   :  { %494 = vmatpush.msrb.mxu0 %v314_v36  ;;  %514 = vmatpush.msrb.mxu1 %v4646_v37  ;;  %v4710_v5 = vld [vmem:[#allocation3 + $0x58] sm:$0xff]  ;;  %v282_v6 = vld [vmem:[#allocation3 + $0x20] sm:$0xff]  ;;  %v4712_v7 = vld [vmem:[#allocation3 + $0x28] sm:$0xff] }
  0x25   :  { %534 = vmatpush.msrb.mxu2 %v316_v38  ;;  %554 = vmatpush.msrb.mxu3 %v4650_v39  ;;  %v284_v8 = vld [vmem:[#allocation3 + $0x30] sm:$0xff]  ;;  %v4716_v9 = vld [vmem:[#allocation3 + $0x38] sm:$0xff]  ;;  %v68_v10 = vld [vmem:[%s8284_s0 + $0x28] sm:$0xff] }
  0x26   :  { %495 = vmatpush.msrb.mxu0 %v310_v40  ;;  %515 = vmatpush.msrb.mxu1 %v4657_v41  ;;  %v278_v12 = vld [vmem:[#allocation3] sm:$0xff]  ;;  %v4723_v13 = vld [vmem:[#allocation3 + $0x8] sm:$0xff]  ;;  %v280_v15 = vld [vmem:[#allocation3 + $0x10] sm:$0xff] }
  0x27   :  { %535 = vmatpush.msrb.mxu2 %v312_v42  ;;  %555 = vmatpush.msrb.mxu3 %v4660_v43  ;;  %v4728_v17 = vld [vmem:[#allocation3 + $0x18] sm:$0xff]  ;;  %v69_v20 = vld [vmem:[%s8284_s0 + $0x30] sm:$0xff]  ;;  %v4752_v25 = vld [vmem:[#allocation5 + $0x3e0] sm:$0xff] }
  0x28   :  { %496 = vmatpush.msrb.mxu0 %v306_v44  ;;  %516 = vmatpush.msrb.mxu1 %v4662_v45  ;;  %v70_v21 = vld [vmem:[%s8284_s0 + $0x38] sm:$0xff]  ;;  %v4754_v27 = vld [vmem:[#allocation5 + $0x3e8] sm:$0xff]  ;;  %v4758_v29 = vld [vmem:[#allocation5 + $0x3c0] sm:$0xff] }
  0x29   :  { %536 = vmatpush.msrb.mxu2 %v308_v46  ;;  %556 = vmatpush.msrb.mxu3 %v4666_v47  ;;  %v4760_v31 = vld [vmem:[#allocation5 + $0x3c8] sm:$0xff]  ;;  %v4762_v33 = vld [vmem:[#allocation5 + $0x3a0] sm:$0xff] }
  0x2a   :  { %3506 = vmatmul.msk.f32.gmra.mxu0 %vm89_vm0, %v66_v48  ;;  %3514 = vmatmul.msk.f32.gmra.mxu1 %vm89_vm0, %v66_v48  ;;  %v4766_v35 = vld [vmem:[#allocation5 + $0x3a8] sm:$0xff]  ;;  %v4768_v36 = vld [vmem:[#allocation5 + $0x380] sm:$0xff] }
  0x2b   :  { %3522 = vmatmul.msk.f32.gmra.mxu2 %vm89_vm0, %v66_v48  ;;  %3530 = vmatmul.msk.f32.gmra.mxu3 %vm89_vm0, %v66_v48  ;;  %v4770_v38 = vld [vmem:[#allocation5 + $0x388] sm:$0xff]  ;;  %v4776_v40 = vld [vmem:[#allocation5 + $0x360] sm:$0xff] }
  0x2c   :  { %497 = vmatpush.msrb.mxu0 %v302_v49  ;;  %517 = vmatpush.msrb.mxu1 %v4673_v50  ;;  %v4778_v42 = vld [vmem:[#allocation5 + $0x368] sm:$0xff]  ;;  %v4782_v44 = vld [vmem:[#allocation5 + $0x340] sm:$0xff] }
  0x2d   :  { %537 = vmatpush.msrb.mxu2 %v304_v51  ;;  %557 = vmatpush.msrb.mxu3 %v4678_v52  ;;  %v4784_v46 = vld [vmem:[#allocation5 + $0x348] sm:$0xff]  ;;  %v4786_v48 = vld [vmem:[#allocation5 + $0x320] sm:$0xff] }
  0x2e   :  { %498 = vmatpush.msrb.mxu0 %v298_v53  ;;  %518 = vmatpush.msrb.mxu1 %v4682_v54  ;;  %v4790_v49 = vld [vmem:[#allocation5 + $0x328] sm:$0xff]  ;;  %v4792_v51 = vld [vmem:[#allocation5 + $0x300] sm:$0xff] }
  0x2f   :  { %538 = vmatpush.msrb.mxu2 %v300_v55  ;;  %558 = vmatpush.msrb.mxu3 %v4685_v56  ;;  %v4794_v53 = vld [vmem:[#allocation5 + $0x308] sm:$0xff]  ;;  %v4800_v55 = vld [vmem:[#allocation5 + $0x2e0] sm:$0xff] }
  0x30   :  { %499 = vmatpush.msrb.mxu0 %v294_v57  ;;  %519 = vmatpush.msrb.mxu1 %v4687_v58  ;;  %v4802_v57 = vld [vmem:[#allocation5 + $0x2e8] sm:$0xff] }
  0x31   :  { %539 = vmatpush.msrb.mxu2 %v296_v59  ;;  %559 = vmatpush.msrb.mxu3 %v4691_v60  ;;  %8795 = vst [vmem:[#allocation9_spill] sm:$0xff] %v4802_v57 }
  0x32   :  { %3507 = vmatmul.msk.f32.gmra.mxu0 %vm89_vm0, %v67_v61  ;;  %3515 = vmatmul.msk.f32.gmra.mxu1 %vm89_vm0, %v67_v61 }
  0x33   :  { %3523 = vmatmul.msk.f32.gmra.mxu2 %vm89_vm0, %v67_v61  ;;  %3531 = vmatmul.msk.f32.gmra.mxu3 %vm89_vm0, %v67_v61 }
  0x34   :  { %500 = vmatpush.msrb.mxu0 %v290_v62  ;;  %520 = vmatpush.msrb.mxu1 %v4698_v63  ;;  %v4810_v62 = vld [vmem:[#allocation5 + $0x2c0] sm:$0xff] }
  0x35   :  { %540 = vmatpush.msrb.mxu2 %v292_v0  ;;  %560 = vmatpush.msrb.mxu3 %v4703_v1  ;;  %8796 = vst [vmem:[#allocation10_spill] sm:$0xff] %v4810_v62  ;;  %v4812_v0 = vld [vmem:[#allocation5 + $0x2c8] sm:$0xff] }
  0x36   :  { %501 = vmatpush.msrb.mxu0 %v286_v2  ;;  %521 = vmatpush.msrb.mxu1 %v4707_v3  ;;  %8797 = vst [vmem:[#allocation11_spill] sm:$0xff] %v4812_v0  ;;  %v4814_v2 = vld [vmem:[#allocation5 + $0x2a0] sm:$0xff] }
  0x37   :  { %541 = vmatpush.msrb.mxu2 %v288_v4  ;;  %561 = vmatpush.msrb.mxu3 %v4710_v5  ;;  %8798 = vst [vmem:[#allocation12_spill] sm:$0xff] %v4814_v2  ;;  %v4818_v4 = vld [vmem:[#allocation5 + $0x2a8] sm:$0xff] }
  0x38   :  { %502 = vmatpush.msrb.mxu0 %v282_v6  ;;  %522 = vmatpush.msrb.mxu1 %v4712_v7  ;;  %8799 = vst [vmem:[#allocation13_spill] sm:$0xff] %v4818_v4  ;;  %v4820_v6 = vld [vmem:[#allocation5 + $0x280] sm:$0xff] }
  0x39   :  { %542 = vmatpush.msrb.mxu2 %v284_v8  ;;  %562 = vmatpush.msrb.mxu3 %v4716_v9  ;;  %8800 = vst [vmem:[#allocation14_spill] sm:$0xff] %v4820_v6  ;;  %v4822_v8 = vld [vmem:[#allocation5 + $0x288] sm:$0xff] }
  0x3a   :  { %3508 = vmatmul.msk.f32.gmra.mxu0 %vm89_vm0, %v68_v10  ;;  %3516 = vmatmul.msk.f32.gmra.mxu1 %vm89_vm0, %v68_v10  ;;  %8801 = vst [vmem:[#allocation15_spill] sm:$0xff] %v4822_v8 }
  0x3b   :  { %3524 = vmatmul.msk.f32.gmra.mxu2 %vm89_vm0, %v68_v10  ;;  %3532 = vmatmul.msk.f32.gmra.mxu3 %vm89_vm0, %v68_v10 }
  0x3c   :  { %503 = vmatpush.msrb.mxu0 %v278_v12  ;;  %523 = vmatpush.msrb.mxu1 %v4723_v13 }
  0x3d   :  { %543 = vmatpush.msrb.mxu2 %v280_v15  ;;  %563 = vmatpush.msrb.mxu3 %v4728_v17  ;;  %v4832_v15 = vld [vmem:[#allocation5 + $0x260] sm:$0xff] }
  0x3e   :  { %655 = vmatpush.msra.mxu1 %v4752_v25  ;;  %8802 = vst [vmem:[#allocation16_spill] sm:$0xff] %v4832_v15 }
  0x3f   :  { %695 = vmatpush.msra.mxu3 %v4754_v27 }
  0x40   :  { %656 = vmatpush.msra.mxu1 %v4758_v29 }
  0x41   :  { %696 = vmatpush.msra.mxu3 %v4760_v31 }
  0x42   :  { %3509 = vmatmul.msk.f32.gmra.mxu0 %vm89_vm0, %v69_v20  ;;  %3517 = vmatmul.msk.f32.gmra.mxu1 %vm89_vm0, %v69_v20 }
  0x43   :  { %3525 = vmatmul.msk.f32.gmra.mxu2 %vm89_vm0, %v69_v20  ;;  %3533 = vmatmul.msk.f32.gmra.mxu3 %vm89_vm0, %v69_v20  ;;  %v4834_v20 = vld [vmem:[#allocation5 + $0x268] sm:$0xff] }
  0x44   :  { %657 = vmatpush.msra.mxu1 %v4762_v33  ;;  %697 = vmatpush.msra.mxu3 %v4766_v35  ;;  %8803 = vst [vmem:[#allocation17_spill] sm:$0xff] %v4834_v20 }
  0x46   :  { %658 = vmatpush.msra.mxu1 %v4768_v36  ;;  %698 = vmatpush.msra.mxu3 %v4770_v38 }
  0x48   :  { %659 = vmatpush.msra.mxu1 %v4776_v40  ;;  %699 = vmatpush.msra.mxu3 %v4778_v42 }
  0x4a   :  { %3510 = vmatmul.msk.f32.gmra.mxu0 %vm89_vm0, %v70_v21  ;;  %3518 = vmatmul.msk.f32.gmra.mxu1 %vm89_vm0, %v70_v21 }
  0x4b   :  { %3526 = vmatmul.msk.f32.gmra.mxu2 %vm89_vm0, %v70_v21  ;;  %3534 = vmatmul.msk.f32.gmra.mxu3 %vm89_vm0, %v70_v21 }
  0x4c   :  { %660 = vmatpush.msra.mxu1 %v4782_v44  ;;  %700 = vmatpush.msra.mxu3 %v4784_v46 }
  0x4e   :  { %661 = vmatpush.msra.mxu1 %v4786_v48  ;;  %701 = vmatpush.msra.mxu3 %v4790_v49 }
  0x50   :  { %662 = vmatpush.msra.mxu1 %v4792_v51  ;;  %702 = vmatpush.msra.mxu3 %v4794_v53 }
  0x52   :  { %504 = vmatmul.f32.vlgmr.msrb.gmra.mxu0 %v8293_v23  ;;  %524 = vmatmul.f32.vlgmr.msrb.gmra.mxu1 %v8293_v23 }
  0x53   :  { %544 = vmatmul.f32.vlgmr.msrb.gmra.mxu2 %v8293_v23  ;;  %564 = vmatmul.f32.vlgmr.msrb.gmra.mxu3 %v8293_v23 }
  0x54   :  { %663 = vmatpush.msra.mxu1 %v4800_v55  ;;  %703 = vmatpush.msra.mxu3 %v4802_v57 }
  0x56   :  { %664 = vmatpush.msra.mxu1 %v4810_v62  ;;  %704 = vmatpush.msra.mxu3 %v4812_v0  ;;  %v4852_v0 = vld [vmem:[#allocation5 + $0x200] sm:$0xff]  ;;  %v4882_v62 = vld [vmem:[#allocation5 + $0x1c8] sm:$0xff] }
  0x57   :  { %8810 = vst [vmem:[#allocation24_spill] sm:$0xff] %v4852_v0 }
  0x58   :  { %665 = vmatpush.msra.mxu1 %v4814_v2  ;;  %705 = vmatpush.msra.mxu3 %v4818_v4  ;;  %v4842_v4 = vld [vmem:[#allocation5 + $0x240] sm:$0xff]  ;;  %v4850_v2 = vld [vmem:[#allocation5 + $0x228] sm:$0xff]  ;;  %8821 = vst [vmem:[#allocation35_spill] sm:$0xff] %v4882_v62 }
  0x59   :  { %8806 = vst [vmem:[#allocation20_spill] sm:$0xff] %v4842_v4 }
  0x5a   :  { %666 = vmatpush.msra.mxu1 %v4820_v6  ;;  %706 = vmatpush.msra.mxu3 %v4822_v8  ;;  %v4844_v6 = vld [vmem:[#allocation5 + $0x248] sm:$0xff]  ;;  %v4846_v8 = vld [vmem:[#allocation5 + $0x220] sm:$0xff]  ;;  %8809 = vst [vmem:[#allocation23_spill] sm:$0xff] %v4850_v2 }
  0x5b   :  { %8807 = vst [vmem:[#allocation21_spill] sm:$0xff] %v4844_v6 }
  0x5c   :  { %667 = vmatpush.msra.mxu1 %v4832_v15  ;;  %707 = vmatpush.msra.mxu3 %v4834_v20  ;;  %8808 = vst [vmem:[#allocation22_spill] sm:$0xff] %v4846_v8  ;;  %v4862_v20 = vld [vmem:[#allocation5 + $0x1e8] sm:$0xff] }
  0x5d   :  { %8813 = vst [vmem:[#allocation27_spill] sm:$0xff] %v4862_v20  ;;  %675 = vmatpush.msra.mxu2 %v4862_v20  ;;  %v4890_v20 = vld [vmem:[#allocation5 + $0x1a0] sm:$0xff] }
  0x5e   :  { %668 = vmatpush.msra.mxu1 %v4842_v4  ;;  %708 = vmatpush.msra.mxu3 %v4844_v6  ;;  %v4864_v4 = vld [vmem:[#allocation5 + $0x3f0] sm:$0xff]  ;;  %8824 = vst [vmem:[#allocation38_spill] sm:$0xff] %v4890_v20 }
  0x5f   :  { %8814 = vst [vmem:[#allocation28_spill] sm:$0xff] %v4864_v4  ;;  %676 = vmatpush.msra.mxu2 %v4882_v62  ;;  %v4904_v62 = vld [vmem:[#allocation5 + $0x188] sm:$0xff] }
  0x60   :  { %669 = vmatpush.msra.mxu1 %v4846_v8  ;;  %709 = vmatpush.msra.mxu3 %v4850_v2  ;;  %v4872_v8 = vld [vmem:[#allocation5 + $0x3f8] sm:$0xff]  ;;  %8829 = vst [vmem:[#allocation43_spill] sm:$0xff] %v4904_v62 }
  0x61   :  { %8817 = vst [vmem:[#allocation31_spill] sm:$0xff] %v4872_v8 }
  0x62   :  { %670 = vmatpush.msra.mxu1 %v4852_v0 }
  0x64   :  { %735 = vmatpush.msrb.mxu1 %v4864_v4  ;;  %v4908_v4 = vld [vmem:[#allocation5 + $0x398] sm:$0xff] }
  0x65   :  { %8831 = vst [vmem:[#allocation45_spill] sm:$0xff] %v4908_v4 }
  0x8f   :  { %v4804_v59 = vpop.f32.mrf.mxu0  ;;  %v4806_v61 = vpop.f32.mrf.mxu1 }
  0x96   :  { %v4828_v10 = vpop.f32.mrf.mxu2  ;;  %v4830_v12 = vpop.f32.mrf.mxu3 }
  0x97   :  { %v4836_v21 = vpop.f32.mrf.mxu0  ;;  %v4838_v23 = vpop.f32.mrf.mxu1 }
  0x98   :  { %8804 = vst [vmem:[#allocation18_spill] sm:$0xff] %v4836_v21  ;;  %v4854_v21 = vld [vmem:[#allocation5 + $0x208] sm:$0xff] }
  0x99   :  { %8805 = vst [vmem:[#allocation19_spill] sm:$0xff] %v4838_v23  ;;  %710 = vmatpush.msra.mxu3 %v4854_v21  ;;  %v4860_v23 = vld [vmem:[#allocation5 + $0x1e0] sm:$0xff] }
  0x9a   :  { %8811 = vst [vmem:[#allocation25_spill] sm:$0xff] %v4854_v21  ;;  %635 = vmatpush.msra.mxu0 %v4860_v23  ;;  %v4880_v21 = vld [vmem:[#allocation5 + $0x1c0] sm:$0xff] }
  0x9b   :  { %8812 = vst [vmem:[#allocation26_spill] sm:$0xff] %v4860_v23  ;;  %775 = vmatpush.msrb.mxu3 %v4872_v8  ;;  %v4898_v23 = vld [vmem:[#allocation5 + $0x3b8] sm:$0xff]  ;;  %v4900_v8 = vld [vmem:[#allocation5 + $0x180] sm:$0xff] }
  0x9c   :  { %8820 = vst [vmem:[#allocation34_spill] sm:$0xff] %v4880_v21  ;;  %636 = vmatpush.msra.mxu0 %v4880_v21  ;;  %v4906_v21 = vld [vmem:[#allocation5 + $0x390] sm:$0xff] }
  0x9d   :  { %8827 = vst [vmem:[#allocation41_spill] sm:$0xff] %v4898_v23 }
  0x9e   :  { %v4866_v6 = vpop.f32.mrf.mxu2  ;;  %v4868_v15 = vpop.f32.mrf.mxu3  ;;  %8828 = vst [vmem:[#allocation42_spill] sm:$0xff] %v4900_v8  ;;  %637 = vmatpush.msra.mxu0 %v4890_v20  ;;  %v4916_v20 = vld [vmem:[#allocation5 + $0x160] sm:$0xff] }
  0x9f   :  { %8815 = vst [vmem:[#allocation29_spill] sm:$0xff] %v4866_v6  ;;  %v4874_v2 = vpop.f32.mrf.mxu0  ;;  %v4876_v0 = vpop.f32.mrf.mxu1  ;;  %v4884_v6 = vld [vmem:[#allocation5 + $0x3d0] sm:$0xff] }
  0xa0   :  { %8816 = vst [vmem:[#allocation30_spill] sm:$0xff] %v4868_v15  ;;  %v4888_v15 = vld [vmem:[#allocation5 + $0x3d8] sm:$0xff]  ;;  %736 = vmatpush.msrb.mxu1 %v4884_v6  ;;  %638 = vmatpush.msra.mxu0 %v4900_v8 }
  0xa1   :  { %8818 = vst [vmem:[#allocation32_spill] sm:$0xff] %v4874_v2  ;;  %v4892_v2 = vld [vmem:[#allocation5 + $0x1a8] sm:$0xff]  ;;  %776 = vmatpush.msrb.mxu3 %v4888_v15  ;;  %v4928_v8 = vld [vmem:[#allocation5 + $0x378] sm:$0xff] }
  0xa2   :  { %8819 = vst [vmem:[#allocation33_spill] sm:$0xff] %v4876_v0  ;;  %v4896_v0 = vld [vmem:[#allocation5 + $0x3b0] sm:$0xff]  ;;  %677 = vmatpush.msra.mxu2 %v4892_v2  ;;  %639 = vmatpush.msra.mxu0 %v4916_v20 }
  0xa3   :  { %8822 = vst [vmem:[#allocation36_spill] sm:$0xff] %v4884_v6  ;;  %737 = vmatpush.msrb.mxu1 %v4896_v0  ;;  %777 = vmatpush.msrb.mxu3 %v4898_v23  ;;  %v4938_v23 = vld [vmem:[#allocation5 + $0x148] sm:$0xff] }
  0xa4   :  { %8823 = vst [vmem:[#allocation37_spill] sm:$0xff] %v4888_v15  ;;  %678 = vmatpush.msra.mxu2 %v4904_v62  ;;  %v4920_v15 = vld [vmem:[#allocation5 + $0x370] sm:$0xff] }
  0xa5   :  { %8825 = vst [vmem:[#allocation39_spill] sm:$0xff] %v4892_v2  ;;  %738 = vmatpush.msrb.mxu1 %v4906_v21  ;;  %778 = vmatpush.msrb.mxu3 %v4908_v4  ;;  %v4918_v2 = vld [vmem:[#allocation5 + $0x168] sm:$0xff]  ;;  %v4936_v4 = vld [vmem:[#allocation5 + $0x140] sm:$0xff] }
  0xa6   :  { %8826 = vst [vmem:[#allocation40_spill] sm:$0xff] %v4896_v0  ;;  %v4922_v6 = vpop.f32.mrf.mxu2  ;;  %v4924_v57 = vpop.f32.mrf.mxu3  ;;  %679 = vmatpush.msra.mxu2 %v4918_v2  ;;  %640 = vmatpush.msra.mxu0 %v4936_v4 }
  0xa7   :  { %8830 = vst [vmem:[#allocation44_spill] sm:$0xff] %v4906_v21  ;;  %v4930_v62 = vpop.f32.mrf.mxu0  ;;  %v4932_v21 = vpop.f32.mrf.mxu1  ;;  %739 = vmatpush.msrb.mxu1 %v4920_v15  ;;  %779 = vmatpush.msrb.mxu3 %v4928_v8 }
  0xa8   :  { %8832 = vst [vmem:[#allocation46_spill] sm:$0xff] %v4916_v20  ;;  %680 = vmatpush.msra.mxu2 %v4938_v23  ;;  %v4954_v20 = vld [vmem:[#allocation5 + $0x338] sm:$0xff] }
  0xa9   :  { %8833 = vst [vmem:[#allocation47_spill] sm:$0xff] %v4918_v2  ;;  %v4946_v2 = vld [vmem:[#allocation5 + $0x120] sm:$0xff] }
  0xaa   :  { %8834 = vst [vmem:[#allocation48_spill] sm:$0xff] %v4920_v15  ;;  %641 = vmatpush.msra.mxu0 %v4946_v2  ;;  %v4964_v15 = vld [vmem:[#allocation5 + $0x318] sm:$0xff] }
  0xab   :  { %8835 = vst [vmem:[#allocation49_spill] sm:$0xff] %v4922_v6  ;;  %v4940_v6 = vld [vmem:[#allocation5 + $0x350] sm:$0xff] }
  0xac   :  { %8836 = vst [vmem:[#allocation50_spill] sm:$0xff] %v4924_v57  ;;  %v4944_v57 = vld [vmem:[#allocation5 + $0x358] sm:$0xff]  ;;  %740 = vmatpush.msrb.mxu1 %v4940_v6 }
  0xad   :  { %8837 = vst [vmem:[#allocation51_spill] sm:$0xff] %v4928_v8  ;;  %780 = vmatpush.msrb.mxu3 %v4944_v57  ;;  %v4956_v8 = vld [vmem:[#allocation5 + $0x100] sm:$0xff] }
  0xae   :  { %8838 = vst [vmem:[#allocation52_spill] sm:$0xff] %v4930_v62  ;;  %v4948_v62 = vld [vmem:[#allocation5 + $0x128] sm:$0xff]  ;;  %642 = vmatpush.msra.mxu0 %v4956_v8  ;;  %v4980_v0 = vpop.f32.mrf.mxu3 }
  0xaf   :  { %8839 = vst [vmem:[#allocation53_spill] sm:$0xff] %v4932_v21  ;;  %v4952_v21 = vld [vmem:[#allocation5 + $0x330] sm:$0xff]  ;;  %681 = vmatpush.msra.mxu2 %v4948_v62  ;;  %781 = vmatpush.msrb.mxu3 %v4954_v20 }
  0xb0   :  { %8840 = vst [vmem:[#allocation54_spill] sm:$0xff] %v4936_v4  ;;  %v4962_v4 = vld [vmem:[#allocation5 + $0x310] sm:$0xff]  ;;  %741 = vmatpush.msrb.mxu1 %v4952_v21 }
  0xb1   :  { %8841 = vst [vmem:[#allocation55_spill] sm:$0xff] %v4938_v23  ;;  %v4960_v23 = vld [vmem:[#allocation5 + $0x108] sm:$0xff]  ;;  %782 = vmatpush.msrb.mxu3 %v4964_v15 }
  0xb2   :  { %8842 = vst [vmem:[#allocation56_spill] sm:$0xff] %v4940_v6  ;;  %682 = vmatpush.msra.mxu2 %v4960_v23  ;;  %742 = vmatpush.msrb.mxu1 %v4962_v4  ;;  %v4978_v6 = vpop.f32.mrf.mxu2 }
  0xb3   :  { %8843 = vst [vmem:[#allocation57_spill] sm:$0xff] %v4944_v57  ;;  %v4976_v57 = vld [vmem:[#allocation5 + $0x2f0] sm:$0xff] }
  0xb4   :  { %8844 = vst [vmem:[#allocation58_spill] sm:$0xff] %v4946_v2  ;;  %v4972_v2 = vld [vmem:[#allocation5 + $0xe0] sm:$0xff]  ;;  %743 = vmatpush.msrb.mxu1 %v4976_v57 }
  0xb5   :  { %8845 = vst [vmem:[#allocation59_spill] sm:$0xff] %v4948_v62  ;;  %v4974_v62 = vld [vmem:[#allocation5 + $0xe8] sm:$0xff]  ;;  %643 = vmatpush.msra.mxu0 %v4972_v2 }
  0xb6   :  { %8846 = vst [vmem:[#allocation60_spill] sm:$0xff] %v4952_v21  ;;  %683 = vmatpush.msra.mxu2 %v4974_v62  ;;  %v5054_v21 = vld [vmem:[#allocation5 + $0x250] sm:$0xff] }
  0xb7   :  { %8847 = vst [vmem:[#allocation61_spill] sm:$0xff] %v4954_v20  ;;  %v4994_v20 = vld [vmem:[#allocation5 + $0xc8] sm:$0xff] }
  0xb8   :  { %8848 = vst [vmem:[#allocation62_spill] sm:$0xff] %v4956_v8  ;;  %v4984_v8 = vld [vmem:[#allocation5 + $0x2f8] sm:$0xff]  ;;  %684 = vmatpush.msra.mxu2 %v4994_v20 }
  0xb9   :  { %8849 = vst [vmem:[#allocation63_spill] sm:$0xff] %v4960_v23  ;;  %v4986_v23 = vpop.f32.mrf.mxu0  ;;  %783 = vmatpush.msrb.mxu3 %v4984_v8 }
  0xba   :  { %8850 = vst [vmem:[#allocation64_spill] sm:$0xff] %v4962_v4  ;;  %v4988_v4 = vpop.f32.mrf.mxu1 }
  0xbb   :  { %8851 = vst [vmem:[#allocation65_spill] sm:$0xff] %v4964_v15  ;;  %v4992_v15 = vld [vmem:[#allocation5 + $0xc0] sm:$0xff] }
  0xbc   :  { %8852 = vst [vmem:[#allocation66_spill] sm:$0xff] %v4972_v2  ;;  %644 = vmatpush.msra.mxu0 %v4992_v15  ;;  %v5012_v2 = vld [vmem:[#allocation5 + $0x2b8] sm:$0xff] }
  0xbd   :  { %8853 = vst [vmem:[#allocation67_spill] sm:$0xff] %v4974_v62  ;;  %v5008_v62 = vld [vmem:[#allocation5 + $0x2b0] sm:$0xff] }
  0xbe   :  { %8854 = vst [vmem:[#allocation68_spill] sm:$0xff] %v4976_v57  ;;  %v5052_v57 = vld [vmem:[#allocation5 + $0x48] sm:$0xff] }
  0xbf   :  { %8855 = vst [vmem:[#allocation69_spill] sm:$0xff] %v4978_v6  ;;  %v4996_v6 = vld [vmem:[#allocation5 + $0x2d0] sm:$0xff] }
  0xc0   :  { %8856 = vst [vmem:[#allocation70_spill] sm:$0xff] %v4980_v0  ;;  %v5000_v0 = vld [vmem:[#allocation5 + $0x2d8] sm:$0xff]  ;;  %744 = vmatpush.msrb.mxu1 %v4996_v6 }
  0xc1   :  { %8857 = vst [vmem:[#allocation71_spill] sm:$0xff] %v4984_v8  ;;  %784 = vmatpush.msrb.mxu3 %v5000_v0  ;;  %v8875_v8 = vmov 0.0  }
  0xc2   :  { %8858 = vst [vmem:[#allocation72_spill] sm:$0xff] %v4986_v23  ;;  %v5004_v23 = vld [vmem:[#allocation5 + $0xa0] sm:$0xff]  ;;  %745 = vmatpush.msrb.mxu1 %v5008_v62  ;;  %711 = vmatmul.f32.vlgmr.msra.gmra.mxu3 %v8875_v8 }
  0xc3   :  { %8859 = vst [vmem:[#allocation73_spill] sm:$0xff] %v4988_v4  ;;  %v5006_v4 = vld [vmem:[#allocation5 + $0xa8] sm:$0xff]  ;;  %645 = vmatpush.msra.mxu0 %v5004_v23  ;;  %785 = vmatpush.msrb.mxu3 %v5012_v2 }
  0xc4   :  { %8860 = vst [vmem:[#allocation74_spill] sm:$0xff] %v4992_v15  ;;  %685 = vmatpush.msra.mxu2 %v5006_v4  ;;  %v5018_v15 = vld [vmem:[#allocation5 + $0x88] sm:$0xff]  ;;  %671 = vmatmul.f32.vlgmr.msra.gmra.mxu1 %v8875_v8 }
  0xc5   :  { %8861 = vst [vmem:[#allocation75_spill] sm:$0xff] %v4994_v20  ;;  %v5016_v20 = vld [vmem:[#allocation5 + $0x80] sm:$0xff] }
  0xc6   :  { %8862 = vst [vmem:[#allocation76_spill] sm:$0xff] %v4996_v6  ;;  %646 = vmatpush.msra.mxu0 %v5016_v20  ;;  %686 = vmatpush.msra.mxu2 %v5018_v15  ;;  %v5024_v6 = vld [vmem:[#allocation5 + $0x298] sm:$0xff] }
  0xc7   :  { %8863 = vst [vmem:[#allocation77_spill] sm:$0xff] %v5000_v0  ;;  %v5020_v0 = vld [vmem:[#allocation5 + $0x290] sm:$0xff]  ;;  %786 = vmatpush.msrb.mxu3 %v5024_v6 }
  0xc8   :  { %8864 = vst [vmem:[#allocation78_spill] sm:$0xff] %v5004_v23  ;;  %746 = vmatpush.msrb.mxu1 %v5020_v0  ;;  %v5030_v23 = vld [vmem:[#allocation5 + $0x60] sm:$0xff] }
  0xc9   :  { %8865 = vst [vmem:[#allocation79_spill] sm:$0xff] %v5006_v4  ;;  %v5028_v4 = vpop.f32.mrf.mxu2  ;;  %647 = vmatpush.msra.mxu0 %v5030_v23 }
  0xca   :  { %8866 = vst [vmem:[#allocation80_spill] sm:$0xff] %v5008_v62  ;;  %v5034_v62 = vld [vmem:[#allocation5 + $0x270] sm:$0xff] }
  0xcb   :  { %8867 = vst [vmem:[#allocation81_spill] sm:$0xff] %v5012_v2  ;;  %v5032_v2 = vld [vmem:[#allocation5 + $0x68] sm:$0xff]  ;;  %747 = vmatpush.msrb.mxu1 %v5034_v62 }
  0xcc   :  { %8868 = vst [vmem:[#allocation82_spill] sm:$0xff] %v5016_v20  ;;  %v5038_v20 = vpop.f32.mrf.mxu0  ;;  %687 = vmatpush.msra.mxu2 %v5032_v2 }
  0xcd   :  { %8869 = vst [vmem:[#allocation83_spill] sm:$0xff] %v5018_v15  ;;  %v5040_v15 = vpop.f32.mrf.mxu1  ;;  %748 = vmatpush.msrb.mxu1 %v5054_v21 }
  0xce   :  { %8870 = vst [vmem:[#allocation84_spill] sm:$0xff] %v5020_v0  ;;  %v5050_v0 = vld [vmem:[#allocation5 + $0x40] sm:$0xff]  ;;  %688 = vmatpush.msra.mxu2 %v5052_v57 }
  0xcf   :  { %8871 = vst [vmem:[#allocation85_spill] sm:$0xff] %v5024_v6  ;;  %v5044_v6 = vld [vmem:[#allocation5 + $0x278] sm:$0xff]  ;;  %648 = vmatpush.msra.mxu0 %v5050_v0 }
  0xd0   :  { %8872 = vst [vmem:[#allocation86_spill] sm:$0xff] %v5028_v4  ;;  %v5046_v4 = vpop.f32.mrf.mxu3  ;;  %787 = vmatpush.msrb.mxu3 %v5044_v6 }
  0xd1   :  { %8873 = vst [vmem:[#allocation87_spill] sm:$0xff] %v5030_v23  ;;  %v5070_v23 = vld [vmem:[#allocation5 + $0x238] sm:$0xff] }
  0xd2   :  { %8874 = vst [vmem:[#allocation88_spill] sm:$0xff] %v5032_v2  ;;  %v5066_v2 = vld [vmem:[#allocation5 + $0x230] sm:$0xff] }
  0xd3   :  { %8876 = vst [vmem:[#allocation89_spill] sm:$0xff] %v5038_v20  ;;  %v5058_v20 = vld [vmem:[#allocation5 + $0x258] sm:$0xff]  ;;  %749 = vmatpush.msrb.mxu1 %v5066_v2 }
  0xd4   :  { %8877 = vst [vmem:[#allocation90_spill] sm:$0xff] %v5040_v15  ;;  %788 = vmatpush.msrb.mxu3 %v5058_v20  ;;  %v5062_v15 = vld [vmem:[#allocation5 + $0x20] sm:$0xff] }
  0xd5   :  { %8878 = vst [vmem:[#allocation91_spill] sm:$0xff] %v5044_v6  ;;  %649 = vmatpush.msra.mxu0 %v5062_v15  ;;  %v5088_v6 = vpop.f32.mrf.mxu2 }
  0xd6   :  { %8879 = vst [vmem:[#allocation92_spill] sm:$0xff] %v5046_v4  ;;  %v5064_v4 = vld [vmem:[#allocation5 + $0x28] sm:$0xff]  ;;  %789 = vmatpush.msrb.mxu3 %v5070_v23 }
  0xd7   :  { %8880 = vst [vmem:[#allocation93_spill] sm:$0xff] %v5050_v0  ;;  %689 = vmatpush.msra.mxu2 %v5064_v4  ;;  %v5076_v0 = vld [vmem:[#allocation5 + $0x8] sm:$0xff] }
  0xd8   :  { %8881 = vst [vmem:[#allocation94_spill] sm:$0xff] %v5052_v57  ;;  %v5074_v57 = vld [vmem:[#allocation5] sm:$0xff] }
  0xd9   :  { %8882 = vst [vmem:[#allocation95_spill] sm:$0xff] %v5054_v21  ;;  %650 = vmatpush.msra.mxu0 %v5074_v57  ;;  %690 = vmatpush.msra.mxu2 %v5076_v0  ;;  %v5082_v21 = vld [vmem:[#allocation5 + $0x218] sm:$0xff] }
  0xda   :  { %8883 = vst [vmem:[#allocation96_spill] sm:$0xff] %v5058_v20  ;;  %v5078_v20 = vld [vmem:[#allocation5 + $0x210] sm:$0xff]  ;;  %790 = vmatpush.msrb.mxu3 %v5082_v21 }
  0xdb   :  { %8884 = vst [vmem:[#allocation97_spill] sm:$0xff] %v5062_v15  ;;  %v5084_v15 = vld [vmem:[#allocation5 + $0x1f0] sm:$0xff]  ;;  %750 = vmatpush.msrb.mxu1 %v5078_v20  ;;  %791 = vmatmul.f32.vlgmr.msrb.gmra.mxu3 %v8875_v8 }
  0xdc   :  { %8885 = vst [vmem:[#allocation98_spill] sm:$0xff] %v5064_v4  ;;  %v5086_v4 = vld [vmem:[#allocation5 + $0x1f8] sm:$0xff]  ;;  %715 = vmatpush.msrb.mxu0 %v5084_v15  ;;  %923 = vmatpush.msra.mxu3 %v4608_v16 }
  0xdd   :  { %8886 = vst [vmem:[#allocation99_spill] sm:$0xff] %v5066_v2  ;;  %v5094_v2 = vpop.f32.mrf.mxu1  ;;  %755 = vmatpush.msrb.mxu2 %v5086_v4  ;;  %883 = vmatpush.msra.mxu1 %v4599_v11  ;;  %v5116_v11 = vld [vmem:[#allocation5 + $0x190] sm:$0xff]  ;;  %v5118_v16 = vld [vmem:[#allocation5 + $0x198] sm:$0xff] }
  0xde   :  { %8887 = vst [vmem:[#allocation100_spill] sm:$0xff] %v5070_v23  ;;  %v5092_v23 = vpop.f32.mrf.mxu0  ;;  %924 = vmatpush.msra.mxu3 %v4613_v19  ;;  %v5128_v19 = vpop.f32.mrf.mxu2  ;;  %751 = vmatmul.f32.vlgmr.msrb.gmra.mxu1 %v8875_v8 }
  0xdf   :  { %8888 = vst [vmem:[#allocation101_spill] sm:$0xff] %v5074_v57  ;;  %v5100_v57 = vld [vmem:[#allocation5 + $0x1d8] sm:$0xff]  ;;  %884 = vmatpush.msra.mxu1 %v4605_v14 }
  0xe0   :  { %8889 = vst [vmem:[#allocation102_spill] sm:$0xff] %v5076_v0  ;;  %v5098_v0 = vld [vmem:[#allocation5 + $0x1d0] sm:$0xff]  ;;  %756 = vmatpush.msrb.mxu2 %v5100_v57  ;;  %925 = vmatpush.msra.mxu3 %v4620_v22  ;;  %v5126_v14 = vld [vmem:[#allocation5 + $0x178] sm:$0xff] }
  0xe1   :  { %8890 = vst [vmem:[#allocation103_spill] sm:$0xff] %v5088_v6  ;;  %716 = vmatpush.msrb.mxu0 %v5098_v0  ;;  %v5106_v6 = vld [vmem:[#allocation5 + $0x1b0] sm:$0xff]  ;;  %885 = vmatpush.msra.mxu1 %v4610_v18  ;;  %v5135_v18 = vld [vmem:[%s8287_s3] sm:$0xf] }
  0xe2   :  { %8891 = vst [vmem:[#allocation104_spill] sm:$0xff] %v5092_v23  ;;  %v5108_v23 = vld [vmem:[#allocation5 + $0x1b8] sm:$0xff]  ;;  %926 = vmatpush.msra.mxu3 %v4628_v26 }
  0xe3   :  { %8892 = vst [vmem:[#allocation105_spill] sm:$0xff] %v5094_v2  ;;  %v5110_v2 = vpop.f32.mrf.mxu3  ;;  %717 = vmatpush.msrb.mxu0 %v5106_v6  ;;  %757 = vmatpush.msrb.mxu2 %v5108_v23  ;;  %v5153_v26 = vld [vmem:[#allocation5 + $0x138] sm:$0xff] }
  0xe4   :  { %8893 = vst [vmem:[#allocation106_spill] sm:$0xff] %v5110_v2  ;;  %v5124_v2 = vld [vmem:[#allocation5 + $0x170] sm:$0xff]  ;;  %886 = vmatpush.msra.mxu1 %v4623_v24  ;;  %927 = vmatpush.msra.mxu3 %v4635_v30  ;;  %v5167_v30 = vld [vmem:[#allocation5 + $0x118] sm:$0xff] }
  0xe5   :  { %8894 = vst [vmem:[#allocation107_spill] sm:$0xff] %v5116_v11  ;;  %718 = vmatpush.msrb.mxu0 %v5116_v11  ;;  %758 = vmatpush.msrb.mxu2 %v5118_v16  ;;  %v5139_v11 = vpop.f32.mrf.mxu1  ;;  %v5151_v24 = vld [vmem:[#allocation5 + $0x130] sm:$0xff] }
  0xe6   :  { %8895 = vst [vmem:[#allocation108_spill] sm:$0xff] %v5118_v16  ;;  %v5137_v22 = vpop.f32.mrf.mxu0  ;;  %v5143_v16 = vld [vmem:[#allocation5 + $0x150] sm:$0xff]  ;;  %887 = vmatpush.msra.mxu1 %v4632_v28  ;;  %928 = vmatpush.msra.mxu3 %v4641_v34  ;;  %v5177_v34 = vld [vmem:[#allocation5 + $0xf8] sm:$0xff] }
  0xe7   :  { %8896 = vst [vmem:[#allocation109_spill] sm:$0xff] %v5128_v19  ;;  %719 = vmatpush.msrb.mxu0 %v5124_v2  ;;  %759 = vmatpush.msrb.mxu2 %v5126_v14  ;;  %v5145_v19 = vld [vmem:[#allocation5 + $0x158] sm:$0xff]  ;;  %v5165_v28 = vld [vmem:[#allocation5 + $0x110] sm:$0xff] }
  0xe8   :  { %8897 = vst [vmem:[#allocation110_spill] sm:$0xff] %v5137_v22  ;;  %v5156_v22 = vperm.slane %v5135_v18, 0  ;;  %888 = vmatpush.msra.mxu1 %v4637_v32  ;;  %929 = vmatpush.msra.mxu3 %v4650_v39  ;;  %v5175_v32 = vld [vmem:[#allocation5 + $0xf0] sm:$0xff] }
  0xe9   :  { %8898 = vst [vmem:[#allocation111_spill] sm:$0xff] %v5139_v11  ;;  %720 = vmatpush.msrb.mxu0 %v5143_v16  ;;  %760 = vmatpush.msrb.mxu2 %v5145_v19  ;;  %v5159_v11 = vperm.slane %v5135_v18, 1 }
  0xea   :  { %8899 = vst [vmem:[#allocation112_spill] sm:$0xff] %v5143_v16  ;;  %889 = vmatpush.msra.mxu1 %v4646_v37  ;;  %v5183_v16 = vpop.f32.mrf.mxu2  ;;  %930 = vmatpush.msra.mxu3 %v4660_v43  ;;  %v5200_v43 = vld [vmem:[#allocation5 + $0xb0] sm:$0xff] }
  0xeb   :  { %8900 = vst [vmem:[#allocation113_spill] sm:$0xff] %v5145_v19  ;;  %721 = vmatpush.msrb.mxu0 %v5151_v24  ;;  %761 = vmatpush.msrb.mxu2 %v5153_v26  ;;  %v5169_v19 = vpop.f32.mrf.mxu3 }
  0xec   :  { %8901 = vst [vmem:[#allocation114_spill] sm:$0xff] %v5151_v24  ;;  %v173_v24 = vadd.f32 %v4806_v61, %v5159_v11  ;;  %890 = vmatpush.msra.mxu1 %v4657_v41  ;;  %931 = vmatpush.msra.mxu3 %v4666_v47  ;;  %v5196_v41 = vperm.slane %v5135_v18, 2  ;;  %v5202_v61 = vld [vmem:[#allocation5 + $0xb8] sm:$0xff] }
  0xed   :  { %8902 = vst [vmem:[#allocation115_spill] sm:$0xff] %v5153_v26  ;;  %722 = vmatpush.msrb.mxu0 %v5165_v28  ;;  %762 = vmatpush.msrb.mxu2 %v5167_v30  ;;  %v132_v26 = vadd.f32 %v4804_v59, %v5156_v22  ;;  %v525_v39 = vpop.f32.mrf.mxu1  ;;  %v5210_v47 = vld [vmem:[#allocation5 + $0x98] sm:$0xff] }
  0xee   :  { %8903 = vst [vmem:[#allocation116_spill] sm:$0xff] %v5156_v22  ;;  %v505_v37 = vpop.f32.mrf.mxu0  ;;  %v569_v22 = vadd.f32 %v525_v39, %v173_v24  ;;  %891 = vmatpush.msra.mxu1 %v4662_v45  ;;  %932 = vmatpush.msra.mxu3 %v4678_v52  ;;  %v5208_v45 = vld [vmem:[#allocation5 + $0x90] sm:$0xff]  ;;  %v5220_v52 = vld [vmem:[#allocation5 + $0x78] sm:$0xff] }
  0xef   :  { %8904 = vst [vmem:[#allocation117_spill] sm:$0xff] %v5159_v11  ;;  %723 = vmatpush.msrb.mxu0 %v5175_v32  ;;  %763 = vmatpush.msrb.mxu2 %v5177_v34  ;;  %v568_v59 = vadd.f32 %v505_v37, %v132_v26  ;;  %v5244_v39 = vld [vmem:[#allocation5 + $0x10] sm:$0xff] }
  0xf0   :  { %8905 = vst [vmem:[#allocation118_spill] sm:$0xff] %v5167_v30  ;;  %v5191_v30 = vld [vmem:[#allocation5 + $0xd8] sm:$0xff]  ;;  %v3536_v11 = vmul.f32 -1.442695, %v569_v22  ;;  %892 = vmatpush.msra.mxu1 %v4673_v50  ;;  %933 = vmatpush.msra.mxu3 %v4685_v56  ;;  %v214_v22 = vadd.f32 %v4828_v10, %v5196_v41  ;;  %v5218_v50 = vld [vmem:[#allocation5 + $0x70] sm:$0xff] }
  0xf1   :  { %8906 = vst [vmem:[#allocation119_spill] sm:$0xff] %v5169_v19  ;;  %v5189_v19 = vld [vmem:[#allocation5 + $0xd0] sm:$0xff]  ;;  %764 = vmatpush.msrb.mxu2 %v5191_v30  ;;  %v5230_v10 = vld [vmem:[#allocation5 + $0x58] sm:$0xff] }
  0xf2   :  { %8907 = vst [vmem:[#allocation120_spill] sm:$0xff] %v5183_v16  ;;  %724 = vmatpush.msrb.mxu0 %v5189_v19  ;;  %v3535_v16 = vmul.f32 -1.442695, %v568_v59  ;;  %893 = vmatpush.msra.mxu1 %v4682_v54  ;;  %v545_v26 = vpop.f32.mrf.mxu2  ;;  %v5228_v56 = vld [vmem:[#allocation5 + $0x50] sm:$0xff]  ;;  %v5253_v59 = vperm.slane %v5135_v18, 3 }
  0xf3   :  { %765 = vmatpush.msrb.mxu2 %v5202_v61  ;;  %v5222_v24 = vpop.f32.mrf.mxu3  ;;  %934 = vmatpush.msra.mxu3 %v4691_v60  ;;  %v570_v54 = vadd.f32 %v545_v26, %v214_v22  ;;  %v5238_v60 = vld [vmem:[#allocation5 + $0x38] sm:$0xff] }
  0xf4   :  { %725 = vmatpush.msrb.mxu0 %v5200_v43  ;;  %3597 = vpow2.f32 %v3535_v16  ;;  %8908 = vst [vmem:[#allocation121_spill] sm:$0xff] %v5222_v24  ;;  %894 = vmatpush.msra.mxu1 %v4687_v58  ;;  %v5236_v58 = vld [vmem:[#allocation5 + $0x30] sm:$0xff] }
  0xf5   :  { %3599 = vpow2.f32 %v3536_v11  ;;  %766 = vmatpush.msrb.mxu2 %v5210_v47  ;;  %v3537_v11 = vmul.f32 -1.442695, %v570_v54  ;;  %935 = vmatpush.msra.mxu3 %v4703_v1  ;;  %v5419_v24 = vld [vmem:[#allocation3 + $0x50] sm:$0xff] }
  0xf6   :  { %726 = vmatpush.msrb.mxu0 %v5208_v45  ;;  %895 = vmatpush.msra.mxu1 %v4698_v63  ;;  %v5246_v63 = vld [vmem:[#allocation5 + $0x18] sm:$0xff] }
  0xf7   :  { %767 = vmatpush.msrb.mxu2 %v5220_v52  ;;  %3601 = vpow2.f32 %v3537_v11  ;;  %936 = vmatpush.msra.mxu3 %v4710_v5 }
  0xf8   :  { %727 = vmatpush.msrb.mxu0 %v5218_v50  ;;  %896 = vmatpush.msra.mxu1 %v4707_v3 }
  0xf9   :  { %768 = vmatpush.msrb.mxu2 %v5230_v10  ;;  %937 = vmatpush.msra.mxu3 %v4716_v9 }
  0xfa   :  { %v3598_v16 = vpop.eup %3597  ;;  %728 = vmatpush.msrb.mxu0 %v5228_v56  ;;  %897 = vmatpush.msra.mxu1 %v4712_v7  ;;  %v255_v7 = vadd.f32 %v4830_v12, %v5253_v59 }
  0xfb   :  { %v3600_v8 = vpop.eup %3599  ;;  %v581_v37 = vadd.f32 1.0, %v3598_v16  ;;  %769 = vmatpush.msrb.mxu2 %v5238_v60  ;;  %938 = vmatpush.msra.mxu3 %v4728_v17  ;;  %v565_v3 = vpop.f32.mrf.mxu3 }
  0xfc   :  { %v5248_v1 = vadd.f32 1.0, %v3600_v8  ;;  %729 = vmatpush.msrb.mxu0 %v5236_v58  ;;  %898 = vmatpush.msra.mxu1 %v4723_v13  ;;  %v571_v22 = vadd.f32 %v565_v3, %v255_v7 }
  0xfd   :  { %3603 = vrcp.f32 %v581_v37  ;;  %770 = vmatpush.msrb.mxu2 %v5246_v63  ;;  %1070 = vmatpush.msrb.mxu3 %v4754_v27  ;;  %v3602_v5 = vpop.eup %3601  ;;  %v593_v54 = vand.u32 2147483647, %v581_v37  ;;  %vm589_vm3 = vweird.f32 %v581_v37 }
  0xfe   :  { %3605 = vrcp.f32 %v5248_v1  ;;  %730 = vmatpush.msrb.mxu0 %v5244_v39  ;;  %1030 = vmatpush.msrb.mxu1 %v4752_v25  ;;  %v5266_v9 = vadd.f32 1.0, %v3602_v5  ;;  %vm604_vm4 = vweird.f32 %v5248_v1 }
  0xff   :  { %1071 = vmatpush.msrb.mxu3 %v4760_v31  ;;  %v610_v31 = vand.u32 2147483648, %v5248_v1  ;;  %vm594_vm6 = vcmp.eq.f32.partialorder %v593_v54, 8.507059e+37  ;;  %v8917_v54 = vld [vmem:[#allocation17_spill] sm:$0xff] }
 0x100   :  { %1031 = vmatpush.msrb.mxu1 %v4758_v29  ;;  %3607 = vrcp.f32 %v5266_v9  ;;  %v595_v29 = vand.u32 2147483648, %v581_v37  ;;  %vm619_vm10 = vweird.f32 %v5266_v9 }
 0x101   :  { %1072 = vmatpush.msrb.mxu3 %v4766_v35  ;;  %3609 = vtanh.f32 %v571_v22  ;;  %v608_v35 = vand.u32 2147483647, %v5248_v1  ;;  %v611_v8 = vor.u32 1.1754944e-38, %v610_v31  ;;  %v8909_v22 = vld [vmem:[#allocation9_spill] sm:$0xff] }
 0x102   :  { %1032 = vmatpush.msrb.mxu1 %v4762_v33  ;;  %v596_v16 = vor.u32 1.1754944e-38, %v595_v29  ;;  %v8915_v29 = vld [vmem:[#allocation15_spill] sm:$0xff] }
 0x103   :  { %v3604_v18 = vpop.eup %3603  ;;  %1073 = vmatpush.msrb.mxu3 %v4770_v38  ;;  %vm609_vm8 = vcmp.eq.f32.partialorder %v608_v35, 8.507059e+37 }
 0x104   :  { %v3606_v13 = vpop.eup %3605  ;;  %v585_v26 = vmul.f32 %v3604_v18, %v581_v37  ;;  %1033 = vmatpush.msrb.mxu1 %v4768_v36  ;;  %vm590_vm1 = vweird.f32 %v3604_v18 }
 0x105   :  { %v600_v17 = vmul.f32 %v3606_v13, %v5248_v1  ;;  %1074 = vmatpush.msrb.mxu3 %v4778_v42  ;;  %vm605_vm2 = vweird.f32 %v3606_v13  ;;  %vm591_vm5 = vmor %vm589_vm3, %vm590_vm1 }
 0x106   :  { %v586_v25 = vsub.f32 1.0, %v585_v26  ;;  %1034 = vmatpush.msrb.mxu1 %v4776_v40  ;;  %v3608_v11 = vpop.eup %3607  ;;  %vm606_vm7 = vmor %vm604_vm4, %vm605_vm2  ;;  %v8910_v26 = vld [vmem:[#allocation10_spill] sm:$0xff] }
 0x107   :  { %v601_v27 = vsub.f32 1.0, %v600_v17  ;;  %1075 = vmatpush.msrb.mxu3 %v4784_v46  ;;  %v615_v38 = vmul.f32 %v3608_v11, %v5266_v9  ;;  %v3610_v37 = vpop.eup %3609  ;;  %vm620_vm9 = vweird.f32 %v3608_v11  ;;  %v625_v17 = vand.u32 2147483648, %v5266_v9 }
 0x108   :  { %v587_v12 = vmul.f32 %v3604_v18, %v586_v25  ;;  %1035 = vmatpush.msrb.mxu1 %v4782_v44  ;;  %vm621_vm11 = vmor %vm619_vm10, %vm620_vm9 }
 0x109   :  { %v602_v33 = vmul.f32 %v3606_v13, %v601_v27  ;;  %1076 = vmatpush.msrb.mxu3 %v4790_v49  ;;  %v616_v44 = vsub.f32 1.0, %v615_v38  ;;  %v8914_v27 = vld [vmem:[#allocation14_spill] sm:$0xff]  ;;  %v626_v31 = vor.u32 1.1754944e-38, %v625_v17  ;;  %v8919_v38 = vld [vmem:[#allocation21_spill] sm:$0xff]  ;;  %v8926_v17 = vld [vmem:[#allocation36_spill] sm:$0xff] }
 0x10a   :  { %v588_v36 = vadd.f32 %v3604_v18, %v587_v12  ;;  %1036 = vmatpush.msrb.mxu1 %v4786_v48  ;;  %v8916_v12 = vld [vmem:[#allocation16_spill] sm:$0xff] }
 0x10b   :  { %v603_v40 = vadd.f32 %v3606_v13, %v602_v33  ;;  %1077 = vmatpush.msrb.mxu3 %v4794_v53  ;;  %v617_v7 = vmul.f32 %v3608_v11, %v616_v44  ;;  %v8912_v53 = vld [vmem:[#allocation12_spill] sm:$0xff]  ;;  %v5327_v44 = vld [vmem:[#allocation3 + $0x1a0] sm:$0xff] }
 0x10c   :  { %v592_v42 = vsel %vm591_vm5, %v3604_v18, %v588_v36  ;;  %1037 = vmatpush.msrb.mxu1 %v4792_v51  ;;  %v623_v51 = vand.u32 2147483647, %v5266_v9  ;;  %v8918_v9 = vld [vmem:[#allocation20_spill] sm:$0xff] }
 0x10d   :  { %v597_v3 = vsel %vm594_vm6, %v596_v16, %v592_v42  ;;  %v607_v46 = vsel %vm606_vm7, %v3606_v13, %v603_v40  ;;  %1078 = vmatpush.msrb.mxu3 %v8909_v22  ;;  %v618_v49 = vadd.f32 %v3608_v11, %v617_v7  ;;  %v8911_v13 = vld [vmem:[#allocation11_spill] sm:$0xff]  ;;  %v5319_v40 = vld [vmem:[#allocation3 + $0x1c0] sm:$0xff]  ;;  %v8924_v7 = vld [vmem:[#allocation28_spill] sm:$0xff] }
 0x10e   :  { %v612_v1 = vsel %vm609_vm8, %v611_v8, %v607_v46  ;;  %v631_v5 = vmul.f32 %v3610_v37, %v597_v3  ;;  %1038 = vmatpush.msrb.mxu1 %v4800_v55  ;;  %v8913_v55 = vld [vmem:[#allocation13_spill] sm:$0xff]  ;;  %vm624_vm12 = vcmp.eq.f32.partialorder %v623_v51, 8.507059e+37  ;;  %v5315_v16 = vld [vmem:[#allocation3 + $0x1f0] sm:$0xff]  ;;  %v8920_v8 = vld [vmem:[#allocation22_spill] sm:$0xff] }
 0x10f   :  { %v630_v18 = vmul.f32 0.0, %v612_v1  ;;  %1079 = vmatpush.msrb.mxu3 %v8911_v13  ;;  %v622_v25 = vsel %vm621_vm11, %v3608_v11, %v618_v49  ;;  %v5311_v11 = vld [vmem:[#allocation3 + $0x1e0] sm:$0xff]  ;;  %v5323_v42 = vld [vmem:[#allocation3 + $0x1d0] sm:$0xff]  ;;  %v8922_v3 = vld [vmem:[#allocation24_spill] sm:$0xff]  ;;  %8947 = vst [vmem:[#allocation13_spill] sm:$0xff] %v5419_v24 }
 0x110   :  { %1039 = vmatpush.msrb.mxu1 %v8910_v26  ;;  %v627_v35 = vsel %vm624_vm12, %v626_v31, %v622_v25  ;;  %v8921_v37 = vld [vmem:[#allocation23_spill] sm:$0xff]  ;;  %v8923_v1 = vld [vmem:[#allocation25_spill] sm:$0xff]  ;;  %v8928_v25 = vld [vmem:[#allocation40_spill] sm:$0xff] }
 0x111   :  { %v5291_v48 = vadd.f32 %v631_v5, %v630_v18  ;;  %1080 = vmatpush.msrb.mxu3 %v8913_v55  ;;  %v5331_v46 = vld [vmem:[#allocation3 + $0x1b0] sm:$0xff]  ;;  %v5335_v5 = vld [vmem:[#allocation3 + $0x180] sm:$0xff] }
 0x112   :  { %1040 = vmatpush.msrb.mxu1 %v8912_v53  ;;  %v5339_v18 = vld [vmem:[#allocation3 + $0x190] sm:$0xff]  ;;  %v5344_v22 = vld [vmem:[#allocation3 + $0x160] sm:$0xff] }
 0x113   :  { %3611 = vtanh.f32 %v5291_v48  ;;  %1081 = vmatpush.msrb.mxu3 %v8915_v29  ;;  %v5347_v49 = vld [vmem:[#allocation3 + $0x170] sm:$0xff]  ;;  %v5351_v13 = vld [vmem:[#allocation3 + $0x140] sm:$0xff] }
 0x114   :  { %1041 = vmatpush.msrb.mxu1 %v8914_v27  ;;  %v8925_v26 = vld [vmem:[#allocation31_spill] sm:$0xff]  ;;  %v8927_v53 = vld [vmem:[#allocation37_spill] sm:$0xff] }
 0x115   :  { %1082 = vmatpush.msrb.mxu3 %v8917_v54  ;;  %v5355_v51 = vld [vmem:[#allocation3 + $0x150] sm:$0xff]  ;;  %v5359_v55 = vld [vmem:[#allocation3 + $0x120] sm:$0xff] }
 0x116   :  { %1042 = vmatpush.msrb.mxu1 %v8916_v12  ;;  %v5363_v27 = vld [vmem:[#allocation3 + $0x130] sm:$0xff]  ;;  %v8929_v29 = vld [vmem:[#allocation41_spill] sm:$0xff]  ;;  %v8930_v12 = vld [vmem:[#allocation44_spill] sm:$0xff] }
 0x117   :  { %1083 = vmatpush.msrb.mxu3 %v8919_v38  ;;  %v5367_v31 = vld [vmem:[#allocation3 + $0x100] sm:$0xff]  ;;  %v5371_v54 = vld [vmem:[#allocation3 + $0x110] sm:$0xff] }
 0x118   :  { %1043 = vmatpush.msrb.mxu1 %v8918_v9  ;;  %v8932_v9 = vld [vmem:[#allocation48_spill] sm:$0xff]  ;;  %v5379_v38 = vld [vmem:[#allocation3 + $0xf0] sm:$0xff] }
 0x119   :  { %v3612_v33 = vpop.eup %3611  ;;  %1084 = vmatpush.msrb.mxu3 %v8921_v37  ;;  %v5383_v37 = vld [vmem:[#allocation3 + $0xc0] sm:$0xff] }
 0x11a   :  { %v5305_v36 = vmul.f32 %v3612_v33, %v627_v35  ;;  %1044 = vmatpush.msrb.mxu1 %v8920_v8  ;;  %v8931_v33 = vld [vmem:[#allocation45_spill] sm:$0xff]  ;;  %v8933_v8 = vld [vmem:[#allocation51_spill] sm:$0xff] }
 0x11b   :  { %1085 = vmatpush.msrb.mxu3 %v8923_v1  ;;  %v5375_v35 = vld [vmem:[#allocation3 + $0xe0] sm:$0xff]  ;;  %v5387_v1 = vld [vmem:[#allocation3 + $0xd0] sm:$0xff] }
 0x11c   :  { %651 = vmatmul.f32.vlgmr.msra.gmra.mxu0 %v5305_v36  ;;  %691 = vmatmul.f32.vlgmr.msra.gmra.mxu2 %v5305_v36 }
 0x11d   :  { %863 = vmatpush.msra.mxu0 %v5311_v11  ;;  %899 = vmatmul.f32.vlgmr.msra.gmra.mxu1 %v5305_v36 }
 0x11e   :  { %903 = vmatpush.msra.mxu2 %v5315_v16  ;;  %939 = vmatmul.f32.vlgmr.msra.gmra.mxu3 %v5305_v36 }
 0x11f   :  { %864 = vmatpush.msra.mxu0 %v5319_v40  ;;  %1045 = vmatpush.msrb.mxu1 %v8922_v3  ;;  %v8934_v3 = vld [vmem:[#allocation56_spill] sm:$0xff] }
 0x120   :  { %904 = vmatpush.msra.mxu2 %v5323_v42  ;;  %1150 = vmatpush.msra.mxu3 %v8925_v26  ;;  %v5391_v26 = vld [vmem:[#allocation3 + $0xa0] sm:$0xff] }
 0x121   :  { %865 = vmatpush.msra.mxu0 %v5327_v44  ;;  %1110 = vmatpush.msra.mxu1 %v8924_v7  ;;  %v8935_v7 = vld [vmem:[#allocation57_spill] sm:$0xff] }
 0x122   :  { %905 = vmatpush.msra.mxu2 %v5331_v46  ;;  %1151 = vmatpush.msra.mxu3 %v8927_v53  ;;  %v5395_v53 = vld [vmem:[#allocation3 + $0xb0] sm:$0xff] }
 0x123   :  { %866 = vmatpush.msra.mxu0 %v5335_v5  ;;  %1111 = vmatpush.msra.mxu1 %v8926_v17  ;;  %v8936_v17 = vld [vmem:[#allocation60_spill] sm:$0xff] }
 0x124   :  { %906 = vmatpush.msra.mxu2 %v5339_v18  ;;  %731 = vmatmul.f32.vlgmr.msrb.gmra.mxu0 %v5305_v36 }
 0x125   :  { %771 = vmatmul.f32.vlgmr.msrb.gmra.mxu2 %v5305_v36  ;;  %867 = vmatpush.msra.mxu0 %v5344_v22 }
 0x126   :  { %907 = vmatpush.msra.mxu2 %v5347_v49  ;;  %1112 = vmatpush.msra.mxu1 %v8928_v25  ;;  %v8937_v25 = vld [vmem:[#allocation61_spill] sm:$0xff] }
 0x127   :  { %868 = vmatpush.msra.mxu0 %v5351_v13  ;;  %1152 = vmatpush.msra.mxu3 %v8929_v29  ;;  %v5399_v29 = vld [vmem:[#allocation3 + $0x80] sm:$0xff] }
 0x128   :  { %908 = vmatpush.msra.mxu2 %v5355_v51  ;;  %1113 = vmatpush.msra.mxu1 %v8930_v12  ;;  %v8938_v12 = vld [vmem:[#allocation64_spill] sm:$0xff] }
 0x129   :  { %869 = vmatpush.msra.mxu0 %v5359_v55  ;;  %1153 = vmatpush.msra.mxu3 %v8931_v33  ;;  %v5403_v33 = vld [vmem:[#allocation3 + $0x90] sm:$0xff] }
 0x12a   :  { %909 = vmatpush.msra.mxu2 %v5363_v27  ;;  %1114 = vmatpush.msra.mxu1 %v8932_v9  ;;  %8939 = vst [vmem:[#allocation9_spill] sm:$0xff] %v5403_v33  ;;  %v8940_v9 = vld [vmem:[#allocation65_spill] sm:$0xff] }
 0x12b   :  { %870 = vmatpush.msra.mxu0 %v5367_v31  ;;  %1154 = vmatpush.msra.mxu3 %v8933_v8  ;;  %v5407_v8 = vld [vmem:[#allocation3 + $0x60] sm:$0xff] }
 0x12c   :  { %910 = vmatpush.msra.mxu2 %v5371_v54  ;;  %1115 = vmatpush.msra.mxu1 %v8934_v3  ;;  %8941 = vst [vmem:[#allocation10_spill] sm:$0xff] %v5407_v8  ;;  %v8942_v3 = vld [vmem:[#allocation68_spill] sm:$0xff] }
 0x12d   :  { %871 = vmatpush.msra.mxu0 %v5375_v35  ;;  %1155 = vmatpush.msra.mxu3 %v8935_v7  ;;  %v5411_v7 = vld [vmem:[#allocation3 + $0x70] sm:$0xff] }
 0x12e   :  { %911 = vmatpush.msra.mxu2 %v5379_v38  ;;  %1116 = vmatpush.msra.mxu1 %v8936_v17  ;;  %8943 = vst [vmem:[#allocation11_spill] sm:$0xff] %v5411_v7  ;;  %v8944_v17 = vld [vmem:[#allocation71_spill] sm:$0xff] }
 0x12f   :  { %872 = vmatpush.msra.mxu0 %v5383_v37  ;;  %1156 = vmatpush.msra.mxu3 %v8937_v25  ;;  %v5415_v25 = vld [vmem:[#allocation3 + $0x40] sm:$0xff] }
 0x130   :  { %912 = vmatpush.msra.mxu2 %v5387_v1  ;;  %1117 = vmatpush.msra.mxu1 %v8938_v12  ;;  %8945 = vst [vmem:[#allocation12_spill] sm:$0xff] %v5415_v25  ;;  %v8946_v12 = vld [vmem:[#allocation76_spill] sm:$0xff] }
 0x131   :  { %873 = vmatpush.msra.mxu0 %v5391_v26  ;;  %1157 = vmatpush.msra.mxu3 %v8940_v9  ;;  %v8948_v9 = vld [vmem:[#allocation77_spill] sm:$0xff] }
 0x132   :  { %913 = vmatpush.msra.mxu2 %v5395_v53  ;;  %1118 = vmatpush.msra.mxu1 %v8942_v3  ;;  %v8950_v3 = vld [vmem:[#allocation80_spill] sm:$0xff] }
 0x133   :  { %874 = vmatpush.msra.mxu0 %v5399_v29  ;;  %1158 = vmatpush.msra.mxu3 %v8944_v17  ;;  %v8952_v17 = vld [vmem:[#allocation81_spill] sm:$0xff] }
 0x134   :  { %914 = vmatpush.msra.mxu2 %v5403_v33  ;;  %1119 = vmatpush.msra.mxu1 %v8946_v12  ;;  %v8954_v12 = vld [vmem:[#allocation84_spill] sm:$0xff]  ;;  %v8964_v33 = vld [vmem:[#allocation39_spill] sm:$0xff] }
 0x135   :  { %875 = vmatpush.msra.mxu0 %v5407_v8  ;;  %1159 = vmatpush.msra.mxu3 %v8948_v9  ;;  %v5423_v8 = vld [vmem:[#allocation3 + $0x20] sm:$0xff]  ;;  %v8956_v9 = vld [vmem:[#allocation26_spill] sm:$0xff] }
 0x136   :  { %915 = vmatpush.msra.mxu2 %v5411_v7  ;;  %8949 = vst [vmem:[#allocation14_spill] sm:$0xff] %v5423_v8  ;;  %1120 = vmatpush.msra.mxu1 %v8950_v3  ;;  %v5427_v7 = vld [vmem:[#allocation3 + $0x30] sm:$0xff] }
 0x137   :  { %876 = vmatpush.msra.mxu0 %v5415_v25  ;;  %8951 = vst [vmem:[#allocation15_spill] sm:$0xff] %v5427_v7  ;;  %1160 = vmatpush.msra.mxu3 %v8952_v17  ;;  %v5431_v25 = vld [vmem:[#allocation3] sm:$0xff]  ;;  %v8957_v3 = vld [vmem:[#allocation27_spill] sm:$0xff]  ;;  %v8959_v17 = vld [vmem:[#allocation34_spill] sm:$0xff] }
 0x138   :  { %916 = vmatpush.msra.mxu2 %v5419_v24  ;;  %8953 = vst [vmem:[#allocation16_spill] sm:$0xff] %v5431_v25  ;;  %1121 = vmatpush.msra.mxu1 %v8954_v12  ;;  %v5435_v24 = vld [vmem:[#allocation3 + $0x10] sm:$0xff] }
 0x139   :  { %877 = vmatpush.msra.mxu0 %v5423_v8  ;;  %8955 = vst [vmem:[#allocation17_spill] sm:$0xff] %v5435_v24  ;;  %v8961_v12 = vld [vmem:[#allocation91_spill] sm:$0xff]  ;;  %v8962_v8 = vld [vmem:[#allocation38_spill] sm:$0xff] }
 0x13a   :  { %917 = vmatpush.msra.mxu2 %v5427_v7  ;;  %v8958_v7 = vld [vmem:[#allocation85_spill] sm:$0xff]  ;;  %1122 = vmatpush.msra.mxu1 %v5034_v62  ;;  %v8970_v62 = vld [vmem:[#allocation46_spill] sm:$0xff] }
 0x13b   :  { %878 = vmatpush.msra.mxu0 %v5431_v25  ;;  %1161 = vmatpush.msra.mxu3 %v8958_v7  ;;  %v8960_v25 = vld [vmem:[#allocation35_spill] sm:$0xff] }
 0x13c   :  { %918 = vmatpush.msra.mxu2 %v5435_v24  ;;  %879 = vmatmul.f32.vlgmr.msra.gmra.mxu0 %v5305_v36  ;;  %v8963_v24 = vld [vmem:[#allocation95_spill] sm:$0xff] }
 0x13d   :  { %919 = vmatmul.f32.vlgmr.msra.gmra.mxu2 %v5305_v36  ;;  %1010 = vmatpush.msrb.mxu0 %v8956_v9  ;;  %v8965_v36 = vld [vmem:[#allocation96_spill] sm:$0xff]  ;;  %v8966_v9 = vld [vmem:[#allocation42_spill] sm:$0xff]  ;;  %v8968_v7 = vld [vmem:[#allocation43_spill] sm:$0xff] }
 0x13e   :  { %1050 = vmatpush.msrb.mxu2 %v8957_v3  ;;  %1162 = vmatpush.msra.mxu3 %v8961_v12  ;;  %v8967_v3 = vld [vmem:[#allocation99_spill] sm:$0xff] }
 0x13f   :  { %1011 = vmatpush.msrb.mxu0 %v8959_v17  ;;  %1123 = vmatpush.msra.mxu1 %v8963_v24  ;;  %v8969_v17 = vld [vmem:[#allocation100_spill] sm:$0xff]  ;;  %v8972_v24 = vld [vmem:[#allocation54_spill] sm:$0xff]  ;;  %v8975_v12 = vld [vmem:[#allocation59_spill] sm:$0xff] }
 0x140   :  { %1051 = vmatpush.msrb.mxu2 %v8960_v25  ;;  %1163 = vmatpush.msra.mxu3 %v8965_v36  ;;  %v8971_v25 = vld [vmem:[#allocation47_spill] sm:$0xff]  ;;  %v8976_v36 = vld [vmem:[#allocation62_spill] sm:$0xff] }
 0x141   :  { %1012 = vmatpush.msrb.mxu0 %v8962_v8  ;;  %1124 = vmatpush.msra.mxu1 %v8967_v3  ;;  %v8974_v8 = vld [vmem:[#allocation58_spill] sm:$0xff] }
 0x142   :  { %1052 = vmatpush.msrb.mxu2 %v8964_v33  ;;  %1164 = vmatpush.msra.mxu3 %v8969_v17  ;;  %v8973_v33 = vld [vmem:[#allocation55_spill] sm:$0xff]  ;;  %v8978_v3 = vld [vmem:[#allocation66_spill] sm:$0xff] }
 0x143   :  { %1013 = vmatpush.msrb.mxu0 %v8966_v9  ;;  %1125 = vmatpush.msra.mxu1 %v5078_v20  ;;  %v8977_v9 = vld [vmem:[#allocation63_spill] sm:$0xff]  ;;  %v8980_v20 = vld [vmem:[#allocation74_spill] sm:$0xff] }
 0x144   :  { %1053 = vmatpush.msrb.mxu2 %v8968_v7  ;;  %1165 = vmatpush.msra.mxu3 %v5082_v21  ;;  %v8979_v7 = vld [vmem:[#allocation67_spill] sm:$0xff]  ;;  %v8982_v21 = vld [vmem:[#allocation78_spill] sm:$0xff] }
 0x145   :  { %1014 = vmatpush.msrb.mxu0 %v8970_v62  ;;  %v8981_v17 = vld [vmem:[#allocation75_spill] sm:$0xff] }
 0x146   :  { %1054 = vmatpush.msrb.mxu2 %v8971_v25  ;;  %v8983_v62 = vld [vmem:[#allocation79_spill] sm:$0xff]  ;;  %v8984_v25 = vld [vmem:[#allocation82_spill] sm:$0xff] }
 0x147   :  { %1015 = vmatpush.msrb.mxu0 %v8972_v24  ;;  %v8985_v24 = vld [vmem:[#allocation83_spill] sm:$0xff] }
 0x148   :  { %1055 = vmatpush.msrb.mxu2 %v8973_v33  ;;  %v8986_v33 = vld [vmem:[#allocation87_spill] sm:$0xff] }
 0x149   :  { %1016 = vmatpush.msrb.mxu0 %v8974_v8  ;;  %v8987_v8 = vld [vmem:[#allocation88_spill] sm:$0xff] }
 0x14a   :  { %1056 = vmatpush.msrb.mxu2 %v8975_v12  ;;  %v8988_v12 = vld [vmem:[#allocation93_spill] sm:$0xff] }
 0x14b   :  { %1017 = vmatpush.msrb.mxu0 %v8976_v36  ;;  %v8989_v36 = vld [vmem:[#allocation94_spill] sm:$0xff] }
 0x14c   :  { %1057 = vmatpush.msrb.mxu2 %v8977_v9  ;;  %v8990_v9 = vld [vmem:[#allocation97_spill] sm:$0xff] }
 0x14d   :  { %1018 = vmatpush.msrb.mxu0 %v8978_v3  ;;  %v8991_v3 = vld [vmem:[#allocation98_spill] sm:$0xff] }
 0x14e   :  { %1058 = vmatpush.msrb.mxu2 %v8979_v7  ;;  %v8992_v7 = vld [vmem:[#allocation101_spill] sm:$0xff] }
 0x14f   :  { %1019 = vmatpush.msrb.mxu0 %v8980_v20  ;;  %v8993_v20 = vld [vmem:[#allocation102_spill] sm:$0xff] }
 0x150   :  { %1059 = vmatpush.msrb.mxu2 %v8981_v17  ;;  %v8994_v17 = vld [vmem:[#allocation107_spill] sm:$0xff] }
 0x151   :  { %1020 = vmatpush.msrb.mxu0 %v8982_v21  ;;  %v8995_v21 = vld [vmem:[#allocation108_spill] sm:$0xff] }
 0x152   :  { %1060 = vmatpush.msrb.mxu2 %v8983_v62  ;;  %v8996_v62 = vld [vmem:[#allocation112_spill] sm:$0xff] }
 0x153   :  { %1021 = vmatpush.msrb.mxu0 %v8984_v25 }
 0x154   :  { %1061 = vmatpush.msrb.mxu2 %v8985_v24 }
 0x155   :  { %1022 = vmatpush.msrb.mxu0 %v8986_v33 }
 0x156   :  { %1062 = vmatpush.msrb.mxu2 %v8987_v8 }
 0x157   :  { %1023 = vmatpush.msrb.mxu0 %v8988_v12 }
 0x158   :  { %1063 = vmatpush.msrb.mxu2 %v8989_v36 }
 0x159   :  { %1024 = vmatpush.msrb.mxu0 %v8990_v9 }
 0x15a   :  { %1064 = vmatpush.msrb.mxu2 %v8991_v3 }
 0x15b   :  { %1025 = vmatpush.msrb.mxu0 %v8992_v7 }
 0x15c   :  { %1065 = vmatpush.msrb.mxu2 %v8993_v20 }
 0x15d   :  { %1090 = vmatpush.msra.mxu0 %v5084_v15  ;;  %v8997_v15 = vld [vmem:[#allocation113_spill] sm:$0xff] }
 0x15e   :  { %1130 = vmatpush.msra.mxu2 %v5086_v4  ;;  %v8998_v4 = vld [vmem:[#allocation114_spill] sm:$0xff] }
 0x15f   :  { %1091 = vmatpush.msra.mxu0 %v5098_v0  ;;  %v8999_v0 = vld [vmem:[#allocation115_spill] sm:$0xff] }
 0x160   :  { %1131 = vmatpush.msra.mxu2 %v5100_v57  ;;  %v9000_v57 = vld [vmem:[#allocation118_spill] sm:$0xff] }
 0x161   :  { %1092 = vmatpush.msra.mxu0 %v5106_v6 }
 0x162   :  { %1132 = vmatpush.msra.mxu2 %v5108_v23  ;;  %v672_v23 = vpop.f32.mrf.mxu1 }
 0x163   :  { %1093 = vmatpush.msra.mxu0 %v8994_v17 }
 0x164   :  { %1133 = vmatpush.msra.mxu2 %v8995_v21 }
 0x165   :  { %1094 = vmatpush.msra.mxu0 %v5124_v2  ;;  %v470_v2 = vld [vmem:[%s8289_s5] sm:$0xf] }
 0x166   :  { %1134 = vmatpush.msra.mxu2 %v5126_v14  ;;  %v5516_v14 = vperm.slane %v470_v2, 0  ;;  %v5527_v7 = vperm.slane %v470_v2, 3 }
 0x167   :  { %1095 = vmatpush.msra.mxu0 %v8996_v62 }
 0x168   :  { %1135 = vmatpush.msra.mxu2 %v8997_v15  ;;  %9001 = vst [vmem:[#allocation20_spill] sm:$0xff] %v5516_v14 }
 0x169   :  { %1096 = vmatpush.msra.mxu0 %v8998_v4  ;;  %9006 = vst [vmem:[#allocation23_spill] sm:$0xff] %v5527_v7 }
 0x16a   :  { %1136 = vmatpush.msra.mxu2 %v8999_v0  ;;  %v752_v6 = vpop.f32.mrf.mxu1 }
 0x16b   :  { %1097 = vmatpush.msra.mxu0 %v5165_v28 }
 0x16c   :  { %1137 = vmatpush.msra.mxu2 %v9000_v57 }
 0x16d   :  { %1098 = vmatpush.msra.mxu0 %v5175_v32  ;;  %v5519_v32 = vperm.slane %v470_v2, 1 }
 0x16e   :  { %1138 = vmatpush.msra.mxu2 %v5177_v34 }
 0x16f   :  { %1099 = vmatpush.msra.mxu0 %v5189_v19  ;;  %9002 = vst [vmem:[#allocation21_spill] sm:$0xff] %v5519_v32 }
 0x170   :  { %1139 = vmatpush.msra.mxu2 %v5191_v30 }
 0x171   :  { %1100 = vmatpush.msra.mxu0 %v5200_v43  ;;  %v5521_v43 = vperm.slane %v470_v2, 2 }
 0x172   :  { %1140 = vmatpush.msra.mxu2 %v5202_v61 }
 0x173   :  { %1101 = vmatpush.msra.mxu0 %v5208_v45  ;;  %9003 = vst [vmem:[#allocation22_spill] sm:$0xff] %v5521_v43 }
 0x174   :  { %1141 = vmatpush.msra.mxu2 %v5210_v47 }
 0x175   :  { %1102 = vmatpush.msra.mxu0 %v5218_v50  ;;  %v9004_v50 = vld [vmem:[#allocation117_spill] sm:$0xff] }
 0x176   :  { %1142 = vmatpush.msra.mxu2 %v5220_v52  ;;  %v9005_v52 = vld [vmem:[#allocation19_spill] sm:$0xff] }
 0x177   :  { %1103 = vmatpush.msra.mxu0 %v5228_v56  ;;  %v176_v56 = vadd.f32 %v9005_v52, %v9004_v50  ;;  %v9008_v52 = vld [vmem:[#allocation18_spill] sm:$0xff] }
 0x178   :  { %1143 = vmatpush.msra.mxu2 %v5230_v10  ;;  %v712_v10 = vpop.f32.mrf.mxu3 }
 0x179   :  { %1104 = vmatpush.msra.mxu0 %v5236_v58 }
 0x17a   :  { %1144 = vmatpush.msra.mxu2 %v5238_v60 }
 0x17b   :  { %1105 = vmatpush.msra.mxu0 %v5244_v39 }
 0x17c   :  { %1145 = vmatpush.msra.mxu2 %v5246_v63 }
 0x199   :  { %v652_v19 = vpop.f32.mrf.mxu0 }
 0x19a   :  { %v653_v28 = vadd.f32 %v652_v19, %v5516_v14  ;;  %v900_v45 = vpop.f32.mrf.mxu1 }
 0x19b   :  { %v944_v63 = vadd.f32 %v900_v45, %v176_v56 }
 0x19c   :  { %v673_v30 = vadd.f32 %v672_v23, %v653_v28  ;;  %v792_v23 = vpop.f32.mrf.mxu3 }
 0x19d   :  { %v3542_v36 = vmul.f32 -1.442695, %v944_v63 }
 0x19e   :  { %v3538_v34 = vmul.f32 -1.442695, %v673_v30 }
 0x19f   :  { %v692_v61 = vpop.f32.mrf.mxu2 }
 0x1a0   :  { %3613 = vpow2.f32 %v3538_v34  ;;  %v693_v47 = vadd.f32 %v692_v61, %v5519_v32 }
 0x1a1   :  { %v732_v58 = vpop.f32.mrf.mxu0 }
 0x1a2   :  { %v713_v60 = vadd.f32 %v712_v10, %v693_v47  ;;  %v733_v39 = vadd.f32 %v732_v58, %v5521_v43  ;;  %v9007_v47 = vld [vmem:[#allocation116_spill] sm:$0xff] }
 0x1a3   :  { %v135_v56 = vadd.f32 %v9008_v52, %v9007_v47 }
 0x1a4   :  { %v3539_v25 = vmul.f32 -1.442695, %v713_v60  ;;  %v753_v24 = vadd.f32 %v752_v6, %v733_v39 }
 0x1a6   :  { %v3614_v33 = vpop.eup %3613  ;;  %3615 = vpow2.f32 %v3539_v25  ;;  %v3540_v8 = vmul.f32 -1.442695, %v753_v24 }
 0x1a7   :  { %v804_v12 = vadd.f32 1.0, %v3614_v33 }
 0x1a8   :  { %v772_v20 = vpop.f32.mrf.mxu2 }
 0x1a9   :  { %3617 = vrcp.f32 %v804_v12  ;;  %v773_v0 = vadd.f32 %v772_v20, %v5527_v7  ;;  %v816_v61 = vand.u32 2147483647, %v804_v12  ;;  %v818_v45 = vand.u32 2147483648, %v804_v12 }
 0x1aa   :  { %3619 = vpow2.f32 %v3540_v8  ;;  %vm812_vm14 = vweird.f32 %v804_v12 }
 0x1ab   :  { %3621 = vpow2.f32 %v3542_v36  ;;  %v793_v2 = vadd.f32 %v792_v23, %v773_v0  ;;  %vm817_vm1 = vcmp.eq.f32.partialorder %v816_v61, 8.507059e+37 }
 0x1ac   :  { %v3616_v9 = vpop.eup %3615 }
 0x1ad   :  { %v805_v3 = vadd.f32 1.0, %v3616_v9  ;;  %v819_v9 = vor.u32 1.1754944e-38, %v818_v45 }
 0x1af   :  { %v3618_v17 = vpop.eup %3617  ;;  %3623 = vrcp.f32 %v805_v3  ;;  %v833_v60 = vand.u32 2147483648, %v805_v3  ;;  %v831_v63 = vand.u32 2147483647, %v805_v3  ;;  %vm827_vm2 = vweird.f32 %v805_v3 }
 0x1b0   :  { %v3620_v21 = vpop.eup %3619  ;;  %v808_v62 = vmul.f32 %v3618_v17, %v804_v12  ;;  %vm813_vm13 = vweird.f32 %v3618_v17 }
 0x1b1   :  { %v3622_v15 = vpop.eup %3621  ;;  %v5529_v4 = vadd.f32 1.0, %v3620_v21  ;;  %vm5538_vm15 = vmor %vm812_vm14, %vm813_vm13  ;;  %vm832_vm4 = vcmp.eq.f32.partialorder %v831_v63, 8.507059e+37 }
 0x1b2   :  { %v809_v57 = vsub.f32 1.0, %v808_v62  ;;  %v5533_v6 = vadd.f32 1.0, %v3622_v15  ;;  %v834_v62 = vor.u32 1.1754944e-38, %v833_v60 }
 0x1b3   :  { %3625 = vrcp.f32 %v5529_v4  ;;  %v848_v39 = vand.u32 2147483648, %v5529_v4  ;;  %vm842_vm6 = vweird.f32 %v5529_v4 }
 0x1b4   :  { %v810_v19 = vmul.f32 %v3618_v17, %v809_v57  ;;  %3627 = vrcp.f32 %v5533_v6  ;;  %vm979_vm10 = vweird.f32 %v5533_v6 }
 0x1b5   :  { %v3624_v28 = vpop.eup %3623  ;;  %3629 = vtanh.f32 %v793_v2 }
 0x1b6   :  { %v823_v30 = vmul.f32 %v3624_v28, %v805_v3  ;;  %v811_v34 = vadd.f32 %v3618_v17, %v810_v19  ;;  %vm828_vm0 = vweird.f32 %v3624_v28  ;;  %v9011_v19 = vld [vmem:[#allocation29_spill] sm:$0xff] }
 0x1b7   :  { %vm829_vm3 = vmor %vm827_vm2, %vm828_vm0 }
 0x1b8   :  { %v824_v10 = vsub.f32 1.0, %v823_v30  ;;  %v815_v8 = vsel %vm5538_vm15, %v3618_v17, %v811_v34  ;;  %v217_v17 = vadd.f32 %v9011_v19, %v5196_v41 }
 0x1b9   :  { %v3626_v58 = vpop.eup %3625  ;;  %v880_v25 = vpop.f32.mrf.mxu0  ;;  %v820_v15 = vsel %vm817_vm1, %v819_v9, %v815_v8  ;;  %v849_v8 = vor.u32 1.1754944e-38, %v848_v39 }
 0x1ba   :  { %v825_v24 = vmul.f32 %v3624_v28, %v824_v10  ;;  %v838_v33 = vmul.f32 %v3626_v58, %v5529_v4  ;;  %v943_v36 = vadd.f32 %v880_v25, %v135_v56  ;;  %v5546_v0 = vpop.eup %3627  ;;  %vm843_vm5 = vweird.f32 %v3626_v58 }
 0x1bb   :  { %v3630_v23 = vpop.eup %3629  ;;  %v975_v52 = vmul.f32 %v5546_v0, %v5533_v6  ;;  %v846_v25 = vand.u32 2147483647, %v5529_v4  ;;  %vm844_vm7 = vmor %vm842_vm6, %vm843_vm5  ;;  %vm980_vm9 = vweird.f32 %v5546_v0 }
 0x1bc   :  { %v839_v12 = vsub.f32 1.0, %v838_v33  ;;  %v826_v20 = vadd.f32 %v3624_v28, %v825_v24  ;;  %v3541_v21 = vmul.f32 -1.442695, %v943_v36  ;;  %v854_v3 = vmul.f32 %v3630_v23, %v820_v15  ;;  %vm5591_vm11 = vmor %vm979_vm10, %vm980_vm9 }
 0x1bd   :  { %v976_v24 = vsub.f32 1.0, %v975_v52  ;;  %vm847_vm8 = vcmp.eq.f32.partialorder %v846_v25, 8.507059e+37  ;;  %v5586_v52 = vld [vmem:[#allocation3 + $0x1d8] sm:$0xff]  ;;  %v5600_v25 = vld [vmem:[#allocation3 + $0x1a8] sm:$0xff] }
 0x1be   :  { %v830_v57 = vsel %vm829_vm3, %v3624_v28, %v826_v20  ;;  %3631 = vpow2.f32 %v3541_v21  ;;  %v840_v2 = vmul.f32 %v3626_v58, %v839_v12  ;;  %v940_v12 = vpop.f32.mrf.mxu3 }
 0x1bf   :  { %v835_v30 = vsel %vm832_vm4, %v834_v62, %v830_v57  ;;  %v977_v9 = vmul.f32 %v5546_v0, %v976_v24  ;;  %v9012_v62 = vld [vmem:[#allocation30_spill] sm:$0xff]  ;;  %v5603_v24 = vld [vmem:[#allocation3 + $0x1b8] sm:$0xff] }
 0x1c0   :  { %v853_v34 = vmul.f32 0.0, %v835_v30  ;;  %v920_v61 = vpop.f32.mrf.mxu2  ;;  %v841_v60 = vadd.f32 %v3626_v58, %v840_v2  ;;  %v258_v15 = vadd.f32 %v9012_v62, %v5253_v59  ;;  %v5574_v2 = vld [vmem:[#allocation3 + $0x1e8] sm:$0xff]  ;;  %v5577_v30 = vld [vmem:[#allocation3 + $0x1f8] sm:$0xff] }
 0x1c1   :  { %v945_v45 = vadd.f32 %v920_v61, %v217_v17 }
 0x1c2   :  { %v5552_v56 = vadd.f32 %v854_v3, %v853_v34  ;;  %v845_v33 = vsel %vm844_vm7, %v3626_v58, %v841_v60  ;;  %v946_v19 = vadd.f32 %v940_v12, %v258_v15  ;;  %v978_v58 = vadd.f32 %v5546_v0, %v977_v9  ;;  %v5607_v9 = vld [vmem:[#allocation3 + $0x188] sm:$0xff]  ;;  %v5620_v15 = vld [vmem:[#allocation3 + $0x178] sm:$0xff] }
 0x1c3   :  { %v3543_v10 = vmul.f32 -1.442695, %v945_v45  ;;  %v850_v20 = vsel %vm847_vm8, %v849_v8, %v845_v33  ;;  %v985_v34 = vand.u32 2147483648, %v5533_v6  ;;  %v983_v3 = vand.u32 2147483647, %v5533_v6  ;;  %v5583_v45 = vld [vmem:[#allocation3 + $0x1c8] sm:$0xff] }
 0x1c4   :  { %v3632_v28 = vpop.eup %3631  ;;  %3633 = vtanh.f32 %v5552_v56  ;;  %v982_v6 = vsel %vm5591_vm11, %v5546_v0, %v978_v58  ;;  %v5610_v0 = vld [vmem:[#allocation3 + $0x198] sm:$0xff] }
 0x1c5   :  { %v5557_v63 = vadd.f32 1.0, %v3632_v28  ;;  %3635 = vpow2.f32 %v3543_v10  ;;  %v986_v33 = vor.u32 1.1754944e-38, %v985_v34  ;;  %vm984_vm13 = vcmp.eq.f32.partialorder %v983_v3, 8.507059e+37 }
 0x1c7   :  { %3637 = vrcp.f32 %v5557_v63  ;;  %v970_v60 = vand.u32 2147483648, %v5557_v63  ;;  %v968_v39 = vand.u32 2147483647, %v5557_v63  ;;  %vm964_vm14 = vweird.f32 %v5557_v63 }
 0x1c8   :  { %v987_v12 = vsel %vm984_vm13, %v986_v33, %v982_v6  ;;  %v5632_v6 = vld [vmem:[#allocation3 + $0x128] sm:$0xff] }
 0x1c9   :  { %vm969_vm0 = vcmp.eq.f32.partialorder %v968_v39, 8.507059e+37  ;;  %v1005_v34 = vmul.f32 %v987_v12, %v5291_v48  ;;  %v5640_v33 = vld [vmem:[#allocation3 + $0x108] sm:$0xff] }
 0x1ca   :  { %v3634_v36 = vpop.eup %3633 }
 0x1cb   :  { %v3636_v21 = vpop.eup %3635  ;;  %v5564_v57 = vmul.f32 %v3634_v36, %v850_v20  ;;  %v971_v20 = vor.u32 1.1754944e-38, %v970_v60 }
 0x1cc   :  { %v5566_v23 = vadd.f32 1.0, %v3636_v21 }
 0x1cd   :  { %v3638_v4 = vpop.eup %3637  ;;  %1046 = vmatmul.f32.vlgmr.msrb.gmra.mxu1 %v5564_v57  ;;  %1086 = vmatmul.f32.vlgmr.msrb.gmra.mxu3 %v5564_v57 }
 0x1ce   :  { %v960_v17 = vmul.f32 %v3638_v4, %v5557_v63  ;;  %3639 = vrcp.f32 %v5566_v23  ;;  %1258 = vmatpush.msrb.mxu1 %v5574_v2  ;;  %1298 = vmatpush.msrb.mxu3 %v5577_v30  ;;  %vm965_vm12 = vweird.f32 %v3638_v4  ;;  %v5617_v63 = vld [vmem:[#allocation3 + $0x168] sm:$0xff]  ;;  %v1000_v39 = vand.u32 2147483648, %v5566_v23 }
 0x1cf   :  { %3641 = vtanh.f32 %v946_v19  ;;  %vm966_vm15 = vmor %vm964_vm14, %vm965_vm12  ;;  %vm994_vm2 = vweird.f32 %v5566_v23  ;;  %v998_v12 = vand.u32 2147483647, %v5566_v23 }
 0x1d0   :  { %v961_v61 = vsub.f32 1.0, %v960_v17  ;;  %1259 = vmatpush.msrb.mxu1 %v5583_v45  ;;  %1299 = vmatpush.msrb.mxu3 %v5586_v52 }
 0x1d1   :  { %vm999_vm4 = vcmp.eq.f32.partialorder %v998_v12, 8.507059e+37  ;;  %v5678_v12 = vld [vmem:[#allocation3 + $0x68] sm:$0xff] }
 0x1d2   :  { %v962_v28 = vmul.f32 %v3638_v4, %v961_v61  ;;  %1260 = vmatpush.msrb.mxu1 %v5600_v25  ;;  %1300 = vmatpush.msrb.mxu3 %v5603_v24  ;;  %v5624_v61 = vld [vmem:[#allocation3 + $0x148] sm:$0xff] }
 0x1d4   :  { %v3640_v8 = vpop.eup %3639  ;;  %v963_v36 = vadd.f32 %v3638_v4, %v962_v28  ;;  %1261 = vmatpush.msrb.mxu1 %v5607_v9  ;;  %1301 = vmatpush.msrb.mxu3 %v5610_v0  ;;  %v5635_v28 = vld [vmem:[#allocation3 + $0x138] sm:$0xff] }
 0x1d5   :  { %v990_v21 = vmul.f32 %v3640_v8, %v5566_v23  ;;  %1126 = vmatmul.f32.vlgmr.msra.gmra.mxu1 %v5564_v57  ;;  %1166 = vmatmul.f32.vlgmr.msra.gmra.mxu3 %v5564_v57  ;;  %v3642_v19 = vpop.eup %3641  ;;  %vm995_vm1 = vweird.f32 %v3640_v8 }
 0x1d6   :  { %v967_v62 = vsel %vm966_vm15, %v3638_v4, %v963_v36  ;;  %1262 = vmatpush.msrb.mxu1 %v5617_v63  ;;  %1302 = vmatpush.msrb.mxu3 %v5620_v15  ;;  %v5627_v4 = vld [vmem:[#allocation3 + $0x158] sm:$0xff]  ;;  %vm996_vm3 = vmor %vm994_vm2, %vm995_vm1 }
 0x1d7   :  { %v972_v58 = vsel %vm969_vm0, %v971_v20, %v967_v62  ;;  %v991_v17 = vsub.f32 1.0, %v990_v21  ;;  %v5643_v36 = vld [vmem:[#allocation3 + $0x118] sm:$0xff]  ;;  %v5648_v20 = vld [vmem:[#allocation3 + $0xe8] sm:$0xff] }
 0x1d8   :  { %v1006_v3 = vmul.f32 %v3642_v19, %v972_v58  ;;  %1263 = vmatpush.msrb.mxu1 %v5624_v61  ;;  %1303 = vmatpush.msrb.mxu3 %v5627_v4  ;;  %v5651_v21 = vld [vmem:[#allocation3 + $0xf8] sm:$0xff]  ;;  %v1001_v19 = vor.u32 1.1754944e-38, %v1000_v39  ;;  %v5654_v58 = vld [vmem:[#allocation3 + $0xc8] sm:$0xff] }
 0x1d9   :  { %v992_v10 = vmul.f32 %v3640_v8, %v991_v17  ;;  %v5657_v17 = vld [vmem:[#allocation3 + $0xd8] sm:$0xff] }
 0x1da   :  { %v5630_v60 = vadd.f32 %v1006_v3, %v1005_v34  ;;  %1264 = vmatpush.msrb.mxu1 %v5632_v6  ;;  %1304 = vmatpush.msrb.mxu3 %v5635_v28  ;;  %v5660_v3 = vld [vmem:[#allocation3 + $0xa8] sm:$0xff]  ;;  %v5671_v39 = vld [vmem:[#allocation3 + $0x98] sm:$0xff] }
 0x1db   :  { %v993_v48 = vadd.f32 %v3640_v8, %v992_v10  ;;  %v5663_v10 = vld [vmem:[#allocation3 + $0xb8] sm:$0xff] }
 0x1dc   :  { %3643 = vtanh.f32 %v5630_v60  ;;  %1265 = vmatpush.msrb.mxu1 %v5640_v33  ;;  %1305 = vmatpush.msrb.mxu3 %v5643_v36 }
 0x1dd   :  { %v997_v62 = vsel %vm996_vm3, %v3640_v8, %v993_v48  ;;  %v5668_v48 = vld [vmem:[#allocation3 + $0x88] sm:$0xff] }
 0x1de   :  { %1266 = vmatpush.msrb.mxu1 %v5648_v20  ;;  %1306 = vmatpush.msrb.mxu3 %v5651_v21  ;;  %v1002_v34 = vsel %vm999_vm4, %v1001_v19, %v997_v62  ;;  %v5681_v62 = vld [vmem:[#allocation3 + $0x78] sm:$0xff]  ;;  %v5686_v19 = vld [vmem:[#allocation3 + $0x48] sm:$0xff] }
 0x1e0   :  { %1267 = vmatpush.msrb.mxu1 %v5654_v58  ;;  %1307 = vmatpush.msrb.mxu3 %v5657_v17 }
 0x1e2   :  { %v3644_v23 = vpop.eup %3643  ;;  %1268 = vmatpush.msrb.mxu1 %v5660_v3  ;;  %1308 = vmatpush.msrb.mxu3 %v5663_v10 }
 0x1e3   :  { %v5666_v8 = vmul.f32 %v3644_v23, %v1002_v34  ;;  %v5689_v23 = vld [vmem:[#allocation3 + $0x58] sm:$0xff]  ;;  %v5775_v34 = vld [vmem:[#allocation5 + $0x308] sm:$0xff] }
 0x1e4   :  { %1269 = vmatpush.msrb.mxu1 %v5668_v48  ;;  %1309 = vmatpush.msrb.mxu3 %v5671_v39  ;;  %9035 = vst [vmem:[#allocation65_spill] sm:$0xff] %v5775_v34 }
 0x1e5   :  { %1026 = vmatmul.f32.vlgmr.msrb.gmra.mxu0 %v5666_v8  ;;  %1066 = vmatmul.f32.vlgmr.msrb.gmra.mxu2 %v5666_v8 }
 0x1e6   :  { %1238 = vmatpush.msrb.mxu0 %v5311_v11  ;;  %1278 = vmatpush.msrb.mxu2 %v5315_v16  ;;  %v5694_v11 = vld [vmem:[#allocation3 + $0x28] sm:$0xff]  ;;  %v5697_v16 = vld [vmem:[#allocation3 + $0x38] sm:$0xff] }
 0x1e7   :  { %1270 = vmatpush.msrb.mxu1 %v5678_v12  ;;  %1310 = vmatpush.msrb.mxu3 %v5681_v62 }
 0x1e8   :  { %1239 = vmatpush.msrb.mxu0 %v5319_v40  ;;  %1279 = vmatpush.msrb.mxu2 %v5323_v42  ;;  %v5702_v40 = vld [vmem:[#allocation3 + $0x8] sm:$0xff]  ;;  %v5705_v42 = vld [vmem:[#allocation3 + $0x18] sm:$0xff] }
 0x1e9   :  { %1271 = vmatpush.msrb.mxu1 %v5686_v19  ;;  %1311 = vmatpush.msrb.mxu3 %v5689_v23  ;;  %9015 = vst [vmem:[#allocation24_spill] sm:$0xff] %v5702_v40 }
 0x1ea   :  { %1240 = vmatpush.msrb.mxu0 %v5327_v44  ;;  %1280 = vmatpush.msrb.mxu2 %v5331_v46  ;;  %9016 = vst [vmem:[#allocation25_spill] sm:$0xff] %v5705_v42  ;;  %v5715_v44 = vld [vmem:[#allocation5 + $0x3e0] sm:$0xff]  ;;  %v5719_v46 = vld [vmem:[#allocation5 + $0x3e8] sm:$0xff] }
 0x1eb   :  { %1272 = vmatpush.msrb.mxu1 %v5694_v11  ;;  %1312 = vmatpush.msrb.mxu3 %v5697_v16  ;;  %9017 = vst [vmem:[#allocation28_spill] sm:$0xff] %v5715_v44 }
 0x1ec   :  { %1241 = vmatpush.msrb.mxu0 %v5335_v5  ;;  %1281 = vmatpush.msrb.mxu2 %v5339_v18  ;;  %9018 = vst [vmem:[#allocation31_spill] sm:$0xff] %v5719_v46  ;;  %v5723_v5 = vld [vmem:[#allocation5 + $0x3c0] sm:$0xff]  ;;  %v5727_v18 = vld [vmem:[#allocation5 + $0x3c8] sm:$0xff] }
 0x1ed   :  { %1273 = vmatpush.msrb.mxu1 %v5702_v40  ;;  %1313 = vmatpush.msrb.mxu3 %v5705_v42  ;;  %9019 = vst [vmem:[#allocation36_spill] sm:$0xff] %v5723_v5 }
 0x1ee   :  { %1106 = vmatmul.f32.vlgmr.msra.gmra.mxu0 %v5666_v8  ;;  %1146 = vmatmul.f32.vlgmr.msra.gmra.mxu2 %v5666_v8  ;;  %9020 = vst [vmem:[#allocation37_spill] sm:$0xff] %v5727_v18 }
 0x1ef   :  { %1242 = vmatpush.msrb.mxu0 %v5344_v22  ;;  %1274 = vmatmul.f32.vlgmr.msrb.gmra.mxu1 %v5666_v8  ;;  %v5731_v22 = vld [vmem:[#allocation5 + $0x3a0] sm:$0xff] }
 0x1f0   :  { %1282 = vmatpush.msrb.mxu2 %v5347_v49  ;;  %1314 = vmatmul.f32.vlgmr.msrb.gmra.mxu3 %v5666_v8  ;;  %9021 = vst [vmem:[#allocation40_spill] sm:$0xff] %v5731_v22  ;;  %v5735_v49 = vld [vmem:[#allocation5 + $0x3a8] sm:$0xff] }
 0x1f1   :  { %1243 = vmatpush.msrb.mxu0 %v5351_v13  ;;  %1405 = vmatpush.msra.mxu1 %v5715_v44  ;;  %9022 = vst [vmem:[#allocation41_spill] sm:$0xff] %v5735_v49  ;;  %v5739_v13 = vld [vmem:[#allocation5 + $0x380] sm:$0xff] }
 0x1f2   :  { %1283 = vmatpush.msrb.mxu2 %v5355_v51  ;;  %1445 = vmatpush.msra.mxu3 %v5719_v46  ;;  %9023 = vst [vmem:[#allocation44_spill] sm:$0xff] %v5739_v13  ;;  %v5743_v51 = vld [vmem:[#allocation5 + $0x388] sm:$0xff] }
 0x1f3   :  { %1244 = vmatpush.msrb.mxu0 %v5359_v55  ;;  %1406 = vmatpush.msra.mxu1 %v5723_v5  ;;  %9024 = vst [vmem:[#allocation45_spill] sm:$0xff] %v5743_v51  ;;  %v5747_v55 = vld [vmem:[#allocation5 + $0x360] sm:$0xff] }
 0x1f4   :  { %1284 = vmatpush.msrb.mxu2 %v5363_v27  ;;  %1446 = vmatpush.msra.mxu3 %v5727_v18  ;;  %9025 = vst [vmem:[#allocation48_spill] sm:$0xff] %v5747_v55  ;;  %v5751_v27 = vld [vmem:[#allocation5 + $0x368] sm:$0xff] }
 0x1f5   :  { %1245 = vmatpush.msrb.mxu0 %v5367_v31  ;;  %1407 = vmatpush.msra.mxu1 %v5731_v22  ;;  %9026 = vst [vmem:[#allocation51_spill] sm:$0xff] %v5751_v27  ;;  %v5755_v31 = vld [vmem:[#allocation5 + $0x340] sm:$0xff] }
 0x1f6   :  { %1285 = vmatpush.msrb.mxu2 %v5371_v54  ;;  %1447 = vmatpush.msra.mxu3 %v5735_v49  ;;  %9027 = vst [vmem:[#allocation56_spill] sm:$0xff] %v5755_v31  ;;  %v5759_v54 = vld [vmem:[#allocation5 + $0x348] sm:$0xff] }
 0x1f7   :  { %1246 = vmatpush.msrb.mxu0 %v5375_v35  ;;  %1408 = vmatpush.msra.mxu1 %v5739_v13  ;;  %9028 = vst [vmem:[#allocation57_spill] sm:$0xff] %v5759_v54  ;;  %v5763_v35 = vld [vmem:[#allocation5 + $0x320] sm:$0xff] }
 0x1f8   :  { %1286 = vmatpush.msrb.mxu2 %v5379_v38  ;;  %1448 = vmatpush.msra.mxu3 %v5743_v51  ;;  %9029 = vst [vmem:[#allocation60_spill] sm:$0xff] %v5763_v35  ;;  %v9030_v38 = vld [vmem:[#allocation9_spill] sm:$0xff] }
 0x1f9   :  { %1247 = vmatpush.msrb.mxu0 %v5383_v37  ;;  %1409 = vmatpush.msra.mxu1 %v5747_v55  ;;  %v5767_v37 = vld [vmem:[#allocation5 + $0x328] sm:$0xff] }
 0x1fa   :  { %1287 = vmatpush.msrb.mxu2 %v5387_v1  ;;  %1449 = vmatpush.msra.mxu3 %v5751_v27  ;;  %9031 = vst [vmem:[#allocation61_spill] sm:$0xff] %v5767_v37  ;;  %v9032_v1 = vld [vmem:[#allocation10_spill] sm:$0xff]  ;;  %v9154_v27 = vld [vmem:[#allocation33_spill] sm:$0xff] }
 0x1fb   :  { %1248 = vmatpush.msrb.mxu0 %v5391_v26  ;;  %1410 = vmatpush.msra.mxu1 %v5755_v31  ;;  %v5771_v26 = vld [vmem:[#allocation5 + $0x300] sm:$0xff]  ;;  %v179_v55 = vadd.f32 %v9154_v27, %v9004_v50 }
 0x1fc   :  { %1288 = vmatpush.msrb.mxu2 %v5395_v53  ;;  %1450 = vmatpush.msra.mxu3 %v5759_v54  ;;  %9033 = vst [vmem:[#allocation64_spill] sm:$0xff] %v5771_v26  ;;  %v9034_v53 = vld [vmem:[#allocation11_spill] sm:$0xff] }
 0x1fd   :  { %1249 = vmatpush.msrb.mxu0 %v5399_v29  ;;  %1411 = vmatpush.msra.mxu1 %v5763_v35  ;;  %v9036_v29 = vld [vmem:[#allocation12_spill] sm:$0xff]  ;;  %v5779_v35 = vld [vmem:[#allocation5 + $0x2e0] sm:$0xff] }
 0x1fe   :  { %1289 = vmatpush.msrb.mxu2 %v9030_v38  ;;  %1451 = vmatpush.msra.mxu3 %v5767_v37  ;;  %9037 = vst [vmem:[#allocation68_spill] sm:$0xff] %v5779_v35  ;;  %v9038_v38 = vld [vmem:[#allocation13_spill] sm:$0xff]  ;;  %v5783_v37 = vld [vmem:[#allocation5 + $0x2e8] sm:$0xff] }
 0x1ff   :  { %1250 = vmatpush.msrb.mxu0 %v9032_v1  ;;  %1412 = vmatpush.msra.mxu1 %v5771_v26  ;;  %9039 = vst [vmem:[#allocation71_spill] sm:$0xff] %v5783_v37  ;;  %v9040_v1 = vld [vmem:[#allocation14_spill] sm:$0xff]  ;;  %v5787_v26 = vld [vmem:[#allocation5 + $0x2c0] sm:$0xff] }
 0x200   :  { %1290 = vmatpush.msrb.mxu2 %v9034_v53  ;;  %1452 = vmatpush.msra.mxu3 %v5775_v34  ;;  %9041 = vst [vmem:[#allocation76_spill] sm:$0xff] %v5787_v26  ;;  %v9042_v53 = vld [vmem:[#allocation15_spill] sm:$0xff]  ;;  %v5791_v34 = vld [vmem:[#allocation5 + $0x2c8] sm:$0xff] }
 0x201   :  { %1251 = vmatpush.msrb.mxu0 %v9036_v29  ;;  %1413 = vmatpush.msra.mxu1 %v5779_v35  ;;  %9043 = vst [vmem:[#allocation77_spill] sm:$0xff] %v5791_v34  ;;  %v9044_v29 = vld [vmem:[#allocation16_spill] sm:$0xff]  ;;  %v5795_v35 = vld [vmem:[#allocation5 + $0x2a0] sm:$0xff] }
 0x202   :  { %1291 = vmatpush.msrb.mxu2 %v9038_v38  ;;  %1453 = vmatpush.msra.mxu3 %v5783_v37  ;;  %9045 = vst [vmem:[#allocation80_spill] sm:$0xff] %v5795_v35  ;;  %v9046_v38 = vld [vmem:[#allocation17_spill] sm:$0xff] }
 0x203   :  { %1252 = vmatpush.msrb.mxu0 %v9040_v1  ;;  %1414 = vmatpush.msra.mxu1 %v5787_v26  ;;  %v5801_v1 = vld [vmem:[#allocation5 + $0x2a8] sm:$0xff] }
 0x204   :  { %1292 = vmatpush.msrb.mxu2 %v9042_v53  ;;  %1454 = vmatpush.msra.mxu3 %v5791_v34  ;;  %9047 = vst [vmem:[#allocation81_spill] sm:$0xff] %v5801_v1  ;;  %v5804_v53 = vld [vmem:[#allocation5 + $0x280] sm:$0xff] }
 0x205   :  { %1253 = vmatpush.msrb.mxu0 %v9044_v29  ;;  %1415 = vmatpush.msra.mxu1 %v5795_v35  ;;  %9048 = vst [vmem:[#allocation84_spill] sm:$0xff] %v5804_v53  ;;  %v5807_v34 = vld [vmem:[#allocation5 + $0x1e0] sm:$0xff]  ;;  %v5810_v29 = vld [vmem:[#allocation5 + $0x288] sm:$0xff] }
 0x206   :  { %1293 = vmatpush.msrb.mxu2 %v9046_v38  ;;  %1254 = vmatmul.f32.vlgmr.msrb.gmra.mxu0 %v5666_v8  ;;  %9049 = vst [vmem:[#allocation26_spill] sm:$0xff] %v5807_v34  ;;  %v5813_v38 = vld [vmem:[#allocation5 + $0x1e8] sm:$0xff] }
 0x207   :  { %1294 = vmatmul.f32.vlgmr.msrb.gmra.mxu2 %v5666_v8  ;;  %1455 = vmatpush.msra.mxu3 %v5801_v1  ;;  %9050 = vst [vmem:[#allocation27_spill] sm:$0xff] %v5810_v29  ;;  %v5816_v8 = vld [vmem:[#allocation5 + $0x260] sm:$0xff] }
 0x208   :  { %1416 = vmatpush.msra.mxu1 %v5804_v53  ;;  %1385 = vmatpush.msra.mxu0 %v5807_v34  ;;  %9051 = vst [vmem:[#allocation85_spill] sm:$0xff] %v5813_v38  ;;  %v5819_v1 = vld [vmem:[#allocation5 + $0x1c0] sm:$0xff]  ;;  %v5822_v53 = vld [vmem:[#allocation5 + $0x268] sm:$0xff] }
 0x209   :  { %1456 = vmatpush.msra.mxu3 %v5810_v29  ;;  %1425 = vmatpush.msra.mxu2 %v5813_v38  ;;  %9052 = vst [vmem:[#allocation34_spill] sm:$0xff] %v5816_v8  ;;  %v5825_v34 = vld [vmem:[#allocation5 + $0x1c8] sm:$0xff]  ;;  %v5828_v29 = vld [vmem:[#allocation5 + $0x240] sm:$0xff] }
 0x20a   :  { %1417 = vmatpush.msra.mxu1 %v5816_v8  ;;  %9053 = vst [vmem:[#allocation35_spill] sm:$0xff] %v5819_v1  ;;  %1386 = vmatpush.msra.mxu0 %v5819_v1  ;;  %v5831_v38 = vld [vmem:[#allocation5 + $0x1a0] sm:$0xff]  ;;  %v5834_v8 = vld [vmem:[#allocation5 + $0x248] sm:$0xff] }
 0x20b   :  { %9054 = vst [vmem:[#allocation91_spill] sm:$0xff] %v5822_v53  ;;  %1457 = vmatpush.msra.mxu3 %v5822_v53  ;;  %1426 = vmatpush.msra.mxu2 %v5825_v34  ;;  %v5837_v1 = vld [vmem:[#allocation5 + $0x1a8] sm:$0xff]  ;;  %v5840_v53 = vld [vmem:[#allocation5 + $0x220] sm:$0xff] }
 0x20c   :  { %9055 = vst [vmem:[#allocation38_spill] sm:$0xff] %v5825_v34  ;;  %1418 = vmatpush.msra.mxu1 %v5828_v29  ;;  %1387 = vmatpush.msra.mxu0 %v5831_v38  ;;  %v5843_v34 = vld [vmem:[#allocation5 + $0x180] sm:$0xff] }
 0x20d   :  { %9056 = vst [vmem:[#allocation95_spill] sm:$0xff] %v5828_v29  ;;  %1458 = vmatpush.msra.mxu3 %v5834_v8  ;;  %1427 = vmatpush.msra.mxu2 %v5837_v1  ;;  %v5846_v29 = vld [vmem:[#allocation5 + $0x228] sm:$0xff] }
 0x20e   :  { %9057 = vst [vmem:[#allocation39_spill] sm:$0xff] %v5831_v38  ;;  %1419 = vmatpush.msra.mxu1 %v5840_v53  ;;  %1388 = vmatpush.msra.mxu0 %v5843_v34  ;;  %v5849_v38 = vld [vmem:[#allocation5 + $0x188] sm:$0xff] }
 0x20f   :  { %9058 = vst [vmem:[#allocation96_spill] sm:$0xff] %v5834_v8  ;;  %1459 = vmatpush.msra.mxu3 %v5846_v29  ;;  %1428 = vmatpush.msra.mxu2 %v5849_v38  ;;  %v5852_v8 = vld [vmem:[#allocation5 + $0x200] sm:$0xff] }
 0x210   :  { %9059 = vst [vmem:[#allocation42_spill] sm:$0xff] %v5837_v1  ;;  %1420 = vmatpush.msra.mxu1 %v5852_v8  ;;  %v5855_v1 = vld [vmem:[#allocation5 + $0x160] sm:$0xff] }
 0x211   :  { %9060 = vst [vmem:[#allocation99_spill] sm:$0xff] %v5840_v53  ;;  %1389 = vmatpush.msra.mxu0 %v5855_v1  ;;  %v5858_v53 = vld [vmem:[#allocation5 + $0x208] sm:$0xff] }
 0x212   :  { %9061 = vst [vmem:[#allocation43_spill] sm:$0xff] %v5843_v34  ;;  %1460 = vmatpush.msra.mxu3 %v5858_v53  ;;  %v5861_v34 = vld [vmem:[#allocation5 + $0x168] sm:$0xff] }
 0x213   :  { %9062 = vst [vmem:[#allocation100_spill] sm:$0xff] %v5846_v29  ;;  %1429 = vmatpush.msra.mxu2 %v5861_v34  ;;  %v5864_v29 = vld [vmem:[#allocation5 + $0x3f0] sm:$0xff] }
 0x214   :  { %9063 = vst [vmem:[#allocation46_spill] sm:$0xff] %v5849_v38  ;;  %1485 = vmatpush.msrb.mxu1 %v5864_v29  ;;  %v5867_v38 = vld [vmem:[#allocation5 + $0x3f8] sm:$0xff] }
 0x215   :  { %9064 = vst [vmem:[#allocation47_spill] sm:$0xff] %v5852_v8  ;;  %1525 = vmatpush.msrb.mxu3 %v5867_v38  ;;  %v5870_v8 = vld [vmem:[#allocation5 + $0x140] sm:$0xff] }
 0x216   :  { %9065 = vst [vmem:[#allocation54_spill] sm:$0xff] %v5855_v1  ;;  %1390 = vmatpush.msra.mxu0 %v5870_v8  ;;  %v5873_v1 = vld [vmem:[#allocation5 + $0x148] sm:$0xff] }
 0x217   :  { %9066 = vst [vmem:[#allocation55_spill] sm:$0xff] %v5858_v53  ;;  %1430 = vmatpush.msra.mxu2 %v5873_v1  ;;  %v5876_v53 = vld [vmem:[#allocation5 + $0x3d0] sm:$0xff] }
 0x218   :  { %9067 = vst [vmem:[#allocation58_spill] sm:$0xff] %v5861_v34  ;;  %1486 = vmatpush.msrb.mxu1 %v5876_v53  ;;  %v5879_v34 = vld [vmem:[#allocation5 + $0x3d8] sm:$0xff] }
 0x219   :  { %9068 = vst [vmem:[#allocation59_spill] sm:$0xff] %v5864_v29  ;;  %1526 = vmatpush.msrb.mxu3 %v5879_v34  ;;  %v5882_v29 = vld [vmem:[#allocation5 + $0x120] sm:$0xff] }
 0x21a   :  { %9069 = vst [vmem:[#allocation62_spill] sm:$0xff] %v5867_v38  ;;  %1391 = vmatpush.msra.mxu0 %v5882_v29  ;;  %v5885_v38 = vld [vmem:[#allocation5 + $0x128] sm:$0xff] }
 0x21b   :  { %9070 = vst [vmem:[#allocation63_spill] sm:$0xff] %v5870_v8  ;;  %1431 = vmatpush.msra.mxu2 %v5885_v38  ;;  %v5888_v8 = vld [vmem:[#allocation5 + $0x3b0] sm:$0xff] }
 0x21c   :  { %9071 = vst [vmem:[#allocation66_spill] sm:$0xff] %v5873_v1  ;;  %1487 = vmatpush.msrb.mxu1 %v5888_v8  ;;  %v5891_v1 = vld [vmem:[#allocation5 + $0x3b8] sm:$0xff] }
 0x21d   :  { %9072 = vst [vmem:[#allocation67_spill] sm:$0xff] %v5876_v53  ;;  %1527 = vmatpush.msrb.mxu3 %v5891_v1  ;;  %v5894_v53 = vld [vmem:[#allocation5 + $0x100] sm:$0xff] }
 0x21e   :  { %9073 = vst [vmem:[#allocation74_spill] sm:$0xff] %v5879_v34  ;;  %1392 = vmatpush.msra.mxu0 %v5894_v53  ;;  %v5897_v34 = vld [vmem:[#allocation5 + $0x108] sm:$0xff] }
 0x21f   :  { %9074 = vst [vmem:[#allocation75_spill] sm:$0xff] %v5882_v29  ;;  %1432 = vmatpush.msra.mxu2 %v5897_v34  ;;  %v5900_v29 = vld [vmem:[#allocation5 + $0x390] sm:$0xff] }
 0x220   :  { %9075 = vst [vmem:[#allocation78_spill] sm:$0xff] %v5885_v38  ;;  %1488 = vmatpush.msrb.mxu1 %v5900_v29  ;;  %v5903_v38 = vld [vmem:[#allocation5 + $0x398] sm:$0xff] }
 0x221   :  { %9076 = vst [vmem:[#allocation79_spill] sm:$0xff] %v5888_v8  ;;  %1528 = vmatpush.msrb.mxu3 %v5903_v38  ;;  %v5906_v8 = vld [vmem:[#allocation5 + $0xe0] sm:$0xff] }
 0x222   :  { %9077 = vst [vmem:[#allocation82_spill] sm:$0xff] %v5891_v1  ;;  %1393 = vmatpush.msra.mxu0 %v5906_v8  ;;  %v5909_v1 = vld [vmem:[#allocation5 + $0xe8] sm:$0xff] }
 0x223   :  { %9078 = vst [vmem:[#allocation83_spill] sm:$0xff] %v5894_v53  ;;  %1433 = vmatpush.msra.mxu2 %v5909_v1  ;;  %v5912_v53 = vld [vmem:[#allocation5 + $0x370] sm:$0xff] }
 0x224   :  { %9079 = vst [vmem:[#allocation87_spill] sm:$0xff] %v5897_v34  ;;  %1489 = vmatpush.msrb.mxu1 %v5912_v53  ;;  %v5915_v34 = vld [vmem:[#allocation5 + $0x378] sm:$0xff] }
 0x225   :  { %9080 = vst [vmem:[#allocation88_spill] sm:$0xff] %v5900_v29  ;;  %1529 = vmatpush.msrb.mxu3 %v5915_v34  ;;  %v5918_v29 = vld [vmem:[#allocation5 + $0xc0] sm:$0xff] }
 0x226   :  { %9081 = vst [vmem:[#allocation93_spill] sm:$0xff] %v5903_v38  ;;  %1394 = vmatpush.msra.mxu0 %v5918_v29  ;;  %v5921_v38 = vld [vmem:[#allocation5 + $0xc8] sm:$0xff] }
 0x227   :  { %9082 = vst [vmem:[#allocation94_spill] sm:$0xff] %v5906_v8  ;;  %1434 = vmatpush.msra.mxu2 %v5921_v38  ;;  %v5924_v8 = vld [vmem:[#allocation5 + $0x350] sm:$0xff] }
 0x228   :  { %9083 = vst [vmem:[#allocation97_spill] sm:$0xff] %v5909_v1  ;;  %1490 = vmatpush.msrb.mxu1 %v5924_v8  ;;  %v5927_v1 = vld [vmem:[#allocation5 + $0x358] sm:$0xff] }
 0x229   :  { %9084 = vst [vmem:[#allocation98_spill] sm:$0xff] %v5912_v53  ;;  %1530 = vmatpush.msrb.mxu3 %v5927_v1  ;;  %v5930_v53 = vld [vmem:[#allocation5 + $0xa0] sm:$0xff] }
 0x22a   :  { %9085 = vst [vmem:[#allocation101_spill] sm:$0xff] %v5915_v34  ;;  %1395 = vmatpush.msra.mxu0 %v5930_v53  ;;  %v5933_v34 = vld [vmem:[#allocation5 + $0xa8] sm:$0xff] }
 0x22b   :  { %9086 = vst [vmem:[#allocation102_spill] sm:$0xff] %v5918_v29  ;;  %1435 = vmatpush.msra.mxu2 %v5933_v34  ;;  %v5936_v29 = vld [vmem:[#allocation5 + $0x330] sm:$0xff] }
 0x22c   :  { %9087 = vst [vmem:[#allocation107_spill] sm:$0xff] %v5921_v38  ;;  %1491 = vmatpush.msrb.mxu1 %v5936_v29  ;;  %v5939_v38 = vld [vmem:[#allocation5 + $0x338] sm:$0xff] }
 0x22d   :  { %9088 = vst [vmem:[#allocation108_spill] sm:$0xff] %v5924_v8  ;;  %1531 = vmatpush.msrb.mxu3 %v5939_v38  ;;  %v5942_v8 = vld [vmem:[#allocation5 + $0x80] sm:$0xff] }
 0x22e   :  { %9089 = vst [vmem:[#allocation112_spill] sm:$0xff] %v5927_v1  ;;  %1396 = vmatpush.msra.mxu0 %v5942_v8  ;;  %v5945_v1 = vld [vmem:[#allocation5 + $0x88] sm:$0xff] }
 0x22f   :  { %9090 = vst [vmem:[#allocation113_spill] sm:$0xff] %v5930_v53  ;;  %1436 = vmatpush.msra.mxu2 %v5945_v1  ;;  %v5948_v53 = vld [vmem:[#allocation5 + $0x310] sm:$0xff] }
 0x230   :  { %9091 = vst [vmem:[#allocation114_spill] sm:$0xff] %v5933_v34  ;;  %1492 = vmatpush.msrb.mxu1 %v5948_v53  ;;  %v5951_v34 = vld [vmem:[#allocation5 + $0x318] sm:$0xff] }
 0x231   :  { %9092 = vst [vmem:[#allocation115_spill] sm:$0xff] %v5936_v29  ;;  %1532 = vmatpush.msrb.mxu3 %v5951_v34  ;;  %v5954_v29 = vld [vmem:[#allocation5 + $0x60] sm:$0xff] }
 0x232   :  { %9093 = vst [vmem:[#allocation118_spill] sm:$0xff] %v5939_v38  ;;  %1397 = vmatpush.msra.mxu0 %v5954_v29  ;;  %v5957_v38 = vld [vmem:[#allocation5 + $0x68] sm:$0xff] }
 0x233   :  { %9094 = vst [vmem:[#allocation19_spill] sm:$0xff] %v5942_v8  ;;  %1437 = vmatpush.msra.mxu2 %v5957_v38  ;;  %v5960_v8 = vld [vmem:[#allocation5 + $0x2f0] sm:$0xff] }
 0x234   :  { %9095 = vst [vmem:[#allocation18_spill] sm:$0xff] %v5945_v1  ;;  %1493 = vmatpush.msrb.mxu1 %v5960_v8  ;;  %v5963_v1 = vld [vmem:[#allocation5 + $0x2f8] sm:$0xff] }
 0x235   :  { %9096 = vst [vmem:[#allocation29_spill] sm:$0xff] %v5948_v53  ;;  %1533 = vmatpush.msrb.mxu3 %v5963_v1  ;;  %v5966_v53 = vld [vmem:[#allocation5 + $0x40] sm:$0xff] }
 0x236   :  { %9097 = vst [vmem:[#allocation30_spill] sm:$0xff] %v5951_v34  ;;  %1398 = vmatpush.msra.mxu0 %v5966_v53  ;;  %v5969_v34 = vld [vmem:[#allocation5 + $0x48] sm:$0xff] }
 0x237   :  { %9098 = vst [vmem:[#allocation9_spill] sm:$0xff] %v5954_v29  ;;  %1438 = vmatpush.msra.mxu2 %v5969_v34  ;;  %v5972_v29 = vld [vmem:[#allocation5 + $0x2d0] sm:$0xff] }
 0x238   :  { %9099 = vst [vmem:[#allocation10_spill] sm:$0xff] %v5957_v38  ;;  %1494 = vmatpush.msrb.mxu1 %v5972_v29  ;;  %v5975_v38 = vld [vmem:[#allocation5 + $0x2d8] sm:$0xff] }
 0x239   :  { %9100 = vst [vmem:[#allocation11_spill] sm:$0xff] %v5960_v8  ;;  %1534 = vmatpush.msrb.mxu3 %v5975_v38  ;;  %v5978_v8 = vld [vmem:[#allocation5 + $0x20] sm:$0xff] }
 0x23a   :  { %9101 = vst [vmem:[#allocation12_spill] sm:$0xff] %v5963_v1  ;;  %1399 = vmatpush.msra.mxu0 %v5978_v8  ;;  %v5981_v1 = vld [vmem:[#allocation5 + $0x28] sm:$0xff] }
 0x23b   :  { %9102 = vst [vmem:[#allocation13_spill] sm:$0xff] %v5966_v53  ;;  %1439 = vmatpush.msra.mxu2 %v5981_v1  ;;  %v5984_v53 = vld [vmem:[#allocation5 + $0x2b0] sm:$0xff] }
 0x23c   :  { %9103 = vst [vmem:[#allocation14_spill] sm:$0xff] %v5969_v34  ;;  %1495 = vmatpush.msrb.mxu1 %v5984_v53  ;;  %v5987_v34 = vld [vmem:[#allocation5 + $0x2b8] sm:$0xff] }
 0x23d   :  { %9104 = vst [vmem:[#allocation15_spill] sm:$0xff] %v5972_v29  ;;  %1535 = vmatpush.msrb.mxu3 %v5987_v34  ;;  %v5990_v29 = vld [vmem:[#allocation5] sm:$0xff] }
 0x23e   :  { %9105 = vst [vmem:[#allocation16_spill] sm:$0xff] %v5975_v38  ;;  %1400 = vmatpush.msra.mxu0 %v5990_v29  ;;  %v5993_v38 = vld [vmem:[#allocation5 + $0x8] sm:$0xff] }
 0x23f   :  { %9106 = vst [vmem:[#allocation17_spill] sm:$0xff] %v5978_v8  ;;  %1440 = vmatpush.msra.mxu2 %v5993_v38  ;;  %v5996_v8 = vld [vmem:[#allocation5 + $0x290] sm:$0xff] }
 0x240   :  { %9107 = vst [vmem:[#allocation122_spill] sm:$0xff] %v5981_v1  ;;  %1496 = vmatpush.msrb.mxu1 %v5996_v8  ;;  %v5999_v1 = vld [vmem:[#allocation5 + $0x298] sm:$0xff] }
 0x241   :  { %9108 = vst [vmem:[#allocation123_spill] sm:$0xff] %v5984_v53  ;;  %1536 = vmatpush.msrb.mxu3 %v5999_v1  ;;  %v6002_v53 = vld [vmem:[#allocation5 + $0x1f0] sm:$0xff] }
 0x242   :  { %9109 = vst [vmem:[#allocation124_spill] sm:$0xff] %v5987_v34  ;;  %1465 = vmatpush.msrb.mxu0 %v6002_v53  ;;  %v6005_v34 = vld [vmem:[#allocation5 + $0x1f8] sm:$0xff] }
 0x243   :  { %9110 = vst [vmem:[#allocation125_spill] sm:$0xff] %v5990_v29  ;;  %1505 = vmatpush.msrb.mxu2 %v6005_v34  ;;  %v6008_v29 = vld [vmem:[#allocation5 + $0x270] sm:$0xff] }
 0x244   :  { %9111 = vst [vmem:[#allocation126_spill] sm:$0xff] %v5993_v38  ;;  %1497 = vmatpush.msrb.mxu1 %v6008_v29  ;;  %v6011_v38 = vld [vmem:[#allocation5 + $0x278] sm:$0xff] }
 0x245   :  { %9112 = vst [vmem:[#allocation127_spill] sm:$0xff] %v5996_v8  ;;  %1537 = vmatpush.msrb.mxu3 %v6011_v38  ;;  %v6014_v8 = vld [vmem:[#allocation5 + $0x1d0] sm:$0xff] }
 0x246   :  { %9113 = vst [vmem:[#allocation128_spill] sm:$0xff] %v5999_v1  ;;  %1466 = vmatpush.msrb.mxu0 %v6014_v8  ;;  %v6017_v1 = vld [vmem:[#allocation5 + $0x1d8] sm:$0xff] }
 0x247   :  { %9114 = vst [vmem:[#allocation129_spill] sm:$0xff] %v6002_v53  ;;  %1506 = vmatpush.msrb.mxu2 %v6017_v1  ;;  %v6020_v53 = vld [vmem:[#allocation5 + $0x250] sm:$0xff] }
 0x248   :  { %9115 = vst [vmem:[#allocation130_spill] sm:$0xff] %v6005_v34  ;;  %1498 = vmatpush.msrb.mxu1 %v6020_v53  ;;  %v6023_v34 = vld [vmem:[#allocation5 + $0x258] sm:$0xff] }
 0x249   :  { %9116 = vst [vmem:[#allocation131_spill] sm:$0xff] %v6008_v29  ;;  %1538 = vmatpush.msrb.mxu3 %v6023_v34  ;;  %v6026_v29 = vld [vmem:[#allocation5 + $0x1b0] sm:$0xff] }
 0x24a   :  { %9117 = vst [vmem:[#allocation132_spill] sm:$0xff] %v6011_v38  ;;  %1467 = vmatpush.msrb.mxu0 %v6026_v29  ;;  %v6029_v38 = vld [vmem:[#allocation5 + $0x1b8] sm:$0xff] }
 0x24b   :  { %9118 = vst [vmem:[#allocation133_spill] sm:$0xff] %v6014_v8  ;;  %1507 = vmatpush.msrb.mxu2 %v6029_v38  ;;  %v6032_v8 = vld [vmem:[#allocation5 + $0x230] sm:$0xff] }
 0x24c   :  { %9119 = vst [vmem:[#allocation134_spill] sm:$0xff] %v6017_v1  ;;  %1499 = vmatpush.msrb.mxu1 %v6032_v8  ;;  %v6035_v1 = vld [vmem:[#allocation5 + $0x238] sm:$0xff] }
 0x24d   :  { %9120 = vst [vmem:[#allocation135_spill] sm:$0xff] %v6020_v53  ;;  %1539 = vmatpush.msrb.mxu3 %v6035_v1  ;;  %v6038_v53 = vld [vmem:[#allocation5 + $0x190] sm:$0xff] }
 0x24e   :  { %9121 = vst [vmem:[#allocation136_spill] sm:$0xff] %v6023_v34  ;;  %1468 = vmatpush.msrb.mxu0 %v6038_v53  ;;  %v6041_v34 = vld [vmem:[#allocation5 + $0x198] sm:$0xff] }
 0x24f   :  { %9122 = vst [vmem:[#allocation137_spill] sm:$0xff] %v6026_v29  ;;  %1508 = vmatpush.msrb.mxu2 %v6041_v34  ;;  %v6044_v29 = vld [vmem:[#allocation5 + $0x210] sm:$0xff] }
 0x250   :  { %9123 = vst [vmem:[#allocation138_spill] sm:$0xff] %v6029_v38  ;;  %1500 = vmatpush.msrb.mxu1 %v6044_v29  ;;  %v6047_v38 = vld [vmem:[#allocation5 + $0x218] sm:$0xff] }
 0x251   :  { %9124 = vst [vmem:[#allocation139_spill] sm:$0xff] %v6032_v8  ;;  %1540 = vmatpush.msrb.mxu3 %v6047_v38  ;;  %v6050_v8 = vld [vmem:[#allocation5 + $0x170] sm:$0xff] }
 0x252   :  { %9125 = vst [vmem:[#allocation140_spill] sm:$0xff] %v6035_v1  ;;  %1469 = vmatpush.msrb.mxu0 %v6050_v8  ;;  %v6053_v1 = vld [vmem:[#allocation5 + $0x178] sm:$0xff] }
 0x253   :  { %9126 = vst [vmem:[#allocation141_spill] sm:$0xff] %v6038_v53  ;;  %1509 = vmatpush.msrb.mxu2 %v6053_v1  ;;  %v6056_v53 = vld [vmem:[#allocation5 + $0x150] sm:$0xff] }
 0x254   :  { %9127 = vst [vmem:[#allocation142_spill] sm:$0xff] %v6041_v34  ;;  %1470 = vmatpush.msrb.mxu0 %v6056_v53  ;;  %v6059_v34 = vld [vmem:[#allocation5 + $0x158] sm:$0xff] }
 0x255   :  { %9128 = vst [vmem:[#allocation143_spill] sm:$0xff] %v6044_v29  ;;  %1510 = vmatpush.msrb.mxu2 %v6059_v34  ;;  %v6062_v29 = vld [vmem:[#allocation5 + $0x130] sm:$0xff] }
 0x256   :  { %9129 = vst [vmem:[#allocation144_spill] sm:$0xff] %v6047_v38  ;;  %1471 = vmatpush.msrb.mxu0 %v6062_v29  ;;  %v6065_v38 = vld [vmem:[#allocation5 + $0x138] sm:$0xff] }
 0x257   :  { %9130 = vst [vmem:[#allocation145_spill] sm:$0xff] %v6050_v8  ;;  %1511 = vmatpush.msrb.mxu2 %v6065_v38  ;;  %v6068_v8 = vld [vmem:[#allocation5 + $0x110] sm:$0xff] }
 0x258   :  { %9131 = vst [vmem:[#allocation146_spill] sm:$0xff] %v6053_v1  ;;  %1472 = vmatpush.msrb.mxu0 %v6068_v8  ;;  %v6071_v1 = vld [vmem:[#allocation5 + $0x118] sm:$0xff] }
 0x259   :  { %9132 = vst [vmem:[#allocation147_spill] sm:$0xff] %v6056_v53  ;;  %1512 = vmatpush.msrb.mxu2 %v6071_v1  ;;  %v6074_v53 = vld [vmem:[#allocation5 + $0xf0] sm:$0xff] }
 0x25a   :  { %9133 = vst [vmem:[#allocation148_spill] sm:$0xff] %v6059_v34  ;;  %1473 = vmatpush.msrb.mxu0 %v6074_v53  ;;  %v6077_v34 = vld [vmem:[#allocation5 + $0xf8] sm:$0xff] }
 0x25b   :  { %9134 = vst [vmem:[#allocation149_spill] sm:$0xff] %v6062_v29  ;;  %1513 = vmatpush.msrb.mxu2 %v6077_v34  ;;  %v6080_v29 = vld [vmem:[#allocation5 + $0xd0] sm:$0xff] }
 0x25c   :  { %9135 = vst [vmem:[#allocation150_spill] sm:$0xff] %v6065_v38  ;;  %1474 = vmatpush.msrb.mxu0 %v6080_v29  ;;  %v6083_v38 = vld [vmem:[#allocation5 + $0xd8] sm:$0xff] }
 0x25d   :  { %9136 = vst [vmem:[#allocation151_spill] sm:$0xff] %v6068_v8  ;;  %1514 = vmatpush.msrb.mxu2 %v6083_v38  ;;  %v6086_v8 = vld [vmem:[#allocation5 + $0xb0] sm:$0xff] }
 0x25e   :  { %9137 = vst [vmem:[#allocation152_spill] sm:$0xff] %v6071_v1  ;;  %1475 = vmatpush.msrb.mxu0 %v6086_v8  ;;  %v6089_v1 = vld [vmem:[#allocation5 + $0xb8] sm:$0xff] }
 0x25f   :  { %9138 = vst [vmem:[#allocation153_spill] sm:$0xff] %v6074_v53  ;;  %1515 = vmatpush.msrb.mxu2 %v6089_v1  ;;  %v6092_v53 = vld [vmem:[#allocation5 + $0x90] sm:$0xff] }
 0x260   :  { %9139 = vst [vmem:[#allocation154_spill] sm:$0xff] %v6077_v34  ;;  %1476 = vmatpush.msrb.mxu0 %v6092_v53  ;;  %v6095_v34 = vld [vmem:[#allocation5 + $0x98] sm:$0xff] }
 0x261   :  { %9140 = vst [vmem:[#allocation155_spill] sm:$0xff] %v6080_v29  ;;  %1516 = vmatpush.msrb.mxu2 %v6095_v34  ;;  %v6098_v29 = vld [vmem:[#allocation5 + $0x70] sm:$0xff] }
 0x262   :  { %9141 = vst [vmem:[#allocation156_spill] sm:$0xff] %v6083_v38  ;;  %1477 = vmatpush.msrb.mxu0 %v6098_v29  ;;  %v6101_v38 = vld [vmem:[#allocation5 + $0x78] sm:$0xff]  ;;  %v1027_v35 = vpop.f32.mrf.mxu0 }
 0x263   :  { %9142 = vst [vmem:[#allocation157_spill] sm:$0xff] %v6086_v8  ;;  %1517 = vmatpush.msrb.mxu2 %v6101_v38  ;;  %v6104_v8 = vld [vmem:[#allocation5 + $0x50] sm:$0xff] }
 0x264   :  { %9143 = vst [vmem:[#allocation158_spill] sm:$0xff] %v6089_v1  ;;  %1478 = vmatpush.msrb.mxu0 %v6104_v8  ;;  %v6107_v1 = vld [vmem:[#allocation5 + $0x58] sm:$0xff] }
 0x265   :  { %9144 = vst [vmem:[#allocation159_spill] sm:$0xff] %v6092_v53  ;;  %1518 = vmatpush.msrb.mxu2 %v6107_v1  ;;  %v6110_v53 = vld [vmem:[#allocation5 + $0x30] sm:$0xff] }
 0x266   :  { %9145 = vst [vmem:[#allocation160_spill] sm:$0xff] %v6095_v34  ;;  %1479 = vmatpush.msrb.mxu0 %v6110_v53  ;;  %v6113_v34 = vld [vmem:[#allocation5 + $0x38] sm:$0xff] }
 0x267   :  { %9146 = vst [vmem:[#allocation161_spill] sm:$0xff] %v6098_v29  ;;  %1519 = vmatpush.msrb.mxu2 %v6113_v34  ;;  %v6116_v29 = vld [vmem:[#allocation5 + $0x10] sm:$0xff] }
 0x268   :  { %9147 = vst [vmem:[#allocation162_spill] sm:$0xff] %v6101_v38  ;;  %1480 = vmatpush.msrb.mxu0 %v6116_v29  ;;  %v6119_v38 = vld [vmem:[#allocation5 + $0x18] sm:$0xff] }
 0x269   :  { %9148 = vst [vmem:[#allocation163_spill] sm:$0xff] %v6104_v8  ;;  %1520 = vmatpush.msrb.mxu2 %v6119_v38  ;;  %v1047_v8 = vpop.f32.mrf.mxu1 }
 0x26a   :  { %9149 = vst [vmem:[#allocation164_spill] sm:$0xff] %v6107_v1  ;;  %v1028_v1 = vadd.f32 %v1027_v35, %v5516_v14 }
 0x26b   :  { %9150 = vst [vmem:[#allocation165_spill] sm:$0xff] %v6110_v53  ;;  %v1067_v53 = vpop.f32.mrf.mxu2  ;;  %v1107_v51 = vpop.f32.mrf.mxu0 }
 0x26c   :  { %9151 = vst [vmem:[#allocation166_spill] sm:$0xff] %v6113_v34  ;;  %v1048_v37 = vadd.f32 %v1047_v8, %v1028_v1  ;;  %v1068_v31 = vadd.f32 %v1067_v53, %v5519_v32  ;;  %v1087_v34 = vpop.f32.mrf.mxu3  ;;  %v1108_v13 = vadd.f32 %v1107_v51, %v5521_v43 }
 0x26d   :  { %9152 = vst [vmem:[#allocation167_spill] sm:$0xff] %v6116_v29 }
 0x26e   :  { %9153 = vst [vmem:[#allocation168_spill] sm:$0xff] %v6119_v38  ;;  %v3544_v54 = vmul.f32 -1.442695, %v1048_v37  ;;  %v1088_v29 = vadd.f32 %v1087_v34, %v1068_v31 }
 0x270   :  { %3645 = vpow2.f32 %v3544_v54  ;;  %v3545_v49 = vmul.f32 -1.442695, %v1088_v29 }
 0x271   :  { %v1127_v26 = vpop.f32.mrf.mxu1 }
 0x272   :  { %v1128_v18 = vadd.f32 %v1127_v26, %v1108_v13  ;;  %3647 = vpow2.f32 %v3545_v49 }
 0x273   :  { %v1147_v32 = vpop.f32.mrf.mxu2 }
 0x274   :  { %v3546_v37 = vmul.f32 -1.442695, %v1128_v18  ;;  %v1148_v51 = vadd.f32 %v1147_v32, %v5527_v7  ;;  %v1167_v49 = vpop.f32.mrf.mxu3 }
 0x276   :  { %v3646_v35 = vpop.eup %3645  ;;  %v1168_v18 = vadd.f32 %v1167_v49, %v1148_v51 }
 0x277   :  { %v1179_v1 = vadd.f32 1.0, %v3646_v35 }
 0x278   :  { %v3648_v54 = vpop.eup %3647 }
 0x279   :  { %v1275_v38 = vpop.f32.mrf.mxu1  ;;  %3649 = vrcp.f32 %v1179_v1  ;;  %v1180_v53 = vadd.f32 1.0, %v3648_v54  ;;  %vm1187_vm6 = vweird.f32 %v1179_v1  ;;  %v1191_v43 = vand.u32 2147483647, %v1179_v1 }
 0x27a   :  { %v1319_v22 = vadd.f32 %v1275_v38, %v179_v55  ;;  %3651 = vpow2.f32 %v3546_v37 }
 0x27b   :  { %v1208_v7 = vand.u32 2147483648, %v1180_v53  ;;  %vm1202_vm9 = vweird.f32 %v1180_v53  ;;  %vm1192_vm10 = vcmp.eq.f32.partialorder %v1191_v43, 8.507059e+37 }
 0x27c   :  { %v3548_v8 = vmul.f32 -1.442695, %v1319_v22 }
 0x27d   :  { %v1209_v50 = vor.u32 1.1754944e-38, %v1208_v7 }
 0x27e   :  { %3653 = vpow2.f32 %v3548_v8  ;;  %v1193_v8 = vand.u32 2147483648, %v1179_v1 }
 0x27f   :  { %v3650_v27 = vpop.eup %3649  ;;  %3655 = vrcp.f32 %v1180_v53 }
 0x280   :  { %v3652_v31 = vpop.eup %3651  ;;  %v1183_v34 = vmul.f32 %v3650_v27, %v1179_v1  ;;  %vm1188_vm5 = vweird.f32 %v3650_v27 }
 0x281   :  { %v6128_v29 = vadd.f32 1.0, %v3652_v31  ;;  %v9155_v31 = vld [vmem:[#allocation32_spill] sm:$0xff]  ;;  %vm6136_vm7 = vmor %vm1187_vm6, %vm1188_vm5 }
 0x282   :  { %v1184_v55 = vsub.f32 1.0, %v1183_v34  ;;  %v138_v34 = vadd.f32 %v9155_v31, %v9007_v47 }
 0x283   :  { %3657 = vrcp.f32 %v6128_v29  ;;  %vm1217_vm14 = vweird.f32 %v6128_v29 }
 0x284   :  { %v3654_v13 = vpop.eup %3653  ;;  %v1185_v22 = vmul.f32 %v3650_v27, %v1184_v55  ;;  %3659 = vtanh.f32 %v1168_v18  ;;  %v1255_v18 = vpop.f32.mrf.mxu0 }
 0x285   :  { %v3656_v26 = vpop.eup %3655  ;;  %v6131_v38 = vadd.f32 1.0, %v3654_v13  ;;  %v1206_v13 = vand.u32 2147483647, %v1180_v53 }
 0x286   :  { %v1198_v35 = vmul.f32 %v3656_v26, %v1180_v53  ;;  %v1186_v37 = vadd.f32 %v3650_v27, %v1185_v22  ;;  %vm1203_vm8 = vweird.f32 %v3656_v26  ;;  %v1194_v22 = vor.u32 1.1754944e-38, %v1193_v8 }
 0x287   :  { %3661 = vrcp.f32 %v6131_v38  ;;  %vm1204_vm11 = vmor %vm1202_vm9, %vm1203_vm8  ;;  %vm1207_vm12 = vcmp.eq.f32.partialorder %v1206_v13, 8.507059e+37  ;;  %vm1354_vm2 = vweird.f32 %v6131_v38 }
 0x288   :  { %v1199_v54 = vsub.f32 1.0, %v1198_v35  ;;  %v1190_v1 = vsel %vm6136_vm7, %v3650_v27, %v1186_v37  ;;  %v1318_v35 = vadd.f32 %v1255_v18, %v138_v34  ;;  %v9158_v27 = vld [vmem:[#allocation49_spill] sm:$0xff] }
 0x289   :  { %v3658_v32 = vpop.eup %3657  ;;  %v1195_v14 = vsel %vm1192_vm10, %v1194_v22, %v1190_v1  ;;  %v220_v37 = vadd.f32 %v9158_v27, %v5196_v41  ;;  %v1315_v1 = vpop.f32.mrf.mxu3 }
 0x28a   :  { %v1200_v55 = vmul.f32 %v3656_v26, %v1199_v54  ;;  %v1213_v49 = vmul.f32 %v3658_v32, %v6128_v29  ;;  %v3547_v5 = vmul.f32 -1.442695, %v1318_v35  ;;  %v3660_v46 = vpop.eup %3659  ;;  %v1295_v43 = vpop.f32.mrf.mxu2  ;;  %vm1218_vm13 = vweird.f32 %v3658_v32 }
 0x28b   :  { %v1229_v8 = vmul.f32 %v3660_v46, %v1195_v14  ;;  %v1320_v7 = vadd.f32 %v1295_v43, %v220_v37  ;;  %vm1219_vm15 = vmor %vm1217_vm14, %vm1218_vm13 }
 0x28c   :  { %v1214_v31 = vsub.f32 1.0, %v1213_v49  ;;  %v1201_v47 = vadd.f32 %v3656_v26, %v1200_v55  ;;  %3663 = vpow2.f32 %v3547_v5  ;;  %v3589_v5 = vld [vmem:[%s8290_s6 + $0x1] ss:$0 sm:$0xff] }
 0x28d   :  { %v6143_v54 = vpop.eup %3661 }
 0x28e   :  { %v1205_v44 = vsel %vm1204_vm11, %v3656_v26, %v1201_v47  ;;  %v1215_v42 = vmul.f32 %v3658_v32, %v1214_v31  ;;  %v1350_v51 = vmul.f32 %v6143_v54, %v6131_v38  ;;  %v1223_v26 = vand.u32 2147483648, %v6128_v29 }
 0x28f   :  { %v1210_v40 = vsel %vm1207_vm12, %v1209_v50, %v1205_v44  ;;  %v3549_v50 = vmul.f32 -1.442695, %v1320_v7  ;;  %vm1355_vm1 = vweird.f32 %v6143_v54 }
 0x290   :  { %v1228_v53 = vmul.f32 %v1210_v40, %v5552_v56  ;;  %v1216_v47 = vadd.f32 %v3658_v32, %v1215_v42  ;;  %v1221_v56 = vand.u32 2147483647, %v6128_v29  ;;  %v1351_v40 = vsub.f32 1.0, %v1350_v51  ;;  %v3588_v29 = vld [vmem:[%s8290_s6] ss:$0 sm:$0xff]  ;;  %vm6184_vm3 = vmor %vm1354_vm2, %vm1355_vm1 }
 0x291   :  { %v1224_v42 = vor.u32 1.1754944e-38, %v1223_v26  ;;  %v1360_v51 = vand.u32 2147483648, %v6131_v38 }
 0x292   :  { %v6148_v34 = vadd.f32 %v1229_v8, %v1228_v53  ;;  %v3664_v44 = vpop.eup %3663  ;;  %v1220_v46 = vsel %vm1219_vm15, %v3658_v32, %v1216_v47  ;;  %vm1222_vm0 = vcmp.eq.f32.partialorder %v1221_v56, 8.507059e+37  ;;  %v1352_v49 = vmul.f32 %v6143_v54, %v1351_v40  ;;  %v9159_v32 = vld [vmem:[#allocation50_spill] sm:$0xff] }
 0x293   :  { %v6156_v14 = vadd.f32 1.0, %v3664_v44  ;;  %v1225_v55 = vsel %vm1222_vm0, %v1224_v42, %v1220_v46  ;;  %v261_v35 = vadd.f32 %v9159_v32, %v5253_v59  ;;  %v861_v8 = vmul.f32 %v3588_v29, %v5564_v57  ;;  %v6276_v29 = vld [vmem:[#allocation3 + $0x120] sm:$0xff]  ;;  %v9168_v32 = vld [vmem:[#allocation40_spill] sm:$0xff] }
 0x294   :  { %3665 = vtanh.f32 %v6148_v34  ;;  %v1353_v43 = vadd.f32 %v6143_v54, %v1352_v49  ;;  %v1358_v57 = vand.u32 2147483647, %v6131_v38  ;;  %v9166_v49 = vld [vmem:[#allocation36_spill] sm:$0xff] }
 0x295   :  { %3667 = vpow2.f32 %v3549_v50  ;;  %v1321_v53 = vadd.f32 %v1315_v1, %v261_v35  ;;  %v1345_v26 = vand.u32 2147483648, %v6156_v14  ;;  %v1343_v38 = vand.u32 2147483647, %v6156_v14  ;;  %v6280_v1 = vld [vmem:[#allocation3 + $0x130] sm:$0xff] }
 0x296   :  { %3669 = vrcp.f32 %v6156_v14  ;;  %v1361_v50 = vor.u32 1.1754944e-38, %v1360_v51  ;;  %vm1359_vm5 = vcmp.eq.f32.partialorder %v1358_v57, 8.507059e+37  ;;  %vm1339_vm6 = vweird.f32 %v6156_v14  ;;  %v6288_v35 = vld [vmem:[#allocation3 + $0x110] sm:$0xff] }
 0x297   :  { %vm1344_vm8 = vcmp.eq.f32.partialorder %v1343_v38, 8.507059e+37  ;;  %v6304_v51 = vld [vmem:[#allocation3 + $0xd0] sm:$0xff]  ;;  %v9176_v38 = vld [vmem:[#allocation60_spill] sm:$0xff] }
 0x298   :  { %v9173_v57 = vld [vmem:[#allocation51_spill] sm:$0xff] }
 0x29a   :  { %v3666_v13 = vpop.eup %3665 }
 0x29b   :  { %v1232_v18 = vmul.f32 %v3666_v13, %v1225_v55  ;;  %v3668_v22 = vpop.eup %3667  ;;  %v6272_v13 = vld [vmem:[#allocation3 + $0x150] sm:$0xff] }
 0x29c   :  { %v6168_v31 = vadd.f32 1.0, %v3668_v22  ;;  %v3670_v37 = vpop.eup %3669  ;;  %v9165_v55 = vld [vmem:[#allocation31_spill] sm:$0xff]  ;;  %v6284_v22 = vld [vmem:[#allocation3 + $0x100] sm:$0xff] }
 0x29d   :  { %1421 = vmatmul.f32.vlgmr.msra.gmra.mxu1 %v1232_v18  ;;  %1461 = vmatmul.f32.vlgmr.msra.gmra.mxu3 %v1232_v18  ;;  %v1236_v27 = vmul.f32 %v3589_v5, %v1232_v18  ;;  %v1335_v7 = vmul.f32 %v3670_v37, %v6156_v14  ;;  %vm1340_vm4 = vweird.f32 %v3670_v37 }
 0x29e   :  { %1633 = vmatpush.msra.mxu1 %v5574_v2  ;;  %1673 = vmatpush.msra.mxu3 %v5577_v30  ;;  %3671 = vrcp.f32 %v6168_v31  ;;  %vm1341_vm7 = vmor %vm1339_vm6, %vm1340_vm4  ;;  %vm1369_vm10 = vweird.f32 %v6168_v31  ;;  %v9174_v30 = vld [vmem:[#allocation56_spill] sm:$0xff] }
 0x29f   :  { %v6180_v47 = vadd.f32 %v1236_v27, %v861_v8  ;;  %v1336_v2 = vsub.f32 1.0, %v1335_v7  ;;  %3673 = vtanh.f32 %v1321_v53  ;;  %v6292_v27 = vld [vmem:[#allocation3 + $0xe0] sm:$0xff]  ;;  %v6296_v53 = vld [vmem:[#allocation3 + $0xf0] sm:$0xff]  ;;  %v9172_v7 = vld [vmem:[#allocation48_spill] sm:$0xff] }
 0x2a0   :  { %1634 = vmatpush.msra.mxu1 %v5583_v45  ;;  %1674 = vmatpush.msra.mxu3 %v5586_v52  ;;  %v1357_v45 = vsel %vm6184_vm3, %v6143_v54, %v1353_v43  ;;  %v9171_v8 = vld [vmem:[#allocation45_spill] sm:$0xff] }
 0x2a1   :  { %v1337_v52 = vmul.f32 %v3670_v37, %v1336_v2  ;;  %v6300_v43 = vld [vmem:[#allocation3 + $0xc0] sm:$0xff] }
 0x2a2   :  { %1635 = vmatpush.msra.mxu1 %v5600_v25  ;;  %1675 = vmatpush.msra.mxu3 %v5603_v24  ;;  %v1362_v25 = vsel %vm1359_vm5, %v1361_v50, %v1357_v45  ;;  %v1346_v24 = vor.u32 1.1754944e-38, %v1345_v26  ;;  %v6308_v2 = vld [vmem:[#allocation3 + $0xa0] sm:$0xff]  ;;  %v6312_v26 = vld [vmem:[#allocation3 + $0xb0] sm:$0xff] }
 0x2a3   :  { %v1338_v56 = vadd.f32 %v3670_v37, %v1337_v52  ;;  %v1380_v14 = vmul.f32 %v1362_v25, %v5630_v60  ;;  %v9175_v45 = vld [vmem:[#allocation57_spill] sm:$0xff]  ;;  %v6320_v50 = vld [vmem:[#allocation3 + $0x90] sm:$0xff]  ;;  %v9178_v25 = vld [vmem:[#allocation64_spill] sm:$0xff] }
 0x2a4   :  { %1636 = vmatpush.msra.mxu1 %v5607_v9  ;;  %1676 = vmatpush.msra.mxu3 %v5610_v0  ;;  %v3672_v44 = vpop.eup %3671  ;;  %v6316_v52 = vld [vmem:[#allocation3 + $0x80] sm:$0xff] }
 0x2a5   :  { %1501 = vmatmul.f32.vlgmr.msrb.gmra.mxu1 %v1232_v18  ;;  %1541 = vmatmul.f32.vlgmr.msrb.gmra.mxu3 %v1232_v18  ;;  %v1365_v54 = vmul.f32 %v3672_v44, %v6168_v31  ;;  %v1342_v40 = vsel %vm1341_vm7, %v3670_v37, %v1338_v56  ;;  %v3674_v9 = vpop.eup %3673  ;;  %vm1370_vm9 = vweird.f32 %v3672_v44  ;;  %v9167_v18 = vld [vmem:[#allocation37_spill] sm:$0xff]  ;;  %v9170_v37 = vld [vmem:[#allocation44_spill] sm:$0xff] }
 0x2a6   :  { %1637 = vmatpush.msra.mxu1 %v5617_v63  ;;  %1677 = vmatpush.msra.mxu3 %v5620_v15  ;;  %v1347_v0 = vsel %vm1344_vm8, %v1346_v24, %v1342_v40  ;;  %vm1371_vm11 = vmor %vm1369_vm10, %vm1370_vm9  ;;  %v6324_v56 = vld [vmem:[#allocation3 + $0x60] sm:$0xff]  ;;  %v6328_v24 = vld [vmem:[#allocation3 + $0x70] sm:$0xff] }
 0x2a7   :  { %v1366_v46 = vsub.f32 1.0, %v1365_v54  ;;  %v1381_v42 = vmul.f32 %v3674_v9, %v1347_v0  ;;  %v9179_v54 = vld [vmem:[#allocation65_spill] sm:$0xff]  ;;  %v9180_v9 = vld [vmem:[#allocation68_spill] sm:$0xff]  ;;  %v6336_v0 = vld [vmem:[#allocation3 + $0x50] sm:$0xff] }
 0x2a8   :  { %1638 = vmatpush.msra.mxu1 %v5624_v61  ;;  %1678 = vmatpush.msra.mxu3 %v5627_v4  ;;  %v1375_v61 = vand.u32 2147483648, %v6168_v31  ;;  %v1373_v4 = vand.u32 2147483647, %v6168_v31  ;;  %v9169_v31 = vld [vmem:[#allocation41_spill] sm:$0xff] }
 0x2a9   :  { %v1367_v5 = vmul.f32 %v3672_v44, %v1366_v46  ;;  %v6206_v63 = vadd.f32 %v1381_v42, %v1380_v14  ;;  %v6332_v40 = vld [vmem:[#allocation3 + $0x40] sm:$0xff]  ;;  %v9181_v46 = vld [vmem:[#allocation71_spill] sm:$0xff]  ;;  %v9182_v42 = vld [vmem:[#allocation76_spill] sm:$0xff] }
 0x2aa   :  { %1639 = vmatpush.msra.mxu1 %v5632_v6  ;;  %1679 = vmatpush.msra.mxu3 %v5635_v28  ;;  %v1376_v6 = vor.u32 1.1754944e-38, %v1375_v61  ;;  %vm1374_vm12 = vcmp.eq.f32.partialorder %v1373_v4, 8.507059e+37  ;;  %v6340_v14 = vld [vmem:[#allocation3 + $0x20] sm:$0xff]  ;;  %v9185_v4 = vld [vmem:[#allocation80_spill] sm:$0xff] }
 0x2ab   :  { %v1368_v15 = vadd.f32 %v3672_v44, %v1367_v5  ;;  %3675 = vtanh.f32 %v6206_v63  ;;  %v6344_v5 = vld [vmem:[#allocation3 + $0x30] sm:$0xff]  ;;  %v6348_v61 = vld [vmem:[#allocation3] sm:$0xff] }
 0x2ac   :  { %1640 = vmatpush.msra.mxu1 %v5640_v33  ;;  %1680 = vmatpush.msra.mxu3 %v5643_v36  ;;  %9184 = vst [vmem:[#allocation33_spill] sm:$0xff] %v6348_v61 }
 0x2ad   :  { %v1372_v60 = vsel %vm1371_vm11, %v3672_v44, %v1368_v15  ;;  %v9177_v44 = vld [vmem:[#allocation61_spill] sm:$0xff] }
 0x2ae   :  { %1641 = vmatpush.msra.mxu1 %v5648_v20  ;;  %1681 = vmatpush.msra.mxu3 %v5651_v21  ;;  %v1377_v33 = vsel %vm1374_vm12, %v1376_v6, %v1372_v60  ;;  %v6226_v20 = vld [vmem:[#allocation3 + $0x1e0] sm:$0xff]  ;;  %v6229_v21 = vld [vmem:[#allocation3 + $0x1f0] sm:$0xff] }
 0x2af   :  { %v9183_v15 = vld [vmem:[#allocation77_spill] sm:$0xff]  ;;  %v6352_v60 = vld [vmem:[#allocation3 + $0x10] sm:$0xff] }
 0x2b0   :  { %1642 = vmatpush.msra.mxu1 %v5654_v58  ;;  %1682 = vmatpush.msra.mxu3 %v5657_v17  ;;  %v6234_v58 = vld [vmem:[#allocation3 + $0x1c0] sm:$0xff]  ;;  %v6237_v17 = vld [vmem:[#allocation3 + $0x1d0] sm:$0xff]  ;;  %9186 = vst [vmem:[#allocation32_spill] sm:$0xff] %v6352_v60 }
 0x2b1   :  { %v3676_v28 = vpop.eup %3675  ;;  %v9187_v6 = vld [vmem:[#allocation81_spill] sm:$0xff] }
 0x2b2   :  { %1643 = vmatpush.msra.mxu1 %v5660_v3  ;;  %1683 = vmatpush.msra.mxu3 %v5663_v10  ;;  %v6220_v36 = vmul.f32 %v3676_v28, %v1377_v33  ;;  %v6242_v3 = vld [vmem:[#allocation3 + $0x1a0] sm:$0xff]  ;;  %v6245_v10 = vld [vmem:[#allocation3 + $0x1b0] sm:$0xff]  ;;  %v9188_v28 = vld [vmem:[#allocation84_spill] sm:$0xff] }
 0x2b3   :  { %v9189_v33 = vld [vmem:[#allocation26_spill] sm:$0xff] }
 0x2b4   :  { %1644 = vmatpush.msra.mxu1 %v5668_v48  ;;  %1684 = vmatpush.msra.mxu3 %v5671_v39  ;;  %v6250_v48 = vld [vmem:[#allocation3 + $0x180] sm:$0xff]  ;;  %v6253_v39 = vld [vmem:[#allocation3 + $0x190] sm:$0xff] }
 0x2b5   :  { %1401 = vmatmul.f32.vlgmr.msra.gmra.mxu0 %v6220_v36  ;;  %1441 = vmatmul.f32.vlgmr.msra.gmra.mxu2 %v6220_v36 }
 0x2b6   :  { %1613 = vmatpush.msra.mxu0 %v6226_v20  ;;  %1653 = vmatpush.msra.mxu2 %v6229_v21 }
 0x2b7   :  { %1645 = vmatpush.msra.mxu1 %v5678_v12  ;;  %1685 = vmatpush.msra.mxu3 %v5681_v62  ;;  %v9162_v12 = vld [vmem:[#allocation24_spill] sm:$0xff]  ;;  %v9163_v62 = vld [vmem:[#allocation25_spill] sm:$0xff] }
 0x2b8   :  { %1614 = vmatpush.msra.mxu0 %v6234_v58  ;;  %1654 = vmatpush.msra.mxu2 %v6237_v17 }
 0x2b9   :  { %1646 = vmatpush.msra.mxu1 %v5686_v19  ;;  %1686 = vmatpush.msra.mxu3 %v5689_v23  ;;  %v6260_v19 = vld [vmem:[#allocation3 + $0x160] sm:$0xff]  ;;  %v6264_v23 = vld [vmem:[#allocation3 + $0x170] sm:$0xff] }
 0x2ba   :  { %1615 = vmatpush.msra.mxu0 %v6242_v3  ;;  %1655 = vmatpush.msra.mxu2 %v6245_v10 }
 0x2bb   :  { %1647 = vmatpush.msra.mxu1 %v5694_v11  ;;  %1687 = vmatpush.msra.mxu3 %v5697_v16  ;;  %v6268_v11 = vld [vmem:[#allocation3 + $0x140] sm:$0xff]  ;;  %v9164_v16 = vld [vmem:[#allocation28_spill] sm:$0xff] }
 0x2bc   :  { %1616 = vmatpush.msra.mxu0 %v6250_v48  ;;  %1656 = vmatpush.msra.mxu2 %v6253_v39 }
 0x2bd   :  { %1648 = vmatpush.msra.mxu1 %v9162_v12  ;;  %1688 = vmatpush.msra.mxu3 %v9163_v62  ;;  %v9190_v12 = vld [vmem:[#allocation27_spill] sm:$0xff]  ;;  %v9191_v62 = vld [vmem:[#allocation85_spill] sm:$0xff] }
 0x2be   :  { %1481 = vmatmul.f32.vlgmr.msrb.gmra.mxu0 %v6220_v36  ;;  %1521 = vmatmul.f32.vlgmr.msrb.gmra.mxu2 %v6220_v36 }
 0x2bf   :  { %1617 = vmatpush.msra.mxu0 %v6260_v19  ;;  %1649 = vmatmul.f32.vlgmr.msra.gmra.mxu1 %v6220_v36 }
 0x2c0   :  { %1657 = vmatpush.msra.mxu2 %v6264_v23  ;;  %1689 = vmatmul.f32.vlgmr.msra.gmra.mxu3 %v6220_v36 }
 0x2c1   :  { %1618 = vmatpush.msra.mxu0 %v6268_v11  ;;  %1780 = vmatpush.msrb.mxu1 %v9164_v16  ;;  %v9192_v16 = vld [vmem:[#allocation34_spill] sm:$0xff] }
 0x2c2   :  { %1658 = vmatpush.msra.mxu2 %v6272_v13  ;;  %1820 = vmatpush.msrb.mxu3 %v9165_v55  ;;  %v9193_v55 = vld [vmem:[#allocation35_spill] sm:$0xff] }
 0x2c3   :  { %1619 = vmatpush.msra.mxu0 %v6276_v29  ;;  %1781 = vmatpush.msrb.mxu1 %v9166_v49  ;;  %v9194_v49 = vld [vmem:[#allocation91_spill] sm:$0xff] }
 0x2c4   :  { %1659 = vmatpush.msra.mxu2 %v6280_v1  ;;  %1821 = vmatpush.msrb.mxu3 %v9167_v18  ;;  %v9195_v18 = vld [vmem:[#allocation38_spill] sm:$0xff] }
 0x2c5   :  { %1620 = vmatpush.msra.mxu0 %v6284_v22  ;;  %1782 = vmatpush.msrb.mxu1 %v9168_v32  ;;  %v9196_v32 = vld [vmem:[#allocation95_spill] sm:$0xff] }
 0x2c6   :  { %1660 = vmatpush.msra.mxu2 %v6288_v35  ;;  %1822 = vmatpush.msrb.mxu3 %v9169_v31  ;;  %v9198_v31 = vld [vmem:[#allocation96_spill] sm:$0xff] }
 0x2c7   :  { %1621 = vmatpush.msra.mxu0 %v6292_v27  ;;  %1783 = vmatpush.msrb.mxu1 %v9170_v37  ;;  %v9199_v37 = vld [vmem:[#allocation42_spill] sm:$0xff] }
 0x2c8   :  { %1661 = vmatpush.msra.mxu2 %v6296_v53  ;;  %1823 = vmatpush.msrb.mxu3 %v9171_v8  ;;  %v9200_v8 = vld [vmem:[#allocation99_spill] sm:$0xff] }
 0x2c9   :  { %1622 = vmatpush.msra.mxu0 %v6300_v43  ;;  %1784 = vmatpush.msrb.mxu1 %v9172_v7  ;;  %v9201_v7 = vld [vmem:[#allocation43_spill] sm:$0xff] }
 0x2ca   :  { %1662 = vmatpush.msra.mxu2 %v6304_v51  ;;  %1824 = vmatpush.msrb.mxu3 %v9173_v57  ;;  %v9202_v57 = vld [vmem:[#allocation100_spill] sm:$0xff] }
 0x2cb   :  { %1623 = vmatpush.msra.mxu0 %v6308_v2  ;;  %1785 = vmatpush.msrb.mxu1 %v9174_v30  ;;  %v9203_v30 = vld [vmem:[#allocation46_spill] sm:$0xff] }
 0x2cc   :  { %1663 = vmatpush.msra.mxu2 %v6312_v26  ;;  %1825 = vmatpush.msrb.mxu3 %v9175_v45  ;;  %v9204_v45 = vld [vmem:[#allocation47_spill] sm:$0xff] }
 0x2cd   :  { %1624 = vmatpush.msra.mxu0 %v6316_v52  ;;  %1786 = vmatpush.msrb.mxu1 %v9176_v38  ;;  %v9205_v38 = vld [vmem:[#allocation54_spill] sm:$0xff] }
 0x2ce   :  { %1664 = vmatpush.msra.mxu2 %v6320_v50  ;;  %1826 = vmatpush.msrb.mxu3 %v9177_v44  ;;  %v9206_v44 = vld [vmem:[#allocation55_spill] sm:$0xff] }
 0x2cf   :  { %1625 = vmatpush.msra.mxu0 %v6324_v56  ;;  %1787 = vmatpush.msrb.mxu1 %v9178_v25  ;;  %v9207_v25 = vld [vmem:[#allocation58_spill] sm:$0xff] }
 0x2d0   :  { %1665 = vmatpush.msra.mxu2 %v6328_v24  ;;  %1827 = vmatpush.msrb.mxu3 %v9179_v54  ;;  %v9208_v54 = vld [vmem:[#allocation59_spill] sm:$0xff] }
 0x2d1   :  { %1626 = vmatpush.msra.mxu0 %v6332_v40  ;;  %1788 = vmatpush.msrb.mxu1 %v9180_v9  ;;  %v9209_v9 = vld [vmem:[#allocation62_spill] sm:$0xff] }
 0x2d2   :  { %1666 = vmatpush.msra.mxu2 %v6336_v0  ;;  %1828 = vmatpush.msrb.mxu3 %v9181_v46  ;;  %v9210_v46 = vld [vmem:[#allocation63_spill] sm:$0xff] }
 0x2d3   :  { %1627 = vmatpush.msra.mxu0 %v6340_v14  ;;  %1789 = vmatpush.msrb.mxu1 %v9182_v42  ;;  %v9211_v42 = vld [vmem:[#allocation66_spill] sm:$0xff] }
 0x2d4   :  { %1667 = vmatpush.msra.mxu2 %v6344_v5  ;;  %1829 = vmatpush.msrb.mxu3 %v9183_v15  ;;  %v9212_v15 = vld [vmem:[#allocation67_spill] sm:$0xff] }
 0x2d5   :  { %1628 = vmatpush.msra.mxu0 %v6348_v61  ;;  %1790 = vmatpush.msrb.mxu1 %v9185_v4  ;;  %v9213_v4 = vld [vmem:[#allocation74_spill] sm:$0xff] }
 0x2d6   :  { %1668 = vmatpush.msra.mxu2 %v6352_v60  ;;  %1629 = vmatmul.f32.vlgmr.msra.gmra.mxu0 %v6220_v36 }
 0x2d7   :  { %1669 = vmatmul.f32.vlgmr.msra.gmra.mxu2 %v6220_v36  ;;  %1830 = vmatpush.msrb.mxu3 %v9187_v6  ;;  %v9197_v36 = vld [vmem:[#allocation39_spill] sm:$0xff] }
 0x2d8   :  { %1791 = vmatpush.msrb.mxu1 %v9188_v28  ;;  %1760 = vmatpush.msrb.mxu0 %v9189_v33  ;;  %v9214_v6 = vld [vmem:[#allocation75_spill] sm:$0xff]  ;;  %v9215_v28 = vld [vmem:[#allocation78_spill] sm:$0xff] }
 0x2d9   :  { %1831 = vmatpush.msrb.mxu3 %v9190_v12  ;;  %1800 = vmatpush.msrb.mxu2 %v9191_v62  ;;  %v9216_v33 = vld [vmem:[#allocation79_spill] sm:$0xff]  ;;  %v9217_v12 = vld [vmem:[#allocation82_spill] sm:$0xff] }
 0x2da   :  { %1792 = vmatpush.msrb.mxu1 %v9192_v16  ;;  %1761 = vmatpush.msrb.mxu0 %v9193_v55  ;;  %v9218_v62 = vld [vmem:[#allocation83_spill] sm:$0xff]  ;;  %v9220_v55 = vld [vmem:[#allocation88_spill] sm:$0xff] }
 0x2db   :  { %1832 = vmatpush.msrb.mxu3 %v9194_v49  ;;  %1801 = vmatpush.msrb.mxu2 %v9195_v18  ;;  %v9219_v16 = vld [vmem:[#allocation87_spill] sm:$0xff]  ;;  %v9221_v49 = vld [vmem:[#allocation93_spill] sm:$0xff]  ;;  %v9222_v18 = vld [vmem:[#allocation94_spill] sm:$0xff] }
 0x2dc   :  { %1793 = vmatpush.msrb.mxu1 %v9196_v32  ;;  %1762 = vmatpush.msrb.mxu0 %v9197_v36  ;;  %v9223_v32 = vld [vmem:[#allocation97_spill] sm:$0xff]  ;;  %v9224_v36 = vld [vmem:[#allocation98_spill] sm:$0xff] }
 0x2dd   :  { %1833 = vmatpush.msrb.mxu3 %v9198_v31  ;;  %1802 = vmatpush.msrb.mxu2 %v9199_v37  ;;  %v9225_v31 = vld [vmem:[#allocation101_spill] sm:$0xff]  ;;  %v9226_v37 = vld [vmem:[#allocation102_spill] sm:$0xff] }
 0x2de   :  { %1794 = vmatpush.msrb.mxu1 %v9200_v8  ;;  %1763 = vmatpush.msrb.mxu0 %v9201_v7  ;;  %v9227_v8 = vld [vmem:[#allocation107_spill] sm:$0xff]  ;;  %v9228_v7 = vld [vmem:[#allocation108_spill] sm:$0xff] }
 0x2df   :  { %1834 = vmatpush.msrb.mxu3 %v9202_v57  ;;  %1803 = vmatpush.msrb.mxu2 %v9203_v30  ;;  %v9229_v57 = vld [vmem:[#allocation112_spill] sm:$0xff]  ;;  %v9230_v30 = vld [vmem:[#allocation113_spill] sm:$0xff] }
 0x2e0   :  { %1795 = vmatpush.msrb.mxu1 %v9204_v45  ;;  %1764 = vmatpush.msrb.mxu0 %v9205_v38  ;;  %v9231_v45 = vld [vmem:[#allocation114_spill] sm:$0xff]  ;;  %v9232_v38 = vld [vmem:[#allocation115_spill] sm:$0xff] }
 0x2e1   :  { %1835 = vmatpush.msrb.mxu3 %v9206_v44  ;;  %1804 = vmatpush.msrb.mxu2 %v9207_v25  ;;  %v9233_v44 = vld [vmem:[#allocation118_spill] sm:$0xff]  ;;  %v9234_v25 = vld [vmem:[#allocation19_spill] sm:$0xff] }
 0x2e2   :  { %1860 = vmatpush.msra.mxu1 %v9208_v54  ;;  %1765 = vmatpush.msrb.mxu0 %v9210_v46  ;;  %v9235_v54 = vld [vmem:[#allocation18_spill] sm:$0xff] }
 0x2e3   :  { %1900 = vmatpush.msra.mxu3 %v9209_v9  ;;  %1805 = vmatpush.msrb.mxu2 %v9211_v42  ;;  %v9236_v9 = vld [vmem:[#allocation29_spill] sm:$0xff]  ;;  %v9237_v46 = vld [vmem:[#allocation30_spill] sm:$0xff] }
 0x2e4   :  { %1861 = vmatpush.msra.mxu1 %v9212_v15  ;;  %1766 = vmatpush.msrb.mxu0 %v9214_v6  ;;  %v9238_v42 = vld [vmem:[#allocation9_spill] sm:$0xff]  ;;  %v9239_v15 = vld [vmem:[#allocation10_spill] sm:$0xff]  ;;  %v9241_v6 = vld [vmem:[#allocation12_spill] sm:$0xff] }
 0x2e5   :  { %1901 = vmatpush.msra.mxu3 %v9213_v4  ;;  %1806 = vmatpush.msrb.mxu2 %v9215_v28  ;;  %v9240_v4 = vld [vmem:[#allocation11_spill] sm:$0xff]  ;;  %v9242_v28 = vld [vmem:[#allocation13_spill] sm:$0xff] }
 0x2e6   :  { %1862 = vmatpush.msra.mxu1 %v9216_v33  ;;  %1767 = vmatpush.msrb.mxu0 %v9218_v62  ;;  %v9243_v33 = vld [vmem:[#allocation14_spill] sm:$0xff]  ;;  %v9245_v62 = vld [vmem:[#allocation16_spill] sm:$0xff] }
 0x2e7   :  { %1902 = vmatpush.msra.mxu3 %v9217_v12  ;;  %1807 = vmatpush.msrb.mxu2 %v9219_v16  ;;  %v9244_v12 = vld [vmem:[#allocation15_spill] sm:$0xff]  ;;  %v9246_v16 = vld [vmem:[#allocation17_spill] sm:$0xff] }
 0x2e8   :  { %1863 = vmatpush.msra.mxu1 %v9220_v55  ;;  %1768 = vmatpush.msrb.mxu0 %v9222_v18  ;;  %v9247_v55 = vld [vmem:[#allocation122_spill] sm:$0xff]  ;;  %v9249_v18 = vld [vmem:[#allocation124_spill] sm:$0xff] }
 0x2e9   :  { %1903 = vmatpush.msra.mxu3 %v9221_v49  ;;  %1808 = vmatpush.msrb.mxu2 %v9223_v32  ;;  %v9248_v49 = vld [vmem:[#allocation123_spill] sm:$0xff]  ;;  %v9250_v32 = vld [vmem:[#allocation125_spill] sm:$0xff] }
 0x2ea   :  { %1864 = vmatpush.msra.mxu1 %v9224_v36  ;;  %1769 = vmatpush.msrb.mxu0 %v9226_v37  ;;  %v9251_v36 = vld [vmem:[#allocation126_spill] sm:$0xff]  ;;  %v9253_v37 = vld [vmem:[#allocation128_spill] sm:$0xff] }
 0x2eb   :  { %1904 = vmatpush.msra.mxu3 %v9225_v31  ;;  %1809 = vmatpush.msrb.mxu2 %v9227_v8  ;;  %v9252_v31 = vld [vmem:[#allocation127_spill] sm:$0xff]  ;;  %v9254_v8 = vld [vmem:[#allocation129_spill] sm:$0xff] }
 0x2ec   :  { %1865 = vmatpush.msra.mxu1 %v9228_v7  ;;  %1770 = vmatpush.msrb.mxu0 %v9230_v30  ;;  %v9255_v7 = vld [vmem:[#allocation130_spill] sm:$0xff]  ;;  %v9257_v30 = vld [vmem:[#allocation132_spill] sm:$0xff] }
 0x2ed   :  { %1905 = vmatpush.msra.mxu3 %v9229_v57  ;;  %1810 = vmatpush.msrb.mxu2 %v9231_v45  ;;  %v9256_v57 = vld [vmem:[#allocation131_spill] sm:$0xff]  ;;  %v9258_v45 = vld [vmem:[#allocation133_spill] sm:$0xff] }
 0x2ee   :  { %1866 = vmatpush.msra.mxu1 %v9232_v38  ;;  %1771 = vmatpush.msrb.mxu0 %v9234_v25  ;;  %v9259_v38 = vld [vmem:[#allocation134_spill] sm:$0xff]  ;;  %v9261_v25 = vld [vmem:[#allocation136_spill] sm:$0xff] }
 0x2ef   :  { %1906 = vmatpush.msra.mxu3 %v9233_v44  ;;  %1811 = vmatpush.msrb.mxu2 %v9235_v54  ;;  %v9260_v44 = vld [vmem:[#allocation135_spill] sm:$0xff]  ;;  %v9262_v54 = vld [vmem:[#allocation137_spill] sm:$0xff] }
 0x2f0   :  { %1867 = vmatpush.msra.mxu1 %v9236_v9  ;;  %1772 = vmatpush.msrb.mxu0 %v9238_v42  ;;  %v9263_v9 = vld [vmem:[#allocation138_spill] sm:$0xff]  ;;  %v9265_v42 = vld [vmem:[#allocation140_spill] sm:$0xff] }
 0x2f1   :  { %1907 = vmatpush.msra.mxu3 %v9237_v46  ;;  %1812 = vmatpush.msrb.mxu2 %v9239_v15  ;;  %v9264_v46 = vld [vmem:[#allocation139_spill] sm:$0xff]  ;;  %v9266_v15 = vld [vmem:[#allocation141_spill] sm:$0xff] }
 0x2f2   :  { %1868 = vmatpush.msra.mxu1 %v9240_v4  ;;  %1773 = vmatpush.msrb.mxu0 %v9242_v28  ;;  %v9267_v4 = vld [vmem:[#allocation142_spill] sm:$0xff]  ;;  %v9269_v28 = vld [vmem:[#allocation144_spill] sm:$0xff] }
 0x2f3   :  { %1908 = vmatpush.msra.mxu3 %v9241_v6  ;;  %1813 = vmatpush.msrb.mxu2 %v9243_v33  ;;  %v9268_v6 = vld [vmem:[#allocation143_spill] sm:$0xff]  ;;  %v9270_v33 = vld [vmem:[#allocation145_spill] sm:$0xff] }
 0x2f4   :  { %1869 = vmatpush.msra.mxu1 %v9244_v12  ;;  %1774 = vmatpush.msrb.mxu0 %v9246_v16  ;;  %v9271_v12 = vld [vmem:[#allocation146_spill] sm:$0xff]  ;;  %v9273_v16 = vld [vmem:[#allocation148_spill] sm:$0xff] }
 0x2f5   :  { %1909 = vmatpush.msra.mxu3 %v9245_v62  ;;  %1814 = vmatpush.msrb.mxu2 %v9247_v55  ;;  %v9272_v62 = vld [vmem:[#allocation147_spill] sm:$0xff]  ;;  %v9274_v55 = vld [vmem:[#allocation149_spill] sm:$0xff] }
 0x2f6   :  { %1870 = vmatpush.msra.mxu1 %v9248_v49  ;;  %1775 = vmatpush.msrb.mxu0 %v9250_v32  ;;  %v9275_v49 = vld [vmem:[#allocation150_spill] sm:$0xff]  ;;  %v9277_v32 = vld [vmem:[#allocation152_spill] sm:$0xff] }
 0x2f7   :  { %1910 = vmatpush.msra.mxu3 %v9249_v18  ;;  %1815 = vmatpush.msrb.mxu2 %v9251_v36  ;;  %v9276_v18 = vld [vmem:[#allocation151_spill] sm:$0xff]  ;;  %v9278_v36 = vld [vmem:[#allocation153_spill] sm:$0xff] }
 0x2f8   :  { %1871 = vmatpush.msra.mxu1 %v9252_v31  ;;  %1840 = vmatpush.msra.mxu0 %v9254_v8  ;;  %v9279_v31 = vld [vmem:[#allocation154_spill] sm:$0xff]  ;;  %v9281_v8 = vld [vmem:[#allocation156_spill] sm:$0xff] }
 0x2f9   :  { %1911 = vmatpush.msra.mxu3 %v9253_v37  ;;  %1880 = vmatpush.msra.mxu2 %v9255_v7  ;;  %v9280_v37 = vld [vmem:[#allocation155_spill] sm:$0xff]  ;;  %v9282_v7 = vld [vmem:[#allocation157_spill] sm:$0xff] }
 0x2fa   :  { %1872 = vmatpush.msra.mxu1 %v9256_v57  ;;  %1841 = vmatpush.msra.mxu0 %v9258_v45  ;;  %v9283_v57 = vld [vmem:[#allocation158_spill] sm:$0xff]  ;;  %v9285_v45 = vld [vmem:[#allocation160_spill] sm:$0xff] }
 0x2fb   :  { %1912 = vmatpush.msra.mxu3 %v9257_v30  ;;  %1881 = vmatpush.msra.mxu2 %v9259_v38  ;;  %v9284_v30 = vld [vmem:[#allocation159_spill] sm:$0xff]  ;;  %v9286_v38 = vld [vmem:[#allocation161_spill] sm:$0xff] }
 0x2fc   :  { %1873 = vmatpush.msra.mxu1 %v9260_v44  ;;  %1842 = vmatpush.msra.mxu0 %v9262_v54  ;;  %v9287_v44 = vld [vmem:[#allocation162_spill] sm:$0xff]  ;;  %v9289_v54 = vld [vmem:[#allocation164_spill] sm:$0xff] }
 0x2fd   :  { %1913 = vmatpush.msra.mxu3 %v9261_v25  ;;  %1882 = vmatpush.msra.mxu2 %v9263_v9  ;;  %v9288_v25 = vld [vmem:[#allocation163_spill] sm:$0xff]  ;;  %v9290_v9 = vld [vmem:[#allocation165_spill] sm:$0xff] }
 0x2fe   :  { %1874 = vmatpush.msra.mxu1 %v9264_v46  ;;  %1843 = vmatpush.msra.mxu0 %v9266_v15  ;;  %v9291_v46 = vld [vmem:[#allocation166_spill] sm:$0xff]  ;;  %v9293_v15 = vld [vmem:[#allocation168_spill] sm:$0xff] }
 0x2ff   :  { %1914 = vmatpush.msra.mxu3 %v9265_v42  ;;  %1883 = vmatpush.msra.mxu2 %v9267_v4  ;;  %v9292_v42 = vld [vmem:[#allocation167_spill] sm:$0xff] }
 0x300   :  { %1875 = vmatpush.msra.mxu1 %v9268_v6  ;;  %1844 = vmatpush.msra.mxu0 %v9270_v33 }
 0x301   :  { %1915 = vmatpush.msra.mxu3 %v9269_v28  ;;  %1884 = vmatpush.msra.mxu2 %v9271_v12  ;;  %v9294_v28 = vld [vmem:[#allocation20_spill] sm:$0xff] }
 0x302   :  { %1845 = vmatpush.msra.mxu0 %v9272_v62 }
 0x303   :  { %1885 = vmatpush.msra.mxu2 %v9273_v16 }
 0x304   :  { %1846 = vmatpush.msra.mxu0 %v9274_v55 }
 0x305   :  { %1886 = vmatpush.msra.mxu2 %v9275_v49  ;;  %v9295_v49 = vld [vmem:[#allocation21_spill] sm:$0xff] }
 0x306   :  { %1847 = vmatpush.msra.mxu0 %v9276_v18 }
 0x307   :  { %1887 = vmatpush.msra.mxu2 %v9277_v32 }
 0x308   :  { %1848 = vmatpush.msra.mxu0 %v9278_v36  ;;  %v9296_v36 = vld [vmem:[#allocation117_spill] sm:$0xff] }
 0x309   :  { %1888 = vmatpush.msra.mxu2 %v9279_v31  ;;  %v9297_v31 = vld [vmem:[#allocation53_spill] sm:$0xff] }
 0x30a   :  { %1849 = vmatpush.msra.mxu0 %v9280_v37  ;;  %v182_v37 = vadd.f32 %v9297_v31, %v9296_v36 }
 0x30b   :  { %1889 = vmatpush.msra.mxu2 %v9281_v8 }
 0x30c   :  { %1850 = vmatpush.msra.mxu0 %v9282_v7 }
 0x30d   :  { %1890 = vmatpush.msra.mxu2 %v9283_v57  ;;  %v9298_v57 = vld [vmem:[#allocation22_spill] sm:$0xff] }
 0x30e   :  { %1851 = vmatpush.msra.mxu0 %v9284_v30 }
 0x30f   :  { %1891 = vmatpush.msra.mxu2 %v9285_v45 }
 0x310   :  { %1852 = vmatpush.msra.mxu0 %v9286_v38 }
 0x311   :  { %1892 = vmatpush.msra.mxu2 %v9287_v44 }
 0x312   :  { %1853 = vmatpush.msra.mxu0 %v9288_v25 }
 0x313   :  { %1893 = vmatpush.msra.mxu2 %v9289_v54 }
 0x314   :  { %1854 = vmatpush.msra.mxu0 %v9290_v9 }
 0x315   :  { %1894 = vmatpush.msra.mxu2 %v9291_v46 }
 0x316   :  { %1855 = vmatpush.msra.mxu0 %v9292_v42 }
 0x317   :  { %1895 = vmatpush.msra.mxu2 %v9293_v15 }
 0x31a   :  { %v1422_v4 = vpop.f32.mrf.mxu1 }
 0x320   :  { %v1462_v32 = vpop.f32.mrf.mxu3 }
 0x322   :  { %v1502_v12 = vpop.f32.mrf.mxu1 }
 0x332   :  { %v1402_v6 = vpop.f32.mrf.mxu0 }
 0x333   :  { %v1403_v33 = vadd.f32 %v1402_v6, %v9294_v28 }
 0x335   :  { %v1423_v62 = vadd.f32 %v1422_v4, %v1403_v33 }
 0x337   :  { %v3550_v16 = vmul.f32 -1.442695, %v1423_v62 }
 0x338   :  { %v1442_v55 = vpop.f32.mrf.mxu2 }
 0x339   :  { %3677 = vpow2.f32 %v3550_v16  ;;  %v1443_v18 = vadd.f32 %v1442_v55, %v9295_v49  ;;  %v9299_v55 = vld [vmem:[#allocation23_spill] sm:$0xff] }
 0x33b   :  { %v1463_v8 = vadd.f32 %v1462_v32, %v1443_v18  ;;  %v1482_v7 = vpop.f32.mrf.mxu0 }
 0x33c   :  { %v1483_v30 = vadd.f32 %v1482_v7, %v9298_v57  ;;  %v1650_v45 = vpop.f32.mrf.mxu1 }
 0x33d   :  { %v3551_v38 = vmul.f32 -1.442695, %v1463_v8  ;;  %v1694_v44 = vadd.f32 %v1650_v45, %v182_v37  ;;  %v1542_v37 = vpop.f32.mrf.mxu3 }
 0x33e   :  { %v1503_v25 = vadd.f32 %v1502_v12, %v1483_v30 }
 0x33f   :  { %v3678_v54 = vpop.eup %3677  ;;  %3679 = vpow2.f32 %v3551_v38  ;;  %v3554_v42 = vmul.f32 -1.442695, %v1694_v44 }
 0x340   :  { %v1554_v9 = vadd.f32 1.0, %v3678_v54  ;;  %v3552_v46 = vmul.f32 -1.442695, %v1503_v25 }
 0x341   :  { %v1522_v6 = vpop.f32.mrf.mxu2 }
 0x342   :  { %3681 = vrcp.f32 %v1554_v9  ;;  %v1523_v18 = vadd.f32 %v1522_v6, %v9299_v55  ;;  %v1568_v25 = vand.u32 2147483648, %v1554_v9  ;;  %vm1562_vm14 = vweird.f32 %v1554_v9  ;;  %v9301_v6 = vld [vmem:[#allocation52_spill] sm:$0xff] }
 0x343   :  { %3683 = vpow2.f32 %v3552_v46  ;;  %v1566_v46 = vand.u32 2147483647, %v1554_v9 }
 0x344   :  { %3685 = vpow2.f32 %v3554_v42  ;;  %v1543_v8 = vadd.f32 %v1542_v37, %v1523_v18 }
 0x345   :  { %v3680_v15 = vpop.eup %3679  ;;  %vm1567_vm2 = vcmp.eq.f32.partialorder %v1566_v46, 8.507059e+37 }
 0x346   :  { %v1555_v4 = vadd.f32 1.0, %v3680_v15  ;;  %v9300_v15 = vld [vmem:[#allocation116_spill] sm:$0xff] }
 0x348   :  { %v3682_v33 = vpop.eup %3681  ;;  %3687 = vrcp.f32 %v1555_v4  ;;  %vm1577_vm1 = vweird.f32 %v1555_v4 }
 0x349   :  { %v3684_v62 = vpop.eup %3683  ;;  %v1558_v16 = vmul.f32 %v3682_v33, %v1554_v9  ;;  %vm1563_vm13 = vweird.f32 %v3682_v33 }
 0x34a   :  { %v6470_v32 = vadd.f32 1.0, %v3684_v62  ;;  %v3686_v12 = vpop.eup %3685  ;;  %v141_v62 = vadd.f32 %v9301_v6, %v9300_v15  ;;  %vm6478_vm15 = vmor %vm1562_vm14, %vm1563_vm13 }
 0x34b   :  { %v1559_v31 = vsub.f32 1.0, %v1558_v16  ;;  %v6473_v45 = vadd.f32 1.0, %v3686_v12  ;;  %v1583_v16 = vand.u32 2147483648, %v1555_v4  ;;  %v1581_v12 = vand.u32 2147483647, %v1555_v4 }
 0x34c   :  { %3689 = vrcp.f32 %v6470_v32  ;;  %vm1592_vm6 = vweird.f32 %v6470_v32 }
 0x34d   :  { %v1560_v7 = vmul.f32 %v3682_v33, %v1559_v31  ;;  %3691 = vtanh.f32 %v1543_v8  ;;  %v1584_v55 = vor.u32 1.1754944e-38, %v1583_v16  ;;  %vm1582_vm4 = vcmp.eq.f32.partialorder %v1581_v12, 8.507059e+37 }
 0x34e   :  { %v3688_v30 = vpop.eup %3687  ;;  %3693 = vrcp.f32 %v6473_v45  ;;  %vm1729_vm10 = vweird.f32 %v6473_v45 }
 0x34f   :  { %v1573_v38 = vmul.f32 %v3688_v30, %v1555_v4  ;;  %v1561_v44 = vadd.f32 %v3682_v33, %v1560_v7  ;;  %vm1578_vm0 = vweird.f32 %v3688_v30  ;;  %v1569_v7 = vor.u32 1.1754944e-38, %v1568_v25 }
 0x350   :  { %vm1579_vm3 = vmor %vm1577_vm1, %vm1578_vm0 }
 0x351   :  { %v1574_v54 = vsub.f32 1.0, %v1573_v38  ;;  %v1565_v9 = vsel %vm6478_vm15, %v3682_v33, %v1561_v44  ;;  %v9304_v33 = vld [vmem:[#allocation69_spill] sm:$0xff] }
 0x352   :  { %v3690_v42 = vpop.eup %3689  ;;  %v1570_v57 = vsel %vm1567_vm2, %v1569_v7, %v1565_v9  ;;  %v223_v44 = vadd.f32 %v9304_v33, %v5196_v41  ;;  %v1690_v9 = vpop.f32.mrf.mxu3  ;;  %v9305_v7 = vld [vmem:[#allocation70_spill] sm:$0xff] }
 0x353   :  { %v1575_v31 = vmul.f32 %v3688_v30, %v1574_v54  ;;  %v1588_v37 = vmul.f32 %v3690_v42, %v6470_v32  ;;  %v1630_v8 = vpop.f32.mrf.mxu0  ;;  %v3692_v49 = vpop.eup %3691  ;;  %vm1593_vm5 = vweird.f32 %v3690_v42 }
 0x354   :  { %v1693_v38 = vadd.f32 %v1630_v8, %v141_v62  ;;  %v6485_v54 = vpop.eup %3693  ;;  %v1604_v25 = vmul.f32 %v3692_v49, %v1570_v57  ;;  %vm1594_vm7 = vmor %vm1592_vm6, %vm1593_vm5 }
 0x355   :  { %v1589_v6 = vsub.f32 1.0, %v1588_v37  ;;  %v1576_v15 = vadd.f32 %v3688_v30, %v1575_v31  ;;  %v1725_v18 = vmul.f32 %v6485_v54, %v6473_v45  ;;  %vm1730_vm9 = vweird.f32 %v6485_v54 }
 0x356   :  { %v3553_v36 = vmul.f32 -1.442695, %v1693_v38  ;;  %v264_v38 = vadd.f32 %v9305_v7, %v5253_v59  ;;  %vm6531_vm11 = vmor %vm1729_vm10, %vm1730_vm9 }
 0x357   :  { %v1580_v28 = vsel %vm1579_vm3, %v3688_v30, %v1576_v15  ;;  %v1590_v60 = vmul.f32 %v3690_v42, %v1589_v6  ;;  %v1598_v15 = vand.u32 2147483648, %v6470_v32  ;;  %v1726_v49 = vsub.f32 1.0, %v1725_v18 }
 0x358   :  { %v1585_v61 = vsel %vm1582_vm4, %v1584_v55, %v1580_v28  ;;  %3695 = vpow2.f32 %v3553_v36  ;;  %v3590_v55 = vld [vmem:[%s8290_s6 + $0x2] ss:$0 sm:$0xff]  ;;  %v1735_v18 = vand.u32 2147483648, %v6473_v45 }
 0x359   :  { %v1603_v4 = vmul.f32 %v1585_v61, %v6148_v34  ;;  %v1591_v30 = vadd.f32 %v3690_v42, %v1590_v60  ;;  %v1596_v34 = vand.u32 2147483647, %v6470_v32  ;;  %v1599_v60 = vor.u32 1.1754944e-38, %v1598_v15  ;;  %v6523_v15 = vld [vmem:[#allocation3 + $0x1d8] sm:$0xff] }
 0x35a   :  { %v1670_v46 = vpop.f32.mrf.mxu2  ;;  %v1727_v37 = vmul.f32 %v6485_v54, %v1726_v49 }
 0x35b   :  { %v6490_v62 = vadd.f32 %v1604_v25, %v1603_v4  ;;  %v1695_v16 = vadd.f32 %v1670_v46, %v223_v44  ;;  %v1595_v57 = vsel %vm1594_vm7, %v3690_v42, %v1591_v30  ;;  %vm1597_vm8 = vcmp.eq.f32.partialorder %v1596_v34, 8.507059e+37  ;;  %v6509_v4 = vld [vmem:[#allocation3 + $0x1e8] sm:$0xff]  ;;  %v6512_v25 = vld [vmem:[#allocation3 + $0x1f8] sm:$0xff] }
 0x35c   :  { %v1600_v31 = vsel %vm1597_vm8, %v1599_v60, %v1595_v57  ;;  %v1696_v44 = vadd.f32 %v1690_v9, %v264_v38  ;;  %v1728_v46 = vadd.f32 %v6485_v54, %v1727_v37  ;;  %v6520_v30 = vld [vmem:[#allocation3 + $0x1c8] sm:$0xff]  ;;  %v6549_v9 = vld [vmem:[#allocation3 + $0x198] sm:$0xff] }
 0x35d   :  { %3697 = vtanh.f32 %v6490_v62  ;;  %v3555_v28 = vmul.f32 -1.442695, %v1695_v16  ;;  %v6536_v60 = vld [vmem:[#allocation3 + $0x1a8] sm:$0xff] }
 0x35e   :  { %v3696_v36 = vpop.eup %3695  ;;  %v6546_v37 = vld [vmem:[#allocation3 + $0x188] sm:$0xff] }
 0x35f   :  { %v6498_v61 = vadd.f32 1.0, %v3696_v36  ;;  %3699 = vpow2.f32 %v3555_v28  ;;  %v1733_v36 = vand.u32 2147483647, %v6473_v45 }
 0x361   :  { %3701 = vrcp.f32 %v6498_v61  ;;  %v1720_v57 = vand.u32 2147483648, %v6498_v61  ;;  %vm1734_vm13 = vcmp.eq.f32.partialorder %v1733_v36, 8.507059e+37  ;;  %vm1714_vm14 = vweird.f32 %v6498_v61 }
 0x363   :  { %v3698_v12 = vpop.eup %3697  ;;  %v1721_v38 = vor.u32 1.1754944e-38, %v1720_v57 }
 0x364   :  { %v1607_v32 = vmul.f32 %v3698_v12, %v1600_v31  ;;  %v1718_v12 = vand.u32 2147483647, %v6498_v61  ;;  %v1736_v31 = vor.u32 1.1754944e-38, %v1735_v18 }
 0x365   :  { %v3700_v8 = vpop.eup %3699 }
 0x366   :  { %v6507_v6 = vadd.f32 1.0, %v3700_v8  ;;  %1796 = vmatmul.f32.vlgmr.msrb.gmra.mxu1 %v1607_v32  ;;  %1836 = vmatmul.f32.vlgmr.msrb.gmra.mxu3 %v1607_v32  ;;  %v1611_v42 = vmul.f32 %v3590_v55, %v1607_v32  ;;  %v6539_v55 = vld [vmem:[#allocation3 + $0x1b8] sm:$0xff]  ;;  %vm1719_vm0 = vcmp.eq.f32.partialorder %v1718_v12, 8.507059e+37 }
 0x367   :  { %v3702_v33 = vpop.eup %3701  ;;  %2008 = vmatpush.msrb.mxu1 %v6509_v4  ;;  %2048 = vmatpush.msrb.mxu3 %v6512_v25 }
 0x368   :  { %v1710_v16 = vmul.f32 %v3702_v33, %v6498_v61  ;;  %3703 = vrcp.f32 %v6507_v6  ;;  %v6527_v28 = vadd.f32 %v1611_v42, %v6180_v47  ;;  %v1732_v47 = vsel %vm6531_vm11, %v6485_v54, %v1728_v46  ;;  %v6557_v46 = vld [vmem:[#allocation3 + $0x178] sm:$0xff] }
 0x369   :  { %2009 = vmatpush.msrb.mxu1 %v6520_v30  ;;  %2049 = vmatpush.msrb.mxu3 %v6523_v15  ;;  %3705 = vtanh.f32 %v1696_v44  ;;  %vm1715_vm12 = vweird.f32 %v3702_v33  ;;  %v1737_v54 = vsel %vm1734_vm13, %v1736_v31, %v1732_v47  ;;  %v6554_v44 = vld [vmem:[#allocation3 + $0x168] sm:$0xff]  ;;  %vm1744_vm2 = vweird.f32 %v6507_v6 }
 0x36a   :  { %v1711_v34 = vsub.f32 1.0, %v1710_v16  ;;  %vm1716_vm15 = vmor %vm1714_vm14, %vm1715_vm12  ;;  %v1755_v49 = vmul.f32 %v1737_v54, %v6206_v63  ;;  %v1750_v63 = vand.u32 2147483648, %v6507_v6  ;;  %v1748_v54 = vand.u32 2147483647, %v6507_v6 }
 0x36b   :  { %2010 = vmatpush.msrb.mxu1 %v6536_v60  ;;  %2050 = vmatpush.msrb.mxu3 %v6539_v55 }
 0x36c   :  { %v1712_v45 = vmul.f32 %v3702_v33, %v1711_v34  ;;  %v6560_v34 = vld [vmem:[#allocation3 + $0x148] sm:$0xff]  ;;  %vm1749_vm4 = vcmp.eq.f32.partialorder %v1748_v54, 8.507059e+37  ;;  %v6618_v54 = vld [vmem:[#allocation3 + $0x78] sm:$0xff] }
 0x36d   :  { %2011 = vmatpush.msrb.mxu1 %v6546_v37  ;;  %2051 = vmatpush.msrb.mxu3 %v6549_v9 }
 0x36e   :  { %v3704_v8 = vpop.eup %3703  ;;  %v1713_v7 = vadd.f32 %v3702_v33, %v1712_v45  ;;  %1876 = vmatmul.f32.vlgmr.msra.gmra.mxu1 %v1607_v32  ;;  %1916 = vmatmul.f32.vlgmr.msra.gmra.mxu3 %v1607_v32  ;;  %v6563_v32 = vld [vmem:[#allocation3 + $0x158] sm:$0xff]  ;;  %v6567_v45 = vld [vmem:[#allocation3 + $0x128] sm:$0xff] }
 0x36f   :  { %v1740_v42 = vmul.f32 %v3704_v8, %v6507_v6  ;;  %2012 = vmatpush.msrb.mxu1 %v6554_v44  ;;  %2052 = vmatpush.msrb.mxu3 %v6557_v46  ;;  %v3706_v18 = vpop.eup %3705  ;;  %vm1745_vm1 = vweird.f32 %v3704_v8  ;;  %v6597_v6 = vld [vmem:[#allocation3 + $0xa8] sm:$0xff] }
 0x370   :  { %v1717_v16 = vsel %vm1716_vm15, %v3702_v33, %v1713_v7  ;;  %v6570_v33 = vld [vmem:[#allocation3 + $0x138] sm:$0xff]  ;;  %v6575_v7 = vld [vmem:[#allocation3 + $0x108] sm:$0xff]  ;;  %vm1746_vm3 = vmor %vm1744_vm2, %vm1745_vm1 }
 0x371   :  { %v1722_v36 = vsel %vm1719_vm0, %v1721_v38, %v1717_v16  ;;  %v1741_v61 = vsub.f32 1.0, %v1740_v42  ;;  %2013 = vmatpush.msrb.mxu1 %v6560_v34  ;;  %2053 = vmatpush.msrb.mxu3 %v6563_v32  ;;  %v6578_v38 = vld [vmem:[#allocation3 + $0x118] sm:$0xff]  ;;  %v6585_v42 = vld [vmem:[#allocation3 + $0xe8] sm:$0xff] }
 0x372   :  { %v1756_v57 = vmul.f32 %v3706_v18, %v1722_v36  ;;  %v6588_v16 = vld [vmem:[#allocation3 + $0xf8] sm:$0xff]  ;;  %v6591_v36 = vld [vmem:[#allocation3 + $0xc8] sm:$0xff] }
 0x373   :  { %v1742_v47 = vmul.f32 %v3704_v8, %v1741_v61  ;;  %2014 = vmatpush.msrb.mxu1 %v6567_v45  ;;  %2054 = vmatpush.msrb.mxu3 %v6570_v33  ;;  %9308 = vst [vmem:[#allocation49_spill] sm:$0xff] %v6588_v16  ;;  %v6594_v61 = vld [vmem:[#allocation3 + $0xd8] sm:$0xff] }
 0x374   :  { %v6573_v12 = vadd.f32 %v1756_v57, %v1755_v49  ;;  %9309 = vst [vmem:[#allocation50_spill] sm:$0xff] %v6591_v36  ;;  %v1751_v49 = vor.u32 1.1754944e-38, %v1750_v63  ;;  %v6600_v57 = vld [vmem:[#allocation3 + $0xb8] sm:$0xff]  ;;  %v6615_v63 = vld [vmem:[#allocation3 + $0x68] sm:$0xff] }
 0x375   :  { %v1743_v31 = vadd.f32 %v3704_v8, %v1742_v47  ;;  %2015 = vmatpush.msrb.mxu1 %v6575_v7  ;;  %2055 = vmatpush.msrb.mxu3 %v6578_v38 }
 0x376   :  { %3707 = vtanh.f32 %v6573_v12 }
 0x377   :  { %2016 = vmatpush.msrb.mxu1 %v6585_v42  ;;  %2056 = vmatpush.msrb.mxu3 %v6588_v16  ;;  %v1747_v18 = vsel %vm1746_vm3, %v3704_v8, %v1743_v31  ;;  %v6605_v16 = vld [vmem:[#allocation3 + $0x88] sm:$0xff] }
 0x378   :  { %v1752_v8 = vsel %vm1749_vm4, %v1751_v49, %v1747_v18  ;;  %v6623_v18 = vld [vmem:[#allocation3 + $0x48] sm:$0xff]  ;;  %v6626_v49 = vld [vmem:[#allocation3 + $0x58] sm:$0xff] }
 0x379   :  { %2017 = vmatpush.msrb.mxu1 %v6591_v36  ;;  %2057 = vmatpush.msrb.mxu3 %v6594_v61  ;;  %v6608_v36 = vld [vmem:[#allocation3 + $0x98] sm:$0xff] }
 0x37b   :  { %2018 = vmatpush.msrb.mxu1 %v6597_v6  ;;  %2058 = vmatpush.msrb.mxu3 %v6600_v57 }
 0x37c   :  { %v3708_v47 = vpop.eup %3707 }
 0x37d   :  { %v6603_v31 = vmul.f32 %v3708_v47, %v1752_v8  ;;  %2019 = vmatpush.msrb.mxu1 %v6605_v16  ;;  %2059 = vmatpush.msrb.mxu3 %v6608_v36  ;;  %v6747_v47 = vld [vmem:[#allocation5 + $0x288] sm:$0xff] }
 0x37e   :  { %9336 = vst [vmem:[#allocation84_spill] sm:$0xff] %v6747_v47  ;;  %v6750_v8 = vld [vmem:[#allocation5 + $0x1e8] sm:$0xff] }
 0x37f   :  { %1776 = vmatmul.f32.vlgmr.msrb.gmra.mxu0 %v6603_v31  ;;  %1816 = vmatmul.f32.vlgmr.msrb.gmra.mxu2 %v6603_v31  ;;  %9337 = vst [vmem:[#allocation26_spill] sm:$0xff] %v6750_v8 }
 0x380   :  { %1988 = vmatpush.msrb.mxu0 %v6226_v20  ;;  %2028 = vmatpush.msrb.mxu2 %v6229_v21  ;;  %v6631_v20 = vld [vmem:[#allocation3 + $0x28] sm:$0xff]  ;;  %v6634_v21 = vld [vmem:[#allocation3 + $0x38] sm:$0xff] }
 0x381   :  { %2020 = vmatpush.msrb.mxu1 %v6615_v63  ;;  %2060 = vmatpush.msrb.mxu3 %v6618_v54 }
 0x382   :  { %1989 = vmatpush.msrb.mxu0 %v6234_v58  ;;  %2029 = vmatpush.msrb.mxu2 %v6237_v17  ;;  %v6639_v58 = vld [vmem:[#allocation3 + $0x8] sm:$0xff]  ;;  %v6642_v17 = vld [vmem:[#allocation3 + $0x18] sm:$0xff] }
 0x383   :  { %2021 = vmatpush.msrb.mxu1 %v6623_v18  ;;  %2061 = vmatpush.msrb.mxu3 %v6626_v49 }
 0x384   :  { %1990 = vmatpush.msrb.mxu0 %v6242_v3  ;;  %2030 = vmatpush.msrb.mxu2 %v6245_v10  ;;  %v6652_v3 = vld [vmem:[#allocation5 + $0x3e0] sm:$0xff]  ;;  %v6656_v10 = vld [vmem:[#allocation5 + $0x3e8] sm:$0xff] }
 0x385   :  { %2022 = vmatpush.msrb.mxu1 %v6631_v20  ;;  %2062 = vmatpush.msrb.mxu3 %v6634_v21  ;;  %9310 = vst [vmem:[#allocation24_spill] sm:$0xff] %v6652_v3 }
 0x386   :  { %1991 = vmatpush.msrb.mxu0 %v6250_v48  ;;  %2031 = vmatpush.msrb.mxu2 %v6253_v39  ;;  %9311 = vst [vmem:[#allocation25_spill] sm:$0xff] %v6656_v10  ;;  %v6660_v48 = vld [vmem:[#allocation5 + $0x3c0] sm:$0xff]  ;;  %v6664_v39 = vld [vmem:[#allocation5 + $0x3c8] sm:$0xff] }
 0x387   :  { %2023 = vmatpush.msrb.mxu1 %v6639_v58  ;;  %2063 = vmatpush.msrb.mxu3 %v6642_v17  ;;  %9312 = vst [vmem:[#allocation28_spill] sm:$0xff] %v6660_v48 }
 0x388   :  { %1856 = vmatmul.f32.vlgmr.msra.gmra.mxu0 %v6603_v31  ;;  %1896 = vmatmul.f32.vlgmr.msra.gmra.mxu2 %v6603_v31  ;;  %9313 = vst [vmem:[#allocation31_spill] sm:$0xff] %v6664_v39 }
 0x389   :  { %1992 = vmatpush.msrb.mxu0 %v6260_v19  ;;  %2024 = vmatmul.f32.vlgmr.msrb.gmra.mxu1 %v6603_v31  ;;  %v6668_v19 = vld [vmem:[#allocation5 + $0x3a0] sm:$0xff] }
 0x38a   :  { %2032 = vmatpush.msrb.mxu2 %v6264_v23  ;;  %2064 = vmatmul.f32.vlgmr.msrb.gmra.mxu3 %v6603_v31  ;;  %9314 = vst [vmem:[#allocation36_spill] sm:$0xff] %v6668_v19  ;;  %v6672_v23 = vld [vmem:[#allocation5 + $0x3a8] sm:$0xff] }
 0x38b   :  { %1993 = vmatpush.msrb.mxu0 %v6268_v11  ;;  %2155 = vmatpush.msra.mxu1 %v6652_v3  ;;  %9315 = vst [vmem:[#allocation37_spill] sm:$0xff] %v6672_v23  ;;  %v6676_v11 = vld [vmem:[#allocation5 + $0x380] sm:$0xff] }
 0x38c   :  { %2033 = vmatpush.msrb.mxu2 %v6272_v13  ;;  %2195 = vmatpush.msra.mxu3 %v6656_v10  ;;  %9316 = vst [vmem:[#allocation40_spill] sm:$0xff] %v6676_v11  ;;  %v6680_v13 = vld [vmem:[#allocation5 + $0x388] sm:$0xff] }
 0x38d   :  { %1994 = vmatpush.msrb.mxu0 %v6276_v29  ;;  %2156 = vmatpush.msra.mxu1 %v6660_v48  ;;  %9317 = vst [vmem:[#allocation41_spill] sm:$0xff] %v6680_v13  ;;  %v6684_v29 = vld [vmem:[#allocation5 + $0x360] sm:$0xff] }
 0x38e   :  { %2034 = vmatpush.msrb.mxu2 %v6280_v1  ;;  %2196 = vmatpush.msra.mxu3 %v6664_v39  ;;  %9318 = vst [vmem:[#allocation44_spill] sm:$0xff] %v6684_v29  ;;  %v6688_v1 = vld [vmem:[#allocation5 + $0x368] sm:$0xff] }
 0x38f   :  { %1995 = vmatpush.msrb.mxu0 %v6284_v22  ;;  %2157 = vmatpush.msra.mxu1 %v6668_v19  ;;  %9319 = vst [vmem:[#allocation45_spill] sm:$0xff] %v6688_v1  ;;  %v6692_v22 = vld [vmem:[#allocation5 + $0x340] sm:$0xff] }
 0x390   :  { %2035 = vmatpush.msrb.mxu2 %v6288_v35  ;;  %2197 = vmatpush.msra.mxu3 %v6672_v23  ;;  %9320 = vst [vmem:[#allocation48_spill] sm:$0xff] %v6692_v22  ;;  %v6696_v35 = vld [vmem:[#allocation5 + $0x348] sm:$0xff] }
 0x391   :  { %1996 = vmatpush.msrb.mxu0 %v6292_v27  ;;  %2158 = vmatpush.msra.mxu1 %v6676_v11  ;;  %9321 = vst [vmem:[#allocation51_spill] sm:$0xff] %v6696_v35  ;;  %v6700_v27 = vld [vmem:[#allocation5 + $0x320] sm:$0xff] }
 0x392   :  { %2036 = vmatpush.msrb.mxu2 %v6296_v53  ;;  %2198 = vmatpush.msra.mxu3 %v6680_v13  ;;  %9322 = vst [vmem:[#allocation56_spill] sm:$0xff] %v6700_v27  ;;  %v6704_v53 = vld [vmem:[#allocation5 + $0x328] sm:$0xff] }
 0x393   :  { %1997 = vmatpush.msrb.mxu0 %v6300_v43  ;;  %2159 = vmatpush.msra.mxu1 %v6684_v29  ;;  %9323 = vst [vmem:[#allocation57_spill] sm:$0xff] %v6704_v53  ;;  %v6708_v43 = vld [vmem:[#allocation5 + $0x300] sm:$0xff] }
 0x394   :  { %2037 = vmatpush.msrb.mxu2 %v6304_v51  ;;  %2199 = vmatpush.msra.mxu3 %v6688_v1  ;;  %9324 = vst [vmem:[#allocation60_spill] sm:$0xff] %v6708_v43  ;;  %v6712_v51 = vld [vmem:[#allocation5 + $0x308] sm:$0xff] }
 0x395   :  { %1998 = vmatpush.msrb.mxu0 %v6308_v2  ;;  %2160 = vmatpush.msra.mxu1 %v6692_v22  ;;  %9325 = vst [vmem:[#allocation61_spill] sm:$0xff] %v6712_v51  ;;  %v6716_v2 = vld [vmem:[#allocation5 + $0x2e0] sm:$0xff] }
 0x396   :  { %2038 = vmatpush.msrb.mxu2 %v6312_v26  ;;  %2200 = vmatpush.msra.mxu3 %v6696_v35  ;;  %9326 = vst [vmem:[#allocation64_spill] sm:$0xff] %v6716_v2  ;;  %v6720_v26 = vld [vmem:[#allocation5 + $0x2e8] sm:$0xff] }
 0x397   :  { %1999 = vmatpush.msrb.mxu0 %v6316_v52  ;;  %2161 = vmatpush.msra.mxu1 %v6700_v27  ;;  %9327 = vst [vmem:[#allocation65_spill] sm:$0xff] %v6720_v26  ;;  %v6724_v52 = vld [vmem:[#allocation5 + $0x2c0] sm:$0xff]  ;;  %v9444_v35 = vld [vmem:[#allocation22_spill] sm:$0xff] }
 0x398   :  { %2039 = vmatpush.msrb.mxu2 %v6320_v50  ;;  %2201 = vmatpush.msra.mxu3 %v6704_v53  ;;  %9328 = vst [vmem:[#allocation68_spill] sm:$0xff] %v6724_v52  ;;  %v6728_v50 = vld [vmem:[#allocation5 + $0x2c8] sm:$0xff] }
 0x399   :  { %2000 = vmatpush.msrb.mxu0 %v6324_v56  ;;  %2162 = vmatpush.msra.mxu1 %v6708_v43  ;;  %9329 = vst [vmem:[#allocation71_spill] sm:$0xff] %v6728_v50  ;;  %v9330_v56 = vld [vmem:[#allocation33_spill] sm:$0xff] }
 0x39a   :  { %2040 = vmatpush.msrb.mxu2 %v6328_v24  ;;  %2202 = vmatpush.msra.mxu3 %v6712_v51  ;;  %v6732_v24 = vld [vmem:[#allocation5 + $0x2a0] sm:$0xff] }
 0x39b   :  { %2001 = vmatpush.msrb.mxu0 %v6332_v40  ;;  %2163 = vmatpush.msra.mxu1 %v6716_v2  ;;  %9331 = vst [vmem:[#allocation76_spill] sm:$0xff] %v6732_v24  ;;  %v9332_v40 = vld [vmem:[#allocation32_spill] sm:$0xff]  ;;  %v9442_v51 = vld [vmem:[#allocation117_spill] sm:$0xff] }
 0x39c   :  { %2041 = vmatpush.msrb.mxu2 %v6336_v0  ;;  %2203 = vmatpush.msra.mxu3 %v6720_v26  ;;  %v6738_v0 = vld [vmem:[#allocation5 + $0x2a8] sm:$0xff]  ;;  %v9441_v26 = vld [vmem:[#allocation21_spill] sm:$0xff] }
 0x39d   :  { %2002 = vmatpush.msrb.mxu0 %v6340_v14  ;;  %2164 = vmatpush.msra.mxu1 %v6724_v52  ;;  %9333 = vst [vmem:[#allocation77_spill] sm:$0xff] %v6738_v0  ;;  %v6741_v14 = vld [vmem:[#allocation5 + $0x280] sm:$0xff] }
 0x39e   :  { %2042 = vmatpush.msrb.mxu2 %v6344_v5  ;;  %2204 = vmatpush.msra.mxu3 %v6728_v50  ;;  %9334 = vst [vmem:[#allocation80_spill] sm:$0xff] %v6741_v14  ;;  %v6744_v5 = vld [vmem:[#allocation5 + $0x1e0] sm:$0xff] }
 0x39f   :  { %2003 = vmatpush.msrb.mxu0 %v9330_v56  ;;  %2165 = vmatpush.msra.mxu1 %v6732_v24  ;;  %9335 = vst [vmem:[#allocation81_spill] sm:$0xff] %v6744_v5  ;;  %v6756_v56 = vld [vmem:[#allocation5 + $0x1c0] sm:$0xff] }
 0x3a0   :  { %2043 = vmatpush.msrb.mxu2 %v9332_v40  ;;  %2004 = vmatmul.f32.vlgmr.msrb.gmra.mxu0 %v6603_v31  ;;  %9339 = vst [vmem:[#allocation85_spill] sm:$0xff] %v6756_v56  ;;  %v6759_v40 = vld [vmem:[#allocation5 + $0x268] sm:$0xff]  ;;  %v9443_v43 = vld [vmem:[#allocation73_spill] sm:$0xff] }
 0x3a1   :  { %2044 = vmatmul.f32.vlgmr.msrb.gmra.mxu2 %v6603_v31  ;;  %2205 = vmatpush.msra.mxu3 %v6738_v0  ;;  %v6753_v31 = vld [vmem:[#allocation5 + $0x260] sm:$0xff]  ;;  %9340 = vst [vmem:[#allocation34_spill] sm:$0xff] %v6759_v40  ;;  %v9440_v0 = vld [vmem:[#allocation20_spill] sm:$0xff]  ;;  %v185_v53 = vadd.f32 %v9443_v43, %v9442_v51 }
 0x3a2   :  { %2166 = vmatpush.msra.mxu1 %v6741_v14  ;;  %2135 = vmatpush.msra.mxu0 %v6744_v5  ;;  %9338 = vst [vmem:[#allocation27_spill] sm:$0xff] %v6753_v31  ;;  %v6762_v5 = vld [vmem:[#allocation5 + $0x1c8] sm:$0xff] }
 0x3a3   :  { %2206 = vmatpush.msra.mxu3 %v6747_v47  ;;  %2175 = vmatpush.msra.mxu2 %v6750_v8  ;;  %9341 = vst [vmem:[#allocation35_spill] sm:$0xff] %v6762_v5  ;;  %v6765_v47 = vld [vmem:[#allocation5 + $0x240] sm:$0xff] }
 0x3a4   :  { %2167 = vmatpush.msra.mxu1 %v6753_v31  ;;  %2136 = vmatpush.msra.mxu0 %v6756_v56  ;;  %9342 = vst [vmem:[#allocation91_spill] sm:$0xff] %v6765_v47  ;;  %v6768_v8 = vld [vmem:[#allocation5 + $0x1a0] sm:$0xff]  ;;  %v6771_v31 = vld [vmem:[#allocation5 + $0x248] sm:$0xff] }
 0x3a5   :  { %2207 = vmatpush.msra.mxu3 %v6759_v40  ;;  %2176 = vmatpush.msra.mxu2 %v6762_v5  ;;  %9343 = vst [vmem:[#allocation38_spill] sm:$0xff] %v6768_v8  ;;  %v6774_v56 = vld [vmem:[#allocation5 + $0x1a8] sm:$0xff]  ;;  %v6777_v40 = vld [vmem:[#allocation5 + $0x220] sm:$0xff] }
 0x3a6   :  { %2168 = vmatpush.msra.mxu1 %v6765_v47  ;;  %2137 = vmatpush.msra.mxu0 %v6768_v8  ;;  %9344 = vst [vmem:[#allocation95_spill] sm:$0xff] %v6771_v31  ;;  %v6780_v5 = vld [vmem:[#allocation5 + $0x180] sm:$0xff]  ;;  %v6783_v47 = vld [vmem:[#allocation5 + $0x228] sm:$0xff] }
 0x3a7   :  { %2208 = vmatpush.msra.mxu3 %v6771_v31  ;;  %9345 = vst [vmem:[#allocation39_spill] sm:$0xff] %v6774_v56  ;;  %2177 = vmatpush.msra.mxu2 %v6774_v56  ;;  %v6786_v8 = vld [vmem:[#allocation5 + $0x188] sm:$0xff]  ;;  %v6789_v31 = vld [vmem:[#allocation5 + $0x200] sm:$0xff] }
 0x3a8   :  { %9346 = vst [vmem:[#allocation96_spill] sm:$0xff] %v6777_v40  ;;  %2169 = vmatpush.msra.mxu1 %v6777_v40  ;;  %2138 = vmatpush.msra.mxu0 %v6780_v5  ;;  %v6792_v56 = vld [vmem:[#allocation5 + $0x160] sm:$0xff]  ;;  %v6795_v40 = vld [vmem:[#allocation5 + $0x208] sm:$0xff] }
 0x3a9   :  { %9347 = vst [vmem:[#allocation42_spill] sm:$0xff] %v6780_v5  ;;  %2209 = vmatpush.msra.mxu3 %v6783_v47  ;;  %2178 = vmatpush.msra.mxu2 %v6786_v8  ;;  %v6798_v5 = vld [vmem:[#allocation5 + $0x168] sm:$0xff] }
 0x3aa   :  { %9348 = vst [vmem:[#allocation99_spill] sm:$0xff] %v6783_v47  ;;  %2170 = vmatpush.msra.mxu1 %v6789_v31  ;;  %2139 = vmatpush.msra.mxu0 %v6792_v56  ;;  %v6801_v47 = vld [vmem:[#allocation5 + $0x3f0] sm:$0xff] }
 0x3ab   :  { %9349 = vst [vmem:[#allocation43_spill] sm:$0xff] %v6786_v8  ;;  %2210 = vmatpush.msra.mxu3 %v6795_v40  ;;  %2179 = vmatpush.msra.mxu2 %v6798_v5  ;;  %v6804_v8 = vld [vmem:[#allocation5 + $0x3f8] sm:$0xff] }
 0x3ac   :  { %9350 = vst [vmem:[#allocation100_spill] sm:$0xff] %v6789_v31  ;;  %2235 = vmatpush.msrb.mxu1 %v6801_v47  ;;  %v6807_v31 = vld [vmem:[#allocation5 + $0x140] sm:$0xff] }
 0x3ad   :  { %9351 = vst [vmem:[#allocation46_spill] sm:$0xff] %v6792_v56  ;;  %2275 = vmatpush.msrb.mxu3 %v6804_v8  ;;  %2140 = vmatpush.msra.mxu0 %v6807_v31  ;;  %v6810_v56 = vld [vmem:[#allocation5 + $0x148] sm:$0xff] }
 0x3ae   :  { %9352 = vst [vmem:[#allocation47_spill] sm:$0xff] %v6795_v40  ;;  %2180 = vmatpush.msra.mxu2 %v6810_v56  ;;  %v6813_v40 = vld [vmem:[#allocation5 + $0x3d0] sm:$0xff] }
 0x3af   :  { %9353 = vst [vmem:[#allocation54_spill] sm:$0xff] %v6798_v5  ;;  %2236 = vmatpush.msrb.mxu1 %v6813_v40  ;;  %v6816_v5 = vld [vmem:[#allocation5 + $0x3d8] sm:$0xff] }
 0x3b0   :  { %9354 = vst [vmem:[#allocation55_spill] sm:$0xff] %v6801_v47  ;;  %2276 = vmatpush.msrb.mxu3 %v6816_v5  ;;  %v6819_v47 = vld [vmem:[#allocation5 + $0x120] sm:$0xff] }
 0x3b1   :  { %9355 = vst [vmem:[#allocation58_spill] sm:$0xff] %v6804_v8  ;;  %2141 = vmatpush.msra.mxu0 %v6819_v47  ;;  %v6822_v8 = vld [vmem:[#allocation5 + $0x128] sm:$0xff] }
 0x3b2   :  { %9356 = vst [vmem:[#allocation59_spill] sm:$0xff] %v6807_v31  ;;  %2181 = vmatpush.msra.mxu2 %v6822_v8  ;;  %v6825_v31 = vld [vmem:[#allocation5 + $0x3b0] sm:$0xff] }
 0x3b3   :  { %9357 = vst [vmem:[#allocation62_spill] sm:$0xff] %v6810_v56  ;;  %2237 = vmatpush.msrb.mxu1 %v6825_v31  ;;  %v6828_v56 = vld [vmem:[#allocation5 + $0x3b8] sm:$0xff] }
 0x3b4   :  { %9358 = vst [vmem:[#allocation63_spill] sm:$0xff] %v6813_v40  ;;  %2277 = vmatpush.msrb.mxu3 %v6828_v56  ;;  %v6831_v40 = vld [vmem:[#allocation5 + $0x100] sm:$0xff] }
 0x3b5   :  { %9359 = vst [vmem:[#allocation66_spill] sm:$0xff] %v6816_v5  ;;  %2142 = vmatpush.msra.mxu0 %v6831_v40  ;;  %v6834_v5 = vld [vmem:[#allocation5 + $0x108] sm:$0xff] }
 0x3b6   :  { %9360 = vst [vmem:[#allocation67_spill] sm:$0xff] %v6819_v47  ;;  %2182 = vmatpush.msra.mxu2 %v6834_v5  ;;  %v6837_v47 = vld [vmem:[#allocation5 + $0x390] sm:$0xff] }
 0x3b7   :  { %9361 = vst [vmem:[#allocation74_spill] sm:$0xff] %v6822_v8  ;;  %2238 = vmatpush.msrb.mxu1 %v6837_v47  ;;  %v6840_v8 = vld [vmem:[#allocation5 + $0x398] sm:$0xff] }
 0x3b8   :  { %9362 = vst [vmem:[#allocation75_spill] sm:$0xff] %v6825_v31  ;;  %2278 = vmatpush.msrb.mxu3 %v6840_v8  ;;  %v6843_v31 = vld [vmem:[#allocation5 + $0xe0] sm:$0xff] }
 0x3b9   :  { %9363 = vst [vmem:[#allocation78_spill] sm:$0xff] %v6828_v56  ;;  %2143 = vmatpush.msra.mxu0 %v6843_v31  ;;  %v6846_v56 = vld [vmem:[#allocation5 + $0xe8] sm:$0xff] }
 0x3ba   :  { %9364 = vst [vmem:[#allocation79_spill] sm:$0xff] %v6831_v40  ;;  %2183 = vmatpush.msra.mxu2 %v6846_v56  ;;  %v6849_v40 = vld [vmem:[#allocation5 + $0x370] sm:$0xff] }
 0x3bb   :  { %9365 = vst [vmem:[#allocation82_spill] sm:$0xff] %v6834_v5  ;;  %2239 = vmatpush.msrb.mxu1 %v6849_v40  ;;  %v6852_v5 = vld [vmem:[#allocation5 + $0x378] sm:$0xff] }
 0x3bc   :  { %9366 = vst [vmem:[#allocation83_spill] sm:$0xff] %v6837_v47  ;;  %2279 = vmatpush.msrb.mxu3 %v6852_v5  ;;  %v6855_v47 = vld [vmem:[#allocation5 + $0xc0] sm:$0xff] }
 0x3bd   :  { %9367 = vst [vmem:[#allocation87_spill] sm:$0xff] %v6840_v8  ;;  %2144 = vmatpush.msra.mxu0 %v6855_v47  ;;  %v6858_v8 = vld [vmem:[#allocation5 + $0xc8] sm:$0xff] }
 0x3be   :  { %9368 = vst [vmem:[#allocation88_spill] sm:$0xff] %v6843_v31  ;;  %2184 = vmatpush.msra.mxu2 %v6858_v8  ;;  %v6861_v31 = vld [vmem:[#allocation5 + $0x350] sm:$0xff] }
 0x3bf   :  { %9369 = vst [vmem:[#allocation93_spill] sm:$0xff] %v6846_v56  ;;  %2240 = vmatpush.msrb.mxu1 %v6861_v31  ;;  %v6864_v56 = vld [vmem:[#allocation5 + $0x358] sm:$0xff] }
 0x3c0   :  { %9370 = vst [vmem:[#allocation94_spill] sm:$0xff] %v6849_v40  ;;  %2280 = vmatpush.msrb.mxu3 %v6864_v56  ;;  %v6867_v40 = vld [vmem:[#allocation5 + $0xa0] sm:$0xff] }
 0x3c1   :  { %9371 = vst [vmem:[#allocation97_spill] sm:$0xff] %v6852_v5  ;;  %2145 = vmatpush.msra.mxu0 %v6867_v40  ;;  %v6870_v5 = vld [vmem:[#allocation5 + $0xa8] sm:$0xff] }
 0x3c2   :  { %9372 = vst [vmem:[#allocation98_spill] sm:$0xff] %v6855_v47  ;;  %2185 = vmatpush.msra.mxu2 %v6870_v5  ;;  %v6873_v47 = vld [vmem:[#allocation5 + $0x330] sm:$0xff] }
 0x3c3   :  { %9373 = vst [vmem:[#allocation101_spill] sm:$0xff] %v6858_v8  ;;  %2241 = vmatpush.msrb.mxu1 %v6873_v47  ;;  %v6876_v8 = vld [vmem:[#allocation5 + $0x338] sm:$0xff] }
 0x3c4   :  { %9374 = vst [vmem:[#allocation102_spill] sm:$0xff] %v6861_v31  ;;  %2281 = vmatpush.msrb.mxu3 %v6876_v8  ;;  %v6879_v31 = vld [vmem:[#allocation5 + $0x80] sm:$0xff] }
 0x3c5   :  { %9375 = vst [vmem:[#allocation107_spill] sm:$0xff] %v6864_v56  ;;  %2146 = vmatpush.msra.mxu0 %v6879_v31  ;;  %v6882_v56 = vld [vmem:[#allocation5 + $0x88] sm:$0xff] }
 0x3c6   :  { %9376 = vst [vmem:[#allocation108_spill] sm:$0xff] %v6867_v40  ;;  %2186 = vmatpush.msra.mxu2 %v6882_v56  ;;  %v6885_v40 = vld [vmem:[#allocation5 + $0x310] sm:$0xff] }
 0x3c7   :  { %9377 = vst [vmem:[#allocation112_spill] sm:$0xff] %v6870_v5  ;;  %2242 = vmatpush.msrb.mxu1 %v6885_v40  ;;  %v6888_v5 = vld [vmem:[#allocation5 + $0x318] sm:$0xff] }
 0x3c8   :  { %9378 = vst [vmem:[#allocation113_spill] sm:$0xff] %v6873_v47  ;;  %2282 = vmatpush.msrb.mxu3 %v6888_v5  ;;  %v6891_v47 = vld [vmem:[#allocation5 + $0x60] sm:$0xff] }
 0x3c9   :  { %9379 = vst [vmem:[#allocation114_spill] sm:$0xff] %v6876_v8  ;;  %2147 = vmatpush.msra.mxu0 %v6891_v47  ;;  %v6894_v8 = vld [vmem:[#allocation5 + $0x68] sm:$0xff] }
 0x3ca   :  { %9380 = vst [vmem:[#allocation115_spill] sm:$0xff] %v6879_v31  ;;  %2187 = vmatpush.msra.mxu2 %v6894_v8  ;;  %v6897_v31 = vld [vmem:[#allocation5 + $0x2f0] sm:$0xff] }
 0x3cb   :  { %9381 = vst [vmem:[#allocation118_spill] sm:$0xff] %v6882_v56  ;;  %2243 = vmatpush.msrb.mxu1 %v6897_v31  ;;  %v6900_v56 = vld [vmem:[#allocation5 + $0x2f8] sm:$0xff] }
 0x3cc   :  { %9382 = vst [vmem:[#allocation19_spill] sm:$0xff] %v6885_v40  ;;  %2283 = vmatpush.msrb.mxu3 %v6900_v56  ;;  %v6903_v40 = vld [vmem:[#allocation5 + $0x40] sm:$0xff] }
 0x3cd   :  { %9383 = vst [vmem:[#allocation18_spill] sm:$0xff] %v6888_v5  ;;  %2148 = vmatpush.msra.mxu0 %v6903_v40  ;;  %v6906_v5 = vld [vmem:[#allocation5 + $0x48] sm:$0xff] }
 0x3ce   :  { %9384 = vst [vmem:[#allocation29_spill] sm:$0xff] %v6891_v47  ;;  %2188 = vmatpush.msra.mxu2 %v6906_v5  ;;  %v6909_v47 = vld [vmem:[#allocation5 + $0x2d0] sm:$0xff] }
 0x3cf   :  { %9385 = vst [vmem:[#allocation30_spill] sm:$0xff] %v6894_v8  ;;  %2244 = vmatpush.msrb.mxu1 %v6909_v47  ;;  %v6912_v8 = vld [vmem:[#allocation5 + $0x2d8] sm:$0xff] }
 0x3d0   :  { %9386 = vst [vmem:[#allocation9_spill] sm:$0xff] %v6897_v31  ;;  %2284 = vmatpush.msrb.mxu3 %v6912_v8  ;;  %v6915_v31 = vld [vmem:[#allocation5 + $0x20] sm:$0xff] }
 0x3d1   :  { %9387 = vst [vmem:[#allocation10_spill] sm:$0xff] %v6900_v56  ;;  %2149 = vmatpush.msra.mxu0 %v6915_v31  ;;  %v6918_v56 = vld [vmem:[#allocation5 + $0x28] sm:$0xff] }
 0x3d2   :  { %9388 = vst [vmem:[#allocation11_spill] sm:$0xff] %v6903_v40  ;;  %2189 = vmatpush.msra.mxu2 %v6918_v56  ;;  %v6921_v40 = vld [vmem:[#allocation5 + $0x2b0] sm:$0xff] }
 0x3d3   :  { %9389 = vst [vmem:[#allocation12_spill] sm:$0xff] %v6906_v5  ;;  %2245 = vmatpush.msrb.mxu1 %v6921_v40  ;;  %v6924_v5 = vld [vmem:[#allocation5 + $0x2b8] sm:$0xff] }
 0x3d4   :  { %9390 = vst [vmem:[#allocation13_spill] sm:$0xff] %v6909_v47  ;;  %2285 = vmatpush.msrb.mxu3 %v6924_v5  ;;  %v6927_v47 = vld [vmem:[#allocation5] sm:$0xff] }
 0x3d5   :  { %9391 = vst [vmem:[#allocation14_spill] sm:$0xff] %v6912_v8  ;;  %2150 = vmatpush.msra.mxu0 %v6927_v47  ;;  %v6930_v8 = vld [vmem:[#allocation5 + $0x8] sm:$0xff] }
 0x3d6   :  { %9392 = vst [vmem:[#allocation15_spill] sm:$0xff] %v6915_v31  ;;  %2190 = vmatpush.msra.mxu2 %v6930_v8  ;;  %v6933_v31 = vld [vmem:[#allocation5 + $0x290] sm:$0xff] }
 0x3d7   :  { %9393 = vst [vmem:[#allocation16_spill] sm:$0xff] %v6918_v56  ;;  %2246 = vmatpush.msrb.mxu1 %v6933_v31  ;;  %v6936_v56 = vld [vmem:[#allocation5 + $0x298] sm:$0xff] }
 0x3d8   :  { %9394 = vst [vmem:[#allocation17_spill] sm:$0xff] %v6921_v40  ;;  %2286 = vmatpush.msrb.mxu3 %v6936_v56  ;;  %v6939_v40 = vld [vmem:[#allocation5 + $0x1f0] sm:$0xff] }
 0x3d9   :  { %9395 = vst [vmem:[#allocation122_spill] sm:$0xff] %v6924_v5  ;;  %2215 = vmatpush.msrb.mxu0 %v6939_v40  ;;  %v6942_v5 = vld [vmem:[#allocation5 + $0x1f8] sm:$0xff] }
 0x3da   :  { %9396 = vst [vmem:[#allocation123_spill] sm:$0xff] %v6927_v47  ;;  %2255 = vmatpush.msrb.mxu2 %v6942_v5  ;;  %v6945_v47 = vld [vmem:[#allocation5 + $0x270] sm:$0xff] }
 0x3db   :  { %9397 = vst [vmem:[#allocation124_spill] sm:$0xff] %v6930_v8  ;;  %2247 = vmatpush.msrb.mxu1 %v6945_v47  ;;  %v6948_v8 = vld [vmem:[#allocation5 + $0x278] sm:$0xff] }
 0x3dc   :  { %9398 = vst [vmem:[#allocation125_spill] sm:$0xff] %v6933_v31  ;;  %2287 = vmatpush.msrb.mxu3 %v6948_v8  ;;  %v6951_v31 = vld [vmem:[#allocation5 + $0x1d0] sm:$0xff] }
 0x3dd   :  { %9399 = vst [vmem:[#allocation126_spill] sm:$0xff] %v6936_v56  ;;  %2216 = vmatpush.msrb.mxu0 %v6951_v31  ;;  %v6954_v56 = vld [vmem:[#allocation5 + $0x1d8] sm:$0xff] }
 0x3de   :  { %9400 = vst [vmem:[#allocation127_spill] sm:$0xff] %v6939_v40  ;;  %2256 = vmatpush.msrb.mxu2 %v6954_v56  ;;  %v6957_v40 = vld [vmem:[#allocation5 + $0x250] sm:$0xff] }
 0x3df   :  { %9401 = vst [vmem:[#allocation128_spill] sm:$0xff] %v6942_v5  ;;  %2248 = vmatpush.msrb.mxu1 %v6957_v40  ;;  %v6960_v5 = vld [vmem:[#allocation5 + $0x258] sm:$0xff] }
 0x3e0   :  { %9402 = vst [vmem:[#allocation129_spill] sm:$0xff] %v6945_v47  ;;  %2288 = vmatpush.msrb.mxu3 %v6960_v5  ;;  %v6963_v47 = vld [vmem:[#allocation5 + $0x1b0] sm:$0xff] }
 0x3e1   :  { %9403 = vst [vmem:[#allocation130_spill] sm:$0xff] %v6948_v8  ;;  %2217 = vmatpush.msrb.mxu0 %v6963_v47  ;;  %v6966_v8 = vld [vmem:[#allocation5 + $0x1b8] sm:$0xff] }
 0x3e2   :  { %9404 = vst [vmem:[#allocation131_spill] sm:$0xff] %v6951_v31  ;;  %2257 = vmatpush.msrb.mxu2 %v6966_v8  ;;  %v6969_v31 = vld [vmem:[#allocation5 + $0x230] sm:$0xff] }
 0x3e3   :  { %9405 = vst [vmem:[#allocation132_spill] sm:$0xff] %v6954_v56  ;;  %2249 = vmatpush.msrb.mxu1 %v6969_v31  ;;  %v6972_v56 = vld [vmem:[#allocation5 + $0x238] sm:$0xff] }
 0x3e4   :  { %9406 = vst [vmem:[#allocation133_spill] sm:$0xff] %v6957_v40  ;;  %2289 = vmatpush.msrb.mxu3 %v6972_v56  ;;  %v6975_v40 = vld [vmem:[#allocation5 + $0x190] sm:$0xff] }
 0x3e5   :  { %9407 = vst [vmem:[#allocation134_spill] sm:$0xff] %v6960_v5  ;;  %2218 = vmatpush.msrb.mxu0 %v6975_v40  ;;  %v6978_v5 = vld [vmem:[#allocation5 + $0x198] sm:$0xff] }
 0x3e6   :  { %9408 = vst [vmem:[#allocation135_spill] sm:$0xff] %v6963_v47  ;;  %2258 = vmatpush.msrb.mxu2 %v6978_v5  ;;  %v6981_v47 = vld [vmem:[#allocation5 + $0x210] sm:$0xff] }
 0x3e7   :  { %9409 = vst [vmem:[#allocation136_spill] sm:$0xff] %v6966_v8  ;;  %2250 = vmatpush.msrb.mxu1 %v6981_v47  ;;  %v6984_v8 = vld [vmem:[#allocation5 + $0x218] sm:$0xff] }
 0x3e8   :  { %9410 = vst [vmem:[#allocation137_spill] sm:$0xff] %v6969_v31  ;;  %2290 = vmatpush.msrb.mxu3 %v6984_v8  ;;  %v6987_v31 = vld [vmem:[#allocation5 + $0x170] sm:$0xff] }
 0x3e9   :  { %9411 = vst [vmem:[#allocation138_spill] sm:$0xff] %v6972_v56  ;;  %2219 = vmatpush.msrb.mxu0 %v6987_v31  ;;  %v6990_v56 = vld [vmem:[#allocation5 + $0x178] sm:$0xff] }
 0x3ea   :  { %9412 = vst [vmem:[#allocation139_spill] sm:$0xff] %v6975_v40  ;;  %2259 = vmatpush.msrb.mxu2 %v6990_v56  ;;  %v6993_v40 = vld [vmem:[#allocation5 + $0x150] sm:$0xff] }
 0x3eb   :  { %9413 = vst [vmem:[#allocation140_spill] sm:$0xff] %v6978_v5  ;;  %2220 = vmatpush.msrb.mxu0 %v6993_v40  ;;  %v6996_v5 = vld [vmem:[#allocation5 + $0x158] sm:$0xff] }
 0x3ec   :  { %9414 = vst [vmem:[#allocation141_spill] sm:$0xff] %v6981_v47  ;;  %2260 = vmatpush.msrb.mxu2 %v6996_v5  ;;  %v6999_v47 = vld [vmem:[#allocation5 + $0x130] sm:$0xff] }
 0x3ed   :  { %9415 = vst [vmem:[#allocation142_spill] sm:$0xff] %v6984_v8  ;;  %2221 = vmatpush.msrb.mxu0 %v6999_v47  ;;  %v7002_v8 = vld [vmem:[#allocation5 + $0x138] sm:$0xff] }
 0x3ee   :  { %9416 = vst [vmem:[#allocation143_spill] sm:$0xff] %v6987_v31  ;;  %2261 = vmatpush.msrb.mxu2 %v7002_v8  ;;  %v7005_v31 = vld [vmem:[#allocation5 + $0x110] sm:$0xff] }
 0x3ef   :  { %9417 = vst [vmem:[#allocation144_spill] sm:$0xff] %v6990_v56  ;;  %2222 = vmatpush.msrb.mxu0 %v7005_v31  ;;  %v7008_v56 = vld [vmem:[#allocation5 + $0x118] sm:$0xff] }
 0x3f0   :  { %9418 = vst [vmem:[#allocation145_spill] sm:$0xff] %v6993_v40  ;;  %2262 = vmatpush.msrb.mxu2 %v7008_v56  ;;  %v7011_v40 = vld [vmem:[#allocation5 + $0xf0] sm:$0xff] }
 0x3f1   :  { %9419 = vst [vmem:[#allocation146_spill] sm:$0xff] %v6996_v5  ;;  %2223 = vmatpush.msrb.mxu0 %v7011_v40  ;;  %v7014_v5 = vld [vmem:[#allocation5 + $0xf8] sm:$0xff] }
 0x3f2   :  { %9420 = vst [vmem:[#allocation147_spill] sm:$0xff] %v6999_v47  ;;  %2263 = vmatpush.msrb.mxu2 %v7014_v5  ;;  %v7017_v47 = vld [vmem:[#allocation5 + $0xd0] sm:$0xff] }
 0x3f3   :  { %9421 = vst [vmem:[#allocation148_spill] sm:$0xff] %v7002_v8  ;;  %2224 = vmatpush.msrb.mxu0 %v7017_v47  ;;  %v7020_v8 = vld [vmem:[#allocation5 + $0xd8] sm:$0xff] }
 0x3f4   :  { %9422 = vst [vmem:[#allocation149_spill] sm:$0xff] %v7005_v31  ;;  %2264 = vmatpush.msrb.mxu2 %v7020_v8  ;;  %v7023_v31 = vld [vmem:[#allocation5 + $0xb0] sm:$0xff] }
 0x3f5   :  { %9423 = vst [vmem:[#allocation150_spill] sm:$0xff] %v7008_v56  ;;  %2225 = vmatpush.msrb.mxu0 %v7023_v31  ;;  %v7026_v56 = vld [vmem:[#allocation5 + $0xb8] sm:$0xff] }
 0x3f6   :  { %9424 = vst [vmem:[#allocation151_spill] sm:$0xff] %v7011_v40  ;;  %2265 = vmatpush.msrb.mxu2 %v7026_v56  ;;  %v7029_v40 = vld [vmem:[#allocation5 + $0x90] sm:$0xff] }
 0x3f7   :  { %9425 = vst [vmem:[#allocation152_spill] sm:$0xff] %v7014_v5  ;;  %2226 = vmatpush.msrb.mxu0 %v7029_v40  ;;  %v7032_v5 = vld [vmem:[#allocation5 + $0x98] sm:$0xff] }
 0x3f8   :  { %9426 = vst [vmem:[#allocation153_spill] sm:$0xff] %v7017_v47  ;;  %2266 = vmatpush.msrb.mxu2 %v7032_v5  ;;  %v7035_v47 = vld [vmem:[#allocation5 + $0x70] sm:$0xff] }
 0x3f9   :  { %9427 = vst [vmem:[#allocation154_spill] sm:$0xff] %v7020_v8  ;;  %2227 = vmatpush.msrb.mxu0 %v7035_v47  ;;  %v7038_v8 = vld [vmem:[#allocation5 + $0x78] sm:$0xff] }
 0x3fa   :  { %9428 = vst [vmem:[#allocation155_spill] sm:$0xff] %v7023_v31  ;;  %2267 = vmatpush.msrb.mxu2 %v7038_v8  ;;  %v7041_v31 = vld [vmem:[#allocation5 + $0x50] sm:$0xff] }
 0x3fb   :  { %9429 = vst [vmem:[#allocation156_spill] sm:$0xff] %v7026_v56  ;;  %2228 = vmatpush.msrb.mxu0 %v7041_v31  ;;  %v7044_v56 = vld [vmem:[#allocation5 + $0x58] sm:$0xff] }
 0x3fc   :  { %9430 = vst [vmem:[#allocation157_spill] sm:$0xff] %v7029_v40  ;;  %2268 = vmatpush.msrb.mxu2 %v7044_v56  ;;  %v7047_v40 = vld [vmem:[#allocation5 + $0x30] sm:$0xff]  ;;  %v1777_v14 = vpop.f32.mrf.mxu0 }
 0x3fd   :  { %9431 = vst [vmem:[#allocation158_spill] sm:$0xff] %v7032_v5  ;;  %2229 = vmatpush.msrb.mxu0 %v7047_v40  ;;  %v7050_v5 = vld [vmem:[#allocation5 + $0x38] sm:$0xff] }
 0x3fe   :  { %9432 = vst [vmem:[#allocation159_spill] sm:$0xff] %v7035_v47  ;;  %2269 = vmatpush.msrb.mxu2 %v7050_v5  ;;  %v7053_v47 = vld [vmem:[#allocation5 + $0x10] sm:$0xff] }
 0x3ff   :  { %9433 = vst [vmem:[#allocation160_spill] sm:$0xff] %v7038_v8  ;;  %2230 = vmatpush.msrb.mxu0 %v7053_v47  ;;  %v7056_v8 = vld [vmem:[#allocation5 + $0x18] sm:$0xff] }
 0x400   :  { %9434 = vst [vmem:[#allocation161_spill] sm:$0xff] %v7041_v31  ;;  %2270 = vmatpush.msrb.mxu2 %v7056_v8  ;;  %v1797_v31 = vpop.f32.mrf.mxu1 }
 0x401   :  { %9435 = vst [vmem:[#allocation162_spill] sm:$0xff] %v7044_v56  ;;  %v1778_v56 = vadd.f32 %v1777_v14, %v9440_v0 }
 0x402   :  { %9436 = vst [vmem:[#allocation163_spill] sm:$0xff] %v7047_v40  ;;  %v1817_v40 = vpop.f32.mrf.mxu2 }
 0x403   :  { %9437 = vst [vmem:[#allocation164_spill] sm:$0xff] %v7050_v5  ;;  %v1798_v50 = vadd.f32 %v1797_v31, %v1778_v56  ;;  %v1818_v2 = vadd.f32 %v1817_v40, %v9441_v26  ;;  %v1837_v5 = vpop.f32.mrf.mxu3 }
 0x404   :  { %9438 = vst [vmem:[#allocation165_spill] sm:$0xff] %v7053_v47 }
 0x405   :  { %9439 = vst [vmem:[#allocation166_spill] sm:$0xff] %v7056_v8  ;;  %v3556_v52 = vmul.f32 -1.442695, %v1798_v50  ;;  %v1838_v47 = vadd.f32 %v1837_v5, %v1818_v2  ;;  %v1857_v27 = vpop.f32.mrf.mxu0 }
 0x406   :  { %v1858_v22 = vadd.f32 %v1857_v27, %v9444_v35  ;;  %v9445_v27 = vld [vmem:[#allocation23_spill] sm:$0xff] }
 0x407   :  { %3709 = vpow2.f32 %v3556_v52  ;;  %v3557_v1 = vmul.f32 -1.442695, %v1838_v47 }
 0x408   :  { %v1877_v24 = vpop.f32.mrf.mxu1 }
 0x409   :  { %v1878_v13 = vadd.f32 %v1877_v24, %v1858_v22  ;;  %3711 = vpow2.f32 %v3557_v1 }
 0x40b   :  { %v3558_v50 = vmul.f32 -1.442695, %v1878_v13  ;;  %v1897_v26 = vpop.f32.mrf.mxu2  ;;  %v1917_v1 = vpop.f32.mrf.mxu3 }
 0x40c   :  { %v1898_v35 = vadd.f32 %v1897_v26, %v9445_v27  ;;  %v9447_v27 = vld [vmem:[#allocation72_spill] sm:$0xff] }
 0x40d   :  { %v3710_v14 = vpop.eup %3709 }
 0x40e   :  { %v1929_v31 = vadd.f32 1.0, %v3710_v14  ;;  %v1918_v13 = vadd.f32 %v1917_v1, %v1898_v35 }
 0x40f   :  { %v3712_v52 = vpop.eup %3711 }
 0x410   :  { %v2025_v8 = vpop.f32.mrf.mxu1  ;;  %3713 = vrcp.f32 %v1929_v31  ;;  %v1930_v40 = vadd.f32 1.0, %v3712_v52  ;;  %vm1937_vm6 = vweird.f32 %v1929_v31  ;;  %v1941_v51 = vand.u32 2147483647, %v1929_v31 }
 0x411   :  { %v2069_v29 = vadd.f32 %v2025_v8, %v185_v53  ;;  %3715 = vpow2.f32 %v3558_v50 }
 0x412   :  { %v1958_v0 = vand.u32 2147483648, %v1930_v40  ;;  %vm1952_vm9 = vweird.f32 %v1930_v40  ;;  %vm1942_vm10 = vcmp.eq.f32.partialorder %v1941_v51, 8.507059e+37 }
 0x413   :  { %v3560_v56 = vmul.f32 -1.442695, %v2069_v29 }
 0x414   :  { %v1959_v11 = vor.u32 1.1754944e-38, %v1958_v0 }
 0x415   :  { %3717 = vpow2.f32 %v3560_v56  ;;  %v1943_v56 = vand.u32 2147483648, %v1929_v31 }
 0x416   :  { %v3714_v43 = vpop.eup %3713  ;;  %3719 = vrcp.f32 %v1930_v40 }
 0x417   :  { %v3716_v2 = vpop.eup %3715  ;;  %v1933_v5 = vmul.f32 %v3714_v43, %v1929_v31  ;;  %vm1938_vm5 = vweird.f32 %v3714_v43 }
 0x418   :  { %v7065_v47 = vadd.f32 1.0, %v3716_v2  ;;  %v9446_v2 = vld [vmem:[#allocation116_spill] sm:$0xff]  ;;  %vm7073_vm7 = vmor %vm1937_vm6, %vm1938_vm5 }
 0x419   :  { %v1934_v53 = vsub.f32 1.0, %v1933_v5  ;;  %v144_v5 = vadd.f32 %v9447_v27, %v9446_v2 }
 0x41a   :  { %3721 = vrcp.f32 %v7065_v47  ;;  %vm1967_vm14 = vweird.f32 %v7065_v47 }
 0x41b   :  { %v3718_v22 = vpop.eup %3717  ;;  %v1935_v29 = vmul.f32 %v3714_v43, %v1934_v53  ;;  %3723 = vtanh.f32 %v1918_v13 }
 0x41c   :  { %v3720_v24 = vpop.eup %3719  ;;  %v7068_v8 = vadd.f32 1.0, %v3718_v22  ;;  %v1956_v22 = vand.u32 2147483647, %v1930_v40 }
 0x41d   :  { %v1948_v14 = vmul.f32 %v3720_v24, %v1930_v40  ;;  %v1936_v50 = vadd.f32 %v3714_v43, %v1935_v29  ;;  %vm1953_vm8 = vweird.f32 %v3720_v24  ;;  %v2005_v13 = vpop.f32.mrf.mxu0  ;;  %v1944_v29 = vor.u32 1.1754944e-38, %v1943_v56 }
 0x41e   :  { %3725 = vrcp.f32 %v7068_v8  ;;  %vm1954_vm11 = vmor %vm1952_vm9, %vm1953_vm8  ;;  %vm1957_vm12 = vcmp.eq.f32.partialorder %v1956_v22, 8.507059e+37  ;;  %vm2104_vm2 = vweird.f32 %v7068_v8 }
 0x41f   :  { %v1949_v52 = vsub.f32 1.0, %v1948_v14  ;;  %v1940_v31 = vsel %vm7073_vm7, %v3714_v43, %v1936_v50  ;;  %v2068_v14 = vadd.f32 %v2005_v13, %v144_v5  ;;  %v9450_v43 = vld [vmem:[#allocation86_spill] sm:$0xff] }
 0x420   :  { %v3722_v26 = vpop.eup %3721  ;;  %v1945_v23 = vsel %vm1942_vm10, %v1944_v29, %v1940_v31  ;;  %v226_v50 = vadd.f32 %v9450_v43, %v5196_v41  ;;  %v2065_v31 = vpop.f32.mrf.mxu3 }
 0x421   :  { %v1950_v53 = vmul.f32 %v3720_v24, %v1949_v52  ;;  %v1963_v1 = vmul.f32 %v3722_v26, %v7065_v47  ;;  %v3559_v19 = vmul.f32 -1.442695, %v2068_v14  ;;  %v3724_v39 = vpop.eup %3723  ;;  %vm1968_vm13 = vweird.f32 %v3722_v26 }
 0x422   :  { %v1979_v56 = vmul.f32 %v3724_v39, %v1945_v23  ;;  %vm1969_vm15 = vmor %vm1967_vm14, %vm1968_vm13 }
 0x423   :  { %v1964_v27 = vsub.f32 1.0, %v1963_v1  ;;  %v1951_v2 = vadd.f32 %v3720_v24, %v1950_v53  ;;  %3727 = vpow2.f32 %v3559_v19 }
 0x424   :  { %v7080_v52 = vpop.eup %3725  ;;  %v2045_v51 = vpop.f32.mrf.mxu2 }
 0x425   :  { %v1955_v48 = vsel %vm1954_vm11, %v3720_v24, %v1951_v2  ;;  %v1965_v10 = vmul.f32 %v3722_v26, %v1964_v27  ;;  %v2070_v0 = vadd.f32 %v2045_v51, %v226_v50  ;;  %v2100_v35 = vmul.f32 %v7080_v52, %v7068_v8 }
 0x426   :  { %v1960_v3 = vsel %vm1957_vm12, %v1959_v11, %v1955_v48  ;;  %v1973_v2 = vand.u32 2147483648, %v7065_v47  ;;  %vm2105_vm1 = vweird.f32 %v7080_v52  ;;  %v2110_v51 = vand.u32 2147483648, %v7068_v8 }
 0x427   :  { %v1978_v40 = vmul.f32 %v1960_v3, %v6490_v62  ;;  %v1966_v24 = vadd.f32 %v3722_v26, %v1965_v10  ;;  %v3561_v48 = vmul.f32 -1.442695, %v2070_v0  ;;  %v1971_v62 = vand.u32 2147483647, %v7065_v47  ;;  %v3591_v10 = vld [vmem:[%s8290_s6 + $0x3] ss:$0 sm:$0xff]  ;;  %vm7114_vm3 = vmor %vm2104_vm2, %vm2105_vm1 }
 0x428   :  { %v2101_v39 = vsub.f32 1.0, %v2100_v35  ;;  %v1974_v11 = vor.u32 1.1754944e-38, %v1973_v2  ;;  %v9451_v47 = vld [vmem:[#allocation92_spill] sm:$0xff]  ;;  %v2111_v2 = vor.u32 1.1754944e-38, %v2110_v51  ;;  %v7231_v51 = vld [vmem:[#allocation3 + $0xd0] sm:$0xff] }
 0x429   :  { %v7085_v5 = vadd.f32 %v1979_v56, %v1978_v40  ;;  %v3728_v19 = vpop.eup %3727  ;;  %v1970_v23 = vsel %vm1969_vm15, %v3722_v26, %v1966_v24  ;;  %vm1972_vm0 = vcmp.eq.f32.partialorder %v1971_v62, 8.507059e+37  ;;  %v267_v14 = vadd.f32 %v9451_v47, %v5253_v59  ;;  %v7215_v47 = vld [vmem:[#allocation3 + $0x110] sm:$0xff]  ;;  %v9466_v35 = vld [vmem:[#allocation48_spill] sm:$0xff] }
 0x42a   :  { %v2081_v3 = vadd.f32 1.0, %v3728_v19  ;;  %v1975_v53 = vsel %vm1972_vm0, %v1974_v11, %v1970_v23  ;;  %v2102_v1 = vmul.f32 %v7080_v52, %v2101_v39 }
 0x42b   :  { %3729 = vtanh.f32 %v7085_v5  ;;  %v2071_v50 = vadd.f32 %v2065_v31, %v267_v14  ;;  %v9459_v31 = vld [vmem:[#allocation31_spill] sm:$0xff]  ;;  %v9461_v14 = vld [vmem:[#allocation37_spill] sm:$0xff] }
 0x42c   :  { %3731 = vpow2.f32 %v3561_v48  ;;  %v2103_v40 = vadd.f32 %v7080_v52, %v2102_v1  ;;  %v2095_v24 = vand.u32 2147483648, %v2081_v3  ;;  %vm2089_vm6 = vweird.f32 %v2081_v3  ;;  %v7207_v1 = vld [vmem:[#allocation3 + $0x130] sm:$0xff] }
 0x42d   :  { %3733 = vrcp.f32 %v2081_v3 }
 0x431   :  { %v3730_v22 = vpop.eup %3729 }
 0x432   :  { %v1982_v13 = vmul.f32 %v3730_v22, %v1975_v53  ;;  %v3732_v29 = vpop.eup %3731  ;;  %v7203_v22 = vld [vmem:[#allocation3 + $0x120] sm:$0xff]  ;;  %v9458_v53 = vld [vmem:[#allocation28_spill] sm:$0xff] }
 0x433   :  { %v7099_v27 = vadd.f32 1.0, %v3732_v29  ;;  %v3734_v43 = vpop.eup %3733  ;;  %v9460_v29 = vld [vmem:[#allocation36_spill] sm:$0xff] }
 0x434   :  { %2171 = vmatmul.f32.vlgmr.msra.gmra.mxu1 %v1982_v13  ;;  %2211 = vmatmul.f32.vlgmr.msra.gmra.mxu3 %v1982_v13  ;;  %v1986_v26 = vmul.f32 %v3591_v10, %v1982_v13  ;;  %v2085_v56 = vmul.f32 %v3734_v43, %v2081_v3  ;;  %vm2090_vm4 = vweird.f32 %v3734_v43 }
 0x435   :  { %2383 = vmatpush.msra.mxu1 %v6509_v4  ;;  %2423 = vmatpush.msra.mxu3 %v6512_v25  ;;  %3735 = vrcp.f32 %v7099_v27  ;;  %v2108_v4 = vand.u32 2147483647, %v7068_v8  ;;  %vm2091_vm7 = vmor %vm2089_vm6, %vm2090_vm4  ;;  %vm2119_vm10 = vweird.f32 %v7099_v27 }
 0x436   :  { %v7110_v0 = vadd.f32 %v1986_v26, %v6527_v28  ;;  %v2086_v25 = vsub.f32 1.0, %v2085_v56  ;;  %3737 = vtanh.f32 %v2071_v50  ;;  %v2093_v28 = vand.u32 2147483647, %v2081_v3  ;;  %v9462_v26 = vld [vmem:[#allocation40_spill] sm:$0xff]  ;;  %v9463_v50 = vld [vmem:[#allocation41_spill] sm:$0xff] }
 0x437   :  { %2384 = vmatpush.msra.mxu1 %v6520_v30  ;;  %2424 = vmatpush.msra.mxu3 %v6523_v15  ;;  %v2107_v30 = vsel %vm7114_vm3, %v7080_v52, %v2103_v40  ;;  %vm2109_vm5 = vcmp.eq.f32.partialorder %v2108_v4, 8.507059e+37  ;;  %v7227_v40 = vld [vmem:[#allocation3 + $0xc0] sm:$0xff]  ;;  %v9464_v56 = vld [vmem:[#allocation44_spill] sm:$0xff] }
 0x438   :  { %v2087_v15 = vmul.f32 %v3734_v43, %v2086_v25  ;;  %vm2094_vm8 = vcmp.eq.f32.partialorder %v2093_v28, 8.507059e+37  ;;  %v9465_v4 = vld [vmem:[#allocation45_spill] sm:$0xff]  ;;  %v9468_v28 = vld [vmem:[#allocation56_spill] sm:$0xff] }
 0x439   :  { %2385 = vmatpush.msra.mxu1 %v6536_v60  ;;  %2425 = vmatpush.msra.mxu3 %v6539_v55  ;;  %v2112_v60 = vsel %vm2109_vm5, %v2111_v2, %v2107_v30  ;;  %v2096_v55 = vor.u32 1.1754944e-38, %v2095_v24  ;;  %v7235_v25 = vld [vmem:[#allocation3 + $0xa0] sm:$0xff]  ;;  %v7239_v24 = vld [vmem:[#allocation3 + $0xb0] sm:$0xff] }
 0x43a   :  { %v2088_v48 = vadd.f32 %v3734_v43, %v2087_v15  ;;  %v2130_v3 = vmul.f32 %v2112_v60, %v6573_v12  ;;  %v9455_v12 = vld [vmem:[#allocation50_spill] sm:$0xff]  ;;  %v9467_v30 = vld [vmem:[#allocation51_spill] sm:$0xff]  ;;  %v7243_v15 = vld [vmem:[#allocation3 + $0x80] sm:$0xff] }
 0x43b   :  { %2386 = vmatpush.msra.mxu1 %v6546_v37  ;;  %2426 = vmatpush.msra.mxu3 %v6549_v9  ;;  %v3736_v8 = vpop.eup %3735  ;;  %v7247_v2 = vld [vmem:[#allocation3 + $0x90] sm:$0xff]  ;;  %v9470_v60 = vld [vmem:[#allocation60_spill] sm:$0xff] }
 0x43c   :  { %2251 = vmatmul.f32.vlgmr.msrb.gmra.mxu1 %v1982_v13  ;;  %2291 = vmatmul.f32.vlgmr.msrb.gmra.mxu3 %v1982_v13  ;;  %v2115_v19 = vmul.f32 %v3736_v8, %v7099_v27  ;;  %v2092_v52 = vsel %vm2091_vm7, %v3734_v43, %v2088_v48  ;;  %v3738_v37 = vpop.eup %3737  ;;  %vm2120_vm9 = vweird.f32 %v3736_v8  ;;  %v7211_v13 = vld [vmem:[#allocation3 + $0x100] sm:$0xff]  ;;  %v7223_v43 = vld [vmem:[#allocation3 + $0xf0] sm:$0xff] }
 0x43d   :  { %2387 = vmatpush.msra.mxu1 %v6554_v44  ;;  %2427 = vmatpush.msra.mxu3 %v6557_v46  ;;  %v2097_v62 = vsel %vm2094_vm8, %v2096_v55, %v2092_v52  ;;  %vm2121_vm11 = vmor %vm2119_vm10, %vm2120_vm9  ;;  %v7251_v48 = vld [vmem:[#allocation3 + $0x60] sm:$0xff]  ;;  %v7255_v55 = vld [vmem:[#allocation3 + $0x70] sm:$0xff] }
 0x43e   :  { %v2116_v9 = vsub.f32 1.0, %v2115_v19  ;;  %v2131_v39 = vmul.f32 %v3738_v37, %v2097_v62  ;;  %v9471_v19 = vld [vmem:[#allocation61_spill] sm:$0xff]  ;;  %v9472_v37 = vld [vmem:[#allocation64_spill] sm:$0xff]  ;;  %v7263_v62 = vld [vmem:[#allocation3 + $0x50] sm:$0xff] }
 0x43f   :  { %2388 = vmatpush.msra.mxu1 %v6560_v34  ;;  %2428 = vmatpush.msra.mxu3 %v6563_v32  ;;  %v2125_v34 = vand.u32 2147483648, %v7099_v27  ;;  %v2123_v32 = vand.u32 2147483647, %v7099_v27  ;;  %v7219_v27 = vld [vmem:[#allocation3 + $0xe0] sm:$0xff] }
 0x440   :  { %v2117_v23 = vmul.f32 %v3736_v8, %v2116_v9  ;;  %v7133_v44 = vadd.f32 %v2131_v39, %v2130_v3  ;;  %v7259_v52 = vld [vmem:[#allocation3 + $0x40] sm:$0xff]  ;;  %v9474_v39 = vld [vmem:[#allocation68_spill] sm:$0xff] }
 0x441   :  { %2389 = vmatpush.msra.mxu1 %v6567_v45  ;;  %2429 = vmatpush.msra.mxu3 %v6570_v33  ;;  %v9454_v45 = vld [vmem:[#allocation49_spill] sm:$0xff]  ;;  %vm2124_vm12 = vcmp.eq.f32.partialorder %v2123_v32, 8.507059e+37  ;;  %v9477_v32 = vld [vmem:[#allocation76_spill] sm:$0xff] }
 0x442   :  { %v2118_v46 = vadd.f32 %v3736_v8, %v2117_v23  ;;  %3739 = vtanh.f32 %v7133_v44  ;;  %v9473_v9 = vld [vmem:[#allocation65_spill] sm:$0xff]  ;;  %v7271_v23 = vld [vmem:[#allocation3 + $0x30] sm:$0xff] }
 0x443   :  { %2390 = vmatpush.msra.mxu1 %v6575_v7  ;;  %2430 = vmatpush.msra.mxu3 %v6578_v38  ;;  %v2126_v7 = vor.u32 1.1754944e-38, %v2125_v34  ;;  %v7267_v3 = vld [vmem:[#allocation3 + $0x20] sm:$0xff] }
 0x444   :  { %v2122_v33 = vsel %vm2121_vm11, %v3736_v8, %v2118_v46  ;;  %v9469_v8 = vld [vmem:[#allocation57_spill] sm:$0xff]  ;;  %v9475_v46 = vld [vmem:[#allocation71_spill] sm:$0xff] }
 0x445   :  { %2391 = vmatpush.msra.mxu1 %v6585_v42  ;;  %2431 = vmatpush.msra.mxu3 %v9454_v45  ;;  %v2127_v11 = vsel %vm2124_vm12, %v2126_v7, %v2122_v33  ;;  %v7153_v42 = vld [vmem:[#allocation3 + $0x1e0] sm:$0xff]  ;;  %v7279_v45 = vld [vmem:[#allocation3 + $0x10] sm:$0xff] }
 0x446   :  { %v7275_v34 = vld [vmem:[#allocation3] sm:$0xff]  ;;  %9478 = vst [vmem:[#allocation168_spill] sm:$0xff] %v7279_v45 }
 0x447   :  { %2392 = vmatpush.msra.mxu1 %v9455_v12  ;;  %2432 = vmatpush.msra.mxu3 %v6594_v61  ;;  %v7156_v61 = vld [vmem:[#allocation3 + $0x1f0] sm:$0xff]  ;;  %9476 = vst [vmem:[#allocation167_spill] sm:$0xff] %v7275_v34  ;;  %v9479_v33 = vld [vmem:[#allocation77_spill] sm:$0xff]  ;;  %v9480_v12 = vld [vmem:[#allocation80_spill] sm:$0xff] }
 0x448   :  { %v3740_v38 = vpop.eup %3739  ;;  %v9481_v7 = vld [vmem:[#allocation81_spill] sm:$0xff] }
 0x449   :  { %2393 = vmatpush.msra.mxu1 %v6597_v6  ;;  %2433 = vmatpush.msra.mxu3 %v6600_v57  ;;  %v7147_v10 = vmul.f32 %v3740_v38, %v2127_v11  ;;  %v7161_v6 = vld [vmem:[#allocation3 + $0x1c0] sm:$0xff]  ;;  %v7172_v57 = vld [vmem:[#allocation3 + $0x1b0] sm:$0xff]  ;;  %v9482_v38 = vld [vmem:[#allocation84_spill] sm:$0xff] }
 0x44a   :  { %v9483_v11 = vld [vmem:[#allocation26_spill] sm:$0xff] }
 0x44b   :  { %2394 = vmatpush.msra.mxu1 %v6605_v16  ;;  %2434 = vmatpush.msra.mxu3 %v6608_v36  ;;  %v7164_v16 = vld [vmem:[#allocation3 + $0x1d0] sm:$0xff]  ;;  %v7169_v36 = vld [vmem:[#allocation3 + $0x1a0] sm:$0xff] }
 0x44c   :  { %2151 = vmatmul.f32.vlgmr.msra.gmra.mxu0 %v7147_v10  ;;  %2191 = vmatmul.f32.vlgmr.msra.gmra.mxu2 %v7147_v10 }
 0x44d   :  { %2363 = vmatpush.msra.mxu0 %v7153_v42  ;;  %2403 = vmatpush.msra.mxu2 %v7156_v61 }
 0x44e   :  { %2395 = vmatpush.msra.mxu1 %v6615_v63  ;;  %2435 = vmatpush.msra.mxu3 %v6618_v54  ;;  %v7177_v63 = vld [vmem:[#allocation3 + $0x180] sm:$0xff]  ;;  %v7180_v54 = vld [vmem:[#allocation3 + $0x190] sm:$0xff] }
 0x44f   :  { %2364 = vmatpush.msra.mxu0 %v7161_v6  ;;  %2404 = vmatpush.msra.mxu2 %v7164_v16 }
 0x450   :  { %2396 = vmatpush.msra.mxu1 %v6623_v18  ;;  %2436 = vmatpush.msra.mxu3 %v6626_v49  ;;  %v7187_v18 = vld [vmem:[#allocation3 + $0x160] sm:$0xff]  ;;  %v7191_v49 = vld [vmem:[#allocation3 + $0x170] sm:$0xff] }
 0x451   :  { %2365 = vmatpush.msra.mxu0 %v7169_v36  ;;  %2405 = vmatpush.msra.mxu2 %v7172_v57 }
 0x452   :  { %2397 = vmatpush.msra.mxu1 %v6631_v20  ;;  %2437 = vmatpush.msra.mxu3 %v6634_v21  ;;  %v7195_v20 = vld [vmem:[#allocation3 + $0x140] sm:$0xff]  ;;  %v9456_v21 = vld [vmem:[#allocation24_spill] sm:$0xff] }
 0x453   :  { %2366 = vmatpush.msra.mxu0 %v7177_v63  ;;  %2406 = vmatpush.msra.mxu2 %v7180_v54 }
 0x454   :  { %2398 = vmatpush.msra.mxu1 %v6639_v58  ;;  %2438 = vmatpush.msra.mxu3 %v6642_v17  ;;  %v7199_v58 = vld [vmem:[#allocation3 + $0x150] sm:$0xff]  ;;  %v9457_v17 = vld [vmem:[#allocation25_spill] sm:$0xff] }
 0x455   :  { %2231 = vmatmul.f32.vlgmr.msrb.gmra.mxu0 %v7147_v10  ;;  %2271 = vmatmul.f32.vlgmr.msrb.gmra.mxu2 %v7147_v10 }
 0x456   :  { %2367 = vmatpush.msra.mxu0 %v7187_v18  ;;  %2399 = vmatmul.f32.vlgmr.msra.gmra.mxu1 %v7147_v10 }
 0x457   :  { %2407 = vmatpush.msra.mxu2 %v7191_v49  ;;  %2439 = vmatmul.f32.vlgmr.msra.gmra.mxu3 %v7147_v10 }
 0x458   :  { %2368 = vmatpush.msra.mxu0 %v7195_v20  ;;  %2530 = vmatpush.msrb.mxu1 %v9456_v21  ;;  %v9484_v21 = vld [vmem:[#allocation27_spill] sm:$0xff] }
 0x459   :  { %2408 = vmatpush.msra.mxu2 %v7199_v58  ;;  %2570 = vmatpush.msrb.mxu3 %v9457_v17  ;;  %v9485_v17 = vld [vmem:[#allocation85_spill] sm:$0xff] }
 0x45a   :  { %2369 = vmatpush.msra.mxu0 %v7203_v22  ;;  %2531 = vmatpush.msrb.mxu1 %v9458_v53  ;;  %v9486_v53 = vld [vmem:[#allocation34_spill] sm:$0xff] }
 0x45b   :  { %2409 = vmatpush.msra.mxu2 %v7207_v1  ;;  %2571 = vmatpush.msrb.mxu3 %v9459_v31  ;;  %v9487_v31 = vld [vmem:[#allocation35_spill] sm:$0xff] }
 0x45c   :  { %2370 = vmatpush.msra.mxu0 %v7211_v13  ;;  %2532 = vmatpush.msrb.mxu1 %v9460_v29  ;;  %v9488_v29 = vld [vmem:[#allocation91_spill] sm:$0xff] }
 0x45d   :  { %2410 = vmatpush.msra.mxu2 %v7215_v47  ;;  %2572 = vmatpush.msrb.mxu3 %v9461_v14  ;;  %v9490_v14 = vld [vmem:[#allocation95_spill] sm:$0xff] }
 0x45e   :  { %2371 = vmatpush.msra.mxu0 %v7219_v27  ;;  %2533 = vmatpush.msrb.mxu1 %v9462_v26  ;;  %v9491_v26 = vld [vmem:[#allocation39_spill] sm:$0xff] }
 0x45f   :  { %2411 = vmatpush.msra.mxu2 %v7223_v43  ;;  %2573 = vmatpush.msrb.mxu3 %v9463_v50  ;;  %v9492_v50 = vld [vmem:[#allocation96_spill] sm:$0xff] }
 0x460   :  { %2372 = vmatpush.msra.mxu0 %v7227_v40  ;;  %2534 = vmatpush.msrb.mxu1 %v9464_v56  ;;  %v9493_v56 = vld [vmem:[#allocation42_spill] sm:$0xff] }
 0x461   :  { %2412 = vmatpush.msra.mxu2 %v7231_v51  ;;  %2574 = vmatpush.msrb.mxu3 %v9465_v4  ;;  %v9494_v4 = vld [vmem:[#allocation99_spill] sm:$0xff] }
 0x462   :  { %2373 = vmatpush.msra.mxu0 %v7235_v25  ;;  %2535 = vmatpush.msrb.mxu1 %v9466_v35  ;;  %v9495_v35 = vld [vmem:[#allocation43_spill] sm:$0xff] }
 0x463   :  { %2413 = vmatpush.msra.mxu2 %v7239_v24  ;;  %2575 = vmatpush.msrb.mxu3 %v9467_v30  ;;  %v9496_v30 = vld [vmem:[#allocation100_spill] sm:$0xff] }
 0x464   :  { %2374 = vmatpush.msra.mxu0 %v7243_v15  ;;  %2536 = vmatpush.msrb.mxu1 %v9468_v28  ;;  %v9497_v28 = vld [vmem:[#allocation46_spill] sm:$0xff] }
 0x465   :  { %2414 = vmatpush.msra.mxu2 %v7247_v2  ;;  %2576 = vmatpush.msrb.mxu3 %v9469_v8  ;;  %v9498_v8 = vld [vmem:[#allocation47_spill] sm:$0xff] }
 0x466   :  { %2375 = vmatpush.msra.mxu0 %v7251_v48  ;;  %2537 = vmatpush.msrb.mxu1 %v9470_v60  ;;  %v9499_v60 = vld [vmem:[#allocation54_spill] sm:$0xff] }
 0x467   :  { %2415 = vmatpush.msra.mxu2 %v7255_v55  ;;  %2577 = vmatpush.msrb.mxu3 %v9471_v19  ;;  %v9500_v19 = vld [vmem:[#allocation55_spill] sm:$0xff] }
 0x468   :  { %2376 = vmatpush.msra.mxu0 %v7259_v52  ;;  %2538 = vmatpush.msrb.mxu1 %v9472_v37  ;;  %v9501_v37 = vld [vmem:[#allocation58_spill] sm:$0xff] }
 0x469   :  { %2416 = vmatpush.msra.mxu2 %v7263_v62  ;;  %2578 = vmatpush.msrb.mxu3 %v9473_v9  ;;  %v9502_v9 = vld [vmem:[#allocation59_spill] sm:$0xff] }
 0x46a   :  { %2377 = vmatpush.msra.mxu0 %v7267_v3  ;;  %2539 = vmatpush.msrb.mxu1 %v9474_v39  ;;  %v9503_v39 = vld [vmem:[#allocation62_spill] sm:$0xff] }
 0x46b   :  { %2417 = vmatpush.msra.mxu2 %v7271_v23  ;;  %2579 = vmatpush.msrb.mxu3 %v9475_v46  ;;  %v9504_v46 = vld [vmem:[#allocation63_spill] sm:$0xff] }
 0x46c   :  { %2378 = vmatpush.msra.mxu0 %v7275_v34  ;;  %2540 = vmatpush.msrb.mxu1 %v9477_v32  ;;  %v9505_v32 = vld [vmem:[#allocation66_spill] sm:$0xff] }
 0x46d   :  { %2418 = vmatpush.msra.mxu2 %v7279_v45  ;;  %2379 = vmatmul.f32.vlgmr.msra.gmra.mxu0 %v7147_v10 }
 0x46e   :  { %2419 = vmatmul.f32.vlgmr.msra.gmra.mxu2 %v7147_v10  ;;  %2580 = vmatpush.msrb.mxu3 %v9479_v33  ;;  %v9489_v10 = vld [vmem:[#allocation38_spill] sm:$0xff]  ;;  %v9506_v33 = vld [vmem:[#allocation67_spill] sm:$0xff] }
 0x46f   :  { %2541 = vmatpush.msrb.mxu1 %v9480_v12  ;;  %2510 = vmatpush.msrb.mxu0 %v9481_v7  ;;  %v9507_v12 = vld [vmem:[#allocation74_spill] sm:$0xff]  ;;  %v9508_v7 = vld [vmem:[#allocation75_spill] sm:$0xff] }
 0x470   :  { %2581 = vmatpush.msrb.mxu3 %v9482_v38  ;;  %2550 = vmatpush.msrb.mxu2 %v9483_v11  ;;  %v9509_v38 = vld [vmem:[#allocation78_spill] sm:$0xff]  ;;  %v9510_v11 = vld [vmem:[#allocation79_spill] sm:$0xff] }
 0x471   :  { %2542 = vmatpush.msrb.mxu1 %v9484_v21  ;;  %2511 = vmatpush.msrb.mxu0 %v9485_v17  ;;  %v9511_v21 = vld [vmem:[#allocation82_spill] sm:$0xff]  ;;  %v9512_v17 = vld [vmem:[#allocation83_spill] sm:$0xff] }
 0x472   :  { %2582 = vmatpush.msrb.mxu3 %v9486_v53  ;;  %2551 = vmatpush.msrb.mxu2 %v9487_v31  ;;  %v9513_v53 = vld [vmem:[#allocation87_spill] sm:$0xff]  ;;  %v9514_v31 = vld [vmem:[#allocation88_spill] sm:$0xff] }
 0x473   :  { %2543 = vmatpush.msrb.mxu1 %v9488_v29  ;;  %2512 = vmatpush.msrb.mxu0 %v9489_v10  ;;  %v9515_v29 = vld [vmem:[#allocation93_spill] sm:$0xff]  ;;  %v9516_v10 = vld [vmem:[#allocation94_spill] sm:$0xff] }
 0x474   :  { %2583 = vmatpush.msrb.mxu3 %v9490_v14  ;;  %2552 = vmatpush.msrb.mxu2 %v9491_v26  ;;  %v9517_v14 = vld [vmem:[#allocation97_spill] sm:$0xff]  ;;  %v9518_v26 = vld [vmem:[#allocation98_spill] sm:$0xff] }
 0x475   :  { %2544 = vmatpush.msrb.mxu1 %v9492_v50  ;;  %2513 = vmatpush.msrb.mxu0 %v9493_v56  ;;  %v9519_v50 = vld [vmem:[#allocation101_spill] sm:$0xff]  ;;  %v9520_v56 = vld [vmem:[#allocation102_spill] sm:$0xff] }
 0x476   :  { %2584 = vmatpush.msrb.mxu3 %v9494_v4  ;;  %2553 = vmatpush.msrb.mxu2 %v9495_v35  ;;  %v9521_v4 = vld [vmem:[#allocation107_spill] sm:$0xff]  ;;  %v9522_v35 = vld [vmem:[#allocation108_spill] sm:$0xff] }
 0x477   :  { %2545 = vmatpush.msrb.mxu1 %v9496_v30  ;;  %2514 = vmatpush.msrb.mxu0 %v9497_v28  ;;  %v9523_v30 = vld [vmem:[#allocation112_spill] sm:$0xff]  ;;  %v9524_v28 = vld [vmem:[#allocation113_spill] sm:$0xff] }
 0x478   :  { %2585 = vmatpush.msrb.mxu3 %v9498_v8  ;;  %2554 = vmatpush.msrb.mxu2 %v9499_v60  ;;  %v9525_v8 = vld [vmem:[#allocation114_spill] sm:$0xff]  ;;  %v9526_v60 = vld [vmem:[#allocation115_spill] sm:$0xff] }
 0x479   :  { %2610 = vmatpush.msra.mxu1 %v9500_v19  ;;  %2515 = vmatpush.msrb.mxu0 %v9502_v9  ;;  %v9527_v19 = vld [vmem:[#allocation118_spill] sm:$0xff] }
 0x47a   :  { %2650 = vmatpush.msra.mxu3 %v9501_v37  ;;  %2555 = vmatpush.msrb.mxu2 %v9503_v39  ;;  %v9528_v37 = vld [vmem:[#allocation19_spill] sm:$0xff]  ;;  %v9529_v9 = vld [vmem:[#allocation18_spill] sm:$0xff]  ;;  %v9530_v39 = vld [vmem:[#allocation29_spill] sm:$0xff] }
 0x47b   :  { %2611 = vmatpush.msra.mxu1 %v9504_v46  ;;  %2516 = vmatpush.msrb.mxu0 %v9506_v33  ;;  %v9531_v46 = vld [vmem:[#allocation30_spill] sm:$0xff] }
 0x47c   :  { %2651 = vmatpush.msra.mxu3 %v9505_v32  ;;  %2556 = vmatpush.msrb.mxu2 %v9507_v12  ;;  %v9532_v32 = vld [vmem:[#allocation9_spill] sm:$0xff]  ;;  %v9533_v33 = vld [vmem:[#allocation10_spill] sm:$0xff]  ;;  %v9534_v12 = vld [vmem:[#allocation11_spill] sm:$0xff] }
 0x47d   :  { %2612 = vmatpush.msra.mxu1 %v9508_v7  ;;  %2517 = vmatpush.msrb.mxu0 %v9510_v11  ;;  %v9535_v7 = vld [vmem:[#allocation12_spill] sm:$0xff]  ;;  %v9537_v11 = vld [vmem:[#allocation14_spill] sm:$0xff] }
 0x47e   :  { %2652 = vmatpush.msra.mxu3 %v9509_v38  ;;  %2557 = vmatpush.msrb.mxu2 %v9511_v21  ;;  %v9536_v38 = vld [vmem:[#allocation13_spill] sm:$0xff]  ;;  %v9538_v21 = vld [vmem:[#allocation15_spill] sm:$0xff] }
 0x47f   :  { %2613 = vmatpush.msra.mxu1 %v9512_v17  ;;  %2518 = vmatpush.msrb.mxu0 %v9514_v31  ;;  %v9539_v17 = vld [vmem:[#allocation16_spill] sm:$0xff]  ;;  %v9541_v31 = vld [vmem:[#allocation122_spill] sm:$0xff] }
 0x480   :  { %2653 = vmatpush.msra.mxu3 %v9513_v53  ;;  %2558 = vmatpush.msrb.mxu2 %v9515_v29  ;;  %v9540_v53 = vld [vmem:[#allocation17_spill] sm:$0xff]  ;;  %v9542_v29 = vld [vmem:[#allocation123_spill] sm:$0xff] }
 0x481   :  { %2614 = vmatpush.msra.mxu1 %v9516_v10  ;;  %2519 = vmatpush.msrb.mxu0 %v9518_v26  ;;  %v9543_v10 = vld [vmem:[#allocation124_spill] sm:$0xff]  ;;  %v9545_v26 = vld [vmem:[#allocation126_spill] sm:$0xff] }
 0x482   :  { %2654 = vmatpush.msra.mxu3 %v9517_v14  ;;  %2559 = vmatpush.msrb.mxu2 %v9519_v50  ;;  %v9544_v14 = vld [vmem:[#allocation125_spill] sm:$0xff]  ;;  %v9546_v50 = vld [vmem:[#allocation127_spill] sm:$0xff] }
 0x483   :  { %2615 = vmatpush.msra.mxu1 %v9520_v56  ;;  %2520 = vmatpush.msrb.mxu0 %v9522_v35  ;;  %v9547_v56 = vld [vmem:[#allocation128_spill] sm:$0xff]  ;;  %v9549_v35 = vld [vmem:[#allocation130_spill] sm:$0xff] }
 0x484   :  { %2655 = vmatpush.msra.mxu3 %v9521_v4  ;;  %2560 = vmatpush.msrb.mxu2 %v9523_v30  ;;  %v9548_v4 = vld [vmem:[#allocation129_spill] sm:$0xff]  ;;  %v9550_v30 = vld [vmem:[#allocation131_spill] sm:$0xff] }
 0x485   :  { %2616 = vmatpush.msra.mxu1 %v9524_v28  ;;  %2521 = vmatpush.msrb.mxu0 %v9526_v60  ;;  %v9551_v28 = vld [vmem:[#allocation132_spill] sm:$0xff]  ;;  %v9553_v60 = vld [vmem:[#allocation134_spill] sm:$0xff] }
 0x486   :  { %2656 = vmatpush.msra.mxu3 %v9525_v8  ;;  %2561 = vmatpush.msrb.mxu2 %v9527_v19  ;;  %v9552_v8 = vld [vmem:[#allocation133_spill] sm:$0xff]  ;;  %v9554_v19 = vld [vmem:[#allocation135_spill] sm:$0xff] }
 0x487   :  { %2617 = vmatpush.msra.mxu1 %v9528_v37  ;;  %2522 = vmatpush.msrb.mxu0 %v9530_v39  ;;  %v9555_v37 = vld [vmem:[#allocation136_spill] sm:$0xff]  ;;  %v9557_v39 = vld [vmem:[#allocation138_spill] sm:$0xff] }
 0x488   :  { %2657 = vmatpush.msra.mxu3 %v9529_v9  ;;  %2562 = vmatpush.msrb.mxu2 %v9531_v46  ;;  %v9556_v9 = vld [vmem:[#allocation137_spill] sm:$0xff]  ;;  %v9558_v46 = vld [vmem:[#allocation139_spill] sm:$0xff] }
 0x489   :  { %2618 = vmatpush.msra.mxu1 %v9532_v32  ;;  %2523 = vmatpush.msrb.mxu0 %v9534_v12  ;;  %v9559_v32 = vld [vmem:[#allocation140_spill] sm:$0xff]  ;;  %v9561_v12 = vld [vmem:[#allocation142_spill] sm:$0xff] }
 0x48a   :  { %2658 = vmatpush.msra.mxu3 %v9533_v33  ;;  %2563 = vmatpush.msrb.mxu2 %v9535_v7  ;;  %v9560_v33 = vld [vmem:[#allocation141_spill] sm:$0xff]  ;;  %v9562_v7 = vld [vmem:[#allocation143_spill] sm:$0xff] }
 0x48b   :  { %2619 = vmatpush.msra.mxu1 %v9536_v38  ;;  %2524 = vmatpush.msrb.mxu0 %v9538_v21  ;;  %v9563_v38 = vld [vmem:[#allocation144_spill] sm:$0xff]  ;;  %v9565_v21 = vld [vmem:[#allocation146_spill] sm:$0xff] }
 0x48c   :  { %2659 = vmatpush.msra.mxu3 %v9537_v11  ;;  %2564 = vmatpush.msrb.mxu2 %v9539_v17  ;;  %v9564_v11 = vld [vmem:[#allocation145_spill] sm:$0xff]  ;;  %v9566_v17 = vld [vmem:[#allocation147_spill] sm:$0xff] }
 0x48d   :  { %2620 = vmatpush.msra.mxu1 %v9540_v53  ;;  %2525 = vmatpush.msrb.mxu0 %v9542_v29  ;;  %v9567_v53 = vld [vmem:[#allocation148_spill] sm:$0xff]  ;;  %v9569_v29 = vld [vmem:[#allocation150_spill] sm:$0xff] }
 0x48e   :  { %2660 = vmatpush.msra.mxu3 %v9541_v31  ;;  %2565 = vmatpush.msrb.mxu2 %v9543_v10  ;;  %v9568_v31 = vld [vmem:[#allocation149_spill] sm:$0xff]  ;;  %v9570_v10 = vld [vmem:[#allocation151_spill] sm:$0xff] }
 0x48f   :  { %2621 = vmatpush.msra.mxu1 %v9544_v14  ;;  %2590 = vmatpush.msra.mxu0 %v9546_v50  ;;  %v9571_v14 = vld [vmem:[#allocation152_spill] sm:$0xff]  ;;  %v9573_v50 = vld [vmem:[#allocation154_spill] sm:$0xff] }
 0x490   :  { %2661 = vmatpush.msra.mxu3 %v9545_v26  ;;  %2630 = vmatpush.msra.mxu2 %v9547_v56  ;;  %v9572_v26 = vld [vmem:[#allocation153_spill] sm:$0xff]  ;;  %v9574_v56 = vld [vmem:[#allocation155_spill] sm:$0xff] }
 0x491   :  { %2622 = vmatpush.msra.mxu1 %v9548_v4  ;;  %2591 = vmatpush.msra.mxu0 %v9550_v30  ;;  %v9575_v4 = vld [vmem:[#allocation156_spill] sm:$0xff]  ;;  %v9577_v30 = vld [vmem:[#allocation158_spill] sm:$0xff] }
 0x492   :  { %2662 = vmatpush.msra.mxu3 %v9549_v35  ;;  %2631 = vmatpush.msra.mxu2 %v9551_v28  ;;  %v9576_v35 = vld [vmem:[#allocation157_spill] sm:$0xff]  ;;  %v9578_v28 = vld [vmem:[#allocation159_spill] sm:$0xff] }
 0x493   :  { %2623 = vmatpush.msra.mxu1 %v9552_v8  ;;  %2592 = vmatpush.msra.mxu0 %v9554_v19  ;;  %v9579_v8 = vld [vmem:[#allocation160_spill] sm:$0xff]  ;;  %v9581_v19 = vld [vmem:[#allocation162_spill] sm:$0xff] }
 0x494   :  { %2663 = vmatpush.msra.mxu3 %v9553_v60  ;;  %2632 = vmatpush.msra.mxu2 %v9555_v37  ;;  %v9580_v60 = vld [vmem:[#allocation161_spill] sm:$0xff]  ;;  %v9582_v37 = vld [vmem:[#allocation163_spill] sm:$0xff] }
 0x495   :  { %2624 = vmatpush.msra.mxu1 %v9556_v9  ;;  %2593 = vmatpush.msra.mxu0 %v9558_v46  ;;  %v9583_v9 = vld [vmem:[#allocation164_spill] sm:$0xff]  ;;  %v9585_v46 = vld [vmem:[#allocation166_spill] sm:$0xff] }
 0x496   :  { %2664 = vmatpush.msra.mxu3 %v9557_v39  ;;  %2633 = vmatpush.msra.mxu2 %v9559_v32  ;;  %v9584_v39 = vld [vmem:[#allocation165_spill] sm:$0xff] }
 0x497   :  { %2625 = vmatpush.msra.mxu1 %v9560_v33  ;;  %2594 = vmatpush.msra.mxu0 %v9562_v7 }
 0x498   :  { %2665 = vmatpush.msra.mxu3 %v9561_v12  ;;  %2634 = vmatpush.msra.mxu2 %v9563_v38  ;;  %v9586_v12 = vld [vmem:[#allocation20_spill] sm:$0xff] }
 0x499   :  { %2595 = vmatpush.msra.mxu0 %v9564_v11 }
 0x49a   :  { %2635 = vmatpush.msra.mxu2 %v9565_v21 }
 0x49b   :  { %2596 = vmatpush.msra.mxu0 %v9566_v17 }
 0x49c   :  { %2636 = vmatpush.msra.mxu2 %v9567_v53  ;;  %v9587_v53 = vld [vmem:[#allocation21_spill] sm:$0xff] }
 0x49d   :  { %2597 = vmatpush.msra.mxu0 %v9568_v31 }
 0x49e   :  { %2637 = vmatpush.msra.mxu2 %v9569_v29 }
 0x49f   :  { %2598 = vmatpush.msra.mxu0 %v9570_v10  ;;  %v9588_v10 = vld [vmem:[#allocation117_spill] sm:$0xff] }
 0x4a0   :  { %2638 = vmatpush.msra.mxu2 %v9571_v14  ;;  %v9589_v14 = vld [vmem:[#allocation90_spill] sm:$0xff] }
 0x4a1   :  { %2599 = vmatpush.msra.mxu0 %v9572_v26  ;;  %v188_v26 = vadd.f32 %v9589_v14, %v9588_v10 }
 0x4a2   :  { %2639 = vmatpush.msra.mxu2 %v9573_v50 }
 0x4a3   :  { %2600 = vmatpush.msra.mxu0 %v9574_v56 }
 0x4a4   :  { %2640 = vmatpush.msra.mxu2 %v9575_v4  ;;  %v9590_v4 = vld [vmem:[#allocation22_spill] sm:$0xff] }
 0x4a5   :  { %2601 = vmatpush.msra.mxu0 %v9576_v35 }
 0x4a6   :  { %2641 = vmatpush.msra.mxu2 %v9577_v30 }
 0x4a7   :  { %2602 = vmatpush.msra.mxu0 %v9578_v28 }
 0x4a8   :  { %2642 = vmatpush.msra.mxu2 %v9579_v8 }
 0x4a9   :  { %2603 = vmatpush.msra.mxu0 %v9580_v60 }
 0x4aa   :  { %2643 = vmatpush.msra.mxu2 %v9581_v19 }
 0x4ab   :  { %2604 = vmatpush.msra.mxu0 %v9582_v37 }
 0x4ac   :  { %2644 = vmatpush.msra.mxu2 %v9583_v9 }
 0x4ad   :  { %2605 = vmatpush.msra.mxu0 %v9584_v39 }
 0x4ae   :  { %2645 = vmatpush.msra.mxu2 %v9585_v46 }
 0x4b1   :  { %v2172_v32 = vpop.f32.mrf.mxu1 }
 0x4b7   :  { %v2212_v29 = vpop.f32.mrf.mxu3 }
 0x4b9   :  { %v2252_v38 = vpop.f32.mrf.mxu1 }
 0x4c9   :  { %v2152_v33 = vpop.f32.mrf.mxu0 }
 0x4ca   :  { %v2153_v7 = vadd.f32 %v2152_v33, %v9586_v12 }
 0x4cc   :  { %v2173_v11 = vadd.f32 %v2172_v32, %v2153_v7 }
 0x4ce   :  { %v3562_v21 = vmul.f32 -1.442695, %v2173_v11 }
 0x4cf   :  { %v2192_v17 = vpop.f32.mrf.mxu2 }
 0x4d0   :  { %3741 = vpow2.f32 %v3562_v21  ;;  %v2193_v31 = vadd.f32 %v2192_v17, %v9587_v53  ;;  %v9591_v17 = vld [vmem:[#allocation23_spill] sm:$0xff] }
 0x4d2   :  { %v2213_v50 = vadd.f32 %v2212_v29, %v2193_v31  ;;  %v2232_v56 = vpop.f32.mrf.mxu0 }
 0x4d3   :  { %v2233_v35 = vadd.f32 %v2232_v56, %v9590_v4  ;;  %v2400_v30 = vpop.f32.mrf.mxu1 }
 0x4d4   :  { %v3563_v28 = vmul.f32 -1.442695, %v2213_v50  ;;  %v2444_v8 = vadd.f32 %v2400_v30, %v188_v26  ;;  %v2292_v26 = vpop.f32.mrf.mxu3 }
 0x4d5   :  { %v2253_v60 = vadd.f32 %v2252_v38, %v2233_v35 }
 0x4d6   :  { %v3742_v19 = vpop.eup %3741  ;;  %3743 = vpow2.f32 %v3563_v28  ;;  %v3566_v39 = vmul.f32 -1.442695, %v2444_v8 }
 0x4d7   :  { %v2304_v37 = vadd.f32 1.0, %v3742_v19  ;;  %v3564_v9 = vmul.f32 -1.442695, %v2253_v60 }
 0x4d8   :  { %v2272_v33 = vpop.f32.mrf.mxu2 }
 0x4d9   :  { %3745 = vrcp.f32 %v2304_v37  ;;  %v2273_v31 = vadd.f32 %v2272_v33, %v9591_v17  ;;  %v2318_v60 = vand.u32 2147483648, %v2304_v37  ;;  %vm2312_vm14 = vweird.f32 %v2304_v37  ;;  %v9593_v33 = vld [vmem:[#allocation89_spill] sm:$0xff] }
 0x4da   :  { %3747 = vpow2.f32 %v3564_v9  ;;  %v2316_v9 = vand.u32 2147483647, %v2304_v37 }
 0x4db   :  { %3749 = vpow2.f32 %v3566_v39  ;;  %v2293_v50 = vadd.f32 %v2292_v26, %v2273_v31 }
 0x4dc   :  { %v3744_v46 = vpop.eup %3743  ;;  %vm2317_vm2 = vcmp.eq.f32.partialorder %v2316_v9, 8.507059e+37 }
 0x4dd   :  { %v2305_v32 = vadd.f32 1.0, %v3744_v46  ;;  %v9592_v46 = vld [vmem:[#allocation116_spill] sm:$0xff] }
 0x4df   :  { %v3746_v7 = vpop.eup %3745  ;;  %3751 = vrcp.f32 %v2305_v32  ;;  %vm2327_vm1 = vweird.f32 %v2305_v32 }
 0x4e0   :  { %v3748_v11 = vpop.eup %3747  ;;  %v2308_v21 = vmul.f32 %v3746_v7, %v2304_v37  ;;  %vm2313_vm13 = vweird.f32 %v3746_v7 }
 0x4e1   :  { %v7397_v29 = vadd.f32 1.0, %v3748_v11  ;;  %v3750_v38 = vpop.eup %3749  ;;  %v147_v11 = vadd.f32 %v9593_v33, %v9592_v46  ;;  %vm7405_vm15 = vmor %vm2312_vm14, %vm2313_vm13 }
 0x4e2   :  { %v2309_v14 = vsub.f32 1.0, %v2308_v21  ;;  %v7400_v30 = vadd.f32 1.0, %v3750_v38  ;;  %v2333_v21 = vand.u32 2147483648, %v2305_v32  ;;  %v2331_v38 = vand.u32 2147483647, %v2305_v32 }
 0x4e3   :  { %3753 = vrcp.f32 %v7397_v29  ;;  %vm2342_vm6 = vweird.f32 %v7397_v29 }
 0x4e4   :  { %v2310_v56 = vmul.f32 %v3746_v7, %v2309_v14  ;;  %3755 = vtanh.f32 %v2293_v50  ;;  %v2334_v17 = vor.u32 1.1754944e-38, %v2333_v21  ;;  %vm2332_vm4 = vcmp.eq.f32.partialorder %v2331_v38, 8.507059e+37 }
 0x4e5   :  { %v3752_v35 = vpop.eup %3751  ;;  %3757 = vrcp.f32 %v7400_v30  ;;  %vm2479_vm10 = vweird.f32 %v7400_v30 }
 0x4e6   :  { %v2323_v28 = vmul.f32 %v3752_v35, %v2305_v32  ;;  %v2311_v8 = vadd.f32 %v3746_v7, %v2310_v56  ;;  %vm2328_vm0 = vweird.f32 %v3752_v35  ;;  %v2319_v56 = vor.u32 1.1754944e-38, %v2318_v60 }
 0x4e7   :  { %vm2329_vm3 = vmor %vm2327_vm1, %vm2328_vm0 }
 0x4e8   :  { %v2324_v19 = vsub.f32 1.0, %v2323_v28  ;;  %v2315_v37 = vsel %vm7405_vm15, %v3746_v7, %v2311_v8  ;;  %v9596_v7 = vld [vmem:[#allocation103_spill] sm:$0xff] }
 0x4e9   :  { %v3754_v39 = vpop.eup %3753  ;;  %v2320_v4 = vsel %vm2317_vm2, %v2319_v56, %v2315_v37  ;;  %v229_v8 = vadd.f32 %v9596_v7, %v5196_v41  ;;  %v2440_v37 = vpop.f32.mrf.mxu3  ;;  %v9597_v56 = vld [vmem:[#allocation106_spill] sm:$0xff] }
 0x4ea   :  { %v2325_v14 = vmul.f32 %v3752_v35, %v2324_v19  ;;  %v2338_v26 = vmul.f32 %v3754_v39, %v7397_v29  ;;  %v2380_v50 = vpop.f32.mrf.mxu0  ;;  %v3756_v53 = vpop.eup %3755  ;;  %vm2343_vm5 = vweird.f32 %v3754_v39 }
 0x4eb   :  { %v2443_v28 = vadd.f32 %v2380_v50, %v147_v11  ;;  %v7412_v19 = vpop.eup %3757  ;;  %v2354_v60 = vmul.f32 %v3756_v53, %v2320_v4  ;;  %vm2344_vm7 = vmor %vm2342_vm6, %vm2343_vm5 }
 0x4ec   :  { %v2339_v33 = vsub.f32 1.0, %v2338_v26  ;;  %v2326_v46 = vadd.f32 %v3752_v35, %v2325_v14  ;;  %v2475_v31 = vmul.f32 %v7412_v19, %v7400_v30  ;;  %vm2480_vm9 = vweird.f32 %v7412_v19 }
 0x4ed   :  { %v3565_v10 = vmul.f32 -1.442695, %v2443_v28  ;;  %v270_v28 = vadd.f32 %v9597_v56, %v5253_v59  ;;  %vm7458_vm11 = vmor %vm2479_vm10, %vm2480_vm9 }
 0x4ee   :  { %v2330_v12 = vsel %vm2329_vm3, %v3752_v35, %v2326_v46  ;;  %v2340_v45 = vmul.f32 %v3754_v39, %v2339_v33  ;;  %v2348_v46 = vand.u32 2147483648, %v7397_v29  ;;  %v2476_v53 = vsub.f32 1.0, %v2475_v31 }
 0x4ef   :  { %v2335_v34 = vsel %vm2332_vm4, %v2334_v17, %v2330_v12  ;;  %3759 = vpow2.f32 %v3565_v10  ;;  %v3592_v17 = vld [vmem:[%s8290_s6 + $0x4] ss:$0 sm:$0xff]  ;;  %v2485_v31 = vand.u32 2147483648, %v7400_v30 }
 0x4f0   :  { %v2353_v32 = vmul.f32 %v2335_v34, %v7085_v5  ;;  %v2341_v35 = vadd.f32 %v3754_v39, %v2340_v45  ;;  %v2346_v5 = vand.u32 2147483647, %v7397_v29  ;;  %v2349_v45 = vor.u32 1.1754944e-38, %v2348_v46  ;;  %v7450_v46 = vld [vmem:[#allocation3 + $0x1d8] sm:$0xff] }
 0x4f1   :  { %v2420_v9 = vpop.f32.mrf.mxu2  ;;  %v2477_v26 = vmul.f32 %v7412_v19, %v2476_v53 }
 0x4f2   :  { %v7417_v11 = vadd.f32 %v2354_v60, %v2353_v32  ;;  %v2445_v21 = vadd.f32 %v2420_v9, %v229_v8  ;;  %v2345_v4 = vsel %vm2344_vm7, %v3754_v39, %v2341_v35  ;;  %vm2347_vm8 = vcmp.eq.f32.partialorder %v2346_v5, 8.507059e+37  ;;  %v7436_v32 = vld [vmem:[#allocation3 + $0x1e8] sm:$0xff]  ;;  %v7439_v60 = vld [vmem:[#allocation3 + $0x1f8] sm:$0xff] }
 0x4f3   :  { %v2350_v14 = vsel %vm2347_vm8, %v2349_v45, %v2345_v4  ;;  %v2446_v8 = vadd.f32 %v2440_v37, %v270_v28  ;;  %v2478_v9 = vadd.f32 %v7412_v19, %v2477_v26  ;;  %v7447_v35 = vld [vmem:[#allocation3 + $0x1c8] sm:$0xff]  ;;  %v7476_v37 = vld [vmem:[#allocation3 + $0x198] sm:$0xff] }
 0x4f4   :  { %3761 = vtanh.f32 %v7417_v11  ;;  %v3567_v12 = vmul.f32 -1.442695, %v2445_v21  ;;  %v7463_v45 = vld [vmem:[#allocation3 + $0x1a8] sm:$0xff] }
 0x4f5   :  { %v3760_v10 = vpop.eup %3759  ;;  %v7473_v26 = vld [vmem:[#allocation3 + $0x188] sm:$0xff] }
 0x4f6   :  { %v7425_v34 = vadd.f32 1.0, %v3760_v10  ;;  %3763 = vpow2.f32 %v3567_v12  ;;  %v2483_v10 = vand.u32 2147483647, %v7400_v30 }
 0x4f8   :  { %3765 = vrcp.f32 %v7425_v34  ;;  %v2470_v4 = vand.u32 2147483648, %v7425_v34  ;;  %vm2484_vm13 = vcmp.eq.f32.partialorder %v2483_v10, 8.507059e+37  ;;  %vm2464_vm14 = vweird.f32 %v7425_v34 }
 0x4fa   :  { %v3762_v38 = vpop.eup %3761  ;;  %v2471_v28 = vor.u32 1.1754944e-38, %v2470_v4 }
 0x4fb   :  { %v2357_v29 = vmul.f32 %v3762_v38, %v2350_v14  ;;  %v2468_v38 = vand.u32 2147483647, %v7425_v34  ;;  %v2486_v14 = vor.u32 1.1754944e-38, %v2485_v31 }
 0x4fc   :  { %v3764_v50 = vpop.eup %3763 }
 0x4fd   :  { %v7434_v33 = vadd.f32 1.0, %v3764_v50  ;;  %2546 = vmatmul.f32.vlgmr.msrb.gmra.mxu1 %v2357_v29  ;;  %2586 = vmatmul.f32.vlgmr.msrb.gmra.mxu3 %v2357_v29  ;;  %v2361_v39 = vmul.f32 %v3592_v17, %v2357_v29  ;;  %v7466_v17 = vld [vmem:[#allocation3 + $0x1b8] sm:$0xff]  ;;  %vm2469_vm0 = vcmp.eq.f32.partialorder %v2468_v38, 8.507059e+37 }
 0x4fe   :  { %v3766_v7 = vpop.eup %3765  ;;  %2758 = vmatpush.msrb.mxu1 %v7436_v32  ;;  %2798 = vmatpush.msrb.mxu3 %v7439_v60 }
 0x4ff   :  { %v2460_v21 = vmul.f32 %v3766_v7, %v7425_v34  ;;  %3767 = vrcp.f32 %v7434_v33  ;;  %v7454_v12 = vadd.f32 %v2361_v39, %v7110_v0  ;;  %v2482_v0 = vsel %vm7458_vm11, %v7412_v19, %v2478_v9  ;;  %v7484_v9 = vld [vmem:[#allocation3 + $0x178] sm:$0xff] }
 0x500   :  { %2759 = vmatpush.msrb.mxu1 %v7447_v35  ;;  %2799 = vmatpush.msrb.mxu3 %v7450_v46  ;;  %3769 = vtanh.f32 %v2446_v8  ;;  %vm2465_vm12 = vweird.f32 %v3766_v7  ;;  %v2487_v19 = vsel %vm2484_vm13, %v2486_v14, %v2482_v0  ;;  %v7481_v8 = vld [vmem:[#allocation3 + $0x168] sm:$0xff]  ;;  %vm2494_vm2 = vweird.f32 %v7434_v33 }
 0x501   :  { %v2461_v5 = vsub.f32 1.0, %v2460_v21  ;;  %vm2466_vm15 = vmor %vm2464_vm14, %vm2465_vm12  ;;  %v2505_v53 = vmul.f32 %v2487_v19, %v7133_v44  ;;  %v2500_v44 = vand.u32 2147483648, %v7434_v33  ;;  %v2498_v19 = vand.u32 2147483647, %v7434_v33 }
 0x502   :  { %2760 = vmatpush.msrb.mxu1 %v7463_v45  ;;  %2800 = vmatpush.msrb.mxu3 %v7466_v17 }
 0x503   :  { %v2462_v30 = vmul.f32 %v3766_v7, %v2461_v5  ;;  %v7487_v5 = vld [vmem:[#allocation3 + $0x148] sm:$0xff]  ;;  %vm2499_vm4 = vcmp.eq.f32.partialorder %v2498_v19, 8.507059e+37  ;;  %v7545_v19 = vld [vmem:[#allocation3 + $0x78] sm:$0xff] }
 0x504   :  { %2761 = vmatpush.msrb.mxu1 %v7473_v26  ;;  %2801 = vmatpush.msrb.mxu3 %v7476_v37 }
 0x505   :  { %v3768_v50 = vpop.eup %3767  ;;  %v2463_v56 = vadd.f32 %v3766_v7, %v2462_v30  ;;  %2626 = vmatmul.f32.vlgmr.msra.gmra.mxu1 %v2357_v29  ;;  %2666 = vmatmul.f32.vlgmr.msra.gmra.mxu3 %v2357_v29  ;;  %v7490_v29 = vld [vmem:[#allocation3 + $0x158] sm:$0xff]  ;;  %v7494_v30 = vld [vmem:[#allocation3 + $0x128] sm:$0xff] }
 0x506   :  { %v2490_v39 = vmul.f32 %v3768_v50, %v7434_v33  ;;  %2762 = vmatpush.msrb.mxu1 %v7481_v8  ;;  %2802 = vmatpush.msrb.mxu3 %v7484_v9  ;;  %v3770_v31 = vpop.eup %3769  ;;  %vm2495_vm1 = vweird.f32 %v3768_v50  ;;  %v7524_v33 = vld [vmem:[#allocation3 + $0xa8] sm:$0xff] }
 0x507   :  { %v2467_v21 = vsel %vm2466_vm15, %v3766_v7, %v2463_v56  ;;  %v7497_v7 = vld [vmem:[#allocation3 + $0x138] sm:$0xff]  ;;  %v7502_v56 = vld [vmem:[#allocation3 + $0x108] sm:$0xff]  ;;  %vm2496_vm3 = vmor %vm2494_vm2, %vm2495_vm1 }
 0x508   :  { %v2472_v10 = vsel %vm2469_vm0, %v2471_v28, %v2467_v21  ;;  %v2491_v34 = vsub.f32 1.0, %v2490_v39  ;;  %2763 = vmatpush.msrb.mxu1 %v7487_v5  ;;  %2803 = vmatpush.msrb.mxu3 %v7490_v29  ;;  %v7505_v28 = vld [vmem:[#allocation3 + $0x118] sm:$0xff]  ;;  %v7512_v39 = vld [vmem:[#allocation3 + $0xe8] sm:$0xff] }
 0x509   :  { %v2506_v4 = vmul.f32 %v3770_v31, %v2472_v10  ;;  %v7515_v21 = vld [vmem:[#allocation3 + $0xf8] sm:$0xff]  ;;  %v7518_v10 = vld [vmem:[#allocation3 + $0xc8] sm:$0xff] }
 0x50a   :  { %v2492_v0 = vmul.f32 %v3768_v50, %v2491_v34  ;;  %2764 = vmatpush.msrb.mxu1 %v7494_v30  ;;  %2804 = vmatpush.msrb.mxu3 %v7497_v7  ;;  %9600 = vst [vmem:[#allocation53_spill] sm:$0xff] %v7515_v21  ;;  %v7521_v34 = vld [vmem:[#allocation3 + $0xd8] sm:$0xff] }
 0x50b   :  { %v7500_v38 = vadd.f32 %v2506_v4, %v2505_v53  ;;  %9601 = vst [vmem:[#allocation52_spill] sm:$0xff] %v7518_v10  ;;  %v2501_v53 = vor.u32 1.1754944e-38, %v2500_v44  ;;  %v7527_v4 = vld [vmem:[#allocation3 + $0xb8] sm:$0xff]  ;;  %v7542_v44 = vld [vmem:[#allocation3 + $0x68] sm:$0xff] }
 0x50c   :  { %v2493_v14 = vadd.f32 %v3768_v50, %v2492_v0  ;;  %2765 = vmatpush.msrb.mxu1 %v7502_v56  ;;  %2805 = vmatpush.msrb.mxu3 %v7505_v28 }
 0x50d   :  { %3771 = vtanh.f32 %v7500_v38 }
 0x50e   :  { %2766 = vmatpush.msrb.mxu1 %v7512_v39  ;;  %2806 = vmatpush.msrb.mxu3 %v7515_v21  ;;  %v2497_v31 = vsel %vm2496_vm3, %v3768_v50, %v2493_v14  ;;  %v7532_v21 = vld [vmem:[#allocation3 + $0x88] sm:$0xff] }
 0x50f   :  { %v2502_v50 = vsel %vm2499_vm4, %v2501_v53, %v2497_v31  ;;  %v7550_v31 = vld [vmem:[#allocation3 + $0x48] sm:$0xff]  ;;  %v7553_v53 = vld [vmem:[#allocation3 + $0x58] sm:$0xff] }
 0x510   :  { %2767 = vmatpush.msrb.mxu1 %v7518_v10  ;;  %2807 = vmatpush.msrb.mxu3 %v7521_v34  ;;  %v7535_v10 = vld [vmem:[#allocation3 + $0x98] sm:$0xff] }
 0x512   :  { %2768 = vmatpush.msrb.mxu1 %v7524_v33  ;;  %2808 = vmatpush.msrb.mxu3 %v7527_v4 }
 0x513   :  { %v3772_v0 = vpop.eup %3771 }
 0x514   :  { %v7530_v14 = vmul.f32 %v3772_v0, %v2502_v50  ;;  %2769 = vmatpush.msrb.mxu1 %v7532_v21  ;;  %2809 = vmatpush.msrb.mxu3 %v7535_v10  ;;  %v7674_v0 = vld [vmem:[#allocation5 + $0x288] sm:$0xff] }
 0x515   :  { %9628 = vst [vmem:[#allocation60_spill] sm:$0xff] %v7674_v0  ;;  %v7677_v50 = vld [vmem:[#allocation5 + $0x1e8] sm:$0xff] }
 0x516   :  { %2526 = vmatmul.f32.vlgmr.msrb.gmra.mxu0 %v7530_v14  ;;  %2566 = vmatmul.f32.vlgmr.msrb.gmra.mxu2 %v7530_v14  ;;  %9629 = vst [vmem:[#allocation61_spill] sm:$0xff] %v7677_v50 }
 0x517   :  { %2738 = vmatpush.msrb.mxu0 %v7153_v42  ;;  %2778 = vmatpush.msrb.mxu2 %v7156_v61  ;;  %v7558_v42 = vld [vmem:[#allocation3 + $0x28] sm:$0xff]  ;;  %v7561_v61 = vld [vmem:[#allocation3 + $0x38] sm:$0xff] }
 0x518   :  { %2770 = vmatpush.msrb.mxu1 %v7542_v44  ;;  %2810 = vmatpush.msrb.mxu3 %v7545_v19 }
 0x519   :  { %2739 = vmatpush.msrb.mxu0 %v7161_v6  ;;  %2779 = vmatpush.msrb.mxu2 %v7164_v16  ;;  %v7566_v6 = vld [vmem:[#allocation3 + $0x8] sm:$0xff]  ;;  %v7569_v16 = vld [vmem:[#allocation3 + $0x18] sm:$0xff] }
 0x51a   :  { %2771 = vmatpush.msrb.mxu1 %v7550_v31  ;;  %2811 = vmatpush.msrb.mxu3 %v7553_v53 }
 0x51b   :  { %2740 = vmatpush.msrb.mxu0 %v7169_v36  ;;  %2780 = vmatpush.msrb.mxu2 %v7172_v57  ;;  %v7579_v36 = vld [vmem:[#allocation5 + $0x3e0] sm:$0xff]  ;;  %v7583_v57 = vld [vmem:[#allocation5 + $0x3e8] sm:$0xff] }
 0x51c   :  { %2772 = vmatpush.msrb.mxu1 %v7558_v42  ;;  %2812 = vmatpush.msrb.mxu3 %v7561_v61  ;;  %9602 = vst [vmem:[#allocation69_spill] sm:$0xff] %v7579_v36 }
 0x51d   :  { %2741 = vmatpush.msrb.mxu0 %v7177_v63  ;;  %2781 = vmatpush.msrb.mxu2 %v7180_v54  ;;  %9603 = vst [vmem:[#allocation70_spill] sm:$0xff] %v7583_v57  ;;  %v7587_v63 = vld [vmem:[#allocation5 + $0x3c0] sm:$0xff]  ;;  %v7591_v54 = vld [vmem:[#allocation5 + $0x3c8] sm:$0xff] }
 0x51e   :  { %2773 = vmatpush.msrb.mxu1 %v7566_v6  ;;  %2813 = vmatpush.msrb.mxu3 %v7569_v16  ;;  %9604 = vst [vmem:[#allocation33_spill] sm:$0xff] %v7587_v63 }
 0x51f   :  { %2606 = vmatmul.f32.vlgmr.msra.gmra.mxu0 %v7530_v14  ;;  %2646 = vmatmul.f32.vlgmr.msra.gmra.mxu2 %v7530_v14  ;;  %9605 = vst [vmem:[#allocation32_spill] sm:$0xff] %v7591_v54 }
 0x520   :  { %2742 = vmatpush.msrb.mxu0 %v7187_v18  ;;  %2774 = vmatmul.f32.vlgmr.msrb.gmra.mxu1 %v7530_v14  ;;  %v7595_v18 = vld [vmem:[#allocation5 + $0x3a0] sm:$0xff] }
 0x521   :  { %2782 = vmatpush.msrb.mxu2 %v7191_v49  ;;  %2814 = vmatmul.f32.vlgmr.msrb.gmra.mxu3 %v7530_v14  ;;  %9606 = vst [vmem:[#allocation73_spill] sm:$0xff] %v7595_v18  ;;  %v7599_v49 = vld [vmem:[#allocation5 + $0x3a8] sm:$0xff] }
 0x522   :  { %2743 = vmatpush.msrb.mxu0 %v7195_v20  ;;  %2905 = vmatpush.msra.mxu1 %v7579_v36  ;;  %9607 = vst [vmem:[#allocation72_spill] sm:$0xff] %v7599_v49  ;;  %v7603_v20 = vld [vmem:[#allocation5 + $0x380] sm:$0xff] }
 0x523   :  { %2783 = vmatpush.msrb.mxu2 %v7199_v58  ;;  %2945 = vmatpush.msra.mxu3 %v7583_v57  ;;  %9608 = vst [vmem:[#allocation86_spill] sm:$0xff] %v7603_v20  ;;  %v7607_v58 = vld [vmem:[#allocation5 + $0x388] sm:$0xff] }
 0x524   :  { %2744 = vmatpush.msrb.mxu0 %v7203_v22  ;;  %2906 = vmatpush.msra.mxu1 %v7587_v63  ;;  %9609 = vst [vmem:[#allocation92_spill] sm:$0xff] %v7607_v58  ;;  %v7611_v22 = vld [vmem:[#allocation5 + $0x360] sm:$0xff] }
 0x525   :  { %2784 = vmatpush.msrb.mxu2 %v7207_v1  ;;  %2946 = vmatpush.msra.mxu3 %v7591_v54  ;;  %9610 = vst [vmem:[#allocation49_spill] sm:$0xff] %v7611_v22  ;;  %v7615_v1 = vld [vmem:[#allocation5 + $0x368] sm:$0xff] }
 0x526   :  { %2745 = vmatpush.msrb.mxu0 %v7211_v13  ;;  %2907 = vmatpush.msra.mxu1 %v7595_v18  ;;  %9611 = vst [vmem:[#allocation50_spill] sm:$0xff] %v7615_v1  ;;  %v7619_v13 = vld [vmem:[#allocation5 + $0x340] sm:$0xff] }
 0x527   :  { %2785 = vmatpush.msrb.mxu2 %v7215_v47  ;;  %2947 = vmatpush.msra.mxu3 %v7599_v49  ;;  %9612 = vst [vmem:[#allocation24_spill] sm:$0xff] %v7619_v13  ;;  %v7623_v47 = vld [vmem:[#allocation5 + $0x348] sm:$0xff] }
 0x528   :  { %2746 = vmatpush.msrb.mxu0 %v7219_v27  ;;  %2908 = vmatpush.msra.mxu1 %v7603_v20  ;;  %9613 = vst [vmem:[#allocation25_spill] sm:$0xff] %v7623_v47  ;;  %v7627_v27 = vld [vmem:[#allocation5 + $0x320] sm:$0xff] }
 0x529   :  { %2786 = vmatpush.msrb.mxu2 %v7223_v43  ;;  %2948 = vmatpush.msra.mxu3 %v7607_v58  ;;  %9614 = vst [vmem:[#allocation28_spill] sm:$0xff] %v7627_v27  ;;  %v7631_v43 = vld [vmem:[#allocation5 + $0x328] sm:$0xff] }
 0x52a   :  { %2747 = vmatpush.msrb.mxu0 %v7227_v40  ;;  %2909 = vmatpush.msra.mxu1 %v7611_v22  ;;  %9615 = vst [vmem:[#allocation31_spill] sm:$0xff] %v7631_v43  ;;  %v7635_v40 = vld [vmem:[#allocation5 + $0x300] sm:$0xff] }
 0x52b   :  { %2787 = vmatpush.msrb.mxu2 %v7231_v51  ;;  %2949 = vmatpush.msra.mxu3 %v7615_v1  ;;  %9616 = vst [vmem:[#allocation36_spill] sm:$0xff] %v7635_v40  ;;  %v7639_v51 = vld [vmem:[#allocation5 + $0x308] sm:$0xff] }
 0x52c   :  { %2748 = vmatpush.msrb.mxu0 %v7235_v25  ;;  %2910 = vmatpush.msra.mxu1 %v7619_v13  ;;  %9617 = vst [vmem:[#allocation37_spill] sm:$0xff] %v7639_v51  ;;  %v7643_v25 = vld [vmem:[#allocation5 + $0x2e0] sm:$0xff] }
 0x52d   :  { %2788 = vmatpush.msrb.mxu2 %v7239_v24  ;;  %2950 = vmatpush.msra.mxu3 %v7623_v47  ;;  %9618 = vst [vmem:[#allocation40_spill] sm:$0xff] %v7643_v25  ;;  %v7647_v24 = vld [vmem:[#allocation5 + $0x2e8] sm:$0xff] }
 0x52e   :  { %2749 = vmatpush.msrb.mxu0 %v7243_v15  ;;  %2911 = vmatpush.msra.mxu1 %v7627_v27  ;;  %9619 = vst [vmem:[#allocation41_spill] sm:$0xff] %v7647_v24  ;;  %v7651_v15 = vld [vmem:[#allocation5 + $0x2c0] sm:$0xff]  ;;  %v9736_v47 = vld [vmem:[#allocation22_spill] sm:$0xff] }
 0x52f   :  { %2789 = vmatpush.msrb.mxu2 %v7247_v2  ;;  %2951 = vmatpush.msra.mxu3 %v7631_v43  ;;  %9620 = vst [vmem:[#allocation44_spill] sm:$0xff] %v7651_v15  ;;  %v7655_v2 = vld [vmem:[#allocation5 + $0x2c8] sm:$0xff] }
 0x530   :  { %2750 = vmatpush.msrb.mxu0 %v7251_v48  ;;  %2912 = vmatpush.msra.mxu1 %v7635_v40  ;;  %9621 = vst [vmem:[#allocation45_spill] sm:$0xff] %v7655_v2  ;;  %v9622_v48 = vld [vmem:[#allocation167_spill] sm:$0xff]  ;;  %v9735_v40 = vld [vmem:[#allocation105_spill] sm:$0xff] }
 0x531   :  { %2790 = vmatpush.msrb.mxu2 %v7255_v55  ;;  %2952 = vmatpush.msra.mxu3 %v7639_v51  ;;  %v7659_v55 = vld [vmem:[#allocation5 + $0x2a0] sm:$0xff] }
 0x532   :  { %2751 = vmatpush.msrb.mxu0 %v7259_v52  ;;  %2913 = vmatpush.msra.mxu1 %v7643_v25  ;;  %9623 = vst [vmem:[#allocation48_spill] sm:$0xff] %v7659_v55  ;;  %v9624_v52 = vld [vmem:[#allocation168_spill] sm:$0xff]  ;;  %v9734_v51 = vld [vmem:[#allocation117_spill] sm:$0xff] }
 0x533   :  { %2791 = vmatpush.msrb.mxu2 %v7263_v62  ;;  %2953 = vmatpush.msra.mxu3 %v7647_v24  ;;  %v7665_v62 = vld [vmem:[#allocation5 + $0x2a8] sm:$0xff]  ;;  %v9733_v24 = vld [vmem:[#allocation21_spill] sm:$0xff]  ;;  %v191_v43 = vadd.f32 %v9735_v40, %v9734_v51 }
 0x534   :  { %2752 = vmatpush.msrb.mxu0 %v7267_v3  ;;  %2914 = vmatpush.msra.mxu1 %v7651_v15  ;;  %9625 = vst [vmem:[#allocation51_spill] sm:$0xff] %v7665_v62  ;;  %v7668_v3 = vld [vmem:[#allocation5 + $0x280] sm:$0xff] }
 0x535   :  { %2792 = vmatpush.msrb.mxu2 %v7271_v23  ;;  %2954 = vmatpush.msra.mxu3 %v7655_v2  ;;  %9626 = vst [vmem:[#allocation56_spill] sm:$0xff] %v7668_v3  ;;  %v7671_v23 = vld [vmem:[#allocation5 + $0x1e0] sm:$0xff] }
 0x536   :  { %2753 = vmatpush.msrb.mxu0 %v9622_v48  ;;  %2915 = vmatpush.msra.mxu1 %v7659_v55  ;;  %9627 = vst [vmem:[#allocation57_spill] sm:$0xff] %v7671_v23  ;;  %v7683_v48 = vld [vmem:[#allocation5 + $0x1c0] sm:$0xff] }
 0x537   :  { %2793 = vmatpush.msrb.mxu2 %v9624_v52  ;;  %2754 = vmatmul.f32.vlgmr.msrb.gmra.mxu0 %v7530_v14  ;;  %9631 = vst [vmem:[#allocation65_spill] sm:$0xff] %v7683_v48  ;;  %v7686_v52 = vld [vmem:[#allocation5 + $0x268] sm:$0xff] }
 0x538   :  { %2794 = vmatmul.f32.vlgmr.msrb.gmra.mxu2 %v7530_v14  ;;  %2955 = vmatpush.msra.mxu3 %v7665_v62  ;;  %v7680_v14 = vld [vmem:[#allocation5 + $0x260] sm:$0xff]  ;;  %9632 = vst [vmem:[#allocation68_spill] sm:$0xff] %v7686_v52  ;;  %v9732_v62 = vld [vmem:[#allocation20_spill] sm:$0xff] }
 0x539   :  { %2916 = vmatpush.msra.mxu1 %v7668_v3  ;;  %2885 = vmatpush.msra.mxu0 %v7671_v23  ;;  %9630 = vst [vmem:[#allocation64_spill] sm:$0xff] %v7680_v14  ;;  %v7689_v23 = vld [vmem:[#allocation5 + $0x1c8] sm:$0xff] }
 0x53a   :  { %2956 = vmatpush.msra.mxu3 %v7674_v0  ;;  %2925 = vmatpush.msra.mxu2 %v7677_v50  ;;  %9633 = vst [vmem:[#allocation71_spill] sm:$0xff] %v7689_v23  ;;  %v7692_v0 = vld [vmem:[#allocation5 + $0x240] sm:$0xff] }
 0x53b   :  { %2917 = vmatpush.msra.mxu1 %v7680_v14  ;;  %2886 = vmatpush.msra.mxu0 %v7683_v48  ;;  %9634 = vst [vmem:[#allocation76_spill] sm:$0xff] %v7692_v0  ;;  %v7695_v50 = vld [vmem:[#allocation5 + $0x1a0] sm:$0xff]  ;;  %v7698_v14 = vld [vmem:[#allocation5 + $0x248] sm:$0xff] }
 0x53c   :  { %2957 = vmatpush.msra.mxu3 %v7686_v52  ;;  %2926 = vmatpush.msra.mxu2 %v7689_v23  ;;  %9635 = vst [vmem:[#allocation77_spill] sm:$0xff] %v7695_v50  ;;  %v7701_v48 = vld [vmem:[#allocation5 + $0x1a8] sm:$0xff]  ;;  %v7704_v52 = vld [vmem:[#allocation5 + $0x220] sm:$0xff] }
 0x53d   :  { %2918 = vmatpush.msra.mxu1 %v7692_v0  ;;  %2887 = vmatpush.msra.mxu0 %v7695_v50  ;;  %9636 = vst [vmem:[#allocation80_spill] sm:$0xff] %v7698_v14  ;;  %v7707_v23 = vld [vmem:[#allocation5 + $0x180] sm:$0xff]  ;;  %v7710_v0 = vld [vmem:[#allocation5 + $0x228] sm:$0xff] }
 0x53e   :  { %2958 = vmatpush.msra.mxu3 %v7698_v14  ;;  %9637 = vst [vmem:[#allocation81_spill] sm:$0xff] %v7701_v48  ;;  %2927 = vmatpush.msra.mxu2 %v7701_v48  ;;  %v7713_v50 = vld [vmem:[#allocation5 + $0x188] sm:$0xff]  ;;  %v7716_v14 = vld [vmem:[#allocation5 + $0x200] sm:$0xff] }
 0x53f   :  { %9638 = vst [vmem:[#allocation84_spill] sm:$0xff] %v7704_v52  ;;  %2919 = vmatpush.msra.mxu1 %v7704_v52  ;;  %2888 = vmatpush.msra.mxu0 %v7707_v23  ;;  %v7719_v48 = vld [vmem:[#allocation5 + $0x160] sm:$0xff]  ;;  %v7722_v52 = vld [vmem:[#allocation5 + $0x208] sm:$0xff] }
 0x540   :  { %9639 = vst [vmem:[#allocation26_spill] sm:$0xff] %v7707_v23  ;;  %2959 = vmatpush.msra.mxu3 %v7710_v0  ;;  %2928 = vmatpush.msra.mxu2 %v7713_v50  ;;  %v7725_v23 = vld [vmem:[#allocation5 + $0x168] sm:$0xff] }
 0x541   :  { %9640 = vst [vmem:[#allocation27_spill] sm:$0xff] %v7710_v0  ;;  %2920 = vmatpush.msra.mxu1 %v7716_v14  ;;  %2889 = vmatpush.msra.mxu0 %v7719_v48  ;;  %v7728_v0 = vld [vmem:[#allocation5 + $0x3f0] sm:$0xff] }
 0x542   :  { %9641 = vst [vmem:[#allocation85_spill] sm:$0xff] %v7713_v50  ;;  %2960 = vmatpush.msra.mxu3 %v7722_v52  ;;  %2929 = vmatpush.msra.mxu2 %v7725_v23  ;;  %v7731_v50 = vld [vmem:[#allocation5 + $0x3f8] sm:$0xff] }
 0x543   :  { %9642 = vst [vmem:[#allocation34_spill] sm:$0xff] %v7716_v14  ;;  %2985 = vmatpush.msrb.mxu1 %v7728_v0  ;;  %v7734_v14 = vld [vmem:[#allocation5 + $0x140] sm:$0xff] }
 0x544   :  { %9643 = vst [vmem:[#allocation35_spill] sm:$0xff] %v7719_v48  ;;  %3025 = vmatpush.msrb.mxu3 %v7731_v50  ;;  %2890 = vmatpush.msra.mxu0 %v7734_v14  ;;  %v7737_v48 = vld [vmem:[#allocation5 + $0x148] sm:$0xff] }
 0x545   :  { %9644 = vst [vmem:[#allocation91_spill] sm:$0xff] %v7722_v52  ;;  %2930 = vmatpush.msra.mxu2 %v7737_v48  ;;  %v7740_v52 = vld [vmem:[#allocation5 + $0x3d0] sm:$0xff] }
 0x546   :  { %9645 = vst [vmem:[#allocation38_spill] sm:$0xff] %v7725_v23  ;;  %2986 = vmatpush.msrb.mxu1 %v7740_v52  ;;  %v7743_v23 = vld [vmem:[#allocation5 + $0x3d8] sm:$0xff] }
 0x547   :  { %9646 = vst [vmem:[#allocation95_spill] sm:$0xff] %v7728_v0  ;;  %3026 = vmatpush.msrb.mxu3 %v7743_v23  ;;  %v7746_v0 = vld [vmem:[#allocation5 + $0x120] sm:$0xff] }
 0x548   :  { %9647 = vst [vmem:[#allocation39_spill] sm:$0xff] %v7731_v50  ;;  %2891 = vmatpush.msra.mxu0 %v7746_v0  ;;  %v7749_v50 = vld [vmem:[#allocation5 + $0x128] sm:$0xff] }
 0x549   :  { %9648 = vst [vmem:[#allocation96_spill] sm:$0xff] %v7734_v14  ;;  %2931 = vmatpush.msra.mxu2 %v7749_v50  ;;  %v7752_v14 = vld [vmem:[#allocation5 + $0x3b0] sm:$0xff] }
 0x54a   :  { %9649 = vst [vmem:[#allocation42_spill] sm:$0xff] %v7737_v48  ;;  %2987 = vmatpush.msrb.mxu1 %v7752_v14  ;;  %v7755_v48 = vld [vmem:[#allocation5 + $0x3b8] sm:$0xff] }
 0x54b   :  { %9650 = vst [vmem:[#allocation99_spill] sm:$0xff] %v7740_v52  ;;  %3027 = vmatpush.msrb.mxu3 %v7755_v48  ;;  %v7758_v52 = vld [vmem:[#allocation5 + $0x100] sm:$0xff] }
 0x54c   :  { %9651 = vst [vmem:[#allocation43_spill] sm:$0xff] %v7743_v23  ;;  %2892 = vmatpush.msra.mxu0 %v7758_v52  ;;  %v7761_v23 = vld [vmem:[#allocation5 + $0x108] sm:$0xff] }
 0x54d   :  { %9652 = vst [vmem:[#allocation100_spill] sm:$0xff] %v7746_v0  ;;  %2932 = vmatpush.msra.mxu2 %v7761_v23  ;;  %v7764_v0 = vld [vmem:[#allocation5 + $0x390] sm:$0xff] }
 0x54e   :  { %9653 = vst [vmem:[#allocation46_spill] sm:$0xff] %v7749_v50  ;;  %2988 = vmatpush.msrb.mxu1 %v7764_v0  ;;  %v7767_v50 = vld [vmem:[#allocation5 + $0x398] sm:$0xff] }
 0x54f   :  { %9654 = vst [vmem:[#allocation47_spill] sm:$0xff] %v7752_v14  ;;  %3028 = vmatpush.msrb.mxu3 %v7767_v50  ;;  %v7770_v14 = vld [vmem:[#allocation5 + $0xe0] sm:$0xff] }
 0x550   :  { %9655 = vst [vmem:[#allocation54_spill] sm:$0xff] %v7755_v48  ;;  %2893 = vmatpush.msra.mxu0 %v7770_v14  ;;  %v7773_v48 = vld [vmem:[#allocation5 + $0xe8] sm:$0xff] }
 0x551   :  { %9656 = vst [vmem:[#allocation55_spill] sm:$0xff] %v7758_v52  ;;  %2933 = vmatpush.msra.mxu2 %v7773_v48  ;;  %v7776_v52 = vld [vmem:[#allocation5 + $0x370] sm:$0xff] }
 0x552   :  { %9657 = vst [vmem:[#allocation58_spill] sm:$0xff] %v7761_v23  ;;  %2989 = vmatpush.msrb.mxu1 %v7776_v52  ;;  %v7779_v23 = vld [vmem:[#allocation5 + $0x378] sm:$0xff] }
 0x553   :  { %9658 = vst [vmem:[#allocation59_spill] sm:$0xff] %v7764_v0  ;;  %3029 = vmatpush.msrb.mxu3 %v7779_v23  ;;  %v7782_v0 = vld [vmem:[#allocation5 + $0xc0] sm:$0xff] }
 0x554   :  { %9659 = vst [vmem:[#allocation62_spill] sm:$0xff] %v7767_v50  ;;  %2894 = vmatpush.msra.mxu0 %v7782_v0  ;;  %v7785_v50 = vld [vmem:[#allocation5 + $0xc8] sm:$0xff] }
 0x555   :  { %9660 = vst [vmem:[#allocation63_spill] sm:$0xff] %v7770_v14  ;;  %2934 = vmatpush.msra.mxu2 %v7785_v50  ;;  %v7788_v14 = vld [vmem:[#allocation5 + $0x350] sm:$0xff] }
 0x556   :  { %9661 = vst [vmem:[#allocation66_spill] sm:$0xff] %v7773_v48  ;;  %2990 = vmatpush.msrb.mxu1 %v7788_v14  ;;  %v7791_v48 = vld [vmem:[#allocation5 + $0x358] sm:$0xff] }
 0x557   :  { %9662 = vst [vmem:[#allocation67_spill] sm:$0xff] %v7776_v52  ;;  %3030 = vmatpush.msrb.mxu3 %v7791_v48  ;;  %v7794_v52 = vld [vmem:[#allocation5 + $0xa0] sm:$0xff] }
 0x558   :  { %9663 = vst [vmem:[#allocation74_spill] sm:$0xff] %v7779_v23  ;;  %2895 = vmatpush.msra.mxu0 %v7794_v52  ;;  %v7797_v23 = vld [vmem:[#allocation5 + $0xa8] sm:$0xff] }
 0x559   :  { %9664 = vst [vmem:[#allocation75_spill] sm:$0xff] %v7782_v0  ;;  %2935 = vmatpush.msra.mxu2 %v7797_v23  ;;  %v7800_v0 = vld [vmem:[#allocation5 + $0x330] sm:$0xff] }
 0x55a   :  { %9665 = vst [vmem:[#allocation78_spill] sm:$0xff] %v7785_v50  ;;  %2991 = vmatpush.msrb.mxu1 %v7800_v0  ;;  %v7803_v50 = vld [vmem:[#allocation5 + $0x338] sm:$0xff] }
 0x55b   :  { %9666 = vst [vmem:[#allocation79_spill] sm:$0xff] %v7788_v14  ;;  %3031 = vmatpush.msrb.mxu3 %v7803_v50  ;;  %v7806_v14 = vld [vmem:[#allocation5 + $0x80] sm:$0xff] }
 0x55c   :  { %9667 = vst [vmem:[#allocation82_spill] sm:$0xff] %v7791_v48  ;;  %2896 = vmatpush.msra.mxu0 %v7806_v14  ;;  %v7809_v48 = vld [vmem:[#allocation5 + $0x88] sm:$0xff] }
 0x55d   :  { %9668 = vst [vmem:[#allocation83_spill] sm:$0xff] %v7794_v52  ;;  %2936 = vmatpush.msra.mxu2 %v7809_v48  ;;  %v7812_v52 = vld [vmem:[#allocation5 + $0x310] sm:$0xff] }
 0x55e   :  { %9669 = vst [vmem:[#allocation87_spill] sm:$0xff] %v7797_v23  ;;  %2992 = vmatpush.msrb.mxu1 %v7812_v52  ;;  %v7815_v23 = vld [vmem:[#allocation5 + $0x318] sm:$0xff] }
 0x55f   :  { %9670 = vst [vmem:[#allocation88_spill] sm:$0xff] %v7800_v0  ;;  %3032 = vmatpush.msrb.mxu3 %v7815_v23  ;;  %v7818_v0 = vld [vmem:[#allocation5 + $0x60] sm:$0xff] }
 0x560   :  { %9671 = vst [vmem:[#allocation93_spill] sm:$0xff] %v7803_v50  ;;  %2897 = vmatpush.msra.mxu0 %v7818_v0  ;;  %v7821_v50 = vld [vmem:[#allocation5 + $0x68] sm:$0xff] }
 0x561   :  { %9672 = vst [vmem:[#allocation94_spill] sm:$0xff] %v7806_v14  ;;  %2937 = vmatpush.msra.mxu2 %v7821_v50  ;;  %v7824_v14 = vld [vmem:[#allocation5 + $0x2f0] sm:$0xff] }
 0x562   :  { %9673 = vst [vmem:[#allocation97_spill] sm:$0xff] %v7809_v48  ;;  %2993 = vmatpush.msrb.mxu1 %v7824_v14  ;;  %v7827_v48 = vld [vmem:[#allocation5 + $0x2f8] sm:$0xff] }
 0x563   :  { %9674 = vst [vmem:[#allocation98_spill] sm:$0xff] %v7812_v52  ;;  %3033 = vmatpush.msrb.mxu3 %v7827_v48  ;;  %v7830_v52 = vld [vmem:[#allocation5 + $0x40] sm:$0xff] }
 0x564   :  { %9675 = vst [vmem:[#allocation101_spill] sm:$0xff] %v7815_v23  ;;  %2898 = vmatpush.msra.mxu0 %v7830_v52  ;;  %v7833_v23 = vld [vmem:[#allocation5 + $0x48] sm:$0xff] }
 0x565   :  { %9676 = vst [vmem:[#allocation102_spill] sm:$0xff] %v7818_v0  ;;  %2938 = vmatpush.msra.mxu2 %v7833_v23  ;;  %v7836_v0 = vld [vmem:[#allocation5 + $0x2d0] sm:$0xff] }
 0x566   :  { %9677 = vst [vmem:[#allocation107_spill] sm:$0xff] %v7821_v50  ;;  %2994 = vmatpush.msrb.mxu1 %v7836_v0  ;;  %v7839_v50 = vld [vmem:[#allocation5 + $0x2d8] sm:$0xff] }
 0x567   :  { %9678 = vst [vmem:[#allocation108_spill] sm:$0xff] %v7824_v14  ;;  %3034 = vmatpush.msrb.mxu3 %v7839_v50  ;;  %v7842_v14 = vld [vmem:[#allocation5 + $0x20] sm:$0xff] }
 0x568   :  { %9679 = vst [vmem:[#allocation112_spill] sm:$0xff] %v7827_v48  ;;  %2899 = vmatpush.msra.mxu0 %v7842_v14  ;;  %v7845_v48 = vld [vmem:[#allocation5 + $0x28] sm:$0xff] }
 0x569   :  { %9680 = vst [vmem:[#allocation113_spill] sm:$0xff] %v7830_v52  ;;  %2939 = vmatpush.msra.mxu2 %v7845_v48  ;;  %v7848_v52 = vld [vmem:[#allocation5 + $0x2b0] sm:$0xff] }
 0x56a   :  { %9681 = vst [vmem:[#allocation114_spill] sm:$0xff] %v7833_v23  ;;  %2995 = vmatpush.msrb.mxu1 %v7848_v52  ;;  %v7851_v23 = vld [vmem:[#allocation5 + $0x2b8] sm:$0xff] }
 0x56b   :  { %9682 = vst [vmem:[#allocation115_spill] sm:$0xff] %v7836_v0  ;;  %3035 = vmatpush.msrb.mxu3 %v7851_v23  ;;  %v7854_v0 = vld [vmem:[#allocation5] sm:$0xff] }
 0x56c   :  { %9683 = vst [vmem:[#allocation118_spill] sm:$0xff] %v7839_v50  ;;  %2900 = vmatpush.msra.mxu0 %v7854_v0  ;;  %v7857_v50 = vld [vmem:[#allocation5 + $0x8] sm:$0xff] }
 0x56d   :  { %9684 = vst [vmem:[#allocation19_spill] sm:$0xff] %v7842_v14  ;;  %2940 = vmatpush.msra.mxu2 %v7857_v50  ;;  %v7860_v14 = vld [vmem:[#allocation5 + $0x290] sm:$0xff] }
 0x56e   :  { %9685 = vst [vmem:[#allocation18_spill] sm:$0xff] %v7845_v48  ;;  %2996 = vmatpush.msrb.mxu1 %v7860_v14  ;;  %v7863_v48 = vld [vmem:[#allocation5 + $0x298] sm:$0xff] }
 0x56f   :  { %9686 = vst [vmem:[#allocation29_spill] sm:$0xff] %v7848_v52  ;;  %3036 = vmatpush.msrb.mxu3 %v7863_v48  ;;  %v7866_v52 = vld [vmem:[#allocation5 + $0x1f0] sm:$0xff] }
 0x570   :  { %9687 = vst [vmem:[#allocation30_spill] sm:$0xff] %v7851_v23  ;;  %2965 = vmatpush.msrb.mxu0 %v7866_v52  ;;  %v7869_v23 = vld [vmem:[#allocation5 + $0x1f8] sm:$0xff] }
 0x571   :  { %9688 = vst [vmem:[#allocation9_spill] sm:$0xff] %v7854_v0  ;;  %3005 = vmatpush.msrb.mxu2 %v7869_v23  ;;  %v7872_v0 = vld [vmem:[#allocation5 + $0x270] sm:$0xff] }
 0x572   :  { %9689 = vst [vmem:[#allocation10_spill] sm:$0xff] %v7857_v50  ;;  %2997 = vmatpush.msrb.mxu1 %v7872_v0  ;;  %v7875_v50 = vld [vmem:[#allocation5 + $0x278] sm:$0xff] }
 0x573   :  { %9690 = vst [vmem:[#allocation11_spill] sm:$0xff] %v7860_v14  ;;  %3037 = vmatpush.msrb.mxu3 %v7875_v50  ;;  %v7878_v14 = vld [vmem:[#allocation5 + $0x1d0] sm:$0xff] }
 0x574   :  { %9691 = vst [vmem:[#allocation12_spill] sm:$0xff] %v7863_v48  ;;  %2966 = vmatpush.msrb.mxu0 %v7878_v14  ;;  %v7881_v48 = vld [vmem:[#allocation5 + $0x1d8] sm:$0xff] }
 0x575   :  { %9692 = vst [vmem:[#allocation13_spill] sm:$0xff] %v7866_v52  ;;  %3006 = vmatpush.msrb.mxu2 %v7881_v48  ;;  %v7884_v52 = vld [vmem:[#allocation5 + $0x250] sm:$0xff] }
 0x576   :  { %9693 = vst [vmem:[#allocation14_spill] sm:$0xff] %v7869_v23  ;;  %2998 = vmatpush.msrb.mxu1 %v7884_v52  ;;  %v7887_v23 = vld [vmem:[#allocation5 + $0x258] sm:$0xff] }
 0x577   :  { %9694 = vst [vmem:[#allocation15_spill] sm:$0xff] %v7872_v0  ;;  %3038 = vmatpush.msrb.mxu3 %v7887_v23  ;;  %v7890_v0 = vld [vmem:[#allocation5 + $0x1b0] sm:$0xff] }
 0x578   :  { %9695 = vst [vmem:[#allocation16_spill] sm:$0xff] %v7875_v50  ;;  %2967 = vmatpush.msrb.mxu0 %v7890_v0  ;;  %v7893_v50 = vld [vmem:[#allocation5 + $0x1b8] sm:$0xff] }
 0x579   :  { %9696 = vst [vmem:[#allocation17_spill] sm:$0xff] %v7878_v14  ;;  %3007 = vmatpush.msrb.mxu2 %v7893_v50  ;;  %v7896_v14 = vld [vmem:[#allocation5 + $0x230] sm:$0xff] }
 0x57a   :  { %9697 = vst [vmem:[#allocation122_spill] sm:$0xff] %v7881_v48  ;;  %2999 = vmatpush.msrb.mxu1 %v7896_v14  ;;  %v7899_v48 = vld [vmem:[#allocation5 + $0x238] sm:$0xff] }
 0x57b   :  { %9698 = vst [vmem:[#allocation123_spill] sm:$0xff] %v7884_v52  ;;  %3039 = vmatpush.msrb.mxu3 %v7899_v48  ;;  %v7902_v52 = vld [vmem:[#allocation5 + $0x190] sm:$0xff] }
 0x57c   :  { %9699 = vst [vmem:[#allocation124_spill] sm:$0xff] %v7887_v23  ;;  %2968 = vmatpush.msrb.mxu0 %v7902_v52  ;;  %v7905_v23 = vld [vmem:[#allocation5 + $0x198] sm:$0xff] }
 0x57d   :  { %9700 = vst [vmem:[#allocation125_spill] sm:$0xff] %v7890_v0  ;;  %3008 = vmatpush.msrb.mxu2 %v7905_v23  ;;  %v7908_v0 = vld [vmem:[#allocation5 + $0x210] sm:$0xff] }
 0x57e   :  { %9701 = vst [vmem:[#allocation126_spill] sm:$0xff] %v7893_v50  ;;  %3000 = vmatpush.msrb.mxu1 %v7908_v0  ;;  %v7911_v50 = vld [vmem:[#allocation5 + $0x218] sm:$0xff] }
 0x57f   :  { %9702 = vst [vmem:[#allocation127_spill] sm:$0xff] %v7896_v14  ;;  %3040 = vmatpush.msrb.mxu3 %v7911_v50  ;;  %v7914_v14 = vld [vmem:[#allocation5 + $0x170] sm:$0xff] }
 0x580   :  { %9703 = vst [vmem:[#allocation128_spill] sm:$0xff] %v7899_v48  ;;  %2969 = vmatpush.msrb.mxu0 %v7914_v14  ;;  %v7917_v48 = vld [vmem:[#allocation5 + $0x178] sm:$0xff] }
 0x581   :  { %9704 = vst [vmem:[#allocation129_spill] sm:$0xff] %v7902_v52  ;;  %3009 = vmatpush.msrb.mxu2 %v7917_v48  ;;  %v7920_v52 = vld [vmem:[#allocation5 + $0x150] sm:$0xff] }
 0x582   :  { %9705 = vst [vmem:[#allocation130_spill] sm:$0xff] %v7905_v23  ;;  %2970 = vmatpush.msrb.mxu0 %v7920_v52  ;;  %v7923_v23 = vld [vmem:[#allocation5 + $0x158] sm:$0xff] }
 0x583   :  { %9706 = vst [vmem:[#allocation131_spill] sm:$0xff] %v7908_v0  ;;  %3010 = vmatpush.msrb.mxu2 %v7923_v23  ;;  %v7926_v0 = vld [vmem:[#allocation5 + $0x130] sm:$0xff] }
 0x584   :  { %9707 = vst [vmem:[#allocation132_spill] sm:$0xff] %v7911_v50  ;;  %2971 = vmatpush.msrb.mxu0 %v7926_v0  ;;  %v7929_v50 = vld [vmem:[#allocation5 + $0x138] sm:$0xff] }
 0x585   :  { %9708 = vst [vmem:[#allocation133_spill] sm:$0xff] %v7914_v14  ;;  %3011 = vmatpush.msrb.mxu2 %v7929_v50  ;;  %v7932_v14 = vld [vmem:[#allocation5 + $0x110] sm:$0xff] }
 0x586   :  { %9709 = vst [vmem:[#allocation134_spill] sm:$0xff] %v7917_v48  ;;  %2972 = vmatpush.msrb.mxu0 %v7932_v14  ;;  %v7935_v48 = vld [vmem:[#allocation5 + $0x118] sm:$0xff] }
 0x587   :  { %9710 = vst [vmem:[#allocation135_spill] sm:$0xff] %v7920_v52  ;;  %3012 = vmatpush.msrb.mxu2 %v7935_v48  ;;  %v7938_v52 = vld [vmem:[#allocation5 + $0xf0] sm:$0xff] }
 0x588   :  { %9711 = vst [vmem:[#allocation136_spill] sm:$0xff] %v7923_v23  ;;  %2973 = vmatpush.msrb.mxu0 %v7938_v52  ;;  %v7941_v23 = vld [vmem:[#allocation5 + $0xf8] sm:$0xff] }
 0x589   :  { %9712 = vst [vmem:[#allocation137_spill] sm:$0xff] %v7926_v0  ;;  %3013 = vmatpush.msrb.mxu2 %v7941_v23  ;;  %v7944_v0 = vld [vmem:[#allocation5 + $0xd0] sm:$0xff] }
 0x58a   :  { %9713 = vst [vmem:[#allocation138_spill] sm:$0xff] %v7929_v50  ;;  %2974 = vmatpush.msrb.mxu0 %v7944_v0  ;;  %v7947_v50 = vld [vmem:[#allocation5 + $0xd8] sm:$0xff] }
 0x58b   :  { %9714 = vst [vmem:[#allocation139_spill] sm:$0xff] %v7932_v14  ;;  %3014 = vmatpush.msrb.mxu2 %v7947_v50  ;;  %v7950_v14 = vld [vmem:[#allocation5 + $0xb0] sm:$0xff] }
 0x58c   :  { %9715 = vst [vmem:[#allocation140_spill] sm:$0xff] %v7935_v48  ;;  %2975 = vmatpush.msrb.mxu0 %v7950_v14  ;;  %v7953_v48 = vld [vmem:[#allocation5 + $0xb8] sm:$0xff] }
 0x58d   :  { %9716 = vst [vmem:[#allocation141_spill] sm:$0xff] %v7938_v52  ;;  %3015 = vmatpush.msrb.mxu2 %v7953_v48  ;;  %v7956_v52 = vld [vmem:[#allocation5 + $0x90] sm:$0xff] }
 0x58e   :  { %9717 = vst [vmem:[#allocation142_spill] sm:$0xff] %v7941_v23  ;;  %2976 = vmatpush.msrb.mxu0 %v7956_v52  ;;  %v7959_v23 = vld [vmem:[#allocation5 + $0x98] sm:$0xff] }
 0x58f   :  { %9718 = vst [vmem:[#allocation143_spill] sm:$0xff] %v7944_v0  ;;  %3016 = vmatpush.msrb.mxu2 %v7959_v23  ;;  %v7962_v0 = vld [vmem:[#allocation5 + $0x70] sm:$0xff] }
 0x590   :  { %9719 = vst [vmem:[#allocation144_spill] sm:$0xff] %v7947_v50  ;;  %2977 = vmatpush.msrb.mxu0 %v7962_v0  ;;  %v7965_v50 = vld [vmem:[#allocation5 + $0x78] sm:$0xff] }
 0x591   :  { %9720 = vst [vmem:[#allocation145_spill] sm:$0xff] %v7950_v14  ;;  %3017 = vmatpush.msrb.mxu2 %v7965_v50  ;;  %v7968_v14 = vld [vmem:[#allocation5 + $0x50] sm:$0xff] }
 0x592   :  { %9721 = vst [vmem:[#allocation146_spill] sm:$0xff] %v7953_v48  ;;  %2978 = vmatpush.msrb.mxu0 %v7968_v14  ;;  %v7971_v48 = vld [vmem:[#allocation5 + $0x58] sm:$0xff] }
 0x593   :  { %9722 = vst [vmem:[#allocation147_spill] sm:$0xff] %v7956_v52  ;;  %3018 = vmatpush.msrb.mxu2 %v7971_v48  ;;  %v7974_v52 = vld [vmem:[#allocation5 + $0x30] sm:$0xff]  ;;  %v2527_v3 = vpop.f32.mrf.mxu0 }
 0x594   :  { %9723 = vst [vmem:[#allocation148_spill] sm:$0xff] %v7959_v23  ;;  %2979 = vmatpush.msrb.mxu0 %v7974_v52  ;;  %v7977_v23 = vld [vmem:[#allocation5 + $0x38] sm:$0xff] }
 0x595   :  { %9724 = vst [vmem:[#allocation149_spill] sm:$0xff] %v7962_v0  ;;  %3019 = vmatpush.msrb.mxu2 %v7977_v23  ;;  %v7980_v0 = vld [vmem:[#allocation5 + $0x10] sm:$0xff] }
 0x596   :  { %9725 = vst [vmem:[#allocation150_spill] sm:$0xff] %v7965_v50  ;;  %2980 = vmatpush.msrb.mxu0 %v7980_v0  ;;  %v7983_v50 = vld [vmem:[#allocation5 + $0x18] sm:$0xff] }
 0x597   :  { %9726 = vst [vmem:[#allocation151_spill] sm:$0xff] %v7968_v14  ;;  %3020 = vmatpush.msrb.mxu2 %v7983_v50  ;;  %v2547_v14 = vpop.f32.mrf.mxu1 }
 0x598   :  { %9727 = vst [vmem:[#allocation152_spill] sm:$0xff] %v7971_v48  ;;  %v2528_v48 = vadd.f32 %v2527_v3, %v9732_v62 }
 0x599   :  { %9728 = vst [vmem:[#allocation153_spill] sm:$0xff] %v7974_v52  ;;  %v2567_v52 = vpop.f32.mrf.mxu2 }
 0x59a   :  { %9729 = vst [vmem:[#allocation154_spill] sm:$0xff] %v7977_v23  ;;  %v2548_v2 = vadd.f32 %v2547_v14, %v2528_v48  ;;  %v2568_v25 = vadd.f32 %v2567_v52, %v9733_v24  ;;  %v2587_v23 = vpop.f32.mrf.mxu3 }
 0x59b   :  { %9730 = vst [vmem:[#allocation155_spill] sm:$0xff] %v7980_v0 }
 0x59c   :  { %9731 = vst [vmem:[#allocation156_spill] sm:$0xff] %v7983_v50  ;;  %v3568_v15 = vmul.f32 -1.442695, %v2548_v2  ;;  %v2588_v0 = vadd.f32 %v2587_v23, %v2568_v25  ;;  %v2607_v27 = vpop.f32.mrf.mxu0 }
 0x59d   :  { %v2608_v13 = vadd.f32 %v2607_v27, %v9736_v47  ;;  %v9737_v27 = vld [vmem:[#allocation23_spill] sm:$0xff] }
 0x59e   :  { %3773 = vpow2.f32 %v3568_v15  ;;  %v3569_v1 = vmul.f32 -1.442695, %v2588_v0 }
 0x59f   :  { %v2627_v55 = vpop.f32.mrf.mxu1 }
 0x5a0   :  { %v2628_v58 = vadd.f32 %v2627_v55, %v2608_v13  ;;  %3775 = vpow2.f32 %v3569_v1 }
 0x5a2   :  { %v3570_v2 = vmul.f32 -1.442695, %v2628_v58  ;;  %v2647_v24 = vpop.f32.mrf.mxu2  ;;  %v2667_v1 = vpop.f32.mrf.mxu3 }
 0x5a3   :  { %v2648_v47 = vadd.f32 %v2647_v24, %v9737_v27  ;;  %v9739_v27 = vld [vmem:[#allocation104_spill] sm:$0xff] }
 0x5a4   :  { %v3774_v3 = vpop.eup %3773 }
 0x5a5   :  { %v2679_v14 = vadd.f32 1.0, %v3774_v3  ;;  %v2668_v58 = vadd.f32 %v2667_v1, %v2648_v47 }
 0x5a6   :  { %v3776_v15 = vpop.eup %3775 }
 0x5a7   :  { %v2775_v50 = vpop.f32.mrf.mxu1  ;;  %3777 = vrcp.f32 %v2679_v14  ;;  %v2680_v52 = vadd.f32 1.0, %v3776_v15  ;;  %vm2687_vm6 = vweird.f32 %v2679_v14  ;;  %v2691_v51 = vand.u32 2147483647, %v2679_v14 }
 0x5a8   :  { %v2819_v22 = vadd.f32 %v2775_v50, %v191_v43  ;;  %3779 = vpow2.f32 %v3570_v2 }
 0x5a9   :  { %v2708_v62 = vand.u32 2147483648, %v2680_v52  ;;  %vm2702_vm9 = vweird.f32 %v2680_v52  ;;  %vm2692_vm10 = vcmp.eq.f32.partialorder %v2691_v51, 8.507059e+37 }
 0x5aa   :  { %v3572_v48 = vmul.f32 -1.442695, %v2819_v22 }
 0x5ab   :  { %v2709_v20 = vor.u32 1.1754944e-38, %v2708_v62 }
 0x5ac   :  { %3781 = vpow2.f32 %v3572_v48  ;;  %v2693_v48 = vand.u32 2147483648, %v2679_v14 }
 0x5ad   :  { %v3778_v40 = vpop.eup %3777  ;;  %3783 = vrcp.f32 %v2680_v52 }
 0x5ae   :  { %v3780_v25 = vpop.eup %3779  ;;  %v2683_v23 = vmul.f32 %v3778_v40, %v2679_v14  ;;  %vm2688_vm5 = vweird.f32 %v3778_v40 }
 0x5af   :  { %v7992_v0 = vadd.f32 1.0, %v3780_v25  ;;  %v9738_v25 = vld [vmem:[#allocation116_spill] sm:$0xff]  ;;  %vm8000_vm7 = vmor %vm2687_vm6, %vm2688_vm5 }
 0x5b0   :  { %v2684_v43 = vsub.f32 1.0, %v2683_v23  ;;  %v150_v23 = vadd.f32 %v9739_v27, %v9738_v25 }
 0x5b1   :  { %3785 = vrcp.f32 %v7992_v0  ;;  %vm2717_vm14 = vweird.f32 %v7992_v0 }
 0x5b2   :  { %v3782_v13 = vpop.eup %3781  ;;  %v2685_v22 = vmul.f32 %v3778_v40, %v2684_v43  ;;  %3787 = vtanh.f32 %v2668_v58 }
 0x5b3   :  { %v3784_v55 = vpop.eup %3783  ;;  %v7995_v50 = vadd.f32 1.0, %v3782_v13  ;;  %v2706_v13 = vand.u32 2147483647, %v2680_v52 }
 0x5b4   :  { %v2698_v3 = vmul.f32 %v3784_v55, %v2680_v52  ;;  %v2686_v2 = vadd.f32 %v3778_v40, %v2685_v22  ;;  %vm2703_vm8 = vweird.f32 %v3784_v55  ;;  %v2755_v58 = vpop.f32.mrf.mxu0  ;;  %v2694_v22 = vor.u32 1.1754944e-38, %v2693_v48 }
 0x5b5   :  { %3789 = vrcp.f32 %v7995_v50  ;;  %vm2704_vm11 = vmor %vm2702_vm9, %vm2703_vm8  ;;  %vm2707_vm12 = vcmp.eq.f32.partialorder %v2706_v13, 8.507059e+37  ;;  %vm2854_vm2 = vweird.f32 %v7995_v50 }
 0x5b6   :  { %v2699_v15 = vsub.f32 1.0, %v2698_v3  ;;  %v2690_v14 = vsel %vm8000_vm7, %v3778_v40, %v2686_v2  ;;  %v2818_v3 = vadd.f32 %v2755_v58, %v150_v23  ;;  %v9742_v40 = vld [vmem:[#allocation109_spill] sm:$0xff] }
 0x5b7   :  { %v3786_v24 = vpop.eup %3785  ;;  %v2695_v49 = vsel %vm2692_vm10, %v2694_v22, %v2690_v14  ;;  %v232_v2 = vadd.f32 %v9742_v40, %v5196_v41  ;;  %v2815_v14 = vpop.f32.mrf.mxu3 }
 0x5b8   :  { %v2700_v43 = vmul.f32 %v3784_v55, %v2699_v15  ;;  %v2713_v1 = vmul.f32 %v3786_v24, %v7992_v0  ;;  %v3571_v18 = vmul.f32 -1.442695, %v2818_v3  ;;  %v3788_v54 = vpop.eup %3787  ;;  %vm2718_vm13 = vweird.f32 %v3786_v24 }
 0x5b9   :  { %v2729_v48 = vmul.f32 %v3788_v54, %v2695_v49  ;;  %vm2719_vm15 = vmor %vm2717_vm14, %vm2718_vm13 }
 0x5ba   :  { %v2714_v27 = vsub.f32 1.0, %v2713_v1  ;;  %v2701_v25 = vadd.f32 %v3784_v55, %v2700_v43  ;;  %3791 = vpow2.f32 %v3571_v18 }
 0x5bb   :  { %v8007_v15 = vpop.eup %3789  ;;  %v2795_v51 = vpop.f32.mrf.mxu2 }
 0x5bc   :  { %v2705_v63 = vsel %vm2704_vm11, %v3784_v55, %v2701_v25  ;;  %v2715_v57 = vmul.f32 %v3786_v24, %v2714_v27  ;;  %v2820_v62 = vadd.f32 %v2795_v51, %v232_v2  ;;  %v2850_v47 = vmul.f32 %v8007_v15, %v7995_v50 }
 0x5bd   :  { %v2710_v36 = vsel %vm2707_vm12, %v2709_v20, %v2705_v63  ;;  %v2723_v25 = vand.u32 2147483648, %v7992_v0  ;;  %vm2855_vm1 = vweird.f32 %v8007_v15  ;;  %v2860_v51 = vand.u32 2147483648, %v7995_v50 }
 0x5be   :  { %v2728_v52 = vmul.f32 %v2710_v36, %v7417_v11  ;;  %v2716_v55 = vadd.f32 %v3786_v24, %v2715_v57  ;;  %v3573_v63 = vmul.f32 -1.442695, %v2820_v62  ;;  %v2721_v11 = vand.u32 2147483647, %v7992_v0  ;;  %v3593_v57 = vld [vmem:[%s8290_s6 + $0x5] ss:$0 sm:$0xff]  ;;  %vm8041_vm3 = vmor %vm2854_vm2, %vm2855_vm1 }
 0x5bf   :  { %v2851_v54 = vsub.f32 1.0, %v2850_v47  ;;  %v2724_v20 = vor.u32 1.1754944e-38, %v2723_v25  ;;  %v9743_v0 = vld [vmem:[#allocation119_spill] sm:$0xff]  ;;  %v2861_v25 = vor.u32 1.1754944e-38, %v2860_v51  ;;  %v9758_v47 = vld [vmem:[#allocation24_spill] sm:$0xff] }
 0x5c0   :  { %v8012_v23 = vadd.f32 %v2729_v48, %v2728_v52  ;;  %v3792_v18 = vpop.eup %3791  ;;  %v2720_v49 = vsel %vm2719_vm15, %v3786_v24, %v2716_v55  ;;  %vm2722_vm0 = vcmp.eq.f32.partialorder %v2721_v11, 8.507059e+37  ;;  %v273_v3 = vadd.f32 %v9743_v0, %v5253_v59  ;;  %v4444_v0 = vld [vmem:[#allocation3 + $0x110] sm:$0xff] }
 0x5c1   :  { %v2831_v36 = vadd.f32 1.0, %v3792_v18  ;;  %v2725_v43 = vsel %vm2722_vm0, %v2724_v20, %v2720_v49  ;;  %v2852_v1 = vmul.f32 %v8007_v15, %v2851_v54  ;;  %v4448_v51 = vld [vmem:[#allocation3 + $0xd0] sm:$0xff] }
 0x5c2   :  { %3793 = vtanh.f32 %v8012_v23  ;;  %v2821_v2 = vadd.f32 %v2815_v14, %v273_v3  ;;  %v9751_v14 = vld [vmem:[#allocation32_spill] sm:$0xff] }
 0x5c3   :  { %3795 = vpow2.f32 %v3573_v63  ;;  %v2853_v52 = vadd.f32 %v8007_v15, %v2852_v1  ;;  %v2845_v55 = vand.u32 2147483648, %v2831_v36  ;;  %vm2839_vm6 = vweird.f32 %v2831_v36  ;;  %v4442_v1 = vld [vmem:[#allocation3 + $0x130] sm:$0xff]  ;;  %v9753_v3 = vld [vmem:[#allocation72_spill] sm:$0xff] }
 0x5c4   :  { %3797 = vrcp.f32 %v2831_v36 }
 0x5c8   :  { %v3794_v13 = vpop.eup %3793 }
 0x5c9   :  { %v2732_v58 = vmul.f32 %v3794_v13, %v2725_v43  ;;  %v3796_v22 = vpop.eup %3795  ;;  %v4435_v13 = vld [vmem:[#allocation3 + $0x180] sm:$0xff] }
 0x5ca   :  { %v8026_v27 = vadd.f32 1.0, %v3796_v22  ;;  %v3798_v40 = vpop.eup %3797  ;;  %v9750_v43 = vld [vmem:[#allocation33_spill] sm:$0xff] }
 0x5cb   :  { %2921 = vmatmul.f32.vlgmr.msra.gmra.mxu1 %v2732_v58  ;;  %2961 = vmatmul.f32.vlgmr.msra.gmra.mxu3 %v2732_v58  ;;  %v2736_v24 = vmul.f32 %v3593_v57, %v2732_v58  ;;  %v2835_v48 = vmul.f32 %v3798_v40, %v2831_v36  ;;  %vm2840_vm4 = vweird.f32 %v3798_v40  ;;  %v9752_v22 = vld [vmem:[#allocation73_spill] sm:$0xff] }
 0x5cc   :  { %3133 = vmatpush.msra.mxu1 %v7436_v32  ;;  %3173 = vmatpush.msra.mxu3 %v7439_v60  ;;  %3799 = vrcp.f32 %v8026_v27  ;;  %v2858_v32 = vand.u32 2147483647, %v7995_v50  ;;  %vm2841_vm7 = vmor %vm2839_vm6, %vm2840_vm4  ;;  %vm2869_vm10 = vweird.f32 %v8026_v27 }
 0x5cd   :  { %v8037_v62 = vadd.f32 %v2736_v24, %v7454_v12  ;;  %v2836_v60 = vsub.f32 1.0, %v2835_v48  ;;  %3801 = vtanh.f32 %v2821_v2  ;;  %v2843_v12 = vand.u32 2147483647, %v2831_v36  ;;  %v9754_v24 = vld [vmem:[#allocation86_spill] sm:$0xff]  ;;  %v9755_v2 = vld [vmem:[#allocation92_spill] sm:$0xff]  ;;  %v9756_v48 = vld [vmem:[#allocation49_spill] sm:$0xff] }
 0x5ce   :  { %3134 = vmatpush.msra.mxu1 %v7447_v35  ;;  %3174 = vmatpush.msra.mxu3 %v7450_v46  ;;  %v2857_v35 = vsel %vm8041_vm3, %v8007_v15, %v2853_v52  ;;  %vm2859_vm5 = vcmp.eq.f32.partialorder %v2858_v32, 8.507059e+37  ;;  %v4447_v52 = vld [vmem:[#allocation3 + $0xc0] sm:$0xff]  ;;  %v9757_v32 = vld [vmem:[#allocation50_spill] sm:$0xff] }
 0x5cf   :  { %v2837_v46 = vmul.f32 %v3798_v40, %v2836_v60  ;;  %vm2844_vm8 = vcmp.eq.f32.partialorder %v2843_v12, 8.507059e+37  ;;  %v4449_v60 = vld [vmem:[#allocation3 + $0xa0] sm:$0xff]  ;;  %v9760_v12 = vld [vmem:[#allocation28_spill] sm:$0xff] }
 0x5d0   :  { %3135 = vmatpush.msra.mxu1 %v7463_v45  ;;  %3175 = vmatpush.msra.mxu3 %v7466_v17  ;;  %v2862_v45 = vsel %vm2859_vm5, %v2861_v25, %v2857_v35  ;;  %v2846_v17 = vor.u32 1.1754944e-38, %v2845_v55  ;;  %v4450_v55 = vld [vmem:[#allocation3 + $0xb0] sm:$0xff]  ;;  %v9759_v35 = vld [vmem:[#allocation25_spill] sm:$0xff] }
 0x5d1   :  { %v2838_v63 = vadd.f32 %v3798_v40, %v2837_v46  ;;  %v2880_v36 = vmul.f32 %v2862_v45, %v7500_v38  ;;  %v9747_v38 = vld [vmem:[#allocation52_spill] sm:$0xff]  ;;  %v4451_v46 = vld [vmem:[#allocation3 + $0x80] sm:$0xff]  ;;  %v4452_v25 = vld [vmem:[#allocation3 + $0x90] sm:$0xff] }
 0x5d2   :  { %3136 = vmatpush.msra.mxu1 %v7473_v26  ;;  %3176 = vmatpush.msra.mxu3 %v7476_v37  ;;  %v3800_v50 = vpop.eup %3799  ;;  %v9762_v45 = vld [vmem:[#allocation36_spill] sm:$0xff] }
 0x5d3   :  { %3001 = vmatmul.f32.vlgmr.msrb.gmra.mxu1 %v2732_v58  ;;  %3041 = vmatmul.f32.vlgmr.msrb.gmra.mxu3 %v2732_v58  ;;  %v2865_v18 = vmul.f32 %v3800_v50, %v8026_v27  ;;  %v2842_v15 = vsel %vm2841_vm7, %v3798_v40, %v2838_v63  ;;  %v3802_v26 = vpop.eup %3801  ;;  %vm2870_vm9 = vweird.f32 %v3800_v50  ;;  %v4443_v58 = vld [vmem:[#allocation3 + $0x100] sm:$0xff]  ;;  %v4446_v40 = vld [vmem:[#allocation3 + $0xf0] sm:$0xff] }
 0x5d4   :  { %3137 = vmatpush.msra.mxu1 %v7481_v8  ;;  %3177 = vmatpush.msra.mxu3 %v7484_v9  ;;  %v2847_v11 = vsel %vm2844_vm8, %v2846_v17, %v2842_v15  ;;  %vm2871_vm11 = vmor %vm2869_vm10, %vm2870_vm9  ;;  %v4453_v63 = vld [vmem:[#allocation3 + $0x60] sm:$0xff]  ;;  %v4454_v17 = vld [vmem:[#allocation3 + $0x70] sm:$0xff] }
 0x5d5   :  { %v2866_v37 = vsub.f32 1.0, %v2865_v18  ;;  %v2881_v54 = vmul.f32 %v3802_v26, %v2847_v11  ;;  %v9763_v18 = vld [vmem:[#allocation37_spill] sm:$0xff]  ;;  %v9764_v26 = vld [vmem:[#allocation40_spill] sm:$0xff]  ;;  %v4456_v11 = vld [vmem:[#allocation3 + $0x50] sm:$0xff] }
 0x5d6   :  { %3138 = vmatpush.msra.mxu1 %v7487_v5  ;;  %3178 = vmatpush.msra.mxu3 %v7490_v29  ;;  %v2875_v5 = vand.u32 2147483648, %v8026_v27  ;;  %v2873_v29 = vand.u32 2147483647, %v8026_v27  ;;  %v4445_v27 = vld [vmem:[#allocation3 + $0xe0] sm:$0xff] }
 0x5d7   :  { %v2867_v49 = vmul.f32 %v3800_v50, %v2866_v37  ;;  %v8060_v8 = vadd.f32 %v2881_v54, %v2880_v36  ;;  %v4455_v15 = vld [vmem:[#allocation3 + $0x40] sm:$0xff]  ;;  %v9766_v54 = vld [vmem:[#allocation44_spill] sm:$0xff] }
 0x5d8   :  { %3139 = vmatpush.msra.mxu1 %v7494_v30  ;;  %3179 = vmatpush.msra.mxu3 %v7497_v7  ;;  %v9746_v30 = vld [vmem:[#allocation53_spill] sm:$0xff]  ;;  %vm2874_vm12 = vcmp.eq.f32.partialorder %v2873_v29, 8.507059e+37  ;;  %v9768_v29 = vld [vmem:[#allocation48_spill] sm:$0xff] }
 0x5d9   :  { %v2868_v9 = vadd.f32 %v3800_v50, %v2867_v49  ;;  %3803 = vtanh.f32 %v8060_v8  ;;  %v9765_v37 = vld [vmem:[#allocation41_spill] sm:$0xff]  ;;  %v4458_v49 = vld [vmem:[#allocation3 + $0x30] sm:$0xff] }
 0x5da   :  { %3140 = vmatpush.msra.mxu1 %v7502_v56  ;;  %3180 = vmatpush.msra.mxu3 %v7505_v28  ;;  %v2876_v56 = vor.u32 1.1754944e-38, %v2875_v5  ;;  %v4457_v36 = vld [vmem:[#allocation3 + $0x20] sm:$0xff] }
 0x5db   :  { %v2872_v7 = vsel %vm2871_vm11, %v3800_v50, %v2868_v9  ;;  %v9761_v50 = vld [vmem:[#allocation31_spill] sm:$0xff]  ;;  %v9767_v9 = vld [vmem:[#allocation45_spill] sm:$0xff] }
 0x5dc   :  { %3141 = vmatpush.msra.mxu1 %v7512_v39  ;;  %3181 = vmatpush.msra.mxu3 %v9746_v30  ;;  %v2877_v20 = vsel %vm2874_vm12, %v2876_v56, %v2872_v7  ;;  %v4429_v39 = vld [vmem:[#allocation3 + $0x1e0] sm:$0xff]  ;;  %v4460_v30 = vld [vmem:[#allocation3 + $0x10] sm:$0xff] }
 0x5dd   :  { %v4459_v5 = vld [vmem:[#allocation3] sm:$0xff]  ;;  %v9769_v7 = vld [vmem:[#allocation51_spill] sm:$0xff] }
 0x5de   :  { %3142 = vmatpush.msra.mxu1 %v9747_v38  ;;  %3182 = vmatpush.msra.mxu3 %v7521_v34  ;;  %v4430_v34 = vld [vmem:[#allocation3 + $0x1f0] sm:$0xff]  ;;  %v9770_v38 = vld [vmem:[#allocation56_spill] sm:$0xff]  ;;  %v9771_v56 = vld [vmem:[#allocation57_spill] sm:$0xff] }
 0x5df   :  { %v3804_v28 = vpop.eup %3803 }
 0x5e0   :  { %3143 = vmatpush.msra.mxu1 %v7524_v33  ;;  %3183 = vmatpush.msra.mxu3 %v7527_v4  ;;  %v8074_v57 = vmul.f32 %v3804_v28, %v2877_v20  ;;  %v4431_v33 = vld [vmem:[#allocation3 + $0x1c0] sm:$0xff]  ;;  %v4432_v4 = vld [vmem:[#allocation3 + $0x1d0] sm:$0xff]  ;;  %v9772_v28 = vld [vmem:[#allocation60_spill] sm:$0xff] }
 0x5e1   :  { %v9773_v20 = vld [vmem:[#allocation61_spill] sm:$0xff] }
 0x5e2   :  { %3144 = vmatpush.msra.mxu1 %v7532_v21  ;;  %3184 = vmatpush.msra.mxu3 %v7535_v10  ;;  %v4433_v21 = vld [vmem:[#allocation3 + $0x1a0] sm:$0xff]  ;;  %v4434_v10 = vld [vmem:[#allocation3 + $0x1b0] sm:$0xff] }
 0x5e3   :  { %2901 = vmatmul.f32.vlgmr.msra.gmra.mxu0 %v8074_v57  ;;  %2941 = vmatmul.f32.vlgmr.msra.gmra.mxu2 %v8074_v57 }
 0x5e4   :  { %3113 = vmatpush.msra.mxu0 %v4429_v39  ;;  %3153 = vmatpush.msra.mxu2 %v4430_v34  ;;  %v9774_v39 = vld [vmem:[#allocation64_spill] sm:$0xff]  ;;  %v9775_v34 = vld [vmem:[#allocation65_spill] sm:$0xff] }
 0x5e5   :  { %3145 = vmatpush.msra.mxu1 %v7542_v44  ;;  %3185 = vmatpush.msra.mxu3 %v7545_v19  ;;  %v4436_v44 = vld [vmem:[#allocation3 + $0x190] sm:$0xff]  ;;  %v4437_v19 = vld [vmem:[#allocation3 + $0x160] sm:$0xff] }
 0x5e6   :  { %3114 = vmatpush.msra.mxu0 %v4431_v33  ;;  %3154 = vmatpush.msra.mxu2 %v4432_v4  ;;  %v9776_v33 = vld [vmem:[#allocation68_spill] sm:$0xff]  ;;  %v9777_v4 = vld [vmem:[#allocation71_spill] sm:$0xff] }
 0x5e7   :  { %3146 = vmatpush.msra.mxu1 %v7550_v31  ;;  %3186 = vmatpush.msra.mxu3 %v7553_v53  ;;  %v4438_v31 = vld [vmem:[#allocation3 + $0x170] sm:$0xff]  ;;  %v4439_v53 = vld [vmem:[#allocation3 + $0x140] sm:$0xff] }
 0x5e8   :  { %3115 = vmatpush.msra.mxu0 %v4433_v21  ;;  %3155 = vmatpush.msra.mxu2 %v4434_v10  ;;  %v9778_v21 = vld [vmem:[#allocation76_spill] sm:$0xff] }
 0x5e9   :  { %3147 = vmatpush.msra.mxu1 %v7558_v42  ;;  %3187 = vmatpush.msra.mxu3 %v7561_v61  ;;  %v9748_v42 = vld [vmem:[#allocation69_spill] sm:$0xff]  ;;  %v4440_v61 = vld [vmem:[#allocation3 + $0x150] sm:$0xff]  ;;  %v9780_v10 = vld [vmem:[#allocation80_spill] sm:$0xff] }
 0x5ea   :  { %3116 = vmatpush.msra.mxu0 %v4435_v13  ;;  %3156 = vmatpush.msra.mxu2 %v4436_v44  ;;  %v9781_v13 = vld [vmem:[#allocation81_spill] sm:$0xff]  ;;  %v9782_v44 = vld [vmem:[#allocation84_spill] sm:$0xff] }
 0x5eb   :  { %3148 = vmatpush.msra.mxu1 %v7566_v6  ;;  %3188 = vmatpush.msra.mxu3 %v7569_v16  ;;  %v9749_v6 = vld [vmem:[#allocation70_spill] sm:$0xff]  ;;  %v4441_v16 = vld [vmem:[#allocation3 + $0x120] sm:$0xff] }
 0x5ec   :  { %2981 = vmatmul.f32.vlgmr.msrb.gmra.mxu0 %v8074_v57  ;;  %3021 = vmatmul.f32.vlgmr.msrb.gmra.mxu2 %v8074_v57 }
 0x5ed   :  { %3117 = vmatpush.msra.mxu0 %v4437_v19  ;;  %3149 = vmatmul.f32.vlgmr.msra.gmra.mxu1 %v8074_v57  ;;  %v9783_v19 = vld [vmem:[#allocation26_spill] sm:$0xff] }
 0x5ee   :  { %3157 = vmatpush.msra.mxu2 %v4438_v31  ;;  %3189 = vmatmul.f32.vlgmr.msra.gmra.mxu3 %v8074_v57  ;;  %v9784_v31 = vld [vmem:[#allocation27_spill] sm:$0xff] }
 0x5ef   :  { %3118 = vmatpush.msra.mxu0 %v4439_v53  ;;  %3280 = vmatpush.msrb.mxu1 %v9748_v42  ;;  %v9785_v53 = vld [vmem:[#allocation85_spill] sm:$0xff]  ;;  %v9786_v42 = vld [vmem:[#allocation34_spill] sm:$0xff] }
 0x5f0   :  { %3158 = vmatpush.msra.mxu2 %v4440_v61  ;;  %3320 = vmatpush.msrb.mxu3 %v9749_v6  ;;  %v9787_v61 = vld [vmem:[#allocation35_spill] sm:$0xff] }
 0x5f1   :  { %3119 = vmatpush.msra.mxu0 %v4441_v16  ;;  %3281 = vmatpush.msrb.mxu1 %v9750_v43  ;;  %v9788_v6 = vld [vmem:[#allocation91_spill] sm:$0xff]  ;;  %v9789_v16 = vld [vmem:[#allocation38_spill] sm:$0xff] }
 0x5f2   :  { %3159 = vmatpush.msra.mxu2 %v4442_v1  ;;  %3321 = vmatpush.msrb.mxu3 %v9751_v14  ;;  %v9790_v43 = vld [vmem:[#allocation95_spill] sm:$0xff]  ;;  %v9792_v14 = vld [vmem:[#allocation96_spill] sm:$0xff] }
 0x5f3   :  { %3120 = vmatpush.msra.mxu0 %v4443_v58  ;;  %3282 = vmatpush.msrb.mxu1 %v9752_v22  ;;  %v9791_v1 = vld [vmem:[#allocation39_spill] sm:$0xff]  ;;  %v9793_v58 = vld [vmem:[#allocation42_spill] sm:$0xff] }
 0x5f4   :  { %3160 = vmatpush.msra.mxu2 %v4444_v0  ;;  %3322 = vmatpush.msrb.mxu3 %v9753_v3  ;;  %v9794_v22 = vld [vmem:[#allocation99_spill] sm:$0xff]  ;;  %v9796_v3 = vld [vmem:[#allocation100_spill] sm:$0xff] }
 0x5f5   :  { %3121 = vmatpush.msra.mxu0 %v4445_v27  ;;  %3283 = vmatpush.msrb.mxu1 %v9754_v24  ;;  %v9795_v0 = vld [vmem:[#allocation43_spill] sm:$0xff]  ;;  %v9797_v27 = vld [vmem:[#allocation46_spill] sm:$0xff] }
 0x5f6   :  { %3161 = vmatpush.msra.mxu2 %v4446_v40  ;;  %3323 = vmatpush.msrb.mxu3 %v9755_v2  ;;  %v9798_v24 = vld [vmem:[#allocation47_spill] sm:$0xff]  ;;  %v9799_v40 = vld [vmem:[#allocation54_spill] sm:$0xff] }
 0x5f7   :  { %3122 = vmatpush.msra.mxu0 %v4447_v52  ;;  %3284 = vmatpush.msrb.mxu1 %v9756_v48  ;;  %v9800_v2 = vld [vmem:[#allocation55_spill] sm:$0xff]  ;;  %v9801_v52 = vld [vmem:[#allocation58_spill] sm:$0xff] }
 0x5f8   :  { %3162 = vmatpush.msra.mxu2 %v4448_v51  ;;  %3324 = vmatpush.msrb.mxu3 %v9757_v32  ;;  %v9802_v48 = vld [vmem:[#allocation59_spill] sm:$0xff]  ;;  %v9803_v51 = vld [vmem:[#allocation62_spill] sm:$0xff] }
 0x5f9   :  { %3123 = vmatpush.msra.mxu0 %v4449_v60  ;;  %3285 = vmatpush.msrb.mxu1 %v9758_v47  ;;  %v9804_v32 = vld [vmem:[#allocation63_spill] sm:$0xff]  ;;  %v9805_v60 = vld [vmem:[#allocation66_spill] sm:$0xff] }
 0x5fa   :  { %3163 = vmatpush.msra.mxu2 %v4450_v55  ;;  %3325 = vmatpush.msrb.mxu3 %v9759_v35  ;;  %v9806_v47 = vld [vmem:[#allocation67_spill] sm:$0xff]  ;;  %v9807_v55 = vld [vmem:[#allocation74_spill] sm:$0xff] }
 0x5fb   :  { %3124 = vmatpush.msra.mxu0 %v4451_v46  ;;  %3286 = vmatpush.msrb.mxu1 %v9760_v12  ;;  %v9808_v35 = vld [vmem:[#allocation75_spill] sm:$0xff]  ;;  %v9809_v46 = vld [vmem:[#allocation78_spill] sm:$0xff] }
 0x5fc   :  { %3164 = vmatpush.msra.mxu2 %v4452_v25  ;;  %3326 = vmatpush.msrb.mxu3 %v9761_v50  ;;  %v9810_v12 = vld [vmem:[#allocation79_spill] sm:$0xff]  ;;  %v9811_v25 = vld [vmem:[#allocation82_spill] sm:$0xff] }
 0x5fd   :  { %3125 = vmatpush.msra.mxu0 %v4453_v63  ;;  %3287 = vmatpush.msrb.mxu1 %v9762_v45  ;;  %v9812_v50 = vld [vmem:[#allocation83_spill] sm:$0xff]  ;;  %v9814_v45 = vld [vmem:[#allocation88_spill] sm:$0xff] }
 0x5fe   :  { %3165 = vmatpush.msra.mxu2 %v4454_v17  ;;  %3327 = vmatpush.msrb.mxu3 %v9763_v18  ;;  %v9813_v63 = vld [vmem:[#allocation87_spill] sm:$0xff]  ;;  %v9815_v17 = vld [vmem:[#allocation93_spill] sm:$0xff]  ;;  %v9816_v18 = vld [vmem:[#allocation94_spill] sm:$0xff] }
 0x5ff   :  { %3126 = vmatpush.msra.mxu0 %v4455_v15  ;;  %3288 = vmatpush.msrb.mxu1 %v9764_v26  ;;  %v9817_v15 = vld [vmem:[#allocation97_spill] sm:$0xff]  ;;  %v9818_v26 = vld [vmem:[#allocation98_spill] sm:$0xff] }
 0x600   :  { %3166 = vmatpush.msra.mxu2 %v4456_v11  ;;  %3328 = vmatpush.msrb.mxu3 %v9765_v37  ;;  %v9819_v11 = vld [vmem:[#allocation101_spill] sm:$0xff]  ;;  %v9820_v37 = vld [vmem:[#allocation102_spill] sm:$0xff] }
 0x601   :  { %3127 = vmatpush.msra.mxu0 %v4457_v36  ;;  %3289 = vmatpush.msrb.mxu1 %v9766_v54  ;;  %v9821_v36 = vld [vmem:[#allocation107_spill] sm:$0xff]  ;;  %v9822_v54 = vld [vmem:[#allocation108_spill] sm:$0xff] }
 0x602   :  { %3167 = vmatpush.msra.mxu2 %v4458_v49  ;;  %3329 = vmatpush.msrb.mxu3 %v9767_v9  ;;  %v9823_v49 = vld [vmem:[#allocation112_spill] sm:$0xff]  ;;  %v9824_v9 = vld [vmem:[#allocation113_spill] sm:$0xff] }
 0x603   :  { %3128 = vmatpush.msra.mxu0 %v4459_v5  ;;  %3290 = vmatpush.msrb.mxu1 %v9768_v29  ;;  %v9825_v5 = vld [vmem:[#allocation114_spill] sm:$0xff]  ;;  %v9826_v29 = vld [vmem:[#allocation115_spill] sm:$0xff] }
 0x604   :  { %3168 = vmatpush.msra.mxu2 %v4460_v30  ;;  %3129 = vmatmul.f32.vlgmr.msra.gmra.mxu0 %v8074_v57  ;;  %v9827_v30 = vld [vmem:[#allocation118_spill] sm:$0xff] }
 0x605   :  { %3169 = vmatmul.f32.vlgmr.msra.gmra.mxu2 %v8074_v57  ;;  %3330 = vmatpush.msrb.mxu3 %v9769_v7  ;;  %v9779_v57 = vld [vmem:[#allocation77_spill] sm:$0xff]  ;;  %v9828_v7 = vld [vmem:[#allocation19_spill] sm:$0xff] }
 0x606   :  { %3291 = vmatpush.msrb.mxu1 %v9770_v38  ;;  %3260 = vmatpush.msrb.mxu0 %v9771_v56  ;;  %v9829_v38 = vld [vmem:[#allocation18_spill] sm:$0xff]  ;;  %v9830_v56 = vld [vmem:[#allocation29_spill] sm:$0xff] }
 0x607   :  { %3331 = vmatpush.msrb.mxu3 %v9772_v28  ;;  %3300 = vmatpush.msrb.mxu2 %v9773_v20  ;;  %v9831_v28 = vld [vmem:[#allocation30_spill] sm:$0xff]  ;;  %v9832_v20 = vld [vmem:[#allocation9_spill] sm:$0xff] }
 0x608   :  { %3292 = vmatpush.msrb.mxu1 %v9774_v39  ;;  %3261 = vmatpush.msrb.mxu0 %v9775_v34  ;;  %v9833_v39 = vld [vmem:[#allocation10_spill] sm:$0xff]  ;;  %v9834_v34 = vld [vmem:[#allocation11_spill] sm:$0xff] }
 0x609   :  { %3332 = vmatpush.msrb.mxu3 %v9776_v33  ;;  %3301 = vmatpush.msrb.mxu2 %v9777_v4  ;;  %v9835_v33 = vld [vmem:[#allocation12_spill] sm:$0xff]  ;;  %v9836_v4 = vld [vmem:[#allocation13_spill] sm:$0xff] }
 0x60a   :  { %3293 = vmatpush.msrb.mxu1 %v9778_v21  ;;  %3262 = vmatpush.msrb.mxu0 %v9779_v57  ;;  %v9837_v21 = vld [vmem:[#allocation14_spill] sm:$0xff]  ;;  %v9838_v57 = vld [vmem:[#allocation15_spill] sm:$0xff] }
 0x60b   :  { %3333 = vmatpush.msrb.mxu3 %v9780_v10  ;;  %3302 = vmatpush.msrb.mxu2 %v9781_v13  ;;  %v9839_v10 = vld [vmem:[#allocation16_spill] sm:$0xff]  ;;  %v9840_v13 = vld [vmem:[#allocation17_spill] sm:$0xff] }
 0x60c   :  { %3294 = vmatpush.msrb.mxu1 %v9782_v44  ;;  %3263 = vmatpush.msrb.mxu0 %v9783_v19  ;;  %v9841_v44 = vld [vmem:[#allocation122_spill] sm:$0xff]  ;;  %v9842_v19 = vld [vmem:[#allocation123_spill] sm:$0xff] }
 0x60d   :  { %3334 = vmatpush.msrb.mxu3 %v9784_v31  ;;  %3303 = vmatpush.msrb.mxu2 %v9785_v53  ;;  %v9843_v31 = vld [vmem:[#allocation124_spill] sm:$0xff]  ;;  %v9844_v53 = vld [vmem:[#allocation125_spill] sm:$0xff] }
 0x60e   :  { %3295 = vmatpush.msrb.mxu1 %v9786_v42  ;;  %3264 = vmatpush.msrb.mxu0 %v9787_v61  ;;  %v9845_v42 = vld [vmem:[#allocation126_spill] sm:$0xff]  ;;  %v9846_v61 = vld [vmem:[#allocation127_spill] sm:$0xff] }
 0x60f   :  { %3335 = vmatpush.msrb.mxu3 %v9788_v6  ;;  %3304 = vmatpush.msrb.mxu2 %v9789_v16  ;;  %v9847_v6 = vld [vmem:[#allocation128_spill] sm:$0xff]  ;;  %v9848_v16 = vld [vmem:[#allocation129_spill] sm:$0xff] }
 0x610   :  { %3360 = vmatpush.msra.mxu1 %v9790_v43  ;;  %3265 = vmatpush.msrb.mxu0 %v9792_v14  ;;  %v9849_v43 = vld [vmem:[#allocation130_spill] sm:$0xff]  ;;  %v9851_v14 = vld [vmem:[#allocation132_spill] sm:$0xff] }
 0x611   :  { %3400 = vmatpush.msra.mxu3 %v9791_v1  ;;  %3305 = vmatpush.msrb.mxu2 %v9793_v58  ;;  %v9850_v1 = vld [vmem:[#allocation131_spill] sm:$0xff]  ;;  %v9852_v58 = vld [vmem:[#allocation133_spill] sm:$0xff] }
 0x612   :  { %3361 = vmatpush.msra.mxu1 %v9794_v22  ;;  %3266 = vmatpush.msrb.mxu0 %v9796_v3  ;;  %v9853_v22 = vld [vmem:[#allocation134_spill] sm:$0xff]  ;;  %v9855_v3 = vld [vmem:[#allocation136_spill] sm:$0xff] }
 0x613   :  { %3401 = vmatpush.msra.mxu3 %v9795_v0  ;;  %3306 = vmatpush.msrb.mxu2 %v9797_v27  ;;  %v9854_v0 = vld [vmem:[#allocation135_spill] sm:$0xff]  ;;  %v9856_v27 = vld [vmem:[#allocation137_spill] sm:$0xff] }
 0x614   :  { %3362 = vmatpush.msra.mxu1 %v9798_v24  ;;  %3267 = vmatpush.msrb.mxu0 %v9800_v2  ;;  %v9857_v24 = vld [vmem:[#allocation138_spill] sm:$0xff]  ;;  %v9859_v2 = vld [vmem:[#allocation140_spill] sm:$0xff] }
 0x615   :  { %3402 = vmatpush.msra.mxu3 %v9799_v40  ;;  %3307 = vmatpush.msrb.mxu2 %v9801_v52  ;;  %v9858_v40 = vld [vmem:[#allocation139_spill] sm:$0xff]  ;;  %v9860_v52 = vld [vmem:[#allocation141_spill] sm:$0xff] }
 0x616   :  { %3363 = vmatpush.msra.mxu1 %v9802_v48  ;;  %3268 = vmatpush.msrb.mxu0 %v9804_v32  ;;  %v9861_v48 = vld [vmem:[#allocation142_spill] sm:$0xff]  ;;  %v9863_v32 = vld [vmem:[#allocation144_spill] sm:$0xff] }
 0x617   :  { %3403 = vmatpush.msra.mxu3 %v9803_v51  ;;  %3308 = vmatpush.msrb.mxu2 %v9805_v60  ;;  %v9862_v51 = vld [vmem:[#allocation143_spill] sm:$0xff]  ;;  %v9864_v60 = vld [vmem:[#allocation145_spill] sm:$0xff] }
 0x618   :  { %3364 = vmatpush.msra.mxu1 %v9806_v47  ;;  %3269 = vmatpush.msrb.mxu0 %v9808_v35  ;;  %v9865_v47 = vld [vmem:[#allocation146_spill] sm:$0xff]  ;;  %v9867_v35 = vld [vmem:[#allocation148_spill] sm:$0xff] }
 0x619   :  { %3404 = vmatpush.msra.mxu3 %v9807_v55  ;;  %3309 = vmatpush.msrb.mxu2 %v9809_v46  ;;  %v9866_v55 = vld [vmem:[#allocation147_spill] sm:$0xff]  ;;  %v9868_v46 = vld [vmem:[#allocation149_spill] sm:$0xff] }
 0x61a   :  { %3365 = vmatpush.msra.mxu1 %v9810_v12  ;;  %3270 = vmatpush.msrb.mxu0 %v9812_v50  ;;  %v9869_v12 = vld [vmem:[#allocation150_spill] sm:$0xff]  ;;  %v9871_v50 = vld [vmem:[#allocation152_spill] sm:$0xff] }
 0x61b   :  { %3405 = vmatpush.msra.mxu3 %v9811_v25  ;;  %3310 = vmatpush.msrb.mxu2 %v9813_v63  ;;  %v9870_v25 = vld [vmem:[#allocation151_spill] sm:$0xff]  ;;  %v9872_v63 = vld [vmem:[#allocation153_spill] sm:$0xff] }
 0x61c   :  { %3366 = vmatpush.msra.mxu1 %v9814_v45  ;;  %3271 = vmatpush.msrb.mxu0 %v9816_v18  ;;  %v9873_v45 = vld [vmem:[#allocation154_spill] sm:$0xff]  ;;  %v9875_v18 = vld [vmem:[#allocation156_spill] sm:$0xff] }
 0x61d   :  { %3406 = vmatpush.msra.mxu3 %v9815_v17  ;;  %3311 = vmatpush.msrb.mxu2 %v9817_v15  ;;  %v9874_v17 = vld [vmem:[#allocation155_spill] sm:$0xff] }
 0x61e   :  { %3367 = vmatpush.msra.mxu1 %v9818_v26  ;;  %3272 = vmatpush.msrb.mxu0 %v9820_v37 }
 0x61f   :  { %3407 = vmatpush.msra.mxu3 %v9819_v11  ;;  %3312 = vmatpush.msrb.mxu2 %v9821_v36  ;;  %v9876_v11 = vld [vmem:[#allocation20_spill] sm:$0xff] }
 0x620   :  { %3368 = vmatpush.msra.mxu1 %v9822_v54  ;;  %3273 = vmatpush.msrb.mxu0 %v9824_v9 }
 0x621   :  { %3408 = vmatpush.msra.mxu3 %v9823_v49  ;;  %3313 = vmatpush.msrb.mxu2 %v9825_v5  ;;  %v9877_v5 = vld [vmem:[#allocation21_spill] sm:$0xff] }
 0x622   :  { %3369 = vmatpush.msra.mxu1 %v9826_v29  ;;  %3274 = vmatpush.msrb.mxu0 %v9828_v7  ;;  %v9878_v7 = vld [vmem:[#allocation117_spill] sm:$0xff] }
 0x623   :  { %3409 = vmatpush.msra.mxu3 %v9827_v30  ;;  %3314 = vmatpush.msrb.mxu2 %v9829_v38  ;;  %v9879_v38 = vld [vmem:[#allocation111_spill] sm:$0xff] }
 0x624   :  { %3370 = vmatpush.msra.mxu1 %v9830_v56  ;;  %3275 = vmatpush.msrb.mxu0 %v9832_v20  ;;  %v194_v56 = vadd.f32 %v9879_v38, %v9878_v7 }
 0x625   :  { %3410 = vmatpush.msra.mxu3 %v9831_v28  ;;  %3315 = vmatpush.msrb.mxu2 %v9833_v39  ;;  %v9880_v39 = vld [vmem:[#allocation22_spill] sm:$0xff] }
 0x626   :  { %3371 = vmatpush.msra.mxu1 %v9834_v34  ;;  %3340 = vmatpush.msra.mxu0 %v9836_v4 }
 0x627   :  { %3411 = vmatpush.msra.mxu3 %v9835_v33  ;;  %3380 = vmatpush.msra.mxu2 %v9837_v21 }
 0x628   :  { %3372 = vmatpush.msra.mxu1 %v9838_v57  ;;  %3341 = vmatpush.msra.mxu0 %v9840_v13 }
 0x629   :  { %3412 = vmatpush.msra.mxu3 %v9839_v10  ;;  %3381 = vmatpush.msra.mxu2 %v9841_v44 }
 0x62a   :  { %3373 = vmatpush.msra.mxu1 %v9842_v19  ;;  %3342 = vmatpush.msra.mxu0 %v9844_v53 }
 0x62b   :  { %3413 = vmatpush.msra.mxu3 %v9843_v31  ;;  %3382 = vmatpush.msra.mxu2 %v9845_v42 }
 0x62c   :  { %3374 = vmatpush.msra.mxu1 %v9846_v61  ;;  %3343 = vmatpush.msra.mxu0 %v9848_v16 }
 0x62d   :  { %3414 = vmatpush.msra.mxu3 %v9847_v6  ;;  %3383 = vmatpush.msra.mxu2 %v9849_v43  ;;  %v9881_v43 = vld [vmem:[#allocation23_spill] sm:$0xff] }
 0x62e   :  { %3375 = vmatpush.msra.mxu1 %v9850_v1  ;;  %3344 = vmatpush.msra.mxu0 %v9852_v58 }
 0x62f   :  { %3415 = vmatpush.msra.mxu3 %v9851_v14  ;;  %3384 = vmatpush.msra.mxu2 %v9853_v22 }
 0x630   :  { %3345 = vmatpush.msra.mxu0 %v9854_v0 }
 0x631   :  { %3385 = vmatpush.msra.mxu2 %v9855_v3 }
 0x632   :  { %3346 = vmatpush.msra.mxu0 %v9856_v27 }
 0x633   :  { %3386 = vmatpush.msra.mxu2 %v9857_v24 }
 0x634   :  { %3347 = vmatpush.msra.mxu0 %v9858_v40 }
 0x635   :  { %3387 = vmatpush.msra.mxu2 %v9859_v2 }
 0x636   :  { %3348 = vmatpush.msra.mxu0 %v9860_v52 }
 0x637   :  { %3388 = vmatpush.msra.mxu2 %v9861_v48 }
 0x638   :  { %3349 = vmatpush.msra.mxu0 %v9862_v51 }
 0x639   :  { %3389 = vmatpush.msra.mxu2 %v9863_v32 }
 0x63a   :  { %3350 = vmatpush.msra.mxu0 %v9864_v60 }
 0x63b   :  { %3390 = vmatpush.msra.mxu2 %v9865_v47  ;;  %v9882_v47 = vld [vmem:[#allocation116_spill] sm:$0xff] }
 0x63c   :  { %3351 = vmatpush.msra.mxu0 %v9866_v55  ;;  %v9883_v55 = vld [vmem:[#allocation110_spill] sm:$0xff] }
 0x63d   :  { %3391 = vmatpush.msra.mxu2 %v9867_v35  ;;  %v153_v35 = vadd.f32 %v9883_v55, %v9882_v47 }
 0x63e   :  { %3352 = vmatpush.msra.mxu0 %v9868_v46 }
 0x63f   :  { %3392 = vmatpush.msra.mxu2 %v9869_v12 }
 0x640   :  { %3353 = vmatpush.msra.mxu0 %v9870_v25 }
 0x641   :  { %3393 = vmatpush.msra.mxu2 %v9871_v50 }
 0x642   :  { %3354 = vmatpush.msra.mxu0 %v9872_v63 }
 0x643   :  { %3394 = vmatpush.msra.mxu2 %v9873_v45 }
 0x644   :  { %3355 = vmatpush.msra.mxu0 %v9874_v17 }
 0x645   :  { %3395 = vmatpush.msra.mxu2 %v9875_v18 }
 0x648   :  { %v2922_v15 = vpop.f32.mrf.mxu1 }
 0x64e   :  { %v2962_v30 = vpop.f32.mrf.mxu3 }
 0x650   :  { %v3002_v36 = vpop.f32.mrf.mxu1 }
 0x656   :  { %v3042_v0 = vpop.f32.mrf.mxu3 }
 0x660   :  { %v2902_v26 = vpop.f32.mrf.mxu0 }
 0x661   :  { %v2903_v37 = vadd.f32 %v2902_v26, %v9876_v11 }
 0x663   :  { %v2923_v54 = vadd.f32 %v2922_v15, %v2903_v37 }
 0x665   :  { %v3574_v49 = vmul.f32 -1.442695, %v2923_v54 }
 0x666   :  { %v2942_v9 = vpop.f32.mrf.mxu2 }
 0x667   :  { %3805 = vpow2.f32 %v3574_v49  ;;  %v2943_v29 = vadd.f32 %v2942_v9, %v9877_v5 }
 0x669   :  { %v2963_v28 = vadd.f32 %v2962_v30, %v2943_v29  ;;  %v2982_v20 = vpop.f32.mrf.mxu0 }
 0x66a   :  { %v2983_v34 = vadd.f32 %v2982_v20, %v9880_v39  ;;  %v3150_v33 = vpop.f32.mrf.mxu1 }
 0x66b   :  { %v3575_v4 = vmul.f32 -1.442695, %v2963_v28  ;;  %v3194_v21 = vadd.f32 %v3150_v33, %v194_v56  ;;  %v9886_v56 = vld [vmem:[#allocation120_spill] sm:$0xff] }
 0x66c   :  { %v3003_v57 = vadd.f32 %v3002_v36, %v2983_v34  ;;  %v235_v28 = vadd.f32 %v9886_v56, %v5196_v41 }
 0x66d   :  { %v3806_v10 = vpop.eup %3805  ;;  %3807 = vpow2.f32 %v3575_v4  ;;  %v3578_v19 = vmul.f32 -1.442695, %v3194_v21 }
 0x66e   :  { %v3054_v13 = vadd.f32 1.0, %v3806_v10  ;;  %v3576_v44 = vmul.f32 -1.442695, %v3003_v57 }
 0x66f   :  { %v3022_v42 = vpop.f32.mrf.mxu2 }
 0x670   :  { %3809 = vrcp.f32 %v3054_v13  ;;  %v3023_v1 = vadd.f32 %v3022_v42, %v9881_v43  ;;  %v3068_v48 = vand.u32 2147483648, %v3054_v13  ;;  %vm3062_vm14 = vweird.f32 %v3054_v13 }
 0x671   :  { %3811 = vpow2.f32 %v3576_v44  ;;  %v3066_v32 = vand.u32 2147483647, %v3054_v13 }
 0x672   :  { %3813 = vpow2.f32 %v3578_v19  ;;  %v3043_v3 = vadd.f32 %v3042_v0, %v3023_v1  ;;  %v3069_v18 = vor.u32 1.1754944e-38, %v3068_v48 }
 0x673   :  { %v3808_v31 = vpop.eup %3807  ;;  %vm3067_vm2 = vcmp.eq.f32.partialorder %v3066_v32, 8.507059e+37 }
 0x674   :  { %v3055_v53 = vadd.f32 1.0, %v3808_v31 }
 0x676   :  { %v3810_v61 = vpop.eup %3809  ;;  %3815 = vrcp.f32 %v3055_v53  ;;  %v3083_v46 = vand.u32 2147483648, %v3055_v53  ;;  %v3081_v25 = vand.u32 2147483647, %v3055_v53  ;;  %vm3077_vm1 = vweird.f32 %v3055_v53 }
 0x677   :  { %v3812_v6 = vpop.eup %3811  ;;  %v3058_v16 = vmul.f32 %v3810_v61, %v3054_v13  ;;  %vm3063_vm13 = vweird.f32 %v3810_v61 }
 0x678   :  { %v8228_v14 = vadd.f32 1.0, %v3812_v6  ;;  %v3814_v58 = vpop.eup %3813  ;;  %vm8236_vm15 = vmor %vm3062_vm14, %vm3063_vm13  ;;  %v3084_v36 = vor.u32 1.1754944e-38, %v3083_v46  ;;  %vm3082_vm4 = vcmp.eq.f32.partialorder %v3081_v25, 8.507059e+37 }
 0x679   :  { %v3059_v22 = vsub.f32 1.0, %v3058_v16  ;;  %v8231_v40 = vadd.f32 1.0, %v3814_v58  ;;  %v3190_v58 = vpop.f32.mrf.mxu3 }
 0x67a   :  { %3817 = vrcp.f32 %v8228_v14  ;;  %v3098_v13 = vand.u32 2147483648, %v8228_v14  ;;  %vm3092_vm6 = vweird.f32 %v8228_v14  ;;  %v3096_v41 = vand.u32 2147483647, %v8228_v14 }
 0x67b   :  { %v3060_v27 = vmul.f32 %v3810_v61, %v3059_v22  ;;  %3819 = vtanh.f32 %v3043_v3  ;;  %v3235_v32 = vand.u32 2147483648, %v8231_v40  ;;  %vm3229_vm10 = vweird.f32 %v8231_v40 }
 0x67c   :  { %v3816_v24 = vpop.eup %3815  ;;  %3821 = vrcp.f32 %v8231_v40  ;;  %v3099_v42 = vor.u32 1.1754944e-38, %v3098_v13  ;;  %vm3097_vm8 = vcmp.eq.f32.partialorder %v3096_v41, 8.507059e+37 }
 0x67d   :  { %v3073_v2 = vmul.f32 %v3816_v24, %v3055_v53  ;;  %v3061_v52 = vadd.f32 %v3810_v61, %v3060_v27  ;;  %vm3078_vm0 = vweird.f32 %v3816_v24  ;;  %v3236_v25 = vor.u32 1.1754944e-38, %v3235_v32 }
 0x67e   :  { %vm3079_vm3 = vmor %vm3077_vm1, %vm3078_vm0 }
 0x67f   :  { %v3074_v51 = vsub.f32 1.0, %v3073_v2  ;;  %v3065_v45 = vsel %vm8236_vm15, %v3810_v61, %v3061_v52  ;;  %v3594_v61 = vld [vmem:[%s8290_s6 + $0x6] ss:$0 sm:$0xff] }
 0x680   :  { %v3818_v60 = vpop.eup %3817  ;;  %v3070_v54 = vsel %vm3067_vm2, %v3069_v18, %v3065_v45 }
 0x681   :  { %v3075_v50 = vmul.f32 %v3816_v24, %v3074_v51  ;;  %v3088_v63 = vmul.f32 %v3818_v60, %v8228_v14  ;;  %v3130_v17 = vpop.f32.mrf.mxu0  ;;  %v3820_v9 = vpop.eup %3819  ;;  %vm3093_vm5 = vweird.f32 %v3818_v60  ;;  %v9887_v14 = vld [vmem:[#allocation121_spill] sm:$0xff] }
 0x682   :  { %v3193_v15 = vadd.f32 %v3130_v17, %v153_v35  ;;  %v8243_v30 = vpop.eup %3821  ;;  %v3104_v34 = vmul.f32 %v3820_v9, %v3070_v54  ;;  %vm3094_vm7 = vmor %vm3092_vm6, %vm3093_vm5  ;;  %v276_v3 = vadd.f32 %v9887_v14, %v5253_v59  ;;  %v3233_v59 = vand.u32 2147483647, %v8231_v40 }
 0x683   :  { %v3089_v26 = vsub.f32 1.0, %v3088_v63  ;;  %v3076_v37 = vadd.f32 %v3816_v24, %v3075_v50  ;;  %v3225_v57 = vmul.f32 %v8243_v30, %v8231_v40  ;;  %vm3230_vm9 = vweird.f32 %v8243_v30 }
 0x684   :  { %v3577_v49 = vmul.f32 -1.442695, %v3193_v15  ;;  %v3196_v52 = vadd.f32 %v3190_v58, %v276_v3  ;;  %vm3231_vm11 = vmor %vm3229_vm10, %vm3230_vm9  ;;  %vm3234_vm13 = vcmp.eq.f32.partialorder %v3233_v59, 8.507059e+37 }
 0x685   :  { %v3080_v29 = vsel %vm3079_vm3, %v3816_v24, %v3076_v37  ;;  %v3090_v7 = vmul.f32 %v3818_v60, %v3089_v26  ;;  %v3226_v31 = vsub.f32 1.0, %v3225_v57 }
 0x686   :  { %v3085_v38 = vsel %vm3082_vm4, %v3084_v36, %v3080_v29  ;;  %3823 = vpow2.f32 %v3577_v49 }
 0x687   :  { %v3103_v20 = vmul.f32 %v3085_v38, %v8012_v23  ;;  %v3091_v10 = vadd.f32 %v3818_v60, %v3090_v7  ;;  %v3227_v1 = vmul.f32 %v8243_v30, %v3226_v31 }
 0x688   :  { %v3170_v33 = vpop.f32.mrf.mxu2 }
 0x689   :  { %v8248_v4 = vadd.f32 %v3104_v34, %v3103_v20  ;;  %v3195_v21 = vadd.f32 %v3170_v33, %v235_v28  ;;  %v3095_v53 = vsel %vm3094_vm7, %v3818_v60, %v3091_v10  ;;  %v3228_v48 = vadd.f32 %v8243_v30, %v3227_v1 }
 0x68a   :  { %v3100_v16 = vsel %vm3097_vm8, %v3099_v42, %v3095_v53 }
 0x68b   :  { %3825 = vtanh.f32 %v8248_v4  ;;  %v3579_v44 = vmul.f32 -1.442695, %v3195_v21  ;;  %v3232_v35 = vsel %vm3231_vm11, %v8243_v30, %v3228_v48 }
 0x68c   :  { %v3824_v19 = vpop.eup %3823 }
 0x68d   :  { %v3206_v23 = vadd.f32 1.0, %v3824_v19  ;;  %3827 = vpow2.f32 %v3579_v44 }
 0x68f   :  { %3829 = vrcp.f32 %v3206_v23  ;;  %v3220_v55 = vand.u32 2147483648, %v3206_v23  ;;  %v3218_v12 = vand.u32 2147483647, %v3206_v23  ;;  %vm3214_vm14 = vweird.f32 %v3206_v23 }
 0x691   :  { %v3826_v6 = vpop.eup %3825  ;;  %v3221_v45 = vor.u32 1.1754944e-38, %v3220_v55  ;;  %vm3219_vm0 = vcmp.eq.f32.partialorder %v3218_v12, 8.507059e+37 }
 0x692   :  { %v3107_v22 = vmul.f32 %v3826_v6, %v3100_v16 }
 0x693   :  { %v3828_v0 = vpop.eup %3827 }
 0x694   :  { %v3208_v27 = vadd.f32 1.0, %v3828_v0  ;;  %3296 = vmatmul.f32.vlgmr.msrb.gmra.mxu1 %v3107_v22  ;;  %3336 = vmatmul.f32.vlgmr.msrb.gmra.mxu3 %v3107_v22  ;;  %v3111_v24 = vmul.f32 %v3594_v61, %v3107_v22 }
 0x695   :  { %v3830_v2 = vpop.eup %3829 }
 0x696   :  { %v3210_v51 = vmul.f32 %v3830_v2, %v3206_v23  ;;  %3831 = vrcp.f32 %v3208_v27  ;;  %v8266_v60 = vadd.f32 %v3111_v24, %v8037_v62  ;;  %vm3215_vm12 = vweird.f32 %v3830_v2 }
 0x697   :  { %3833 = vtanh.f32 %v3196_v52  ;;  %v3237_v62 = vsel %vm3234_vm13, %v3236_v25, %v3232_v35  ;;  %vm3216_vm15 = vmor %vm3214_vm14, %vm3215_vm12  ;;  %v3250_v29 = vand.u32 2147483648, %v3208_v27  ;;  %vm3244_vm2 = vweird.f32 %v3208_v27 }
 0x698   :  { %v3211_v47 = vsub.f32 1.0, %v3210_v51  ;;  %v3255_v37 = vmul.f32 %v3237_v62, %v8060_v8  ;;  %v3248_v30 = vand.u32 2147483647, %v3208_v27 }
 0x699   :  { %v3251_v38 = vor.u32 1.1754944e-38, %v3250_v29 }
 0x69a   :  { %v3212_v46 = vmul.f32 %v3830_v2, %v3211_v47  ;;  %vm3249_vm4 = vcmp.eq.f32.partialorder %v3248_v30, 8.507059e+37 }
 0x69c   :  { %v3832_v50 = vpop.eup %3831  ;;  %v3213_v63 = vadd.f32 %v3830_v2, %v3212_v46  ;;  %3376 = vmatmul.f32.vlgmr.msra.gmra.mxu1 %v3107_v22  ;;  %3416 = vmatmul.f32.vlgmr.msra.gmra.mxu3 %v3107_v22 }
 0x69d   :  { %v3240_v40 = vmul.f32 %v3832_v50, %v3208_v27  ;;  %v3834_v18 = vpop.eup %3833  ;;  %vm3245_vm1 = vweird.f32 %v3832_v50 }
 0x69e   :  { %v3217_v17 = vsel %vm3216_vm15, %v3830_v2, %v3213_v63  ;;  %vm3246_vm3 = vmor %vm3244_vm2, %vm3245_vm1  ;;  %vm3495_vm1 = vcmask 7168  }
 0x69f   :  { %v3222_v15 = vsel %vm3219_vm0, %v3221_v45, %v3217_v17  ;;  %v3241_v26 = vsub.f32 1.0, %v3240_v40 }
 0x6a0   :  { %v3256_v36 = vmul.f32 %v3834_v18, %v3222_v15 }
 0x6a1   :  { %v3242_v54 = vmul.f32 %v3832_v50, %v3241_v26 }
 0x6a2   :  { %v3257_v49 = vadd.f32 %v3256_v36, %v3255_v37 }
 0x6a3   :  { %v3243_v9 = vadd.f32 %v3832_v50, %v3242_v54 }
 0x6a4   :  { %3835 = vtanh.f32 %v3257_v49 }
 0x6a5   :  { %v3247_v7 = vsel %vm3246_vm3, %v3832_v50, %v3243_v9 }
 0x6a6   :  { %v3252_v28 = vsel %vm3249_vm4, %v3251_v38, %v3247_v7  ;;  %v3595_v38 = vld [vmem:[%s8290_s6 + $0x7] ss:$0 sm:$0xff] }
 0x6aa   :  { %v3836_v56 = vpop.eup %3835 }
 0x6ab   :  { %v3259_v20 = vmul.f32 %v3836_v56, %v3252_v28 }
 0x6ad   :  { %3276 = vmatmul.f32.vlgmr.msrb.gmra.mxu0 %v3259_v20  ;;  %3316 = vmatmul.f32.vlgmr.msrb.gmra.mxu2 %v3259_v20 }
 0x6b5   :  { %3356 = vmatmul.f32.vlgmr.msra.gmra.mxu0 %v3259_v20  ;;  %3396 = vmatmul.f32.vlgmr.msra.gmra.mxu2 %v3259_v20 }
 0x711   :  { %v3297_v8 = vpop.f32.mrf.mxu1 }
 0x717   :  { %v3337_v44 = vpop.f32.mrf.mxu3 }
 0x719   :  { %v3377_v31 = vpop.f32.mrf.mxu1 }
 0x71f   :  { %v3417_v27 = vpop.f32.mrf.mxu3 }
 0x72a   :  { %v3277_v34 = vpop.f32.mrf.mxu0 }
 0x72b   :  { %v3278_v33 = vadd.f32 %v3277_v34, %v9876_v11  ;;  %v3596_v34 = vld [vmem:[#allocation2] ss:$0 sm:$0xff] }
 0x72d   :  { %v3298_v21 = vadd.f32 %v3297_v8, %v3278_v33 }
 0x72f   :  { %v3580_v57 = vmul.f32 -1.442695, %v3298_v21 }
 0x730   :  { %v3317_v10 = vpop.f32.mrf.mxu2 }
 0x731   :  { %3837 = vpow2.f32 %v3580_v57  ;;  %v3318_v13 = vadd.f32 %v3317_v10, %v9877_v5 }
 0x732   :  { %v3357_v19 = vpop.f32.mrf.mxu0 }
 0x733   :  { %v3338_v41 = vadd.f32 %v3337_v44, %v3318_v13  ;;  %v3358_v23 = vadd.f32 %v3357_v19, %v9880_v39 }
 0x735   :  { %v3581_v53 = vmul.f32 -1.442695, %v3338_v41  ;;  %v3378_v42 = vadd.f32 %v3377_v31, %v3358_v23 }
 0x737   :  { %v3838_v61 = vpop.eup %3837  ;;  %3839 = vpow2.f32 %v3581_v53  ;;  %v3582_v6 = vmul.f32 -1.442695, %v3378_v42 }
 0x738   :  { %v3429_v16 = vadd.f32 1.0, %v3838_v61  ;;  %v3397_v22 = vpop.f32.mrf.mxu2 }
 0x739   :  { %3841 = vpow2.f32 %v3582_v6  ;;  %v3398_v39 = vadd.f32 %v3397_v22, %v9881_v43 }
 0x73a   :  { %3843 = vrcp.f32 %v3429_v16  ;;  %v3443_v59 = vand.u32 2147483648, %v3429_v16  ;;  %vm3437_vm6 = vweird.f32 %v3429_v16  ;;  %v3441_v55 = vand.u32 2147483647, %v3429_v16 }
 0x73b   :  { %v3418_v52 = vadd.f32 %v3417_v27, %v3398_v39 }
 0x73c   :  { %v3444_v50 = vor.u32 1.1754944e-38, %v3443_v59  ;;  %vm3442_vm10 = vcmp.eq.f32.partialorder %v3441_v55, 8.507059e+37 }
 0x73d   :  { %v3840_v11 = vpop.eup %3839 }
 0x73e   :  { %v3430_v1 = vadd.f32 1.0, %v3840_v11 }
 0x73f   :  { %v3842_v58 = vpop.eup %3841 }
 0x740   :  { %v3844_v0 = vpop.eup %3843  ;;  %3845 = vrcp.f32 %v3430_v1  ;;  %v3431_v5 = vadd.f32 1.0, %v3842_v58  ;;  %v3458_v46 = vand.u32 2147483648, %v3430_v1  ;;  %v3456_v25 = vand.u32 2147483647, %v3430_v1 }
 0x741   :  { %v3433_v14 = vmul.f32 %v3844_v0, %v3429_v16  ;;  %vm3438_vm5 = vweird.f32 %v3844_v0  ;;  %vm3452_vm9 = vweird.f32 %v3430_v1 }
 0x742   :  { %3847 = vrcp.f32 %v3431_v5  ;;  %vm3439_vm7 = vmor %vm3437_vm6, %vm3438_vm5  ;;  %v3459_v45 = vor.u32 1.1754944e-38, %v3458_v46  ;;  %vm3457_vm12 = vcmp.eq.f32.partialorder %v3456_v25, 8.507059e+37  ;;  %v3473_v9 = vand.u32 2147483648, %v3431_v5 }
 0x743   :  { %v3434_v3 = vsub.f32 1.0, %v3433_v14  ;;  %3849 = vtanh.f32 %v3418_v52  ;;  %vm3467_vm14 = vweird.f32 %v3431_v5  ;;  %v3471_v29 = vand.u32 2147483647, %v3431_v5 }
 0x744   :  { %v3474_v7 = vor.u32 1.1754944e-38, %v3473_v9 }
 0x745   :  { %v3435_v24 = vmul.f32 %v3844_v0, %v3434_v3  ;;  %vm3472_vm0 = vcmp.eq.f32.partialorder %v3471_v29, 8.507059e+37 }
 0x746   :  { %v3846_v2 = vpop.eup %3845 }
 0x747   :  { %v3448_v48 = vmul.f32 %v3846_v2, %v3430_v1  ;;  %v3436_v51 = vadd.f32 %v3844_v0, %v3435_v24  ;;  %vm3453_vm8 = vweird.f32 %v3846_v2 }
 0x748   :  { %v3848_v32 = vpop.eup %3847  ;;  %vm3454_vm11 = vmor %vm3452_vm9, %vm3453_vm8 }
 0x749   :  { %v3449_v47 = vsub.f32 1.0, %v3448_v48  ;;  %v3463_v35 = vmul.f32 %v3848_v32, %v3431_v5  ;;  %v3440_v43 = vsel %vm3439_vm7, %v3844_v0, %v3436_v51  ;;  %v3850_v18 = vpop.eup %3849  ;;  %vm3468_vm13 = vweird.f32 %v3848_v32 }
 0x74a   :  { %v3445_v40 = vsel %vm3442_vm10, %v3444_v50, %v3440_v43  ;;  %vm3469_vm15 = vmor %vm3467_vm14, %vm3468_vm13 }
 0x74b   :  { %v3450_v12 = vmul.f32 %v3846_v2, %v3449_v47  ;;  %v3464_v63 = vsub.f32 1.0, %v3463_v35  ;;  %v3479_v37 = vmul.f32 %v3850_v18, %v3445_v40 }
 0x74d   :  { %v3451_v62 = vadd.f32 %v3846_v2, %v3450_v12  ;;  %v3465_v26 = vmul.f32 %v3848_v32, %v3464_v63 }
 0x74f   :  { %v3455_v17 = vsel %vm3454_vm11, %v3846_v2, %v3451_v62  ;;  %v3466_v49 = vadd.f32 %v3848_v32, %v3465_v26 }
 0x750   :  { %v3460_v15 = vsel %vm3457_vm12, %v3459_v45, %v3455_v17 }
 0x751   :  { %v3478_v36 = vmul.f32 %v3460_v15, %v8248_v4  ;;  %v3470_v30 = vsel %vm3469_vm15, %v3848_v32, %v3466_v49 }
 0x752   :  { %v3475_v28 = vsel %vm3472_vm0, %v3474_v7, %v3470_v30 }
 0x753   :  { %v3480_v54 = vadd.f32 %v3479_v37, %v3478_v36 }
 0x755   :  { %3851 = vtanh.f32 %v3480_v54 }
 0x75b   :  { %v3852_v56 = vpop.eup %3851 }
 0x75c   :  { %v3482_v20 = vmul.f32 %v3852_v56, %v3475_v28 }
 0x75e   :  { %v3486_v8 = vmul.f32 %v3595_v38, %v3482_v20 }
 0x760   :  { %v3487_v4 = vadd.f32 %v3486_v8, %v8266_v60 }
 0x762   :  { %3488 = vadd.xlane.f32.xlu0 %v3487_v4 }
 0x7d5   :  { %v3489_v33 = vpop.xlane.xlu0 %3488 }
 0x7d6   :  { %v3494_v21 = vadd.f32 %v3596_v34, %v3489_v33 }
 0x7d8   :  { %3496 = vst.msk [vmem:[%s8292_s8] sm:$0xff] %vm3495_vm1, %v3494_v21 }
 0x7d9   :  { %3501 = vsyncpa [#allocation4], 1 }
 0x7da   :  { %3502 = vsyncpa [#allocation6], 1 }

</bundles_post_ra>
